<compile_context>
chip_gen: v6e
topology: v6e:2x2x1
jax: 0.10.0
libtpu: 0.0.40
codegen_flags: <defaults>
</compile_context>

<pallas_src>
import functools

import jax
import jax.numpy as jnp
import numpy as np
from jax.experimental import pallas as pl
from jax.experimental.pallas import tpu as pltpu


def _round_up(x, m):
    return ((x + m - 1) // m) * m


# ----------------------------------------------------------------------------
# Constant "window" matrix for a stride-1 'same' conv:
#   A[t*HW + p, q] = 1  iff input position q feeds output position p at tap t,
#   else 0 (out-of-bounds taps -> all-zero row == zero padding).
#   window_t = A[t*HW:(t+1)*HW] @ x    for x of shape (HW, C).
# ----------------------------------------------------------------------------
def build_window_matrix(H, W, ksize):
    P = ksize // 2
    HW = H * W
    A = np.zeros((ksize * ksize * HW, HW), np.float32)
    for kh in range(ksize):
        for kw in range(ksize):
            t = kh * ksize + kw
            for h in range(H):
                for w in range(W):
                    ih, iw = h + kh - P, w + kw - P
                    if 0 <= ih < H and 0 <= iw < W:
                        A[t * HW + h * W + w, ih * W + iw] = 1.0
    return A


# ----------------------------------------------------------------------------
# Kernel 1: single-step GEMM + bias + optional ReLU (the two stride-2 convs)
# ----------------------------------------------------------------------------
def _matmul_bias_act_kernel(x_ref, w_ref, b_ref, o_ref, *, relu):
    out = jnp.dot(x_ref[...], w_ref[...], preferred_element_type=jnp.float32)
    out = out + b_ref[...]
    if relu:
        out = jnp.maximum(out, 0.0)
    o_ref[...] = out.astype(o_ref.dtype)


def matmul_bias_act(x, w_packed, b_packed, *, relu, out_dtype):
    """(M,K) @ (K,Np) + b (+ReLU).  Single K step (K un-tiled, per perf review);
    bf16 operands, f32 accumulation + epilogue; Np is a multiple of 128 so the
    output store is lane-dense."""
    M, K = x.shape
    K2, Np = w_packed.shape
    assert K == K2 and Np % 128 == 0
    tm = min(256, _round_up(M, 8))
    Mp = _round_up(M, tm)
    tn = 128
    xp = jnp.pad(x, ((0, Mp - M), (0, 0))).astype(jnp.bfloat16)

    blk_bytes = (tm * K * 2 + K * tn * 2 + tn * 4
                 + tm * tn * jnp.dtype(out_dtype).itemsize)
    vmem_limit = int(2 * blk_bytes + 8 * 1024 * 1024)

    out = pl.pallas_call(
        functools.partial(_matmul_bias_act_kernel, relu=relu),
        out_shape=jax.ShapeDtypeStruct((Mp, Np), out_dtype),
        grid_spec=pltpu.PrefetchScalarGridSpec(
            num_scalar_prefetch=0,
            grid=(Mp // tm, Np // tn),
            in_specs=[
                pl.BlockSpec((tm, K), lambda i, j: (i, 0)),
                pl.BlockSpec((K, tn), lambda i, j: (0, j)),
                pl.BlockSpec((1, tn), lambda i, j: (0, j)),
            ],
            out_specs=pl.BlockSpec((tm, tn), lambda i, j: (i, j)),
        ),
        compiler_params=pltpu.CompilerParams(
            dimension_semantics=("parallel", "parallel"),
            vmem_limit_bytes=vmem_limit,
        ),
    )(xp, w_packed, b_packed)
    return out[:M]


# ----------------------------------------------------------------------------
# Kernel 2: the fused 4-residual-block stack.
#   grid = (batch, block).  One residual block per grid step; the activation
#   lives in h_scr across the block axis (init at block 0 from h_in).
# ----------------------------------------------------------------------------
def _fused_blocks_kernel(h_in_ref, a_ref, w_ref, b_ref, g_ref, be_ref,
                         o_ref, h_scr, z_scr, *, hw, taps, c_true, eps):
    blk = pl.program_id(1)
    cp = h_scr.shape[-1]

    @pl.when(blk == 0)
    def _():
        h_scr[...] = h_in_ref[0]

    h0 = h_scr[...]                      # (HW, Cp) f32 block input / residual
    a = a_ref[...]                       # (taps*HW, HW) 0/1 selection matrix, bf16

    def conv7(x_f32, conv_idx, relu):
        # Window extraction for all 49 taps: one MXU matmul against the constant
        # selection matrix (exact: each output element copies one input element).
        z = jnp.dot(a, x_f32.astype(jnp.bfloat16),
                    preferred_element_type=jnp.float32)
        z_scr[...] = z.astype(jnp.bfloat16)      # rows ordered (tap, position)
        acc = jnp.zeros((hw, cp), jnp.float32)
        for t in range(taps):                    # 49 per-tap MXU products, f32 acc
            row0 = (conv_idx * taps + t) * cp
            acc = acc + jnp.dot(z_scr[t * hw:(t + 1) * hw, :],
                                w_ref[0, row0:row0 + cp, :],
                                preferred_element_type=jnp.float32)
        acc = acc + b_ref[0, conv_idx:conv_idx + 1, :]
        if relu:
            acc = jnp.maximum(acc, 0.0)
        return acc

    t1 = conv7(h0, 0, relu=True)
    y = conv7(t1, 1, relu=False)

    # LayerNorm over (C,H,W) per sample.  Explicitly masked to the real channels
    # so the zero-padded columns can never corrupt the statistics; two-pass
    # centered variance (no E[x^2]-mean^2 cancellation).
    mask = jax.lax.broadcasted_iota(jnp.int32, (hw, cp), 1) < c_true
    denom = float(hw * c_true)
    mean = jnp.sum(jnp.where(mask, y, 0.0)) / denom
    cz = jnp.where(mask, y - mean, 0.0)
    var = jnp.sum(cz * cz) / denom
    yn = cz * jax.lax.rsqrt(var + eps)
    out = jnp.where(mask, yn * g_ref[0] + be_ref[0] + h0, 0.0)

    h_scr[...] = out                     # feeds the next block
    o_ref[0] = out.astype(o_ref.dtype)


def fused_blocks(h_in, A, w_stack, b_stack, g_stack, be_stack, *, c_true, eps=1e-5):
    B, HW, CP = h_in.shape
    NB = w_stack.shape[0]
    taps_hw, hw2 = A.shape
    assert hw2 == HW and taps_hw % HW == 0
    TAPS = taps_hw // HW
    assert HW % 8 == 0 and CP % 128 == 0
    assert w_stack.shape[1] == 2 * TAPS * CP and w_stack.shape[2] == CP

    # Scoped-VMEM budget from the actual block footprint (double-buffered inputs).
    blk_bytes = (w_stack.shape[1] * CP * w_stack.dtype.itemsize
                 + A.size * A.dtype.itemsize
                 + 4 * HW * CP * 4 + 2 * CP * 4)
    scratch_bytes = HW * CP * 4 + TAPS * HW * CP * 2
    vmem_limit = int(2 * blk_bytes + scratch_bytes + 8 * 1024 * 1024)

    kern = functools.partial(_fused_blocks_kernel, hw=HW, taps=TAPS,
                             c_true=c_true, eps=eps)
    return pl.pallas_call(
        kern,
        out_shape=jax.ShapeDtypeStruct((B, HW, CP), jnp.float32),
        grid_spec=pltpu.PrefetchScalarGridSpec(
            num_scalar_prefetch=0,
            grid=(B, NB),
            in_specs=[
                pl.BlockSpec((1, HW, CP), lambda b, k: (b, 0, 0)),            # h_in
                pl.BlockSpec((TAPS * HW, HW), lambda b, k: (0, 0)),           # A
                pl.BlockSpec((1, 2 * TAPS * CP, CP), lambda b, k: (k, 0, 0)),  # weights
                pl.BlockSpec((1, 2, CP), lambda b, k: (k, 0, 0)),             # biases
                pl.BlockSpec((1, HW, CP), lambda b, k: (k, 0, 0)),            # gamma
                pl.BlockSpec((1, HW, CP), lambda b, k: (k, 0, 0)),            # beta
            ],
            out_specs=pl.BlockSpec((1, HW, CP), lambda b, k: (b, 0, 0)),
            scratch_shapes=[
                pltpu.VMEM((HW, CP), jnp.float32),           # resident activation
                pltpu.VMEM((TAPS * HW, CP), jnp.bfloat16),   # per-conv tap windows
            ],
        ),
        compiler_params=pltpu.CompilerParams(
            dimension_semantics=("parallel", "arbitrary"),
            vmem_limit_bytes=vmem_limit,
        ),
    )(h_in, A, w_stack, b_stack, g_stack, be_stack)


# ----------------------------------------------------------------------------
# Plain-JAX glue: im2col for the two stride-2 convs, pixel shuffle
# ----------------------------------------------------------------------------
def im2col_nhwc(x, kh, kw, stride, pad):
    """NHWC patches with K ordered (kh, kw, Cin)."""
    B, H, W, C = x.shape
    OH = (H + 2 * pad - kh) // stride + 1
    OW = (W + 2 * pad - kw) // stride + 1
    xp = jnp.pad(x, ((0, 0), (pad, pad), (pad, pad), (0, 0)))
    taps = []
    for i in range(kh):
        for j in range(kw):
            taps.append(xp[:, i:i + stride * OH:stride, j:j + stride * OW:stride, :])
    patches = jnp.concatenate(taps, axis=-1)
    return patches.reshape(B * OH * OW, kh * kw * C), OH, OW


def pixel_shuffle_nhwc(x, r):
    B, H, W, C = x.shape
    Cout = C // (r * r)
    x = x.reshape(B, H, W, Cout, r, r)
    x = x.transpose(0, 1, 4, 2, 5, 3)
    return x.reshape(B, H * r, W * r, Cout)


def pixel_shuffle_nchw(x, r):
    B, C, H, W = x.shape
    Cout = C // (r * r)
    x = x.reshape(B, Cout, r, r, H, W)
    x = x.transpose(0, 1, 4, 2, 5, 3)
    return x.reshape(B, Cout, H * r, W * r)


# ----------------------------------------------------------------------------
# Parameters: raw (PyTorch-layout) init + one-time packing into kernel layouts
# ----------------------------------------------------------------------------
def init_params(key, mesh_size, inchannels=8):
    cmesh = [mesh_size[0] // 4, mesh_size[1] // 4]
    keys = jax.random.split(key, 20)
    ki = iter(keys)

    def conv_init(k, cout, cin, kh, kw):
        k1, k2 = jax.random.split(k)
        bound = 1.0 / np.sqrt(cin * kh * kw)
        w = jax.random.uniform(k1, (cout, cin, kh, kw), jnp.float32, -bound, bound)
        b = jax.random.uniform(k2, (cout,), jnp.float32, -bound, bound)
        return w, b

    params = {}
    params["c1w"], params["c1b"] = conv_init(next(ki), 24, inchannels, 6, 6)
    params["c2w"], params["c2b"] = conv_init(next(ki), 96, 24, 6, 6)
    blocks = []
    for _ in range(4):
        w1, b1 = conv_init(next(ki), 96, 96, 7, 7)
        w2, b2 = conv_init(next(ki), 96, 96, 7, 7)
        kg, kb = jax.random.split(next(ki))
        blocks.append(dict(
            w1=w1, b1=b1, w2=w2, b2=b2,
            # PyTorch inits LN affine to ones/zeros; perturb slightly so the test
            # actually exercises the gamma/beta layout path of the fused kernel.
            gamma=1.0 + 0.05 * jax.random.normal(kg, (96, cmesh[0], cmesh[1]), jnp.float32),
            beta=0.05 * jax.random.normal(kb, (96, cmesh[0], cmesh[1]), jnp.float32),
        ))
    params["blocks"] = blocks
    params["cow"], params["cob"] = conv_init(next(ki), 3, 6, 5, 5)
    params["rw"] = jax.random.normal(next(ki), (1, 2, mesh_size[0], 1), jnp.float32)
    params["cw"] = jax.random.normal(next(ki), (1, 2, 1, mesh_size[1]), jnp.float32)
    return params


def pack_params(params, cmesh):
    """One-time repacking of every weight-side constant into kernel layout
    (done OUTSIDE the jitted forward, per perf review item 3)."""
    CP = 128
    KS = 7
    TAPS = KS * KS
    H, W = cmesh
    HW = H * W

    def pack_conv_gemm(w, b):
        cout, cin, kh, kw = w.shape
        wm = w.transpose(2, 3, 1, 0).reshape(kh * kw * cin, cout)   # rows (kh,kw,cin)
        wm = jnp.pad(wm, ((0, 0), (0, CP - cout))).astype(jnp.bfloat16)
        bp = jnp.pad(b.reshape(1, cout), ((0, 0), (0, CP - cout))).astype(jnp.float32)
        return wm, bp

    packed = {}
    packed["c1w"], packed["c1b"] = pack_conv_gemm(params["c1w"], params["c1b"])
    packed["c2w"], packed["c2b"] = pack_conv_gemm(params["c2w"], params["c2b"])

    w_blocks, b_blocks, g_blocks, be_blocks = [], [], [], []
    for blk in params["blocks"]:
        per_conv_w, per_conv_b = [], []
        for wk, bk in (("w1", "b1"), ("w2", "b2")):
            w = blk[wk]                                             # (96,96,7,7) OIHW
            cout, cin, _, _ = w.shape
            wt = w.transpose(2, 3, 1, 0).reshape(TAPS, cin, cout)   # (tap, ci, co)
            wt = jnp.pad(wt, ((0, 0), (0, CP - cin), (0, CP - cout)))
            per_conv_w.append(wt.reshape(TAPS * CP, CP))
            per_conv_b.append(jnp.pad(blk[bk], (0, CP - cout)))
        w_blocks.append(jnp.concatenate(per_conv_w, axis=0).astype(jnp.bfloat16))
        b_blocks.append(jnp.stack(per_conv_b).astype(jnp.float32))  # (2, CP)
        g = blk["gamma"].transpose(1, 2, 0).reshape(HW, -1)
        be = blk["beta"].transpose(1, 2, 0).reshape(HW, -1)
        g_blocks.append(jnp.pad(g, ((0, 0), (0, CP - g.shape[1]))).astype(jnp.float32))
        be_blocks.append(jnp.pad(be, ((0, 0), (0, CP - be.shape[1]))).astype(jnp.float32))

    packed["blk_w"] = jnp.stack(w_blocks)                           # (4, 2*49*128, 128)
    packed["blk_b"] = jnp.stack(b_blocks)                           # (4, 2, 128)
    packed["blk_g"] = jnp.stack(g_blocks)                           # (4, HW, 128)
    packed["blk_be"] = jnp.stack(be_blocks)                         # (4, HW, 128)
    packed["A"] = jnp.asarray(build_window_matrix(H, W, KS), jnp.bfloat16)

    packed["cow"] = params["cow"].transpose(2, 3, 1, 0)             # HWIO for lax.conv
    packed["cob"] = params["cob"]
    packed["rw"] = params["rw"]
    packed["cw"] = params["cw"]
    return packed


# ----------------------------------------------------------------------------
# Forward
# ----------------------------------------------------------------------------
def cnn2d_ns_rich_forward(packed, u0, mu, pdeu):
    # (mu * rw) @ cw : tiny rank-1 product, plain jnp (fused by XLA into the concat).
    prod = jnp.matmul(mu * packed["rw"], packed["cw"])              # (B,2,H,W)
    x = jnp.concatenate([u0, prod, pdeu], axis=1)                   # (B,8,H,W) NCHW
    x = x.transpose(0, 2, 3, 1)                                     # -> NHWC once
    B = x.shape[0]

    # conv1: 8->24, 6x6, stride 2, pad 2, ReLU (bf16 out: it only feeds a GEMM)
    p1, oh1, ow1 = im2col_nhwc(x, 6, 6, 2, 2)
    h = matmul_bias_act(p1, packed["c1w"], packed["c1b"], relu=True,
                        out_dtype=jnp.bfloat16)
    h = h[:, :24].reshape(B, oh1, ow1, 24)

    # conv2: 24->96, 6x6, stride 2, pad 2, ReLU (f32 out: residual/LayerNorm path)
    p2, oh2, ow2 = im2col_nhwc(h, 6, 6, 2, 2)
    h = matmul_bias_act(p2, packed["c2w"], packed["c2b"], relu=True,
                        out_dtype=jnp.float32)
    cp = packed["c2w"].shape[1]
    h_in = h.reshape(B, oh2 * ow2, cp)          # padded channel columns are exactly 0

    # 4 fused residual blocks: one pallas_call, activation resident in VMEM.
    hb = fused_blocks(h_in, packed["A"], packed["blk_w"], packed["blk_b"],
                      packed["blk_g"], packed["blk_be"], c_true=96)
    h = hb[:, :, :96].reshape(B, oh2, ow2, 96)

    # PixelShuffle(4) + final 5x5 conv (6->3): layout glue + tiny GEMM -> XLA
    # (perf review: padding Cout 3->128 in Pallas wastes ~97% of the MXU).
    h = pixel_shuffle_nhwc(h, 4)
    out = jax.lax.conv_general_dilated(
        h, packed["cow"], (1, 1), [(2, 2), (2, 2)],
        dimension_numbers=("NHWC", "HWIO", "NHWC"),
        precision=jax.lax.Precision.HIGHEST)
    out = out + packed["cob"].reshape(1, 1, 1, -1)
    return out.transpose(0, 3, 1, 2)                                # -> NCHW at exit


# ----------------------------------------------------------------------------
# Pure-JAX f32 reference (correctness check only)
# ----------------------------------------------------------------------------
def forward_ref(params, u0, mu, pdeu):
    def conv(x, w, b, s, p, relu):
        y = jax.lax.conv_general_dilated(
            x, w, (s, s), [(p, p), (p, p)],
            dimension_numbers=("NCHW", "OIHW", "NCHW"),
            precision=jax.lax.Precision.HIGHEST)
        y = y + b.reshape(1, -1, 1, 1)
        return jnp.maximum(y, 0.0) if relu else y

    prod = (mu * params["rw"]) @ params["cw"]
    x = jnp.concatenate([u0, prod, pdeu], axis=1)
    h = conv(x, params["c1w"], params["c1b"], 2, 2, True)
    h = conv(h, params["c2w"], params["c2b"], 2, 2, True)
    for blk in params["blocks"]:
        t = conv(h, blk["w1"], blk["b1"], 1, 3, True)
        t = conv(t, blk["w2"], blk["b2"], 1, 3, False)
        Bb, C, Hh, Ww = t.shape
        tf = t.reshape(Bb, -1)
        mean = tf.mean(-1, keepdims=True)
        var = ((tf - mean) ** 2).mean(-1, keepdims=True)
        tn = ((tf - mean) / jnp.sqrt(var + 1e-5)).reshape(Bb, C, Hh, Ww)
        h = tn * blk["gamma"][None] + blk["beta"][None] + h
    h = pixel_shuffle_nchw(h, 4)
    return conv(h, params["cow"], params["cob"], 1, 2, False)


# ----------------------------------------------------------------------------
if __name__ == "__main__":
    key = jax.random.PRNGKey(0)
    mesh_size = [16, 16]
    cmesh = [mesh_size[0] // 4, mesh_size[1] // 4]
    B = 2
    k_p, k_u, k_m, k_d = jax.random.split(key, 4)

    params = init_params(k_p, mesh_size, inchannels=8)
    packed = pack_params(params, cmesh)                      # one-time weight packing

    u0 = jax.random.normal(k_u, (B, 3, mesh_size[0], mesh_size[1]), jnp.float32)
    pdeu = jax.random.normal(k_d, (B, 3, mesh_size[0], mesh_size[1]), jnp.float32)
    mu = jax.random.uniform(k_m, (B, 1, 1, 1), jnp.float32, 0.5, 1.5)

    fwd = jax.jit(cnn2d_ns_rich_forward)
    out = jax.block_until_ready(fwd(packed, u0, mu, pdeu))

    assert out.shape == (B, 3, mesh_size[0], mesh_size[1]), out.shape
    ref = forward_ref(params, u0, mu, pdeu)
    # Tolerance accounts for bf16 MXU operands (f32 accumulation, f32 LayerNorm /
    # residual epilogues) vs. the all-f32 HIGHEST-precision reference.
    np.testing.assert_allclose(np.asarray(out), np.asarray(ref), rtol=5e-2, atol=5e-2)

    print("KERNEL_OK")
</pallas_src>

<mosaic_0001>
module attributes {stable_mosaic.version = 11 : i64} {
  func.func @_matmul_bias_act_kernel(%arg0: i32, %arg1: i32, %arg2: memref<128x288xbf16, #tpu.memory_space<vmem>>, %arg3: memref<288x128xbf16, #tpu.memory_space<vmem>>, %arg4: memref<1x128xf32, #tpu.memory_space<vmem>>, %arg5: memref<128x128xbf16, #tpu.memory_space<vmem>>) attributes {dimension_semantics = [#tpu.dimension_semantics<parallel>, #tpu.dimension_semantics<parallel>], iteration_bounds = array<i64: 1, 1>, scalar_prefetch = 0 : i64, scratch_operands = 0 : i64, tpu.core_type = #tpu.core_type<tc>, window_params = [{transform_indices = @transform_0, window_bounds = array<i64: 128, 288>}, {transform_indices = @transform_1, window_bounds = array<i64: 288, 128>}, {transform_indices = @transform_2, window_bounds = array<i64: 1, 128>}, {transform_indices = @transform_3, window_bounds = array<i64: 128, 128>}]} {
    %c0 = arith.constant 0 : index
    %c0_0 = arith.constant 0 : index
    %0 = vector.load %arg2[%c0, %c0_0] : memref<128x288xbf16, #tpu.memory_space<vmem>>, vector<128x288xbf16>
    %c0_1 = arith.constant 0 : index
    %c0_2 = arith.constant 0 : index
    %1 = vector.load %arg3[%c0_1, %c0_2] : memref<288x128xbf16, #tpu.memory_space<vmem>>, vector<288x128xbf16>
    %cst = arith.constant dense<0.000000e+00> : vector<128x128xf32>
    %2 = tpu.matmul %0, %1, %cst {dimension_numbers = #tpu.dot_dimension_numbers<[1], [0], [0], [1], [0, 0, 1, 1], [], []>} : vector<128x288xbf16>, vector<288x128xbf16>, vector<128x128xf32> -> vector<128x128xf32>
    %c0_3 = arith.constant 0 : index
    %c0_4 = arith.constant 0 : index
    %3 = vector.load %arg4[%c0_3, %c0_4] : memref<1x128xf32, #tpu.memory_space<vmem>>, vector<1x128xf32>
    %4 = vector.broadcast %3 : vector<1x128xf32> to vector<128x128xf32>
    %5 = arith.addf %2, %4 : vector<128x128xf32>
    %cst_5 = arith.constant 0.000000e+00 : f32
    %6 = vector.broadcast %cst_5 : f32 to vector<128x128xf32>
    %7 = arith.maximumf %5, %6 : vector<128x128xf32>
    %8 = arith.truncf %7 : vector<128x128xf32> to vector<128x128xbf16>
    %c0_6 = arith.constant 0 : index
    %c0_7 = arith.constant 0 : index
    %9 = vector.load %arg5[%c0_6, %c0_7] : memref<128x128xbf16, #tpu.memory_space<vmem>>, vector<128x128xbf16>
    tpu.vector_store %arg5[%c0_6, %c0_7], %8 {strides = array<i32>} : memref<128x128xbf16, #tpu.memory_space<vmem>>, vector<128x128xbf16>,
    return
  }
  func.func @transform_0(%arg0: i32, %arg1: i32) -> (i32, i32) {
    %c0_i32 = arith.constant 0 : i32
    %c0_i32_0 = arith.constant 0 : i32
    return %arg0, %c0_i32 : i32, i32
  }
  func.func @transform_1(%arg0: i32, %arg1: i32) -> (i32, i32) {
    %c0_i32 = arith.constant 0 : i32
    %c0_i32_0 = arith.constant 0 : i32
    return %c0_i32, %arg1 : i32, i32
  }
  func.func @transform_2(%arg0: i32, %arg1: i32) -> (i32, i32) {
    %c0_i32 = arith.constant 0 : i32
    %c0_i32_0 = arith.constant 0 : i32
    return %c0_i32, %arg1 : i32, i32
  }
  func.func @transform_3(%arg0: i32, %arg1: i32) -> (i32, i32) {
    %c0_i32 = arith.constant 0 : i32
    return %arg0, %arg1 : i32, i32
  }
}

module attributes {stable_mosaic.version = 11 : i64} {
  func.func @_matmul_bias_act_kernel(%arg0: i32, %arg1: i32, %arg2: memref<32x864xbf16, #tpu.memory_space<vmem>>, %arg3: memref<864x128xbf16, #tpu.memory_space<vmem>>, %arg4: memref<1x128xf32, #tpu.memory_space<vmem>>, %arg5: memref<32x128xf32, #tpu.memory_space<vmem>>) attributes {dimension_semantics = [#tpu.dimension_semantics<parallel>, #tpu.dimension_semantics<parallel>], iteration_bounds = array<i64: 1, 1>, scalar_prefetch = 0 : i64, scratch_operands = 0 : i64, tpu.core_type = #tpu.core_type<tc>, window_params = [{transform_indices = @transform_0, window_bounds = array<i64: 32, 864>}, {transform_indices = @transform_1, window_bounds = array<i64: 864, 128>}, {transform_indices = @transform_2, window_bounds = array<i64: 1, 128>}, {transform_indices = @transform_3, window_bounds = array<i64: 32, 128>}]} {
    %c0 = arith.constant 0 : index
    %c0_0 = arith.constant 0 : index
    %0 = vector.load %arg2[%c0, %c0_0] : memref<32x864xbf16, #tpu.memory_space<vmem>>, vector<32x864xbf16>
    %c0_1 = arith.constant 0 : index
    %c0_2 = arith.constant 0 : index
    %1 = vector.load %arg3[%c0_1, %c0_2] : memref<864x128xbf16, #tpu.memory_space<vmem>>, vector<864x128xbf16>
    %cst = arith.constant dense<0.000000e+00> : vector<32x128xf32>
    %2 = tpu.matmul %0, %1, %cst {dimension_numbers = #tpu.dot_dimension_numbers<[1], [0], [0], [1], [0, 0, 1, 1], [], []>} : vector<32x864xbf16>, vector<864x128xbf16>, vector<32x128xf32> -> vector<32x128xf32>
    %c0_3 = arith.constant 0 : index
    %c0_4 = arith.constant 0 : index
    %3 = vector.load %arg4[%c0_3, %c0_4] : memref<1x128xf32, #tpu.memory_space<vmem>>, vector<1x128xf32>
    %4 = vector.broadcast %3 : vector<1x128xf32> to vector<32x128xf32>
    %5 = arith.addf %2, %4 : vector<32x128xf32>
    %cst_5 = arith.constant 0.000000e+00 : f32
    %6 = vector.broadcast %cst_5 : f32 to vector<32x128xf32>
    %7 = arith.maximumf %5, %6 : vector<32x128xf32>
    %c0_6 = arith.constant 0 : index
    %c0_7 = arith.constant 0 : index
    %8 = vector.load %arg5[%c0_6, %c0_7] : memref<32x128xf32, #tpu.memory_space<vmem>>, vector<32x128xf32>
    tpu.vector_store %arg5[%c0_6, %c0_7], %7 {strides = array<i32>} : memref<32x128xf32, #tpu.memory_space<vmem>>, vector<32x128xf32>,
    return
  }
  func.func @transform_0(%arg0: i32, %arg1: i32) -> (i32, i32) {
    %c0_i32 = arith.constant 0 : i32
    %c0_i32_0 = arith.constant 0 : i32
    return %arg0, %c0_i32 : i32, i32
  }
  func.func @transform_1(%arg0: i32, %arg1: i32) -> (i32, i32) {
    %c0_i32 = arith.constant 0 : i32
    %c0_i32_0 = arith.constant 0 : i32
    return %c0_i32, %arg1 : i32, i32
  }
  func.func @transform_2(%arg0: i32, %arg1: i32) -> (i32, i32) {
    %c0_i32 = arith.constant 0 : i32
    %c0_i32_0 = arith.constant 0 : i32
    return %c0_i32, %arg1 : i32, i32
  }
  func.func @transform_3(%arg0: i32, %arg1: i32) -> (i32, i32) {
    %c0_i32 = arith.constant 0 : i32
    return %arg0, %arg1 : i32, i32
  }
}

module attributes {stable_mosaic.version = 11 : i64} {
  func.func @_fused_blocks_kernel(%arg0: i32, %arg1: i32, %arg2: memref<1x16x128xf32, #tpu.memory_space<vmem>>, %arg3: memref<784x16xbf16, #tpu.memory_space<vmem>>, %arg4: memref<1x12544x128xbf16, #tpu.memory_space<vmem>>, %arg5: memref<1x2x128xf32, #tpu.memory_space<vmem>>, %arg6: memref<1x16x128xf32, #tpu.memory_space<vmem>>, %arg7: memref<1x16x128xf32, #tpu.memory_space<vmem>>, %arg8: memref<1x16x128xf32, #tpu.memory_space<vmem>>, %arg9: memref<16x128xf32, #tpu.memory_space<vmem>>, %arg10: memref<784x128xbf16, #tpu.memory_space<vmem>>) attributes {dimension_semantics = [#tpu.dimension_semantics<parallel>, #tpu.dimension_semantics<arbitrary>], iteration_bounds = array<i64: 2, 4>, scalar_prefetch = 0 : i64, scratch_operands = 2 : i64, tpu.core_type = #tpu.core_type<tc>, window_params = [{transform_indices = @transform_0, window_bounds = array<i64: 1, 16, 128>}, {pipeline_mode = #tpu.pipeline_mode<synchronous>, transform_indices = @transform_1, window_bounds = array<i64: 784, 16>}, {transform_indices = @transform_2, window_bounds = array<i64: 1, 12544, 128>}, {transform_indices = @transform_3, window_bounds = array<i64: 1, 2, 128>}, {transform_indices = @transform_4, window_bounds = array<i64: 1, 16, 128>}, {transform_indices = @transform_5, window_bounds = array<i64: 1, 16, 128>}, {transform_indices = @transform_6, window_bounds = array<i64: 1, 16, 128>}]} {
    %c0_i32 = arith.constant 0 : i32
    %0 = arith.cmpi eq, %arg1, %c0_i32 : i32
    %1 = arith.extui %0 : i1 to i32
    %c0_i32_0 = arith.constant 0 : i32
    %2 = arith.cmpi ne, %1, %c0_i32_0 : i32
    scf.if %2 {
      %c0_485 = arith.constant 0 : index
      %c0_486 = arith.constant 0 : index
      %c0_487 = arith.constant 0 : index
      %552 = vector.load %arg2[%c0_485, %c0_486, %c0_487] : memref<1x16x128xf32, #tpu.memory_space<vmem>>, vector<1x16x128xf32>
      %553 = vector.shape_cast %552 : vector<1x16x128xf32> to vector<16x128xf32>
      %c0_488 = arith.constant 0 : index
      %c0_489 = arith.constant 0 : index
      %554 = vector.load %arg9[%c0_488, %c0_489] : memref<16x128xf32, #tpu.memory_space<vmem>>, vector<16x128xf32>
      tpu.vector_store %arg9[%c0_488, %c0_489], %553 {strides = array<i32>} : memref<16x128xf32, #tpu.memory_space<vmem>>, vector<16x128xf32>,
    } else {
    }
    %c0 = arith.constant 0 : index
    %c0_1 = arith.constant 0 : index
    %3 = vector.load %arg9[%c0, %c0_1] : memref<16x128xf32, #tpu.memory_space<vmem>>, vector<16x128xf32>
    %c0_2 = arith.constant 0 : index
    %c0_3 = arith.constant 0 : index
    %4 = vector.load %arg3[%c0_2, %c0_3] : memref<784x16xbf16, #tpu.memory_space<vmem>>, vector<784x16xbf16>
    %5 = arith.truncf %3 : vector<16x128xf32> to vector<16x128xbf16>
    %cst = arith.constant dense<0.000000e+00> : vector<784x128xf32>
    %6 = tpu.matmul %4, %5, %cst {dimension_numbers = #tpu.dot_dimension_numbers<[1], [0], [0], [1], [0, 0, 1, 1], [], []>} : vector<784x16xbf16>, vector<16x128xbf16>, vector<784x128xf32> -> vector<784x128xf32>
    %7 = arith.truncf %6 : vector<784x128xf32> to vector<784x128xbf16>
    %c0_4 = arith.constant 0 : index
    %c0_5 = arith.constant 0 : index
    %8 = vector.load %arg10[%c0_4, %c0_5] : memref<784x128xbf16, #tpu.memory_space<vmem>>, vector<784x128xbf16>
    tpu.vector_store %arg10[%c0_4, %c0_5], %7 {strides = array<i32>} : memref<784x128xbf16, #tpu.memory_space<vmem>>, vector<784x128xbf16>,
    %cst_6 = arith.constant 0.000000e+00 : f32
    %9 = vector.broadcast %cst_6 : f32 to vector<16x128xf32>
    %c0_7 = arith.constant 0 : index
    %c0_8 = arith.constant 0 : index
    %10 = vector.load %arg10[%c0_7, %c0_8] : memref<784x128xbf16, #tpu.memory_space<vmem>>, vector<16x128xbf16>
    %c0_9 = arith.constant 0 : index
    %c0_10 = arith.constant 0 : index
    %c0_11 = arith.constant 0 : index
    %11 = vector.load %arg4[%c0_9, %c0_10, %c0_11] : memref<1x12544x128xbf16, #tpu.memory_space<vmem>>, vector<1x128x128xbf16>
    %12 = vector.shape_cast %11 : vector<1x128x128xbf16> to vector<128x128xbf16>
    %cst_12 = arith.constant dense<0.000000e+00> : vector<16x128xf32>
    %13 = tpu.matmul %10, %12, %cst_12 {dimension_numbers = #tpu.dot_dimension_numbers<[1], [0], [0], [1], [0, 0, 1, 1], [], []>} : vector<16x128xbf16>, vector<128x128xbf16>, vector<16x128xf32> -> vector<16x128xf32>
    %14 = arith.addf %9, %13 : vector<16x128xf32>
    %c16 = arith.constant 16 : index
    %c0_13 = arith.constant 0 : index
    %15 = vector.load %arg10[%c16, %c0_13] : memref<784x128xbf16, #tpu.memory_space<vmem>>, vector<16x128xbf16>
    %c0_14 = arith.constant 0 : index
    %c128 = arith.constant 128 : index
    %c0_15 = arith.constant 0 : index
    %16 = vector.load %arg4[%c0_14, %c128, %c0_15] : memref<1x12544x128xbf16, #tpu.memory_space<vmem>>, vector<1x128x128xbf16>
    %17 = vector.shape_cast %16 : vector<1x128x128xbf16> to vector<128x128xbf16>
    %cst_16 = arith.constant dense<0.000000e+00> : vector<16x128xf32>
    %18 = tpu.matmul %15, %17, %cst_16 {dimension_numbers = #tpu.dot_dimension_numbers<[1], [0], [0], [1], [0, 0, 1, 1], [], []>} : vector<16x128xbf16>, vector<128x128xbf16>, vector<16x128xf32> -> vector<16x128xf32>
    %19 = arith.addf %14, %18 : vector<16x128xf32>
    %c32 = arith.constant 32 : index
    %c0_17 = arith.constant 0 : index
    %20 = vector.load %arg10[%c32, %c0_17] : memref<784x128xbf16, #tpu.memory_space<vmem>>, vector<16x128xbf16>
    %c0_18 = arith.constant 0 : index
    %c256 = arith.constant 256 : index
    %c0_19 = arith.constant 0 : index
    %21 = vector.load %arg4[%c0_18, %c256, %c0_19] : memref<1x12544x128xbf16, #tpu.memory_space<vmem>>, vector<1x128x128xbf16>
    %22 = vector.shape_cast %21 : vector<1x128x128xbf16> to vector<128x128xbf16>
    %cst_20 = arith.constant dense<0.000000e+00> : vector<16x128xf32>
    %23 = tpu.matmul %20, %22, %cst_20 {dimension_numbers = #tpu.dot_dimension_numbers<[1], [0], [0], [1], [0, 0, 1, 1], [], []>} : vector<16x128xbf16>, vector<128x128xbf16>, vector<16x128xf32> -> vector<16x128xf32>
    %24 = arith.addf %19, %23 : vector<16x128xf32>
    %c48 = arith.constant 48 : index
    %c0_21 = arith.constant 0 : index
    %25 = vector.load %arg10[%c48, %c0_21] : memref<784x128xbf16, #tpu.memory_space<vmem>>, vector<16x128xbf16>
    %c0_22 = arith.constant 0 : index
    %c384 = arith.constant 384 : index
    %c0_23 = arith.constant 0 : index
    %26 = vector.load %arg4[%c0_22, %c384, %c0_23] : memref<1x12544x128xbf16, #tpu.memory_space<vmem>>, vector<1x128x128xbf16>
    %27 = vector.shape_cast %26 : vector<1x128x128xbf16> to vector<128x128xbf16>
    %cst_24 = arith.constant dense<0.000000e+00> : vector<16x128xf32>
    %28 = tpu.matmul %25, %27, %cst_24 {dimension_numbers = #tpu.dot_dimension_numbers<[1], [0], [0], [1], [0, 0, 1, 1], [], []>} : vector<16x128xbf16>, vector<128x128xbf16>, vector<16x128xf32> -> vector<16x128xf32>
    %29 = arith.addf %24, %28 : vector<16x128xf32>
    %c64 = arith.constant 64 : index
    %c0_25 = arith.constant 0 : index
    %30 = vector.load %arg10[%c64, %c0_25] : memref<784x128xbf16, #tpu.memory_space<vmem>>, vector<16x128xbf16>
    %c0_26 = arith.constant 0 : index
    %c512 = arith.constant 512 : index
    %c0_27 = arith.constant 0 : index
    %31 = vector.load %arg4[%c0_26, %c512, %c0_27] : memref<1x12544x128xbf16, #tpu.memory_space<vmem>>, vector<1x128x128xbf16>
    %32 = vector.shape_cast %31 : vector<1x128x128xbf16> to vector<128x128xbf16>
    %cst_28 = arith.constant dense<0.000000e+00> : vector<16x128xf32>
    %33 = tpu.matmul %30, %32, %cst_28 {dimension_numbers = #tpu.dot_dimension_numbers<[1], [0], [0], [1], [0, 0, 1, 1], [], []>} : vector<16x128xbf16>, vector<128x128xbf16>, vector<16x128xf32> -> vector<16x128xf32>
    %34 = arith.addf %29, %33 : vector<16x128xf32>
    %c80 = arith.constant 80 : index
    %c0_29 = arith.constant 0 : index
    %35 = vector.load %arg10[%c80, %c0_29] : memref<784x128xbf16, #tpu.memory_space<vmem>>, vector<16x128xbf16>
    %c0_30 = arith.constant 0 : index
    %c640 = arith.constant 640 : index
    %c0_31 = arith.constant 0 : index
    %36 = vector.load %arg4[%c0_30, %c640, %c0_31] : memref<1x12544x128xbf16, #tpu.memory_space<vmem>>, vector<1x128x128xbf16>
    %37 = vector.shape_cast %36 : vector<1x128x128xbf16> to vector<128x128xbf16>
    %cst_32 = arith.constant dense<0.000000e+00> : vector<16x128xf32>
    %38 = tpu.matmul %35, %37, %cst_32 {dimension_numbers = #tpu.dot_dimension_numbers<[1], [0], [0], [1], [0, 0, 1, 1], [], []>} : vector<16x128xbf16>, vector<128x128xbf16>, vector<16x128xf32> -> vector<16x128xf32>
    %39 = arith.addf %34, %38 : vector<16x128xf32>
    %c96 = arith.constant 96 : index
    %c0_33 = arith.constant 0 : index
    %40 = vector.load %arg10[%c96, %c0_33] : memref<784x128xbf16, #tpu.memory_space<vmem>>, vector<16x128xbf16>
    %c0_34 = arith.constant 0 : index
    %c768 = arith.constant 768 : index
    %c0_35 = arith.constant 0 : index
    %41 = vector.load %arg4[%c0_34, %c768, %c0_35] : memref<1x12544x128xbf16, #tpu.memory_space<vmem>>, vector<1x128x128xbf16>
    %42 = vector.shape_cast %41 : vector<1x128x128xbf16> to vector<128x128xbf16>
    %cst_36 = arith.constant dense<0.000000e+00> : vector<16x128xf32>
    %43 = tpu.matmul %40, %42, %cst_36 {dimension_numbers = #tpu.dot_dimension_numbers<[1], [0], [0], [1], [0, 0, 1, 1], [], []>} : vector<16x128xbf16>, vector<128x128xbf16>, vector<16x128xf32> -> vector<16x128xf32>
    %44 = arith.addf %39, %43 : vector<16x128xf32>
    %c112 = arith.constant 112 : index
    %c0_37 = arith.constant 0 : index
    %45 = vector.load %arg10[%c112, %c0_37] : memref<784x128xbf16, #tpu.memory_space<vmem>>, vector<16x128xbf16>
    %c0_38 = arith.constant 0 : index
    %c896 = arith.constant 896 : index
    %c0_39 = arith.constant 0 : index
    %46 = vector.load %arg4[%c0_38, %c896, %c0_39] : memref<1x12544x128xbf16, #tpu.memory_space<vmem>>, vector<1x128x128xbf16>
    %47 = vector.shape_cast %46 : vector<1x128x128xbf16> to vector<128x128xbf16>
    %cst_40 = arith.constant dense<0.000000e+00> : vector<16x128xf32>
    %48 = tpu.matmul %45, %47, %cst_40 {dimension_numbers = #tpu.dot_dimension_numbers<[1], [0], [0], [1], [0, 0, 1, 1], [], []>} : vector<16x128xbf16>, vector<128x128xbf16>, vector<16x128xf32> -> vector<16x128xf32>
    %49 = arith.addf %44, %48 : vector<16x128xf32>
    %c128_41 = arith.constant 128 : index
    %c0_42 = arith.constant 0 : index
    %50 = vector.load %arg10[%c128_41, %c0_42] : memref<784x128xbf16, #tpu.memory_space<vmem>>, vector<16x128xbf16>
    %c0_43 = arith.constant 0 : index
    %c1024 = arith.constant 1024 : index
    %c0_44 = arith.constant 0 : index
    %51 = vector.load %arg4[%c0_43, %c1024, %c0_44] : memref<1x12544x128xbf16, #tpu.memory_space<vmem>>, vector<1x128x128xbf16>
    %52 = vector.shape_cast %51 : vector<1x128x128xbf16> to vector<128x128xbf16>
    %cst_45 = arith.constant dense<0.000000e+00> : vector<16x128xf32>
    %53 = tpu.matmul %50, %52, %cst_45 {dimension_numbers = #tpu.dot_dimension_numbers<[1], [0], [0], [1], [0, 0, 1, 1], [], []>} : vector<16x128xbf16>, vector<128x128xbf16>, vector<16x128xf32> -> vector<16x128xf32>
    %54 = arith.addf %49, %53 : vector<16x128xf32>
    %c144 = arith.constant 144 : index
    %c0_46 = arith.constant 0 : index
    %55 = vector.load %arg10[%c144, %c0_46] : memref<784x128xbf16, #tpu.memory_space<vmem>>, vector<16x128xbf16>
    %c0_47 = arith.constant 0 : index
    %c1152 = arith.constant 1152 : index
    %c0_48 = arith.constant 0 : index
    %56 = vector.load %arg4[%c0_47, %c1152, %c0_48] : memref<1x12544x128xbf16, #tpu.memory_space<vmem>>, vector<1x128x128xbf16>
    %57 = vector.shape_cast %56 : vector<1x128x128xbf16> to vector<128x128xbf16>
    %cst_49 = arith.constant dense<0.000000e+00> : vector<16x128xf32>
    %58 = tpu.matmul %55, %57, %cst_49 {dimension_numbers = #tpu.dot_dimension_numbers<[1], [0], [0], [1], [0, 0, 1, 1], [], []>} : vector<16x128xbf16>, vector<128x128xbf16>, vector<16x128xf32> -> vector<16x128xf32>
    %59 = arith.addf %54, %58 : vector<16x128xf32>
    %c160 = arith.constant 160 : index
    %c0_50 = arith.constant 0 : index
    %60 = vector.load %arg10[%c160, %c0_50] : memref<784x128xbf16, #tpu.memory_space<vmem>>, vector<16x128xbf16>
    %c0_51 = arith.constant 0 : index
    %c1280 = arith.constant 1280 : index
    %c0_52 = arith.constant 0 : index
    %61 = vector.load %arg4[%c0_51, %c1280, %c0_52] : memref<1x12544x128xbf16, #tpu.memory_space<vmem>>, vector<1x128x128xbf16>
    %62 = vector.shape_cast %61 : vector<1x128x128xbf16> to vector<128x128xbf16>
    %cst_53 = arith.constant dense<0.000000e+00> : vector<16x128xf32>
    %63 = tpu.matmul %60, %62, %cst_53 {dimension_numbers = #tpu.dot_dimension_numbers<[1], [0], [0], [1], [0, 0, 1, 1], [], []>} : vector<16x128xbf16>, vector<128x128xbf16>, vector<16x128xf32> -> vector<16x128xf32>
    %64 = arith.addf %59, %63 : vector<16x128xf32>
    %c176 = arith.constant 176 : index
    %c0_54 = arith.constant 0 : index
    %65 = vector.load %arg10[%c176, %c0_54] : memref<784x128xbf16, #tpu.memory_space<vmem>>, vector<16x128xbf16>
    %c0_55 = arith.constant 0 : index
    %c1408 = arith.constant 1408 : index
    %c0_56 = arith.constant 0 : index
    %66 = vector.load %arg4[%c0_55, %c1408, %c0_56] : memref<1x12544x128xbf16, #tpu.memory_space<vmem>>, vector<1x128x128xbf16>
    %67 = vector.shape_cast %66 : vector<1x128x128xbf16> to vector<128x128xbf16>
    %cst_57 = arith.constant dense<0.000000e+00> : vector<16x128xf32>
    %68 = tpu.matmul %65, %67, %cst_57 {dimension_numbers = #tpu.dot_dimension_numbers<[1], [0], [0], [1], [0, 0, 1, 1], [], []>} : vector<16x128xbf16>, vector<128x128xbf16>, vector<16x128xf32> -> vector<16x128xf32>
    %69 = arith.addf %64, %68 : vector<16x128xf32>
    %c192 = arith.constant 192 : index
    %c0_58 = arith.constant 0 : index
    %70 = vector.load %arg10[%c192, %c0_58] : memref<784x128xbf16, #tpu.memory_space<vmem>>, vector<16x128xbf16>
    %c0_59 = arith.constant 0 : index
    %c1536 = arith.constant 1536 : index
    %c0_60 = arith.constant 0 : index
    %71 = vector.load %arg4[%c0_59, %c1536, %c0_60] : memref<1x12544x128xbf16, #tpu.memory_space<vmem>>, vector<1x128x128xbf16>
    %72 = vector.shape_cast %71 : vector<1x128x128xbf16> to vector<128x128xbf16>
    %cst_61 = arith.constant dense<0.000000e+00> : vector<16x128xf32>
    %73 = tpu.matmul %70, %72, %cst_61 {dimension_numbers = #tpu.dot_dimension_numbers<[1], [0], [0], [1], [0, 0, 1, 1], [], []>} : vector<16x128xbf16>, vector<128x128xbf16>, vector<16x128xf32> -> vector<16x128xf32>
    %74 = arith.addf %69, %73 : vector<16x128xf32>
    %c208 = arith.constant 208 : index
    %c0_62 = arith.constant 0 : index
    %75 = vector.load %arg10[%c208, %c0_62] : memref<784x128xbf16, #tpu.memory_space<vmem>>, vector<16x128xbf16>
    %c0_63 = arith.constant 0 : index
    %c1664 = arith.constant 1664 : index
    %c0_64 = arith.constant 0 : index
    %76 = vector.load %arg4[%c0_63, %c1664, %c0_64] : memref<1x12544x128xbf16, #tpu.memory_space<vmem>>, vector<1x128x128xbf16>
    %77 = vector.shape_cast %76 : vector<1x128x128xbf16> to vector<128x128xbf16>
    %cst_65 = arith.constant dense<0.000000e+00> : vector<16x128xf32>
    %78 = tpu.matmul %75, %77, %cst_65 {dimension_numbers = #tpu.dot_dimension_numbers<[1], [0], [0], [1], [0, 0, 1, 1], [], []>} : vector<16x128xbf16>, vector<128x128xbf16>, vector<16x128xf32> -> vector<16x128xf32>
    %79 = arith.addf %74, %78 : vector<16x128xf32>
    %c224 = arith.constant 224 : index
    %c0_66 = arith.constant 0 : index
    %80 = vector.load %arg10[%c224, %c0_66] : memref<784x128xbf16, #tpu.memory_space<vmem>>, vector<16x128xbf16>
    %c0_67 = arith.constant 0 : index
    %c1792 = arith.constant 1792 : index
    %c0_68 = arith.constant 0 : index
    %81 = vector.load %arg4[%c0_67, %c1792, %c0_68] : memref<1x12544x128xbf16, #tpu.memory_space<vmem>>, vector<1x128x128xbf16>
    %82 = vector.shape_cast %81 : vector<1x128x128xbf16> to vector<128x128xbf16>
    %cst_69 = arith.constant dense<0.000000e+00> : vector<16x128xf32>
    %83 = tpu.matmul %80, %82, %cst_69 {dimension_numbers = #tpu.dot_dimension_numbers<[1], [0], [0], [1], [0, 0, 1, 1], [], []>} : vector<16x128xbf16>, vector<128x128xbf16>, vector<16x128xf32> -> vector<16x128xf32>
    %84 = arith.addf %79, %83 : vector<16x128xf32>
    %c240 = arith.constant 240 : index
    %c0_70 = arith.constant 0 : index
    %85 = vector.load %arg10[%c240, %c0_70] : memref<784x128xbf16, #tpu.memory_space<vmem>>, vector<16x128xbf16>
    %c0_71 = arith.constant 0 : index
    %c1920 = arith.constant 1920 : index
    %c0_72 = arith.constant 0 : index
    %86 = vector.load %arg4[%c0_71, %c1920, %c0_72] : memref<1x12544x128xbf16, #tpu.memory_space<vmem>>, vector<1x128x128xbf16>
    %87 = vector.shape_cast %86 : vector<1x128x128xbf16> to vector<128x128xbf16>
    %cst_73 = arith.constant dense<0.000000e+00> : vector<16x128xf32>
    %88 = tpu.matmul %85, %87, %cst_73 {dimension_numbers = #tpu.dot_dimension_numbers<[1], [0], [0], [1], [0, 0, 1, 1], [], []>} : vector<16x128xbf16>, vector<128x128xbf16>, vector<16x128xf32> -> vector<16x128xf32>
    %89 = arith.addf %84, %88 : vector<16x128xf32>
    %c256_74 = arith.constant 256 : index
    %c0_75 = arith.constant 0 : index
    %90 = vector.load %arg10[%c256_74, %c0_75] : memref<784x128xbf16, #tpu.memory_space<vmem>>, vector<16x128xbf16>
    %c0_76 = arith.constant 0 : index
    %c2048 = arith.constant 2048 : index
    %c0_77 = arith.constant 0 : index
    %91 = vector.load %arg4[%c0_76, %c2048, %c0_77] : memref<1x12544x128xbf16, #tpu.memory_space<vmem>>, vector<1x128x128xbf16>
    %92 = vector.shape_cast %91 : vector<1x128x128xbf16> to vector<128x128xbf16>
    %cst_78 = arith.constant dense<0.000000e+00> : vector<16x128xf32>
    %93 = tpu.matmul %90, %92, %cst_78 {dimension_numbers = #tpu.dot_dimension_numbers<[1], [0], [0], [1], [0, 0, 1, 1], [], []>} : vector<16x128xbf16>, vector<128x128xbf16>, vector<16x128xf32> -> vector<16x128xf32>
    %94 = arith.addf %89, %93 : vector<16x128xf32>
    %c272 = arith.constant 272 : index
    %c0_79 = arith.constant 0 : index
    %95 = vector.load %arg10[%c272, %c0_79] : memref<784x128xbf16, #tpu.memory_space<vmem>>, vector<16x128xbf16>
    %c0_80 = arith.constant 0 : index
    %c2176 = arith.constant 2176 : index
    %c0_81 = arith.constant 0 : index
    %96 = vector.load %arg4[%c0_80, %c2176, %c0_81] : memref<1x12544x128xbf16, #tpu.memory_space<vmem>>, vector<1x128x128xbf16>
    %97 = vector.shape_cast %96 : vector<1x128x128xbf16> to vector<128x128xbf16>
    %cst_82 = arith.constant dense<0.000000e+00> : vector<16x128xf32>
    %98 = tpu.matmul %95, %97, %cst_82 {dimension_numbers = #tpu.dot_dimension_numbers<[1], [0], [0], [1], [0, 0, 1, 1], [], []>} : vector<16x128xbf16>, vector<128x128xbf16>, vector<16x128xf32> -> vector<16x128xf32>
    %99 = arith.addf %94, %98 : vector<16x128xf32>
    %c288 = arith.constant 288 : index
    %c0_83 = arith.constant 0 : index
    %100 = vector.load %arg10[%c288, %c0_83] : memref<784x128xbf16, #tpu.memory_space<vmem>>, vector<16x128xbf16>
    %c0_84 = arith.constant 0 : index
    %c2304 = arith.constant 2304 : index
    %c0_85 = arith.constant 0 : index
    %101 = vector.load %arg4[%c0_84, %c2304, %c0_85] : memref<1x12544x128xbf16, #tpu.memory_space<vmem>>, vector<1x128x128xbf16>
    %102 = vector.shape_cast %101 : vector<1x128x128xbf16> to vector<128x128xbf16>
    %cst_86 = arith.constant dense<0.000000e+00> : vector<16x128xf32>
    %103 = tpu.matmul %100, %102, %cst_86 {dimension_numbers = #tpu.dot_dimension_numbers<[1], [0], [0], [1], [0, 0, 1, 1], [], []>} : vector<16x128xbf16>, vector<128x128xbf16>, vector<16x128xf32> -> vector<16x128xf32>
    %104 = arith.addf %99, %103 : vector<16x128xf32>
    %c304 = arith.constant 304 : index
    %c0_87 = arith.constant 0 : index
    %105 = vector.load %arg10[%c304, %c0_87] : memref<784x128xbf16, #tpu.memory_space<vmem>>, vector<16x128xbf16>
    %c0_88 = arith.constant 0 : index
    %c2432 = arith.constant 2432 : index
    %c0_89 = arith.constant 0 : index
    %106 = vector.load %arg4[%c0_88, %c2432, %c0_89] : memref<1x12544x128xbf16, #tpu.memory_space<vmem>>, vector<1x128x128xbf16>
    %107 = vector.shape_cast %106 : vector<1x128x128xbf16> to vector<128x128xbf16>
    %cst_90 = arith.constant dense<0.000000e+00> : vector<16x128xf32>
    %108 = tpu.matmul %105, %107, %cst_90 {dimension_numbers = #tpu.dot_dimension_numbers<[1], [0], [0], [1], [0, 0, 1, 1], [], []>} : vector<16x128xbf16>, vector<128x128xbf16>, vector<16x128xf32> -> vector<16x128xf32>
    %109 = arith.addf %104, %108 : vector<16x128xf32>
    %c320 = arith.constant 320 : index
    %c0_91 = arith.constant 0 : index
    %110 = vector.load %arg10[%c320, %c0_91] : memref<784x128xbf16, #tpu.memory_space<vmem>>, vector<16x128xbf16>
    %c0_92 = arith.constant 0 : index
    %c2560 = arith.constant 2560 : index
    %c0_93 = arith.constant 0 : index
    %111 = vector.load %arg4[%c0_92, %c2560, %c0_93] : memref<1x12544x128xbf16, #tpu.memory_space<vmem>>, vector<1x128x128xbf16>
    %112 = vector.shape_cast %111 : vector<1x128x128xbf16> to vector<128x128xbf16>
    %cst_94 = arith.constant dense<0.000000e+00> : vector<16x128xf32>
    %113 = tpu.matmul %110, %112, %cst_94 {dimension_numbers = #tpu.dot_dimension_numbers<[1], [0], [0], [1], [0, 0, 1, 1], [], []>} : vector<16x128xbf16>, vector<128x128xbf16>, vector<16x128xf32> -> vector<16x128xf32>
    %114 = arith.addf %109, %113 : vector<16x128xf32>
    %c336 = arith.constant 336 : index
    %c0_95 = arith.constant 0 : index
    %115 = vector.load %arg10[%c336, %c0_95] : memref<784x128xbf16, #tpu.memory_space<vmem>>, vector<16x128xbf16>
    %c0_96 = arith.constant 0 : index
    %c2688 = arith.constant 2688 : index
    %c0_97 = arith.constant 0 : index
    %116 = vector.load %arg4[%c0_96, %c2688, %c0_97] : memref<1x12544x128xbf16, #tpu.memory_space<vmem>>, vector<1x128x128xbf16>
    %117 = vector.shape_cast %116 : vector<1x128x128xbf16> to vector<128x128xbf16>
    %cst_98 = arith.constant dense<0.000000e+00> : vector<16x128xf32>
    %118 = tpu.matmul %115, %117, %cst_98 {dimension_numbers = #tpu.dot_dimension_numbers<[1], [0], [0], [1], [0, 0, 1, 1], [], []>} : vector<16x128xbf16>, vector<128x128xbf16>, vector<16x128xf32> -> vector<16x128xf32>
    %119 = arith.addf %114, %118 : vector<16x128xf32>
    %c352 = arith.constant 352 : index
    %c0_99 = arith.constant 0 : index
    %120 = vector.load %arg10[%c352, %c0_99] : memref<784x128xbf16, #tpu.memory_space<vmem>>, vector<16x128xbf16>
    %c0_100 = arith.constant 0 : index
    %c2816 = arith.constant 2816 : index
    %c0_101 = arith.constant 0 : index
    %121 = vector.load %arg4[%c0_100, %c2816, %c0_101] : memref<1x12544x128xbf16, #tpu.memory_space<vmem>>, vector<1x128x128xbf16>
    %122 = vector.shape_cast %121 : vector<1x128x128xbf16> to vector<128x128xbf16>
    %cst_102 = arith.constant dense<0.000000e+00> : vector<16x128xf32>
    %123 = tpu.matmul %120, %122, %cst_102 {dimension_numbers = #tpu.dot_dimension_numbers<[1], [0], [0], [1], [0, 0, 1, 1], [], []>} : vector<16x128xbf16>, vector<128x128xbf16>, vector<16x128xf32> -> vector<16x128xf32>
    %124 = arith.addf %119, %123 : vector<16x128xf32>
    %c368 = arith.constant 368 : index
    %c0_103 = arith.constant 0 : index
    %125 = vector.load %arg10[%c368, %c0_103] : memref<784x128xbf16, #tpu.memory_space<vmem>>, vector<16x128xbf16>
    %c0_104 = arith.constant 0 : index
    %c2944 = arith.constant 2944 : index
    %c0_105 = arith.constant 0 : index
    %126 = vector.load %arg4[%c0_104, %c2944, %c0_105] : memref<1x12544x128xbf16, #tpu.memory_space<vmem>>, vector<1x128x128xbf16>
    %127 = vector.shape_cast %126 : vector<1x128x128xbf16> to vector<128x128xbf16>
    %cst_106 = arith.constant dense<0.000000e+00> : vector<16x128xf32>
    %128 = tpu.matmul %125, %127, %cst_106 {dimension_numbers = #tpu.dot_dimension_numbers<[1], [0], [0], [1], [0, 0, 1, 1], [], []>} : vector<16x128xbf16>, vector<128x128xbf16>, vector<16x128xf32> -> vector<16x128xf32>
    %129 = arith.addf %124, %128 : vector<16x128xf32>
    %c384_107 = arith.constant 384 : index
    %c0_108 = arith.constant 0 : index
    %130 = vector.load %arg10[%c384_107, %c0_108] : memref<784x128xbf16, #tpu.memory_space<vmem>>, vector<16x128xbf16>
    %c0_109 = arith.constant 0 : index
    %c3072 = arith.constant 3072 : index
    %c0_110 = arith.constant 0 : index
    %131 = vector.load %arg4[%c0_109, %c3072, %c0_110] : memref<1x12544x128xbf16, #tpu.memory_space<vmem>>, vector<1x128x128xbf16>
    %132 = vector.shape_cast %131 : vector<1x128x128xbf16> to vector<128x128xbf16>
    %cst_111 = arith.constant dense<0.000000e+00> : vector<16x128xf32>
    %133 = tpu.matmul %130, %132, %cst_111 {dimension_numbers = #tpu.dot_dimension_numbers<[1], [0], [0], [1], [0, 0, 1, 1], [], []>} : vector<16x128xbf16>, vector<128x128xbf16>, vector<16x128xf32> -> vector<16x128xf32>
    %134 = arith.addf %129, %133 : vector<16x128xf32>
    %c400 = arith.constant 400 : index
    %c0_112 = arith.constant 0 : index
    %135 = vector.load %arg10[%c400, %c0_112] : memref<784x128xbf16, #tpu.memory_space<vmem>>, vector<16x128xbf16>
    %c0_113 = arith.constant 0 : index
    %c3200 = arith.constant 3200 : index
    %c0_114 = arith.constant 0 : index
    %136 = vector.load %arg4[%c0_113, %c3200, %c0_114] : memref<1x12544x128xbf16, #tpu.memory_space<vmem>>, vector<1x128x128xbf16>
    %137 = vector.shape_cast %136 : vector<1x128x128xbf16> to vector<128x128xbf16>
    %cst_115 = arith.constant dense<0.000000e+00> : vector<16x128xf32>
    %138 = tpu.matmul %135, %137, %cst_115 {dimension_numbers = #tpu.dot_dimension_numbers<[1], [0], [0], [1], [0, 0, 1, 1], [], []>} : vector<16x128xbf16>, vector<128x128xbf16>, vector<16x128xf32> -> vector<16x128xf32>
    %139 = arith.addf %134, %138 : vector<16x128xf32>
    %c416 = arith.constant 416 : index
    %c0_116 = arith.constant 0 : index
    %140 = vector.load %arg10[%c416, %c0_116] : memref<784x128xbf16, #tpu.memory_space<vmem>>, vector<16x128xbf16>
    %c0_117 = arith.constant 0 : index
    %c3328 = arith.constant 3328 : index
    %c0_118 = arith.constant 0 : index
    %141 = vector.load %arg4[%c0_117, %c3328, %c0_118] : memref<1x12544x128xbf16, #tpu.memory_space<vmem>>, vector<1x128x128xbf16>
    %142 = vector.shape_cast %141 : vector<1x128x128xbf16> to vector<128x128xbf16>
    %cst_119 = arith.constant dense<0.000000e+00> : vector<16x128xf32>
    %143 = tpu.matmul %140, %142, %cst_119 {dimension_numbers = #tpu.dot_dimension_numbers<[1], [0], [0], [1], [0, 0, 1, 1], [], []>} : vector<16x128xbf16>, vector<128x128xbf16>, vector<16x128xf32> -> vector<16x128xf32>
    %144 = arith.addf %139, %143 : vector<16x128xf32>
    %c432 = arith.constant 432 : index
    %c0_120 = arith.constant 0 : index
    %145 = vector.load %arg10[%c432, %c0_120] : memref<784x128xbf16, #tpu.memory_space<vmem>>, vector<16x128xbf16>
    %c0_121 = arith.constant 0 : index
    %c3456 = arith.constant 3456 : index
    %c0_122 = arith.constant 0 : index
    %146 = vector.load %arg4[%c0_121, %c3456, %c0_122] : memref<1x12544x128xbf16, #tpu.memory_space<vmem>>, vector<1x128x128xbf16>
    %147 = vector.shape_cast %146 : vector<1x128x128xbf16> to vector<128x128xbf16>
    %cst_123 = arith.constant dense<0.000000e+00> : vector<16x128xf32>
    %148 = tpu.matmul %145, %147, %cst_123 {dimension_numbers = #tpu.dot_dimension_numbers<[1], [0], [0], [1], [0, 0, 1, 1], [], []>} : vector<16x128xbf16>, vector<128x128xbf16>, vector<16x128xf32> -> vector<16x128xf32>
    %149 = arith.addf %144, %148 : vector<16x128xf32>
    %c448 = arith.constant 448 : index
    %c0_124 = arith.constant 0 : index
    %150 = vector.load %arg10[%c448, %c0_124] : memref<784x128xbf16, #tpu.memory_space<vmem>>, vector<16x128xbf16>
    %c0_125 = arith.constant 0 : index
    %c3584 = arith.constant 3584 : index
    %c0_126 = arith.constant 0 : index
    %151 = vector.load %arg4[%c0_125, %c3584, %c0_126] : memref<1x12544x128xbf16, #tpu.memory_space<vmem>>, vector<1x128x128xbf16>
    %152 = vector.shape_cast %151 : vector<1x128x128xbf16> to vector<128x128xbf16>
    %cst_127 = arith.constant dense<0.000000e+00> : vector<16x128xf32>
    %153 = tpu.matmul %150, %152, %cst_127 {dimension_numbers = #tpu.dot_dimension_numbers<[1], [0], [0], [1], [0, 0, 1, 1], [], []>} : vector<16x128xbf16>, vector<128x128xbf16>, vector<16x128xf32> -> vector<16x128xf32>
    %154 = arith.addf %149, %153 : vector<16x128xf32>
    %c464 = arith.constant 464 : index
    %c0_128 = arith.constant 0 : index
    %155 = vector.load %arg10[%c464, %c0_128] : memref<784x128xbf16, #tpu.memory_space<vmem>>, vector<16x128xbf16>
    %c0_129 = arith.constant 0 : index
    %c3712 = arith.constant 3712 : index
    %c0_130 = arith.constant 0 : index
    %156 = vector.load %arg4[%c0_129, %c3712, %c0_130] : memref<1x12544x128xbf16, #tpu.memory_space<vmem>>, vector<1x128x128xbf16>
    %157 = vector.shape_cast %156 : vector<1x128x128xbf16> to vector<128x128xbf16>
    %cst_131 = arith.constant dense<0.000000e+00> : vector<16x128xf32>
    %158 = tpu.matmul %155, %157, %cst_131 {dimension_numbers = #tpu.dot_dimension_numbers<[1], [0], [0], [1], [0, 0, 1, 1], [], []>} : vector<16x128xbf16>, vector<128x128xbf16>, vector<16x128xf32> -> vector<16x128xf32>
    %159 = arith.addf %154, %158 : vector<16x128xf32>
    %c480 = arith.constant 480 : index
    %c0_132 = arith.constant 0 : index
    %160 = vector.load %arg10[%c480, %c0_132] : memref<784x128xbf16, #tpu.memory_space<vmem>>, vector<16x128xbf16>
    %c0_133 = arith.constant 0 : index
    %c3840 = arith.constant 3840 : index
    %c0_134 = arith.constant 0 : index
    %161 = vector.load %arg4[%c0_133, %c3840, %c0_134] : memref<1x12544x128xbf16, #tpu.memory_space<vmem>>, vector<1x128x128xbf16>
    %162 = vector.shape_cast %161 : vector<1x128x128xbf16> to vector<128x128xbf16>
    %cst_135 = arith.constant dense<0.000000e+00> : vector<16x128xf32>
    %163 = tpu.matmul %160, %162, %cst_135 {dimension_numbers = #tpu.dot_dimension_numbers<[1], [0], [0], [1], [0, 0, 1, 1], [], []>} : vector<16x128xbf16>, vector<128x128xbf16>, vector<16x128xf32> -> vector<16x128xf32>
    %164 = arith.addf %159, %163 : vector<16x128xf32>
    %c496 = arith.constant 496 : index
    %c0_136 = arith.constant 0 : index
    %165 = vector.load %arg10[%c496, %c0_136] : memref<784x128xbf16, #tpu.memory_space<vmem>>, vector<16x128xbf16>
    %c0_137 = arith.constant 0 : index
    %c3968 = arith.constant 3968 : index
    %c0_138 = arith.constant 0 : index
    %166 = vector.load %arg4[%c0_137, %c3968, %c0_138] : memref<1x12544x128xbf16, #tpu.memory_space<vmem>>, vector<1x128x128xbf16>
    %167 = vector.shape_cast %166 : vector<1x128x128xbf16> to vector<128x128xbf16>
    %cst_139 = arith.constant dense<0.000000e+00> : vector<16x128xf32>
    %168 = tpu.matmul %165, %167, %cst_139 {dimension_numbers = #tpu.dot_dimension_numbers<[1], [0], [0], [1], [0, 0, 1, 1], [], []>} : vector<16x128xbf16>, vector<128x128xbf16>, vector<16x128xf32> -> vector<16x128xf32>
    %169 = arith.addf %164, %168 : vector<16x128xf32>
    %c512_140 = arith.constant 512 : index
    %c0_141 = arith.constant 0 : index
    %170 = vector.load %arg10[%c512_140, %c0_141] : memref<784x128xbf16, #tpu.memory_space<vmem>>, vector<16x128xbf16>
    %c0_142 = arith.constant 0 : index
    %c4096 = arith.constant 4096 : index
    %c0_143 = arith.constant 0 : index
    %171 = vector.load %arg4[%c0_142, %c4096, %c0_143] : memref<1x12544x128xbf16, #tpu.memory_space<vmem>>, vector<1x128x128xbf16>
    %172 = vector.shape_cast %171 : vector<1x128x128xbf16> to vector<128x128xbf16>
    %cst_144 = arith.constant dense<0.000000e+00> : vector<16x128xf32>
    %173 = tpu.matmul %170, %172, %cst_144 {dimension_numbers = #tpu.dot_dimension_numbers<[1], [0], [0], [1], [0, 0, 1, 1], [], []>} : vector<16x128xbf16>, vector<128x128xbf16>, vector<16x128xf32> -> vector<16x128xf32>
    %174 = arith.addf %169, %173 : vector<16x128xf32>
    %c528 = arith.constant 528 : index
    %c0_145 = arith.constant 0 : index
    %175 = vector.load %arg10[%c528, %c0_145] : memref<784x128xbf16, #tpu.memory_space<vmem>>, vector<16x128xbf16>
    %c0_146 = arith.constant 0 : index
    %c4224 = arith.constant 4224 : index
    %c0_147 = arith.constant 0 : index
    %176 = vector.load %arg4[%c0_146, %c4224, %c0_147] : memref<1x12544x128xbf16, #tpu.memory_space<vmem>>, vector<1x128x128xbf16>
    %177 = vector.shape_cast %176 : vector<1x128x128xbf16> to vector<128x128xbf16>
    %cst_148 = arith.constant dense<0.000000e+00> : vector<16x128xf32>
    %178 = tpu.matmul %175, %177, %cst_148 {dimension_numbers = #tpu.dot_dimension_numbers<[1], [0], [0], [1], [0, 0, 1, 1], [], []>} : vector<16x128xbf16>, vector<128x128xbf16>, vector<16x128xf32> -> vector<16x128xf32>
    %179 = arith.addf %174, %178 : vector<16x128xf32>
    %c544 = arith.constant 544 : index
    %c0_149 = arith.constant 0 : index
    %180 = vector.load %arg10[%c544, %c0_149] : memref<784x128xbf16, #tpu.memory_space<vmem>>, vector<16x128xbf16>
    %c0_150 = arith.constant 0 : index
    %c4352 = arith.constant 4352 : index
    %c0_151 = arith.constant 0 : index
    %181 = vector.load %arg4[%c0_150, %c4352, %c0_151] : memref<1x12544x128xbf16, #tpu.memory_space<vmem>>, vector<1x128x128xbf16>
    %182 = vector.shape_cast %181 : vector<1x128x128xbf16> to vector<128x128xbf16>
    %cst_152 = arith.constant dense<0.000000e+00> : vector<16x128xf32>
    %183 = tpu.matmul %180, %182, %cst_152 {dimension_numbers = #tpu.dot_dimension_numbers<[1], [0], [0], [1], [0, 0, 1, 1], [], []>} : vector<16x128xbf16>, vector<128x128xbf16>, vector<16x128xf32> -> vector<16x128xf32>
    %184 = arith.addf %179, %183 : vector<16x128xf32>
    %c560 = arith.constant 560 : index
    %c0_153 = arith.constant 0 : index
    %185 = vector.load %arg10[%c560, %c0_153] : memref<784x128xbf16, #tpu.memory_space<vmem>>, vector<16x128xbf16>
    %c0_154 = arith.constant 0 : index
    %c4480 = arith.constant 4480 : index
    %c0_155 = arith.constant 0 : index
    %186 = vector.load %arg4[%c0_154, %c4480, %c0_155] : memref<1x12544x128xbf16, #tpu.memory_space<vmem>>, vector<1x128x128xbf16>
    %187 = vector.shape_cast %186 : vector<1x128x128xbf16> to vector<128x128xbf16>
    %cst_156 = arith.constant dense<0.000000e+00> : vector<16x128xf32>
    %188 = tpu.matmul %185, %187, %cst_156 {dimension_numbers = #tpu.dot_dimension_numbers<[1], [0], [0], [1], [0, 0, 1, 1], [], []>} : vector<16x128xbf16>, vector<128x128xbf16>, vector<16x128xf32> -> vector<16x128xf32>
    %189 = arith.addf %184, %188 : vector<16x128xf32>
    %c576 = arith.constant 576 : index
    %c0_157 = arith.constant 0 : index
    %190 = vector.load %arg10[%c576, %c0_157] : memref<784x128xbf16, #tpu.memory_space<vmem>>, vector<16x128xbf16>
    %c0_158 = arith.constant 0 : index
    %c4608 = arith.constant 4608 : index
    %c0_159 = arith.constant 0 : index
    %191 = vector.load %arg4[%c0_158, %c4608, %c0_159] : memref<1x12544x128xbf16, #tpu.memory_space<vmem>>, vector<1x128x128xbf16>
    %192 = vector.shape_cast %191 : vector<1x128x128xbf16> to vector<128x128xbf16>
    %cst_160 = arith.constant dense<0.000000e+00> : vector<16x128xf32>
    %193 = tpu.matmul %190, %192, %cst_160 {dimension_numbers = #tpu.dot_dimension_numbers<[1], [0], [0], [1], [0, 0, 1, 1], [], []>} : vector<16x128xbf16>, vector<128x128xbf16>, vector<16x128xf32> -> vector<16x128xf32>
    %194 = arith.addf %189, %193 : vector<16x128xf32>
    %c592 = arith.constant 592 : index
    %c0_161 = arith.constant 0 : index
    %195 = vector.load %arg10[%c592, %c0_161] : memref<784x128xbf16, #tpu.memory_space<vmem>>, vector<16x128xbf16>
    %c0_162 = arith.constant 0 : index
    %c4736 = arith.constant 4736 : index
    %c0_163 = arith.constant 0 : index
    %196 = vector.load %arg4[%c0_162, %c4736, %c0_163] : memref<1x12544x128xbf16, #tpu.memory_space<vmem>>, vector<1x128x128xbf16>
    %197 = vector.shape_cast %196 : vector<1x128x128xbf16> to vector<128x128xbf16>
    %cst_164 = arith.constant dense<0.000000e+00> : vector<16x128xf32>
    %198 = tpu.matmul %195, %197, %cst_164 {dimension_numbers = #tpu.dot_dimension_numbers<[1], [0], [0], [1], [0, 0, 1, 1], [], []>} : vector<16x128xbf16>, vector<128x128xbf16>, vector<16x128xf32> -> vector<16x128xf32>
    %199 = arith.addf %194, %198 : vector<16x128xf32>
    %c608 = arith.constant 608 : index
    %c0_165 = arith.constant 0 : index
    %200 = vector.load %arg10[%c608, %c0_165] : memref<784x128xbf16, #tpu.memory_space<vmem>>, vector<16x128xbf16>
    %c0_166 = arith.constant 0 : index
    %c4864 = arith.constant 4864 : index
    %c0_167 = arith.constant 0 : index
    %201 = vector.load %arg4[%c0_166, %c4864, %c0_167] : memref<1x12544x128xbf16, #tpu.memory_space<vmem>>, vector<1x128x128xbf16>
    %202 = vector.shape_cast %201 : vector<1x128x128xbf16> to vector<128x128xbf16>
    %cst_168 = arith.constant dense<0.000000e+00> : vector<16x128xf32>
    %203 = tpu.matmul %200, %202, %cst_168 {dimension_numbers = #tpu.dot_dimension_numbers<[1], [0], [0], [1], [0, 0, 1, 1], [], []>} : vector<16x128xbf16>, vector<128x128xbf16>, vector<16x128xf32> -> vector<16x128xf32>
    %204 = arith.addf %199, %203 : vector<16x128xf32>
    %c624 = arith.constant 624 : index
    %c0_169 = arith.constant 0 : index
    %205 = vector.load %arg10[%c624, %c0_169] : memref<784x128xbf16, #tpu.memory_space<vmem>>, vector<16x128xbf16>
    %c0_170 = arith.constant 0 : index
    %c4992 = arith.constant 4992 : index
    %c0_171 = arith.constant 0 : index
    %206 = vector.load %arg4[%c0_170, %c4992, %c0_171] : memref<1x12544x128xbf16, #tpu.memory_space<vmem>>, vector<1x128x128xbf16>
    %207 = vector.shape_cast %206 : vector<1x128x128xbf16> to vector<128x128xbf16>
    %cst_172 = arith.constant dense<0.000000e+00> : vector<16x128xf32>
    %208 = tpu.matmul %205, %207, %cst_172 {dimension_numbers = #tpu.dot_dimension_numbers<[1], [0], [0], [1], [0, 0, 1, 1], [], []>} : vector<16x128xbf16>, vector<128x128xbf16>, vector<16x128xf32> -> vector<16x128xf32>
    %209 = arith.addf %204, %208 : vector<16x128xf32>
    %c640_173 = arith.constant 640 : index
    %c0_174 = arith.constant 0 : index
    %210 = vector.load %arg10[%c640_173, %c0_174] : memref<784x128xbf16, #tpu.memory_space<vmem>>, vector<16x128xbf16>
    %c0_175 = arith.constant 0 : index
    %c5120 = arith.constant 5120 : index
    %c0_176 = arith.constant 0 : index
    %211 = vector.load %arg4[%c0_175, %c5120, %c0_176] : memref<1x12544x128xbf16, #tpu.memory_space<vmem>>, vector<1x128x128xbf16>
    %212 = vector.shape_cast %211 : vector<1x128x128xbf16> to vector<128x128xbf16>
    %cst_177 = arith.constant dense<0.000000e+00> : vector<16x128xf32>
    %213 = tpu.matmul %210, %212, %cst_177 {dimension_numbers = #tpu.dot_dimension_numbers<[1], [0], [0], [1], [0, 0, 1, 1], [], []>} : vector<16x128xbf16>, vector<128x128xbf16>, vector<16x128xf32> -> vector<16x128xf32>
    %214 = arith.addf %209, %213 : vector<16x128xf32>
    %c656 = arith.constant 656 : index
    %c0_178 = arith.constant 0 : index
    %215 = vector.load %arg10[%c656, %c0_178] : memref<784x128xbf16, #tpu.memory_space<vmem>>, vector<16x128xbf16>
    %c0_179 = arith.constant 0 : index
    %c5248 = arith.constant 5248 : index
    %c0_180 = arith.constant 0 : index
    %216 = vector.load %arg4[%c0_179, %c5248, %c0_180] : memref<1x12544x128xbf16, #tpu.memory_space<vmem>>, vector<1x128x128xbf16>
    %217 = vector.shape_cast %216 : vector<1x128x128xbf16> to vector<128x128xbf16>
    %cst_181 = arith.constant dense<0.000000e+00> : vector<16x128xf32>
    %218 = tpu.matmul %215, %217, %cst_181 {dimension_numbers = #tpu.dot_dimension_numbers<[1], [0], [0], [1], [0, 0, 1, 1], [], []>} : vector<16x128xbf16>, vector<128x128xbf16>, vector<16x128xf32> -> vector<16x128xf32>
    %219 = arith.addf %214, %218 : vector<16x128xf32>
    %c672 = arith.constant 672 : index
    %c0_182 = arith.constant 0 : index
    %220 = vector.load %arg10[%c672, %c0_182] : memref<784x128xbf16, #tpu.memory_space<vmem>>, vector<16x128xbf16>
    %c0_183 = arith.constant 0 : index
    %c5376 = arith.constant 5376 : index
    %c0_184 = arith.constant 0 : index
    %221 = vector.load %arg4[%c0_183, %c5376, %c0_184] : memref<1x12544x128xbf16, #tpu.memory_space<vmem>>, vector<1x128x128xbf16>
    %222 = vector.shape_cast %221 : vector<1x128x128xbf16> to vector<128x128xbf16>
    %cst_185 = arith.constant dense<0.000000e+00> : vector<16x128xf32>
    %223 = tpu.matmul %220, %222, %cst_185 {dimension_numbers = #tpu.dot_dimension_numbers<[1], [0], [0], [1], [0, 0, 1, 1], [], []>} : vector<16x128xbf16>, vector<128x128xbf16>, vector<16x128xf32> -> vector<16x128xf32>
    %224 = arith.addf %219, %223 : vector<16x128xf32>
    %c688 = arith.constant 688 : index
    %c0_186 = arith.constant 0 : index
    %225 = vector.load %arg10[%c688, %c0_186] : memref<784x128xbf16, #tpu.memory_space<vmem>>, vector<16x128xbf16>
    %c0_187 = arith.constant 0 : index
    %c5504 = arith.constant 5504 : index
    %c0_188 = arith.constant 0 : index
    %226 = vector.load %arg4[%c0_187, %c5504, %c0_188] : memref<1x12544x128xbf16, #tpu.memory_space<vmem>>, vector<1x128x128xbf16>
    %227 = vector.shape_cast %226 : vector<1x128x128xbf16> to vector<128x128xbf16>
    %cst_189 = arith.constant dense<0.000000e+00> : vector<16x128xf32>
    %228 = tpu.matmul %225, %227, %cst_189 {dimension_numbers = #tpu.dot_dimension_numbers<[1], [0], [0], [1], [0, 0, 1, 1], [], []>} : vector<16x128xbf16>, vector<128x128xbf16>, vector<16x128xf32> -> vector<16x128xf32>
    %229 = arith.addf %224, %228 : vector<16x128xf32>
    %c704 = arith.constant 704 : index
    %c0_190 = arith.constant 0 : index
    %230 = vector.load %arg10[%c704, %c0_190] : memref<784x128xbf16, #tpu.memory_space<vmem>>, vector<16x128xbf16>
    %c0_191 = arith.constant 0 : index
    %c5632 = arith.constant 5632 : index
    %c0_192 = arith.constant 0 : index
    %231 = vector.load %arg4[%c0_191, %c5632, %c0_192] : memref<1x12544x128xbf16, #tpu.memory_space<vmem>>, vector<1x128x128xbf16>
    %232 = vector.shape_cast %231 : vector<1x128x128xbf16> to vector<128x128xbf16>
    %cst_193 = arith.constant dense<0.000000e+00> : vector<16x128xf32>
    %233 = tpu.matmul %230, %232, %cst_193 {dimension_numbers = #tpu.dot_dimension_numbers<[1], [0], [0], [1], [0, 0, 1, 1], [], []>} : vector<16x128xbf16>, vector<128x128xbf16>, vector<16x128xf32> -> vector<16x128xf32>
    %234 = arith.addf %229, %233 : vector<16x128xf32>
    %c720 = arith.constant 720 : index
    %c0_194 = arith.constant 0 : index
    %235 = vector.load %arg10[%c720, %c0_194] : memref<784x128xbf16, #tpu.memory_space<vmem>>, vector<16x128xbf16>
    %c0_195 = arith.constant 0 : index
    %c5760 = arith.constant 5760 : index
    %c0_196 = arith.constant 0 : index
    %236 = vector.load %arg4[%c0_195, %c5760, %c0_196] : memref<1x12544x128xbf16, #tpu.memory_space<vmem>>, vector<1x128x128xbf16>
    %237 = vector.shape_cast %236 : vector<1x128x128xbf16> to vector<128x128xbf16>
    %cst_197 = arith.constant dense<0.000000e+00> : vector<16x128xf32>
    %238 = tpu.matmul %235, %237, %cst_197 {dimension_numbers = #tpu.dot_dimension_numbers<[1], [0], [0], [1], [0, 0, 1, 1], [], []>} : vector<16x128xbf16>, vector<128x128xbf16>, vector<16x128xf32> -> vector<16x128xf32>
    %239 = arith.addf %234, %238 : vector<16x128xf32>
    %c736 = arith.constant 736 : index
    %c0_198 = arith.constant 0 : index
    %240 = vector.load %arg10[%c736, %c0_198] : memref<784x128xbf16, #tpu.memory_space<vmem>>, vector<16x128xbf16>
    %c0_199 = arith.constant 0 : index
    %c5888 = arith.constant 5888 : index
    %c0_200 = arith.constant 0 : index
    %241 = vector.load %arg4[%c0_199, %c5888, %c0_200] : memref<1x12544x128xbf16, #tpu.memory_space<vmem>>, vector<1x128x128xbf16>
    %242 = vector.shape_cast %241 : vector<1x128x128xbf16> to vector<128x128xbf16>
    %cst_201 = arith.constant dense<0.000000e+00> : vector<16x128xf32>
    %243 = tpu.matmul %240, %242, %cst_201 {dimension_numbers = #tpu.dot_dimension_numbers<[1], [0], [0], [1], [0, 0, 1, 1], [], []>} : vector<16x128xbf16>, vector<128x128xbf16>, vector<16x128xf32> -> vector<16x128xf32>
    %244 = arith.addf %239, %243 : vector<16x128xf32>
    %c752 = arith.constant 752 : index
    %c0_202 = arith.constant 0 : index
    %245 = vector.load %arg10[%c752, %c0_202] : memref<784x128xbf16, #tpu.memory_space<vmem>>, vector<16x128xbf16>
    %c0_203 = arith.constant 0 : index
    %c6016 = arith.constant 6016 : index
    %c0_204 = arith.constant 0 : index
    %246 = vector.load %arg4[%c0_203, %c6016, %c0_204] : memref<1x12544x128xbf16, #tpu.memory_space<vmem>>, vector<1x128x128xbf16>
    %247 = vector.shape_cast %246 : vector<1x128x128xbf16> to vector<128x128xbf16>
    %cst_205 = arith.constant dense<0.000000e+00> : vector<16x128xf32>
    %248 = tpu.matmul %245, %247, %cst_205 {dimension_numbers = #tpu.dot_dimension_numbers<[1], [0], [0], [1], [0, 0, 1, 1], [], []>} : vector<16x128xbf16>, vector<128x128xbf16>, vector<16x128xf32> -> vector<16x128xf32>
    %249 = arith.addf %244, %248 : vector<16x128xf32>
    %c768_206 = arith.constant 768 : index
    %c0_207 = arith.constant 0 : index
    %250 = vector.load %arg10[%c768_206, %c0_207] : memref<784x128xbf16, #tpu.memory_space<vmem>>, vector<16x128xbf16>
    %c0_208 = arith.constant 0 : index
    %c6144 = arith.constant 6144 : index
    %c0_209 = arith.constant 0 : index
    %251 = vector.load %arg4[%c0_208, %c6144, %c0_209] : memref<1x12544x128xbf16, #tpu.memory_space<vmem>>, vector<1x128x128xbf16>
    %252 = vector.shape_cast %251 : vector<1x128x128xbf16> to vector<128x128xbf16>
    %cst_210 = arith.constant dense<0.000000e+00> : vector<16x128xf32>
    %253 = tpu.matmul %250, %252, %cst_210 {dimension_numbers = #tpu.dot_dimension_numbers<[1], [0], [0], [1], [0, 0, 1, 1], [], []>} : vector<16x128xbf16>, vector<128x128xbf16>, vector<16x128xf32> -> vector<16x128xf32>
    %254 = arith.addf %249, %253 : vector<16x128xf32>
    %c0_211 = arith.constant 0 : index
    %c0_212 = arith.constant 0 : index
    %c0_213 = arith.constant 0 : index
    %255 = vector.load %arg5[%c0_211, %c0_212, %c0_213] : memref<1x2x128xf32, #tpu.memory_space<vmem>>, vector<1x1x128xf32>
    %256 = vector.shape_cast %255 : vector<1x1x128xf32> to vector<1x128xf32>
    %257 = vector.broadcast %256 : vector<1x128xf32> to vector<16x128xf32>
    %258 = arith.addf %254, %257 : vector<16x128xf32>
    %cst_214 = arith.constant 0.000000e+00 : f32
    %259 = vector.broadcast %cst_214 : f32 to vector<16x128xf32>
    %260 = arith.maximumf %258, %259 : vector<16x128xf32>
    %261 = arith.truncf %260 : vector<16x128xf32> to vector<16x128xbf16>
    %cst_215 = arith.constant dense<0.000000e+00> : vector<784x128xf32>
    %262 = tpu.matmul %4, %261, %cst_215 {dimension_numbers = #tpu.dot_dimension_numbers<[1], [0], [0], [1], [0, 0, 1, 1], [], []>} : vector<784x16xbf16>, vector<16x128xbf16>, vector<784x128xf32> -> vector<784x128xf32>
    %263 = arith.truncf %262 : vector<784x128xf32> to vector<784x128xbf16>
    %c0_216 = arith.constant 0 : index
    %c0_217 = arith.constant 0 : index
    %264 = vector.load %arg10[%c0_216, %c0_217] : memref<784x128xbf16, #tpu.memory_space<vmem>>, vector<784x128xbf16>
    tpu.vector_store %arg10[%c0_216, %c0_217], %263 {strides = array<i32>} : memref<784x128xbf16, #tpu.memory_space<vmem>>, vector<784x128xbf16>,
    %cst_218 = arith.constant 0.000000e+00 : f32
    %265 = vector.broadcast %cst_218 : f32 to vector<16x128xf32>
    %c0_219 = arith.constant 0 : index
    %c0_220 = arith.constant 0 : index
    %266 = vector.load %arg10[%c0_219, %c0_220] : memref<784x128xbf16, #tpu.memory_space<vmem>>, vector<16x128xbf16>
    %c0_221 = arith.constant 0 : index
    %c6272 = arith.constant 6272 : index
    %c0_222 = arith.constant 0 : index
    %267 = vector.load %arg4[%c0_221, %c6272, %c0_222] : memref<1x12544x128xbf16, #tpu.memory_space<vmem>>, vector<1x128x128xbf16>
    %268 = vector.shape_cast %267 : vector<1x128x128xbf16> to vector<128x128xbf16>
    %cst_223 = arith.constant dense<0.000000e+00> : vector<16x128xf32>
    %269 = tpu.matmul %266, %268, %cst_223 {dimension_numbers = #tpu.dot_dimension_numbers<[1], [0], [0], [1], [0, 0, 1, 1], [], []>} : vector<16x128xbf16>, vector<128x128xbf16>, vector<16x128xf32> -> vector<16x128xf32>
    %270 = arith.addf %265, %269 : vector<16x128xf32>
    %c16_224 = arith.constant 16 : index
    %c0_225 = arith.constant 0 : index
    %271 = vector.load %arg10[%c16_224, %c0_225] : memref<784x128xbf16, #tpu.memory_space<vmem>>, vector<16x128xbf16>
    %c0_226 = arith.constant 0 : index
    %c6400 = arith.constant 6400 : index
    %c0_227 = arith.constant 0 : index
    %272 = vector.load %arg4[%c0_226, %c6400, %c0_227] : memref<1x12544x128xbf16, #tpu.memory_space<vmem>>, vector<1x128x128xbf16>
    %273 = vector.shape_cast %272 : vector<1x128x128xbf16> to vector<128x128xbf16>
    %cst_228 = arith.constant dense<0.000000e+00> : vector<16x128xf32>
    %274 = tpu.matmul %271, %273, %cst_228 {dimension_numbers = #tpu.dot_dimension_numbers<[1], [0], [0], [1], [0, 0, 1, 1], [], []>} : vector<16x128xbf16>, vector<128x128xbf16>, vector<16x128xf32> -> vector<16x128xf32>
    %275 = arith.addf %270, %274 : vector<16x128xf32>
    %c32_229 = arith.constant 32 : index
    %c0_230 = arith.constant 0 : index
    %276 = vector.load %arg10[%c32_229, %c0_230] : memref<784x128xbf16, #tpu.memory_space<vmem>>, vector<16x128xbf16>
    %c0_231 = arith.constant 0 : index
    %c6528 = arith.constant 6528 : index
    %c0_232 = arith.constant 0 : index
    %277 = vector.load %arg4[%c0_231, %c6528, %c0_232] : memref<1x12544x128xbf16, #tpu.memory_space<vmem>>, vector<1x128x128xbf16>
    %278 = vector.shape_cast %277 : vector<1x128x128xbf16> to vector<128x128xbf16>
    %cst_233 = arith.constant dense<0.000000e+00> : vector<16x128xf32>
    %279 = tpu.matmul %276, %278, %cst_233 {dimension_numbers = #tpu.dot_dimension_numbers<[1], [0], [0], [1], [0, 0, 1, 1], [], []>} : vector<16x128xbf16>, vector<128x128xbf16>, vector<16x128xf32> -> vector<16x128xf32>
    %280 = arith.addf %275, %279 : vector<16x128xf32>
    %c48_234 = arith.constant 48 : index
    %c0_235 = arith.constant 0 : index
    %281 = vector.load %arg10[%c48_234, %c0_235] : memref<784x128xbf16, #tpu.memory_space<vmem>>, vector<16x128xbf16>
    %c0_236 = arith.constant 0 : index
    %c6656 = arith.constant 6656 : index
    %c0_237 = arith.constant 0 : index
    %282 = vector.load %arg4[%c0_236, %c6656, %c0_237] : memref<1x12544x128xbf16, #tpu.memory_space<vmem>>, vector<1x128x128xbf16>
    %283 = vector.shape_cast %282 : vector<1x128x128xbf16> to vector<128x128xbf16>
    %cst_238 = arith.constant dense<0.000000e+00> : vector<16x128xf32>
    %284 = tpu.matmul %281, %283, %cst_238 {dimension_numbers = #tpu.dot_dimension_numbers<[1], [0], [0], [1], [0, 0, 1, 1], [], []>} : vector<16x128xbf16>, vector<128x128xbf16>, vector<16x128xf32> -> vector<16x128xf32>
    %285 = arith.addf %280, %284 : vector<16x128xf32>
    %c64_239 = arith.constant 64 : index
    %c0_240 = arith.constant 0 : index
    %286 = vector.load %arg10[%c64_239, %c0_240] : memref<784x128xbf16, #tpu.memory_space<vmem>>, vector<16x128xbf16>
    %c0_241 = arith.constant 0 : index
    %c6784 = arith.constant 6784 : index
    %c0_242 = arith.constant 0 : index
    %287 = vector.load %arg4[%c0_241, %c6784, %c0_242] : memref<1x12544x128xbf16, #tpu.memory_space<vmem>>, vector<1x128x128xbf16>
    %288 = vector.shape_cast %287 : vector<1x128x128xbf16> to vector<128x128xbf16>
    %cst_243 = arith.constant dense<0.000000e+00> : vector<16x128xf32>
    %289 = tpu.matmul %286, %288, %cst_243 {dimension_numbers = #tpu.dot_dimension_numbers<[1], [0], [0], [1], [0, 0, 1, 1], [], []>} : vector<16x128xbf16>, vector<128x128xbf16>, vector<16x128xf32> -> vector<16x128xf32>
    %290 = arith.addf %285, %289 : vector<16x128xf32>
    %c80_244 = arith.constant 80 : index
    %c0_245 = arith.constant 0 : index
    %291 = vector.load %arg10[%c80_244, %c0_245] : memref<784x128xbf16, #tpu.memory_space<vmem>>, vector<16x128xbf16>
    %c0_246 = arith.constant 0 : index
    %c6912 = arith.constant 6912 : index
    %c0_247 = arith.constant 0 : index
    %292 = vector.load %arg4[%c0_246, %c6912, %c0_247] : memref<1x12544x128xbf16, #tpu.memory_space<vmem>>, vector<1x128x128xbf16>
    %293 = vector.shape_cast %292 : vector<1x128x128xbf16> to vector<128x128xbf16>
    %cst_248 = arith.constant dense<0.000000e+00> : vector<16x128xf32>
    %294 = tpu.matmul %291, %293, %cst_248 {dimension_numbers = #tpu.dot_dimension_numbers<[1], [0], [0], [1], [0, 0, 1, 1], [], []>} : vector<16x128xbf16>, vector<128x128xbf16>, vector<16x128xf32> -> vector<16x128xf32>
    %295 = arith.addf %290, %294 : vector<16x128xf32>
    %c96_249 = arith.constant 96 : index
    %c0_250 = arith.constant 0 : index
    %296 = vector.load %arg10[%c96_249, %c0_250] : memref<784x128xbf16, #tpu.memory_space<vmem>>, vector<16x128xbf16>
    %c0_251 = arith.constant 0 : index
    %c7040 = arith.constant 7040 : index
    %c0_252 = arith.constant 0 : index
    %297 = vector.load %arg4[%c0_251, %c7040, %c0_252] : memref<1x12544x128xbf16, #tpu.memory_space<vmem>>, vector<1x128x128xbf16>
    %298 = vector.shape_cast %297 : vector<1x128x128xbf16> to vector<128x128xbf16>
    %cst_253 = arith.constant dense<0.000000e+00> : vector<16x128xf32>
    %299 = tpu.matmul %296, %298, %cst_253 {dimension_numbers = #tpu.dot_dimension_numbers<[1], [0], [0], [1], [0, 0, 1, 1], [], []>} : vector<16x128xbf16>, vector<128x128xbf16>, vector<16x128xf32> -> vector<16x128xf32>
    %300 = arith.addf %295, %299 : vector<16x128xf32>
    %c112_254 = arith.constant 112 : index
    %c0_255 = arith.constant 0 : index
    %301 = vector.load %arg10[%c112_254, %c0_255] : memref<784x128xbf16, #tpu.memory_space<vmem>>, vector<16x128xbf16>
    %c0_256 = arith.constant 0 : index
    %c7168 = arith.constant 7168 : index
    %c0_257 = arith.constant 0 : index
    %302 = vector.load %arg4[%c0_256, %c7168, %c0_257] : memref<1x12544x128xbf16, #tpu.memory_space<vmem>>, vector<1x128x128xbf16>
    %303 = vector.shape_cast %302 : vector<1x128x128xbf16> to vector<128x128xbf16>
    %cst_258 = arith.constant dense<0.000000e+00> : vector<16x128xf32>
    %304 = tpu.matmul %301, %303, %cst_258 {dimension_numbers = #tpu.dot_dimension_numbers<[1], [0], [0], [1], [0, 0, 1, 1], [], []>} : vector<16x128xbf16>, vector<128x128xbf16>, vector<16x128xf32> -> vector<16x128xf32>
    %305 = arith.addf %300, %304 : vector<16x128xf32>
    %c128_259 = arith.constant 128 : index
    %c0_260 = arith.constant 0 : index
    %306 = vector.load %arg10[%c128_259, %c0_260] : memref<784x128xbf16, #tpu.memory_space<vmem>>, vector<16x128xbf16>
    %c0_261 = arith.constant 0 : index
    %c7296 = arith.constant 7296 : index
    %c0_262 = arith.constant 0 : index
    %307 = vector.load %arg4[%c0_261, %c7296, %c0_262] : memref<1x12544x128xbf16, #tpu.memory_space<vmem>>, vector<1x128x128xbf16>
    %308 = vector.shape_cast %307 : vector<1x128x128xbf16> to vector<128x128xbf16>
    %cst_263 = arith.constant dense<0.000000e+00> : vector<16x128xf32>
    %309 = tpu.matmul %306, %308, %cst_263 {dimension_numbers = #tpu.dot_dimension_numbers<[1], [0], [0], [1], [0, 0, 1, 1], [], []>} : vector<16x128xbf16>, vector<128x128xbf16>, vector<16x128xf32> -> vector<16x128xf32>
    %310 = arith.addf %305, %309 : vector<16x128xf32>
    %c144_264 = arith.constant 144 : index
    %c0_265 = arith.constant 0 : index
    %311 = vector.load %arg10[%c144_264, %c0_265] : memref<784x128xbf16, #tpu.memory_space<vmem>>, vector<16x128xbf16>
    %c0_266 = arith.constant 0 : index
    %c7424 = arith.constant 7424 : index
    %c0_267 = arith.constant 0 : index
    %312 = vector.load %arg4[%c0_266, %c7424, %c0_267] : memref<1x12544x128xbf16, #tpu.memory_space<vmem>>, vector<1x128x128xbf16>
    %313 = vector.shape_cast %312 : vector<1x128x128xbf16> to vector<128x128xbf16>
    %cst_268 = arith.constant dense<0.000000e+00> : vector<16x128xf32>
    %314 = tpu.matmul %311, %313, %cst_268 {dimension_numbers = #tpu.dot_dimension_numbers<[1], [0], [0], [1], [0, 0, 1, 1], [], []>} : vector<16x128xbf16>, vector<128x128xbf16>, vector<16x128xf32> -> vector<16x128xf32>
    %315 = arith.addf %310, %314 : vector<16x128xf32>
    %c160_269 = arith.constant 160 : index
    %c0_270 = arith.constant 0 : index
    %316 = vector.load %arg10[%c160_269, %c0_270] : memref<784x128xbf16, #tpu.memory_space<vmem>>, vector<16x128xbf16>
    %c0_271 = arith.constant 0 : index
    %c7552 = arith.constant 7552 : index
    %c0_272 = arith.constant 0 : index
    %317 = vector.load %arg4[%c0_271, %c7552, %c0_272] : memref<1x12544x128xbf16, #tpu.memory_space<vmem>>, vector<1x128x128xbf16>
    %318 = vector.shape_cast %317 : vector<1x128x128xbf16> to vector<128x128xbf16>
    %cst_273 = arith.constant dense<0.000000e+00> : vector<16x128xf32>
    %319 = tpu.matmul %316, %318, %cst_273 {dimension_numbers = #tpu.dot_dimension_numbers<[1], [0], [0], [1], [0, 0, 1, 1], [], []>} : vector<16x128xbf16>, vector<128x128xbf16>, vector<16x128xf32> -> vector<16x128xf32>
    %320 = arith.addf %315, %319 : vector<16x128xf32>
    %c176_274 = arith.constant 176 : index
    %c0_275 = arith.constant 0 : index
    %321 = vector.load %arg10[%c176_274, %c0_275] : memref<784x128xbf16, #tpu.memory_space<vmem>>, vector<16x128xbf16>
    %c0_276 = arith.constant 0 : index
    %c7680 = arith.constant 7680 : index
    %c0_277 = arith.constant 0 : index
    %322 = vector.load %arg4[%c0_276, %c7680, %c0_277] : memref<1x12544x128xbf16, #tpu.memory_space<vmem>>, vector<1x128x128xbf16>
    %323 = vector.shape_cast %322 : vector<1x128x128xbf16> to vector<128x128xbf16>
    %cst_278 = arith.constant dense<0.000000e+00> : vector<16x128xf32>
    %324 = tpu.matmul %321, %323, %cst_278 {dimension_numbers = #tpu.dot_dimension_numbers<[1], [0], [0], [1], [0, 0, 1, 1], [], []>} : vector<16x128xbf16>, vector<128x128xbf16>, vector<16x128xf32> -> vector<16x128xf32>
    %325 = arith.addf %320, %324 : vector<16x128xf32>
    %c192_279 = arith.constant 192 : index
    %c0_280 = arith.constant 0 : index
    %326 = vector.load %arg10[%c192_279, %c0_280] : memref<784x128xbf16, #tpu.memory_space<vmem>>, vector<16x128xbf16>
    %c0_281 = arith.constant 0 : index
    %c7808 = arith.constant 7808 : index
    %c0_282 = arith.constant 0 : index
    %327 = vector.load %arg4[%c0_281, %c7808, %c0_282] : memref<1x12544x128xbf16, #tpu.memory_space<vmem>>, vector<1x128x128xbf16>
    %328 = vector.shape_cast %327 : vector<1x128x128xbf16> to vector<128x128xbf16>
    %cst_283 = arith.constant dense<0.000000e+00> : vector<16x128xf32>
    %329 = tpu.matmul %326, %328, %cst_283 {dimension_numbers = #tpu.dot_dimension_numbers<[1], [0], [0], [1], [0, 0, 1, 1], [], []>} : vector<16x128xbf16>, vector<128x128xbf16>, vector<16x128xf32> -> vector<16x128xf32>
    %330 = arith.addf %325, %329 : vector<16x128xf32>
    %c208_284 = arith.constant 208 : index
    %c0_285 = arith.constant 0 : index
    %331 = vector.load %arg10[%c208_284, %c0_285] : memref<784x128xbf16, #tpu.memory_space<vmem>>, vector<16x128xbf16>
    %c0_286 = arith.constant 0 : index
    %c7936 = arith.constant 7936 : index
    %c0_287 = arith.constant 0 : index
    %332 = vector.load %arg4[%c0_286, %c7936, %c0_287] : memref<1x12544x128xbf16, #tpu.memory_space<vmem>>, vector<1x128x128xbf16>
    %333 = vector.shape_cast %332 : vector<1x128x128xbf16> to vector<128x128xbf16>
    %cst_288 = arith.constant dense<0.000000e+00> : vector<16x128xf32>
    %334 = tpu.matmul %331, %333, %cst_288 {dimension_numbers = #tpu.dot_dimension_numbers<[1], [0], [0], [1], [0, 0, 1, 1], [], []>} : vector<16x128xbf16>, vector<128x128xbf16>, vector<16x128xf32> -> vector<16x128xf32>
    %335 = arith.addf %330, %334 : vector<16x128xf32>
    %c224_289 = arith.constant 224 : index
    %c0_290 = arith.constant 0 : index
    %336 = vector.load %arg10[%c224_289, %c0_290] : memref<784x128xbf16, #tpu.memory_space<vmem>>, vector<16x128xbf16>
    %c0_291 = arith.constant 0 : index
    %c8064 = arith.constant 8064 : index
    %c0_292 = arith.constant 0 : index
    %337 = vector.load %arg4[%c0_291, %c8064, %c0_292] : memref<1x12544x128xbf16, #tpu.memory_space<vmem>>, vector<1x128x128xbf16>
    %338 = vector.shape_cast %337 : vector<1x128x128xbf16> to vector<128x128xbf16>
    %cst_293 = arith.constant dense<0.000000e+00> : vector<16x128xf32>
    %339 = tpu.matmul %336, %338, %cst_293 {dimension_numbers = #tpu.dot_dimension_numbers<[1], [0], [0], [1], [0, 0, 1, 1], [], []>} : vector<16x128xbf16>, vector<128x128xbf16>, vector<16x128xf32> -> vector<16x128xf32>
    %340 = arith.addf %335, %339 : vector<16x128xf32>
    %c240_294 = arith.constant 240 : index
    %c0_295 = arith.constant 0 : index
    %341 = vector.load %arg10[%c240_294, %c0_295] : memref<784x128xbf16, #tpu.memory_space<vmem>>, vector<16x128xbf16>
    %c0_296 = arith.constant 0 : index
    %c8192 = arith.constant 8192 : index
    %c0_297 = arith.constant 0 : index
    %342 = vector.load %arg4[%c0_296, %c8192, %c0_297] : memref<1x12544x128xbf16, #tpu.memory_space<vmem>>, vector<1x128x128xbf16>
    %343 = vector.shape_cast %342 : vector<1x128x128xbf16> to vector<128x128xbf16>
    %cst_298 = arith.constant dense<0.000000e+00> : vector<16x128xf32>
    %344 = tpu.matmul %341, %343, %cst_298 {dimension_numbers = #tpu.dot_dimension_numbers<[1], [0], [0], [1], [0, 0, 1, 1], [], []>} : vector<16x128xbf16>, vector<128x128xbf16>, vector<16x128xf32> -> vector<16x128xf32>
    %345 = arith.addf %340, %344 : vector<16x128xf32>
    %c256_299 = arith.constant 256 : index
    %c0_300 = arith.constant 0 : index
    %346 = vector.load %arg10[%c256_299, %c0_300] : memref<784x128xbf16, #tpu.memory_space<vmem>>, vector<16x128xbf16>
    %c0_301 = arith.constant 0 : index
    %c8320 = arith.constant 8320 : index
    %c0_302 = arith.constant 0 : index
    %347 = vector.load %arg4[%c0_301, %c8320, %c0_302] : memref<1x12544x128xbf16, #tpu.memory_space<vmem>>, vector<1x128x128xbf16>
    %348 = vector.shape_cast %347 : vector<1x128x128xbf16> to vector<128x128xbf16>
    %cst_303 = arith.constant dense<0.000000e+00> : vector<16x128xf32>
    %349 = tpu.matmul %346, %348, %cst_303 {dimension_numbers = #tpu.dot_dimension_numbers<[1], [0], [0], [1], [0, 0, 1, 1], [], []>} : vector<16x128xbf16>, vector<128x128xbf16>, vector<16x128xf32> -> vector<16x128xf32>
    %350 = arith.addf %345, %349 : vector<16x128xf32>
    %c272_304 = arith.constant 272 : index
    %c0_305 = arith.constant 0 : index
    %351 = vector.load %arg10[%c272_304, %c0_305] : memref<784x128xbf16, #tpu.memory_space<vmem>>, vector<16x128xbf16>
    %c0_306 = arith.constant 0 : index
    %c8448 = arith.constant 8448 : index
    %c0_307 = arith.constant 0 : index
    %352 = vector.load %arg4[%c0_306, %c8448, %c0_307] : memref<1x12544x128xbf16, #tpu.memory_space<vmem>>, vector<1x128x128xbf16>
    %353 = vector.shape_cast %352 : vector<1x128x128xbf16> to vector<128x128xbf16>
    %cst_308 = arith.constant dense<0.000000e+00> : vector<16x128xf32>
    %354 = tpu.matmul %351, %353, %cst_308 {dimension_numbers = #tpu.dot_dimension_numbers<[1], [0], [0], [1], [0, 0, 1, 1], [], []>} : vector<16x128xbf16>, vector<128x128xbf16>, vector<16x128xf32> -> vector<16x128xf32>
    %355 = arith.addf %350, %354 : vector<16x128xf32>
    %c288_309 = arith.constant 288 : index
    %c0_310 = arith.constant 0 : index
    %356 = vector.load %arg10[%c288_309, %c0_310] : memref<784x128xbf16, #tpu.memory_space<vmem>>, vector<16x128xbf16>
    %c0_311 = arith.constant 0 : index
    %c8576 = arith.constant 8576 : index
    %c0_312 = arith.constant 0 : index
    %357 = vector.load %arg4[%c0_311, %c8576, %c0_312] : memref<1x12544x128xbf16, #tpu.memory_space<vmem>>, vector<1x128x128xbf16>
    %358 = vector.shape_cast %357 : vector<1x128x128xbf16> to vector<128x128xbf16>
    %cst_313 = arith.constant dense<0.000000e+00> : vector<16x128xf32>
    %359 = tpu.matmul %356, %358, %cst_313 {dimension_numbers = #tpu.dot_dimension_numbers<[1], [0], [0], [1], [0, 0, 1, 1], [], []>} : vector<16x128xbf16>, vector<128x128xbf16>, vector<16x128xf32> -> vector<16x128xf32>
    %360 = arith.addf %355, %359 : vector<16x128xf32>
    %c304_314 = arith.constant 304 : index
    %c0_315 = arith.constant 0 : index
    %361 = vector.load %arg10[%c304_314, %c0_315] : memref<784x128xbf16, #tpu.memory_space<vmem>>, vector<16x128xbf16>
    %c0_316 = arith.constant 0 : index
    %c8704 = arith.constant 8704 : index
    %c0_317 = arith.constant 0 : index
    %362 = vector.load %arg4[%c0_316, %c8704, %c0_317] : memref<1x12544x128xbf16, #tpu.memory_space<vmem>>, vector<1x128x128xbf16>
    %363 = vector.shape_cast %362 : vector<1x128x128xbf16> to vector<128x128xbf16>
    %cst_318 = arith.constant dense<0.000000e+00> : vector<16x128xf32>
    %364 = tpu.matmul %361, %363, %cst_318 {dimension_numbers = #tpu.dot_dimension_numbers<[1], [0], [0], [1], [0, 0, 1, 1], [], []>} : vector<16x128xbf16>, vector<128x128xbf16>, vector<16x128xf32> -> vector<16x128xf32>
    %365 = arith.addf %360, %364 : vector<16x128xf32>
    %c320_319 = arith.constant 320 : index
    %c0_320 = arith.constant 0 : index
    %366 = vector.load %arg10[%c320_319, %c0_320] : memref<784x128xbf16, #tpu.memory_space<vmem>>, vector<16x128xbf16>
    %c0_321 = arith.constant 0 : index
    %c8832 = arith.constant 8832 : index
    %c0_322 = arith.constant 0 : index
    %367 = vector.load %arg4[%c0_321, %c8832, %c0_322] : memref<1x12544x128xbf16, #tpu.memory_space<vmem>>, vector<1x128x128xbf16>
    %368 = vector.shape_cast %367 : vector<1x128x128xbf16> to vector<128x128xbf16>
    %cst_323 = arith.constant dense<0.000000e+00> : vector<16x128xf32>
    %369 = tpu.matmul %366, %368, %cst_323 {dimension_numbers = #tpu.dot_dimension_numbers<[1], [0], [0], [1], [0, 0, 1, 1], [], []>} : vector<16x128xbf16>, vector<128x128xbf16>, vector<16x128xf32> -> vector<16x128xf32>
    %370 = arith.addf %365, %369 : vector<16x128xf32>
    %c336_324 = arith.constant 336 : index
    %c0_325 = arith.constant 0 : index
    %371 = vector.load %arg10[%c336_324, %c0_325] : memref<784x128xbf16, #tpu.memory_space<vmem>>, vector<16x128xbf16>
    %c0_326 = arith.constant 0 : index
    %c8960 = arith.constant 8960 : index
    %c0_327 = arith.constant 0 : index
    %372 = vector.load %arg4[%c0_326, %c8960, %c0_327] : memref<1x12544x128xbf16, #tpu.memory_space<vmem>>, vector<1x128x128xbf16>
    %373 = vector.shape_cast %372 : vector<1x128x128xbf16> to vector<128x128xbf16>
    %cst_328 = arith.constant dense<0.000000e+00> : vector<16x128xf32>
    %374 = tpu.matmul %371, %373, %cst_328 {dimension_numbers = #tpu.dot_dimension_numbers<[1], [0], [0], [1], [0, 0, 1, 1], [], []>} : vector<16x128xbf16>, vector<128x128xbf16>, vector<16x128xf32> -> vector<16x128xf32>
    %375 = arith.addf %370, %374 : vector<16x128xf32>
    %c352_329 = arith.constant 352 : index
    %c0_330 = arith.constant 0 : index
    %376 = vector.load %arg10[%c352_329, %c0_330] : memref<784x128xbf16, #tpu.memory_space<vmem>>, vector<16x128xbf16>
    %c0_331 = arith.constant 0 : index
    %c9088 = arith.constant 9088 : index
    %c0_332 = arith.constant 0 : index
    %377 = vector.load %arg4[%c0_331, %c9088, %c0_332] : memref<1x12544x128xbf16, #tpu.memory_space<vmem>>, vector<1x128x128xbf16>
    %378 = vector.shape_cast %377 : vector<1x128x128xbf16> to vector<128x128xbf16>
    %cst_333 = arith.constant dense<0.000000e+00> : vector<16x128xf32>
    %379 = tpu.matmul %376, %378, %cst_333 {dimension_numbers = #tpu.dot_dimension_numbers<[1], [0], [0], [1], [0, 0, 1, 1], [], []>} : vector<16x128xbf16>, vector<128x128xbf16>, vector<16x128xf32> -> vector<16x128xf32>
    %380 = arith.addf %375, %379 : vector<16x128xf32>
    %c368_334 = arith.constant 368 : index
    %c0_335 = arith.constant 0 : index
    %381 = vector.load %arg10[%c368_334, %c0_335] : memref<784x128xbf16, #tpu.memory_space<vmem>>, vector<16x128xbf16>
    %c0_336 = arith.constant 0 : index
    %c9216 = arith.constant 9216 : index
    %c0_337 = arith.constant 0 : index
    %382 = vector.load %arg4[%c0_336, %c9216, %c0_337] : memref<1x12544x128xbf16, #tpu.memory_space<vmem>>, vector<1x128x128xbf16>
    %383 = vector.shape_cast %382 : vector<1x128x128xbf16> to vector<128x128xbf16>
    %cst_338 = arith.constant dense<0.000000e+00> : vector<16x128xf32>
    %384 = tpu.matmul %381, %383, %cst_338 {dimension_numbers = #tpu.dot_dimension_numbers<[1], [0], [0], [1], [0, 0, 1, 1], [], []>} : vector<16x128xbf16>, vector<128x128xbf16>, vector<16x128xf32> -> vector<16x128xf32>
    %385 = arith.addf %380, %384 : vector<16x128xf32>
    %c384_339 = arith.constant 384 : index
    %c0_340 = arith.constant 0 : index
    %386 = vector.load %arg10[%c384_339, %c0_340] : memref<784x128xbf16, #tpu.memory_space<vmem>>, vector<16x128xbf16>
    %c0_341 = arith.constant 0 : index
    %c9344 = arith.constant 9344 : index
    %c0_342 = arith.constant 0 : index
    %387 = vector.load %arg4[%c0_341, %c9344, %c0_342] : memref<1x12544x128xbf16, #tpu.memory_space<vmem>>, vector<1x128x128xbf16>
    %388 = vector.shape_cast %387 : vector<1x128x128xbf16> to vector<128x128xbf16>
    %cst_343 = arith.constant dense<0.000000e+00> : vector<16x128xf32>
    %389 = tpu.matmul %386, %388, %cst_343 {dimension_numbers = #tpu.dot_dimension_numbers<[1], [0], [0], [1], [0, 0, 1, 1], [], []>} : vector<16x128xbf16>, vector<128x128xbf16>, vector<16x128xf32> -> vector<16x128xf32>
    %390 = arith.addf %385, %389 : vector<16x128xf32>
    %c400_344 = arith.constant 400 : index
    %c0_345 = arith.constant 0 : index
    %391 = vector.load %arg10[%c400_344, %c0_345] : memref<784x128xbf16, #tpu.memory_space<vmem>>, vector<16x128xbf16>
    %c0_346 = arith.constant 0 : index
    %c9472 = arith.constant 9472 : index
    %c0_347 = arith.constant 0 : index
    %392 = vector.load %arg4[%c0_346, %c9472, %c0_347] : memref<1x12544x128xbf16, #tpu.memory_space<vmem>>, vector<1x128x128xbf16>
    %393 = vector.shape_cast %392 : vector<1x128x128xbf16> to vector<128x128xbf16>
    %cst_348 = arith.constant dense<0.000000e+00> : vector<16x128xf32>
    %394 = tpu.matmul %391, %393, %cst_348 {dimension_numbers = #tpu.dot_dimension_numbers<[1], [0], [0], [1], [0, 0, 1, 1], [], []>} : vector<16x128xbf16>, vector<128x128xbf16>, vector<16x128xf32> -> vector<16x128xf32>
    %395 = arith.addf %390, %394 : vector<16x128xf32>
    %c416_349 = arith.constant 416 : index
    %c0_350 = arith.constant 0 : index
    %396 = vector.load %arg10[%c416_349, %c0_350] : memref<784x128xbf16, #tpu.memory_space<vmem>>, vector<16x128xbf16>
    %c0_351 = arith.constant 0 : index
    %c9600 = arith.constant 9600 : index
    %c0_352 = arith.constant 0 : index
    %397 = vector.load %arg4[%c0_351, %c9600, %c0_352] : memref<1x12544x128xbf16, #tpu.memory_space<vmem>>, vector<1x128x128xbf16>
    %398 = vector.shape_cast %397 : vector<1x128x128xbf16> to vector<128x128xbf16>
    %cst_353 = arith.constant dense<0.000000e+00> : vector<16x128xf32>
    %399 = tpu.matmul %396, %398, %cst_353 {dimension_numbers = #tpu.dot_dimension_numbers<[1], [0], [0], [1], [0, 0, 1, 1], [], []>} : vector<16x128xbf16>, vector<128x128xbf16>, vector<16x128xf32> -> vector<16x128xf32>
    %400 = arith.addf %395, %399 : vector<16x128xf32>
    %c432_354 = arith.constant 432 : index
    %c0_355 = arith.constant 0 : index
    %401 = vector.load %arg10[%c432_354, %c0_355] : memref<784x128xbf16, #tpu.memory_space<vmem>>, vector<16x128xbf16>
    %c0_356 = arith.constant 0 : index
    %c9728 = arith.constant 9728 : index
    %c0_357 = arith.constant 0 : index
    %402 = vector.load %arg4[%c0_356, %c9728, %c0_357] : memref<1x12544x128xbf16, #tpu.memory_space<vmem>>, vector<1x128x128xbf16>
    %403 = vector.shape_cast %402 : vector<1x128x128xbf16> to vector<128x128xbf16>
    %cst_358 = arith.constant dense<0.000000e+00> : vector<16x128xf32>
    %404 = tpu.matmul %401, %403, %cst_358 {dimension_numbers = #tpu.dot_dimension_numbers<[1], [0], [0], [1], [0, 0, 1, 1], [], []>} : vector<16x128xbf16>, vector<128x128xbf16>, vector<16x128xf32> -> vector<16x128xf32>
    %405 = arith.addf %400, %404 : vector<16x128xf32>
    %c448_359 = arith.constant 448 : index
    %c0_360 = arith.constant 0 : index
    %406 = vector.load %arg10[%c448_359, %c0_360] : memref<784x128xbf16, #tpu.memory_space<vmem>>, vector<16x128xbf16>
    %c0_361 = arith.constant 0 : index
    %c9856 = arith.constant 9856 : index
    %c0_362 = arith.constant 0 : index
    %407 = vector.load %arg4[%c0_361, %c9856, %c0_362] : memref<1x12544x128xbf16, #tpu.memory_space<vmem>>, vector<1x128x128xbf16>
    %408 = vector.shape_cast %407 : vector<1x128x128xbf16> to vector<128x128xbf16>
    %cst_363 = arith.constant dense<0.000000e+00> : vector<16x128xf32>
    %409 = tpu.matmul %406, %408, %cst_363 {dimension_numbers = #tpu.dot_dimension_numbers<[1], [0], [0], [1], [0, 0, 1, 1], [], []>} : vector<16x128xbf16>, vector<128x128xbf16>, vector<16x128xf32> -> vector<16x128xf32>
    %410 = arith.addf %405, %409 : vector<16x128xf32>
    %c464_364 = arith.constant 464 : index
    %c0_365 = arith.constant 0 : index
    %411 = vector.load %arg10[%c464_364, %c0_365] : memref<784x128xbf16, #tpu.memory_space<vmem>>, vector<16x128xbf16>
    %c0_366 = arith.constant 0 : index
    %c9984 = arith.constant 9984 : index
    %c0_367 = arith.constant 0 : index
    %412 = vector.load %arg4[%c0_366, %c9984, %c0_367] : memref<1x12544x128xbf16, #tpu.memory_space<vmem>>, vector<1x128x128xbf16>
    %413 = vector.shape_cast %412 : vector<1x128x128xbf16> to vector<128x128xbf16>
    %cst_368 = arith.constant dense<0.000000e+00> : vector<16x128xf32>
    %414 = tpu.matmul %411, %413, %cst_368 {dimension_numbers = #tpu.dot_dimension_numbers<[1], [0], [0], [1], [0, 0, 1, 1], [], []>} : vector<16x128xbf16>, vector<128x128xbf16>, vector<16x128xf32> -> vector<16x128xf32>
    %415 = arith.addf %410, %414 : vector<16x128xf32>
    %c480_369 = arith.constant 480 : index
    %c0_370 = arith.constant 0 : index
    %416 = vector.load %arg10[%c480_369, %c0_370] : memref<784x128xbf16, #tpu.memory_space<vmem>>, vector<16x128xbf16>
    %c0_371 = arith.constant 0 : index
    %c10112 = arith.constant 10112 : index
    %c0_372 = arith.constant 0 : index
    %417 = vector.load %arg4[%c0_371, %c10112, %c0_372] : memref<1x12544x128xbf16, #tpu.memory_space<vmem>>, vector<1x128x128xbf16>
    %418 = vector.shape_cast %417 : vector<1x128x128xbf16> to vector<128x128xbf16>
    %cst_373 = arith.constant dense<0.000000e+00> : vector<16x128xf32>
    %419 = tpu.matmul %416, %418, %cst_373 {dimension_numbers = #tpu.dot_dimension_numbers<[1], [0], [0], [1], [0, 0, 1, 1], [], []>} : vector<16x128xbf16>, vector<128x128xbf16>, vector<16x128xf32> -> vector<16x128xf32>
    %420 = arith.addf %415, %419 : vector<16x128xf32>
    %c496_374 = arith.constant 496 : index
    %c0_375 = arith.constant 0 : index
    %421 = vector.load %arg10[%c496_374, %c0_375] : memref<784x128xbf16, #tpu.memory_space<vmem>>, vector<16x128xbf16>
    %c0_376 = arith.constant 0 : index
    %c10240 = arith.constant 10240 : index
    %c0_377 = arith.constant 0 : index
    %422 = vector.load %arg4[%c0_376, %c10240, %c0_377] : memref<1x12544x128xbf16, #tpu.memory_space<vmem>>, vector<1x128x128xbf16>
    %423 = vector.shape_cast %422 : vector<1x128x128xbf16> to vector<128x128xbf16>
    %cst_378 = arith.constant dense<0.000000e+00> : vector<16x128xf32>
    %424 = tpu.matmul %421, %423, %cst_378 {dimension_numbers = #tpu.dot_dimension_numbers<[1], [0], [0], [1], [0, 0, 1, 1], [], []>} : vector<16x128xbf16>, vector<128x128xbf16>, vector<16x128xf32> -> vector<16x128xf32>
    %425 = arith.addf %420, %424 : vector<16x128xf32>
    %c512_379 = arith.constant 512 : index
    %c0_380 = arith.constant 0 : index
    %426 = vector.load %arg10[%c512_379, %c0_380] : memref<784x128xbf16, #tpu.memory_space<vmem>>, vector<16x128xbf16>
    %c0_381 = arith.constant 0 : index
    %c10368 = arith.constant 10368 : index
    %c0_382 = arith.constant 0 : index
    %427 = vector.load %arg4[%c0_381, %c10368, %c0_382] : memref<1x12544x128xbf16, #tpu.memory_space<vmem>>, vector<1x128x128xbf16>
    %428 = vector.shape_cast %427 : vector<1x128x128xbf16> to vector<128x128xbf16>
    %cst_383 = arith.constant dense<0.000000e+00> : vector<16x128xf32>
    %429 = tpu.matmul %426, %428, %cst_383 {dimension_numbers = #tpu.dot_dimension_numbers<[1], [0], [0], [1], [0, 0, 1, 1], [], []>} : vector<16x128xbf16>, vector<128x128xbf16>, vector<16x128xf32> -> vector<16x128xf32>
    %430 = arith.addf %425, %429 : vector<16x128xf32>
    %c528_384 = arith.constant 528 : index
    %c0_385 = arith.constant 0 : index
    %431 = vector.load %arg10[%c528_384, %c0_385] : memref<784x128xbf16, #tpu.memory_space<vmem>>, vector<16x128xbf16>
    %c0_386 = arith.constant 0 : index
    %c10496 = arith.constant 10496 : index
    %c0_387 = arith.constant 0 : index
    %432 = vector.load %arg4[%c0_386, %c10496, %c0_387] : memref<1x12544x128xbf16, #tpu.memory_space<vmem>>, vector<1x128x128xbf16>
    %433 = vector.shape_cast %432 : vector<1x128x128xbf16> to vector<128x128xbf16>
    %cst_388 = arith.constant dense<0.000000e+00> : vector<16x128xf32>
    %434 = tpu.matmul %431, %433, %cst_388 {dimension_numbers = #tpu.dot_dimension_numbers<[1], [0], [0], [1], [0, 0, 1, 1], [], []>} : vector<16x128xbf16>, vector<128x128xbf16>, vector<16x128xf32> -> vector<16x128xf32>
    %435 = arith.addf %430, %434 : vector<16x128xf32>
    %c544_389 = arith.constant 544 : index
    %c0_390 = arith.constant 0 : index
    %436 = vector.load %arg10[%c544_389, %c0_390] : memref<784x128xbf16, #tpu.memory_space<vmem>>, vector<16x128xbf16>
    %c0_391 = arith.constant 0 : index
    %c10624 = arith.constant 10624 : index
    %c0_392 = arith.constant 0 : index
    %437 = vector.load %arg4[%c0_391, %c10624, %c0_392] : memref<1x12544x128xbf16, #tpu.memory_space<vmem>>, vector<1x128x128xbf16>
    %438 = vector.shape_cast %437 : vector<1x128x128xbf16> to vector<128x128xbf16>
    %cst_393 = arith.constant dense<0.000000e+00> : vector<16x128xf32>
    %439 = tpu.matmul %436, %438, %cst_393 {dimension_numbers = #tpu.dot_dimension_numbers<[1], [0], [0], [1], [0, 0, 1, 1], [], []>} : vector<16x128xbf16>, vector<128x128xbf16>, vector<16x128xf32> -> vector<16x128xf32>
    %440 = arith.addf %435, %439 : vector<16x128xf32>
    %c560_394 = arith.constant 560 : index
    %c0_395 = arith.constant 0 : index
    %441 = vector.load %arg10[%c560_394, %c0_395] : memref<784x128xbf16, #tpu.memory_space<vmem>>, vector<16x128xbf16>
    %c0_396 = arith.constant 0 : index
    %c10752 = arith.constant 10752 : index
    %c0_397 = arith.constant 0 : index
    %442 = vector.load %arg4[%c0_396, %c10752, %c0_397] : memref<1x12544x128xbf16, #tpu.memory_space<vmem>>, vector<1x128x128xbf16>
    %443 = vector.shape_cast %442 : vector<1x128x128xbf16> to vector<128x128xbf16>
    %cst_398 = arith.constant dense<0.000000e+00> : vector<16x128xf32>
    %444 = tpu.matmul %441, %443, %cst_398 {dimension_numbers = #tpu.dot_dimension_numbers<[1], [0], [0], [1], [0, 0, 1, 1], [], []>} : vector<16x128xbf16>, vector<128x128xbf16>, vector<16x128xf32> -> vector<16x128xf32>
    %445 = arith.addf %440, %444 : vector<16x128xf32>
    %c576_399 = arith.constant 576 : index
    %c0_400 = arith.constant 0 : index
    %446 = vector.load %arg10[%c576_399, %c0_400] : memref<784x128xbf16, #tpu.memory_space<vmem>>, vector<16x128xbf16>
    %c0_401 = arith.constant 0 : index
    %c10880 = arith.constant 10880 : index
    %c0_402 = arith.constant 0 : index
    %447 = vector.load %arg4[%c0_401, %c10880, %c0_402] : memref<1x12544x128xbf16, #tpu.memory_space<vmem>>, vector<1x128x128xbf16>
    %448 = vector.shape_cast %447 : vector<1x128x128xbf16> to vector<128x128xbf16>
    %cst_403 = arith.constant dense<0.000000e+00> : vector<16x128xf32>
    %449 = tpu.matmul %446, %448, %cst_403 {dimension_numbers = #tpu.dot_dimension_numbers<[1], [0], [0], [1], [0, 0, 1, 1], [], []>} : vector<16x128xbf16>, vector<128x128xbf16>, vector<16x128xf32> -> vector<16x128xf32>
    %450 = arith.addf %445, %449 : vector<16x128xf32>
    %c592_404 = arith.constant 592 : index
    %c0_405 = arith.constant 0 : index
    %451 = vector.load %arg10[%c592_404, %c0_405] : memref<784x128xbf16, #tpu.memory_space<vmem>>, vector<16x128xbf16>
    %c0_406 = arith.constant 0 : index
    %c11008 = arith.constant 11008 : index
    %c0_407 = arith.constant 0 : index
    %452 = vector.load %arg4[%c0_406, %c11008, %c0_407] : memref<1x12544x128xbf16, #tpu.memory_space<vmem>>, vector<1x128x128xbf16>
    %453 = vector.shape_cast %452 : vector<1x128x128xbf16> to vector<128x128xbf16>
    %cst_408 = arith.constant dense<0.000000e+00> : vector<16x128xf32>
    %454 = tpu.matmul %451, %453, %cst_408 {dimension_numbers = #tpu.dot_dimension_numbers<[1], [0], [0], [1], [0, 0, 1, 1], [], []>} : vector<16x128xbf16>, vector<128x128xbf16>, vector<16x128xf32> -> vector<16x128xf32>
    %455 = arith.addf %450, %454 : vector<16x128xf32>
    %c608_409 = arith.constant 608 : index
    %c0_410 = arith.constant 0 : index
    %456 = vector.load %arg10[%c608_409, %c0_410] : memref<784x128xbf16, #tpu.memory_space<vmem>>, vector<16x128xbf16>
    %c0_411 = arith.constant 0 : index
    %c11136 = arith.constant 11136 : index
    %c0_412 = arith.constant 0 : index
    %457 = vector.load %arg4[%c0_411, %c11136, %c0_412] : memref<1x12544x128xbf16, #tpu.memory_space<vmem>>, vector<1x128x128xbf16>
    %458 = vector.shape_cast %457 : vector<1x128x128xbf16> to vector<128x128xbf16>
    %cst_413 = arith.constant dense<0.000000e+00> : vector<16x128xf32>
    %459 = tpu.matmul %456, %458, %cst_413 {dimension_numbers = #tpu.dot_dimension_numbers<[1], [0], [0], [1], [0, 0, 1, 1], [], []>} : vector<16x128xbf16>, vector<128x128xbf16>, vector<16x128xf32> -> vector<16x128xf32>
    %460 = arith.addf %455, %459 : vector<16x128xf32>
    %c624_414 = arith.constant 624 : index
    %c0_415 = arith.constant 0 : index
    %461 = vector.load %arg10[%c624_414, %c0_415] : memref<784x128xbf16, #tpu.memory_space<vmem>>, vector<16x128xbf16>
    %c0_416 = arith.constant 0 : index
    %c11264 = arith.constant 11264 : index
    %c0_417 = arith.constant 0 : index
    %462 = vector.load %arg4[%c0_416, %c11264, %c0_417] : memref<1x12544x128xbf16, #tpu.memory_space<vmem>>, vector<1x128x128xbf16>
    %463 = vector.shape_cast %462 : vector<1x128x128xbf16> to vector<128x128xbf16>
    %cst_418 = arith.constant dense<0.000000e+00> : vector<16x128xf32>
    %464 = tpu.matmul %461, %463, %cst_418 {dimension_numbers = #tpu.dot_dimension_numbers<[1], [0], [0], [1], [0, 0, 1, 1], [], []>} : vector<16x128xbf16>, vector<128x128xbf16>, vector<16x128xf32> -> vector<16x128xf32>
    %465 = arith.addf %460, %464 : vector<16x128xf32>
    %c640_419 = arith.constant 640 : index
    %c0_420 = arith.constant 0 : index
    %466 = vector.load %arg10[%c640_419, %c0_420] : memref<784x128xbf16, #tpu.memory_space<vmem>>, vector<16x128xbf16>
    %c0_421 = arith.constant 0 : index
    %c11392 = arith.constant 11392 : index
    %c0_422 = arith.constant 0 : index
    %467 = vector.load %arg4[%c0_421, %c11392, %c0_422] : memref<1x12544x128xbf16, #tpu.memory_space<vmem>>, vector<1x128x128xbf16>
    %468 = vector.shape_cast %467 : vector<1x128x128xbf16> to vector<128x128xbf16>
    %cst_423 = arith.constant dense<0.000000e+00> : vector<16x128xf32>
    %469 = tpu.matmul %466, %468, %cst_423 {dimension_numbers = #tpu.dot_dimension_numbers<[1], [0], [0], [1], [0, 0, 1, 1], [], []>} : vector<16x128xbf16>, vector<128x128xbf16>, vector<16x128xf32> -> vector<16x128xf32>
    %470 = arith.addf %465, %469 : vector<16x128xf32>
    %c656_424 = arith.constant 656 : index
    %c0_425 = arith.constant 0 : index
    %471 = vector.load %arg10[%c656_424, %c0_425] : memref<784x128xbf16, #tpu.memory_space<vmem>>, vector<16x128xbf16>
    %c0_426 = arith.constant 0 : index
    %c11520 = arith.constant 11520 : index
    %c0_427 = arith.constant 0 : index
    %472 = vector.load %arg4[%c0_426, %c11520, %c0_427] : memref<1x12544x128xbf16, #tpu.memory_space<vmem>>, vector<1x128x128xbf16>
    %473 = vector.shape_cast %472 : vector<1x128x128xbf16> to vector<128x128xbf16>
    %cst_428 = arith.constant dense<0.000000e+00> : vector<16x128xf32>
    %474 = tpu.matmul %471, %473, %cst_428 {dimension_numbers = #tpu.dot_dimension_numbers<[1], [0], [0], [1], [0, 0, 1, 1], [], []>} : vector<16x128xbf16>, vector<128x128xbf16>, vector<16x128xf32> -> vector<16x128xf32>
    %475 = arith.addf %470, %474 : vector<16x128xf32>
    %c672_429 = arith.constant 672 : index
    %c0_430 = arith.constant 0 : index
    %476 = vector.load %arg10[%c672_429, %c0_430] : memref<784x128xbf16, #tpu.memory_space<vmem>>, vector<16x128xbf16>
    %c0_431 = arith.constant 0 : index
    %c11648 = arith.constant 11648 : index
    %c0_432 = arith.constant 0 : index
    %477 = vector.load %arg4[%c0_431, %c11648, %c0_432] : memref<1x12544x128xbf16, #tpu.memory_space<vmem>>, vector<1x128x128xbf16>
    %478 = vector.shape_cast %477 : vector<1x128x128xbf16> to vector<128x128xbf16>
    %cst_433 = arith.constant dense<0.000000e+00> : vector<16x128xf32>
    %479 = tpu.matmul %476, %478, %cst_433 {dimension_numbers = #tpu.dot_dimension_numbers<[1], [0], [0], [1], [0, 0, 1, 1], [], []>} : vector<16x128xbf16>, vector<128x128xbf16>, vector<16x128xf32> -> vector<16x128xf32>
    %480 = arith.addf %475, %479 : vector<16x128xf32>
    %c688_434 = arith.constant 688 : index
    %c0_435 = arith.constant 0 : index
    %481 = vector.load %arg10[%c688_434, %c0_435] : memref<784x128xbf16, #tpu.memory_space<vmem>>, vector<16x128xbf16>
    %c0_436 = arith.constant 0 : index
    %c11776 = arith.constant 11776 : index
    %c0_437 = arith.constant 0 : index
    %482 = vector.load %arg4[%c0_436, %c11776, %c0_437] : memref<1x12544x128xbf16, #tpu.memory_space<vmem>>, vector<1x128x128xbf16>
    %483 = vector.shape_cast %482 : vector<1x128x128xbf16> to vector<128x128xbf16>
    %cst_438 = arith.constant dense<0.000000e+00> : vector<16x128xf32>
    %484 = tpu.matmul %481, %483, %cst_438 {dimension_numbers = #tpu.dot_dimension_numbers<[1], [0], [0], [1], [0, 0, 1, 1], [], []>} : vector<16x128xbf16>, vector<128x128xbf16>, vector<16x128xf32> -> vector<16x128xf32>
    %485 = arith.addf %480, %484 : vector<16x128xf32>
    %c704_439 = arith.constant 704 : index
    %c0_440 = arith.constant 0 : index
    %486 = vector.load %arg10[%c704_439, %c0_440] : memref<784x128xbf16, #tpu.memory_space<vmem>>, vector<16x128xbf16>
    %c0_441 = arith.constant 0 : index
    %c11904 = arith.constant 11904 : index
    %c0_442 = arith.constant 0 : index
    %487 = vector.load %arg4[%c0_441, %c11904, %c0_442] : memref<1x12544x128xbf16, #tpu.memory_space<vmem>>, vector<1x128x128xbf16>
    %488 = vector.shape_cast %487 : vector<1x128x128xbf16> to vector<128x128xbf16>
    %cst_443 = arith.constant dense<0.000000e+00> : vector<16x128xf32>
    %489 = tpu.matmul %486, %488, %cst_443 {dimension_numbers = #tpu.dot_dimension_numbers<[1], [0], [0], [1], [0, 0, 1, 1], [], []>} : vector<16x128xbf16>, vector<128x128xbf16>, vector<16x128xf32> -> vector<16x128xf32>
    %490 = arith.addf %485, %489 : vector<16x128xf32>
    %c720_444 = arith.constant 720 : index
    %c0_445 = arith.constant 0 : index
    %491 = vector.load %arg10[%c720_444, %c0_445] : memref<784x128xbf16, #tpu.memory_space<vmem>>, vector<16x128xbf16>
    %c0_446 = arith.constant 0 : index
    %c12032 = arith.constant 12032 : index
    %c0_447 = arith.constant 0 : index
    %492 = vector.load %arg4[%c0_446, %c12032, %c0_447] : memref<1x12544x128xbf16, #tpu.memory_space<vmem>>, vector<1x128x128xbf16>
    %493 = vector.shape_cast %492 : vector<1x128x128xbf16> to vector<128x128xbf16>
    %cst_448 = arith.constant dense<0.000000e+00> : vector<16x128xf32>
    %494 = tpu.matmul %491, %493, %cst_448 {dimension_numbers = #tpu.dot_dimension_numbers<[1], [0], [0], [1], [0, 0, 1, 1], [], []>} : vector<16x128xbf16>, vector<128x128xbf16>, vector<16x128xf32> -> vector<16x128xf32>
    %495 = arith.addf %490, %494 : vector<16x128xf32>
    %c736_449 = arith.constant 736 : index
    %c0_450 = arith.constant 0 : index
    %496 = vector.load %arg10[%c736_449, %c0_450] : memref<784x128xbf16, #tpu.memory_space<vmem>>, vector<16x128xbf16>
    %c0_451 = arith.constant 0 : index
    %c12160 = arith.constant 12160 : index
    %c0_452 = arith.constant 0 : index
    %497 = vector.load %arg4[%c0_451, %c12160, %c0_452] : memref<1x12544x128xbf16, #tpu.memory_space<vmem>>, vector<1x128x128xbf16>
    %498 = vector.shape_cast %497 : vector<1x128x128xbf16> to vector<128x128xbf16>
    %cst_453 = arith.constant dense<0.000000e+00> : vector<16x128xf32>
    %499 = tpu.matmul %496, %498, %cst_453 {dimension_numbers = #tpu.dot_dimension_numbers<[1], [0], [0], [1], [0, 0, 1, 1], [], []>} : vector<16x128xbf16>, vector<128x128xbf16>, vector<16x128xf32> -> vector<16x128xf32>
    %500 = arith.addf %495, %499 : vector<16x128xf32>
    %c752_454 = arith.constant 752 : index
    %c0_455 = arith.constant 0 : index
    %501 = vector.load %arg10[%c752_454, %c0_455] : memref<784x128xbf16, #tpu.memory_space<vmem>>, vector<16x128xbf16>
    %c0_456 = arith.constant 0 : index
    %c12288 = arith.constant 12288 : index
    %c0_457 = arith.constant 0 : index
    %502 = vector.load %arg4[%c0_456, %c12288, %c0_457] : memref<1x12544x128xbf16, #tpu.memory_space<vmem>>, vector<1x128x128xbf16>
    %503 = vector.shape_cast %502 : vector<1x128x128xbf16> to vector<128x128xbf16>
    %cst_458 = arith.constant dense<0.000000e+00> : vector<16x128xf32>
    %504 = tpu.matmul %501, %503, %cst_458 {dimension_numbers = #tpu.dot_dimension_numbers<[1], [0], [0], [1], [0, 0, 1, 1], [], []>} : vector<16x128xbf16>, vector<128x128xbf16>, vector<16x128xf32> -> vector<16x128xf32>
    %505 = arith.addf %500, %504 : vector<16x128xf32>
    %c768_459 = arith.constant 768 : index
    %c0_460 = arith.constant 0 : index
    %506 = vector.load %arg10[%c768_459, %c0_460] : memref<784x128xbf16, #tpu.memory_space<vmem>>, vector<16x128xbf16>
    %c0_461 = arith.constant 0 : index
    %c12416 = arith.constant 12416 : index
    %c0_462 = arith.constant 0 : index
    %507 = vector.load %arg4[%c0_461, %c12416, %c0_462] : memref<1x12544x128xbf16, #tpu.memory_space<vmem>>, vector<1x128x128xbf16>
    %508 = vector.shape_cast %507 : vector<1x128x128xbf16> to vector<128x128xbf16>
    %cst_463 = arith.constant dense<0.000000e+00> : vector<16x128xf32>
    %509 = tpu.matmul %506, %508, %cst_463 {dimension_numbers = #tpu.dot_dimension_numbers<[1], [0], [0], [1], [0, 0, 1, 1], [], []>} : vector<16x128xbf16>, vector<128x128xbf16>, vector<16x128xf32> -> vector<16x128xf32>
    %510 = arith.addf %505, %509 : vector<16x128xf32>
    %c0_464 = arith.constant 0 : index
    %c1 = arith.constant 1 : index
    %c0_465 = arith.constant 0 : index
    %511 = vector.load %arg5[%c0_464, %c1, %c0_465] : memref<1x2x128xf32, #tpu.memory_space<vmem>>, vector<1x1x128xf32>
    %512 = vector.shape_cast %511 : vector<1x1x128xf32> to vector<1x128xf32>
    %513 = vector.broadcast %512 : vector<1x128xf32> to vector<16x128xf32>
    %514 = arith.addf %510, %513 : vector<16x128xf32>
    %515 = tpu.iota {dimensions = array<i32: 1>} : vector<16x128xi32>
    %c96_i32 = arith.constant 96 : i32
    %516 = vector.broadcast %c96_i32 : i32 to vector<16x128xi32>
    %517 = arith.cmpi slt, %515, %516 : vector<16x128xi32>
    %cst_466 = arith.constant 0.000000e+00 : f32
    %518 = vector.broadcast %cst_466 : f32 to vector<16x128xf32>
    %519 = arith.select %517, %514, %518 : vector<16x128xi1>, vector<16x128xf32>
    %520 = vector.shape_cast %519 : vector<16x128xf32> to vector<1x16x128xf32>
    %cst_467 = arith.constant dense<0.000000e+00> : vector<1xf32>
    %521 = vector.multi_reduction <add>, %520, %cst_467 [1, 2] : vector<1x16x128xf32> to vector<1xf32>
    %522 = vector.shape_cast %521 : vector<1xf32> to vector<1x1x1xf32>
    %523 = vector.extract %522[0, 0, 0] : f32 from vector<1x1x1xf32>
    %cst_468 = arith.constant 1.536000e+03 : f32
    %524 = arith.divf %523, %cst_468 : f32
    %525 = vector.broadcast %524 : f32 to vector<16x128xf32>
    %526 = arith.subf %514, %525 : vector<16x128xf32>
    %cst_469 = arith.constant 0.000000e+00 : f32
    %527 = vector.broadcast %cst_469 : f32 to vector<16x128xf32>
    %528 = arith.select %517, %526, %527 : vector<16x128xi1>, vector<16x128xf32>
    %529 = arith.mulf %528, %528 : vector<16x128xf32>
    %530 = vector.shape_cast %529 : vector<16x128xf32> to vector<1x16x128xf32>
    %cst_470 = arith.constant dense<0.000000e+00> : vector<1xf32>
    %531 = vector.multi_reduction <add>, %530, %cst_470 [1, 2] : vector<1x16x128xf32> to vector<1xf32>
    %532 = vector.shape_cast %531 : vector<1xf32> to vector<1x1x1xf32>
    %533 = vector.extract %532[0, 0, 0] : f32 from vector<1x1x1xf32>
    %cst_471 = arith.constant 1.536000e+03 : f32
    %534 = arith.divf %533, %cst_471 : f32
    %cst_472 = arith.constant 9.99999974E-6 : f32
    %535 = arith.addf %534, %cst_472 : f32
    %536 = math.rsqrt %535 : f32
    %537 = vector.broadcast %536 : f32 to vector<16x128xf32>
    %538 = arith.mulf %528, %537 : vector<16x128xf32>
    %c0_473 = arith.constant 0 : index
    %c0_474 = arith.constant 0 : index
    %c0_475 = arith.constant 0 : index
    %539 = vector.load %arg6[%c0_473, %c0_474, %c0_475] : memref<1x16x128xf32, #tpu.memory_space<vmem>>, vector<1x16x128xf32>
    %540 = vector.shape_cast %539 : vector<1x16x128xf32> to vector<16x128xf32>
    %541 = arith.mulf %538, %540 : vector<16x128xf32>
    %c0_476 = arith.constant 0 : index
    %c0_477 = arith.constant 0 : index
    %c0_478 = arith.constant 0 : index
    %542 = vector.load %arg7[%c0_476, %c0_477, %c0_478] : memref<1x16x128xf32, #tpu.memory_space<vmem>>, vector<1x16x128xf32>
    %543 = vector.shape_cast %542 : vector<1x16x128xf32> to vector<16x128xf32>
    %544 = arith.addf %541, %543 : vector<16x128xf32>
    %545 = arith.addf %544, %3 : vector<16x128xf32>
    %cst_479 = arith.constant 0.000000e+00 : f32
    %546 = vector.broadcast %cst_479 : f32 to vector<16x128xf32>
    %547 = arith.select %517, %545, %546 : vector<16x128xi1>, vector<16x128xf32>
    %c0_480 = arith.constant 0 : index
    %c0_481 = arith.constant 0 : index
    %548 = vector.load %arg9[%c0_480, %c0_481] : memref<16x128xf32, #tpu.memory_space<vmem>>, vector<16x128xf32>
    tpu.vector_store %arg9[%c0_480, %c0_481], %547 {strides = array<i32>} : memref<16x128xf32, #tpu.memory_space<vmem>>, vector<16x128xf32>,
    %c0_482 = arith.constant 0 : index
    %c0_483 = arith.constant 0 : index
    %c0_484 = arith.constant 0 : index
    %549 = vector.load %arg8[%c0_482, %c0_483, %c0_484] : memref<1x16x128xf32, #tpu.memory_space<vmem>>, vector<1x16x128xf32>
    %550 = vector.shape_cast %549 : vector<1x16x128xf32> to vector<16x128xf32>
    %551 = vector.shape_cast %547 : vector<16x128xf32> to vector<1x16x128xf32>
    tpu.vector_store %arg8[%c0_482, %c0_483, %c0_484], %551 {strides = array<i32>} : memref<1x16x128xf32, #tpu.memory_space<vmem>>, vector<1x16x128xf32>,
    return
  }
  func.func @transform_0(%arg0: i32, %arg1: i32) -> (i32, i32, i32) {
    %c0_i32 = arith.constant 0 : i32
    %c0_i32_0 = arith.constant 0 : i32
    %c0_i32_1 = arith.constant 0 : i32
    return %arg0, %c0_i32, %c0_i32_0 : i32, i32, i32
  }
  func.func @transform_1(%arg0: i32, %arg1: i32) -> (i32, i32) {
    %c0_i32 = arith.constant 0 : i32
    %c0_i32_0 = arith.constant 0 : i32
    %c0_i32_1 = arith.constant 0 : i32
    return %c0_i32, %c0_i32_0 : i32, i32
  }
  func.func @transform_2(%arg0: i32, %arg1: i32) -> (i32, i32, i32) {
    %c0_i32 = arith.constant 0 : i32
    %c0_i32_0 = arith.constant 0 : i32
    %c0_i32_1 = arith.constant 0 : i32
    return %arg1, %c0_i32, %c0_i32_0 : i32, i32, i32
  }
  func.func @transform_3(%arg0: i32, %arg1: i32) -> (i32, i32, i32) {
    %c0_i32 = arith.constant 0 : i32
    %c0_i32_0 = arith.constant 0 : i32
    %c0_i32_1 = arith.constant 0 : i32
    return %arg1, %c0_i32, %c0_i32_0 : i32, i32, i32
  }
  func.func @transform_4(%arg0: i32, %arg1: i32) -> (i32, i32, i32) {
    %c0_i32 = arith.constant 0 : i32
    %c0_i32_0 = arith.constant 0 : i32
    %c0_i32_1 = arith.constant 0 : i32
    return %arg1, %c0_i32, %c0_i32_0 : i32, i32, i32
  }
  func.func @transform_5(%arg0: i32, %arg1: i32) -> (i32, i32, i32) {
    %c0_i32 = arith.constant 0 : i32
    %c0_i32_0 = arith.constant 0 : i32
    %c0_i32_1 = arith.constant 0 : i32
    return %arg1, %c0_i32, %c0_i32_0 : i32, i32, i32
  }
  func.func @transform_6(%arg0: i32, %arg1: i32) -> (i32, i32, i32) {
    %c0_i32 = arith.constant 0 : i32
    %c0_i32_0 = arith.constant 0 : i32
    %c0_i32_1 = arith.constant 0 : i32
    return %arg0, %c0_i32, %c0_i32_0 : i32, i32, i32
  }
}

</mosaic_0001>

<bundles_post_ra>
// kernel: cnn2d_ns_rich_forward.3
= control target key start
LH: loop header
LB: loop body
LE: loop exit
PB: predicated region body
PF: predicated region fallthrough
CT: control target
= control target key end

     0   :  { %8 = vsyncpa [#allocation3], 0  ;;  %s1179_s0 = inlined_call_operand.vmem [shape: bf16[128,288], index: 0, kind: input, shape index: {}]   ;;  %s1180_s1 = inlined_call_operand.hbm [shape: bf16[288,128], index: 1, kind: input, shape index: {}]   ;;  %s1181_s2 = inlined_call_operand.hbm [shape: f32[1,128], index: 2, kind: input, shape index: {}]   ;;  %s1182_s3 = inlined_call_operand.vmem [shape: bf16[128,128], index: 3, kind: output, shape index: {}]  }
   0x1   :  { %9 = vsyncpa [#allocation5], 0  ;;  %s1003_s12 = smov [#allocation2]  }
   0x2   :  { %s17_s13 = sshll.u32 %s1003_s12, 4  ;;  %s18_s13 = int_to_ptr.vmem [resolvable:$true] %s17_s13 }
   0x3   :  { %s967_s14 = scalar_lea.vmem %s18_s13, 2304  ;;  %p972_p1 = scmp.lt.s32.totalorder %s18_s13, %s18_s13 }
   0x4   :  { %p968_p0 = scmp.ne.s32.totalorder %s18_s13, %s967_s14  ;;  %p973_p2 = scmp.lt.s32.totalorder %s967_s14, %s967_s14 }
   0x6   :  { %p974_p3 = por %p973_p2, %p972_p1 }
   0x8   :  { %p975_p4 = pnand %p974_p3, %p968_p0 }
   0xa   :  { %978 = shalt.err (!%p975_p4)
}
   0xb   :  { %s1004_s15 = smov 64   ;;  %s1005_s16 = smov 4  }
   0xc   :  { %23 = dma.hbm_to_vmem [thread:$0]  %s1180_s1, 2304, %s18_s13, [#allocation3], %s1004_s15, %s1004_s15, %s1005_s16  }
   0xd   :  { %s1006_s19 = smov [#allocation4]  }
   0xe   :  { %s30_s20 = sshll.u32 %s1006_s19, 4  ;;  %s31_s20 = int_to_ptr.vmem [resolvable:$true] %s30_s20 }
   0xf   :  { %s987_s21 = scalar_lea.vmem %s31_s20, 16  ;;  %s991_s22 = scalar_lea.vmem %s31_s20, 32 }
  0x10   :  { %p988_p5 = scmp.ne.s32.totalorder %s31_s20, %s987_s21  ;;  %p992_p6 = scmp.lt.s32.totalorder %s31_s20, %s31_s20 }
  0x11   :  { %p993_p7 = scmp.lt.s32.totalorder %s991_s22, %s987_s21 }
  0x13   :  { %p994_p8 = por %p993_p7, %p992_p6 }
  0x15   :  { %p995_p9 = pnand %p994_p8, %p988_p5 }
  0x17   :  { %998 = shalt.err (!%p995_p9)
}
  0x18   :  { %33 = dma.hbm_to_vmem [thread:$0]  %s1181_s2, 16, %s31_s20, [#allocation5]  }
  0x19   :  { %999 = dma.done.wait [#allocation3], 2304  }
  0x1a   :  { %1000 = vsyncadd [#allocation3], 4294964992 }
  0x1b   :  { %1001 = dma.done.wait [#allocation5], 16  }
  0x1c   :  { %1002 = vsyncadd [#allocation5], 4294967280  ;;  %v909_v0 = vld [vmem:[#allocation2 + $0x78] sm:$0xff]   ;;  %v911_v2 = vld [vmem:[#allocation2 + $0x70] sm:$0xff]   ;;  %vm344_vm0 = vcmask 261120  }
  0x1d   :  { %v910_v1 = vld [vmem:[#allocation2 + $0x38] sm:$0xff]   ;;  %795 = vmatprep.subr.bf16.mxu0 %v909_v0  ;;  %889 = vmatprep.subr.bf16.mxu1 %v909_v0  ;;  %v912_v3 = vld [vmem:[#allocation2 + $0x30] sm:$0xff]   ;;  %v913_v4 = vld [vmem:[#allocation2 + $0x68] sm:$0xff]  }
  0x1e   :  { %796 = vmatpush3.bf16.msra.mxu0 %v910_v1  ;;  %897 = vmatpush3.bf16.msra.mxu1 %v910_v1  ;;  %v914_v5 = vld [vmem:[#allocation2 + $0x28] sm:$0xff]   ;;  %v915_v6 = vld [vmem:[#allocation2 + $0x60] sm:$0xff]   ;;  %v917_v8 = vld [vmem:[#allocation2 + $0x58] sm:$0xff]  }
  0x1f   :  { %797 = vmatprep.subr.bf16.mxu0 %v911_v2  ;;  %890 = vmatprep.subr.bf16.mxu1 %v911_v2  ;;  %v916_v7 = vld [vmem:[#allocation2 + $0x20] sm:$0xff]   ;;  %v918_v9 = vld [vmem:[#allocation2 + $0x18] sm:$0xff]   ;;  %v919_v10 = vld [vmem:[#allocation2 + $0x50] sm:$0xff]  }
  0x20   :  { %v927_v11 = vld [vmem:[%s1179_s0 + $0x4] ss:$12 sps:$4 sm:$0xff]   ;;  %v930_v12 = vld [vmem:[%s1179_s0 + $0x94] ss:$12 sps:$4 sm:$0xff]   ;;  %v921_v14 = vld [vmem:[#allocation2 + $0x48] sm:$0xff]  }
  0x21   :  { %v920_v13 = vld [vmem:[#allocation2 + $0x10] sm:$0xff]   ;;  %401 = vmatprep.mubr.bf16.mxu0 %v927_v11  ;;  %449 = vmatprep.mubr.bf16.mxu1 %v930_v12  ;;  %v922_v15 = vld [vmem:[#allocation2 + $0x8] sm:$0xff]   ;;  %v923_v16 = vld [vmem:[#allocation2 + $0x40] sm:$0xff]  }
  0x22   :  { %798 = vmatpush3.bf16.msra.mxu0 %v912_v3  ;;  %898 = vmatpush3.bf16.msra.mxu1 %v912_v3  ;;  %v924_v17 = vld [vmem:[#allocation2] sm:$0xff]   ;;  %v931_v19 = vld [vmem:[#allocation2 + $0x88] sm:$0xff]   ;;  %v928_v20 = vld [vmem:[%s1179_s0 + $0x90] ss:$12 sps:$4 sm:$0xff]  }
  0x23   :  { %799 = vmatprep.subr.bf16.mxu0 %v913_v4  ;;  %891 = vmatprep.subr.bf16.mxu1 %v913_v4  ;;  %v925_v18 = vld [vmem:[%s1179_s0] ss:$12 sps:$4 sm:$0xff]   ;;  %v932_v21 = vld [vmem:[%s1179_s0 + $0x1c] ss:$12 sps:$4 sm:$0xff]   ;;  %v936_v24 = vld [vmem:[%s1179_s0 + $0x18] ss:$12 sps:$4 sm:$0xff]  }
  0x24   :  { %v934_v22 = vld [vmem:[%s1179_s0 + $0xac] ss:$12 sps:$4 sm:$0xff]   ;;  %v938_v23 = vld [vmem:[#allocation2 + $0x80] sm:$0xff]   ;;  %v937_v25 = vld [vmem:[%s1179_s0 + $0xa8] ss:$12 sps:$4 sm:$0xff]  }
  0x25   :  { %v939_v26 = vld [vmem:[%s1179_s0 + $0x34] ss:$12 sps:$4 sm:$0xff]   ;;  %v942_v28 = vld [vmem:[%s1179_s0 + $0x30] ss:$12 sps:$4 sm:$0xff]   ;;  %v944_v30 = vld [vmem:[%s1179_s0 + $0x4c] ss:$12 sps:$4 sm:$0xff]  }
  0x26   :  { %800 = vmatpush3.bf16.msra.mxu0 %v914_v5  ;;  %899 = vmatpush3.bf16.msra.mxu1 %v914_v5  ;;  %v941_v27 = vld [vmem:[%s1179_s0 + $0x8] ss:$12 sps:$4 sm:$0xff]   ;;  %v943_v29 = vld [vmem:[%s1179_s0 + $0x20] ss:$12 sps:$4 sm:$0xff]   ;;  %v946_v31 = vld [vmem:[%s1179_s0 + $0x38] ss:$12 sps:$4 sm:$0xff]  }
  0x27   :  { %801 = vmatprep.subr.bf16.mxu0 %v915_v6  ;;  %892 = vmatprep.subr.bf16.mxu1 %v915_v6  ;;  %v947_v32 = vld [vmem:[%s1179_s0 + $0x48] ss:$12 sps:$4 sm:$0xff]   ;;  %v948_v33 = vld [vmem:[%s1179_s0 + $0x50] ss:$12 sps:$4 sm:$0xff]   ;;  %v952_v36 = vld [vmem:[%s1179_s0 + $0x60] ss:$12 sps:$4 sm:$0xff]  }
  0x28   :  { %v949_v34 = vld [vmem:[%s1179_s0 + $0x64] ss:$12 sps:$4 sm:$0xff]   ;;  %v951_v35 = vld [vmem:[%s1179_s0 + $0x68] ss:$12 sps:$4 sm:$0xff]   ;;  %v953_v37 = vld [vmem:[%s1179_s0 + $0x80] ss:$12 sps:$4 sm:$0xff]  }
  0x29   :  { %v954_v38 = vld [vmem:[%s1179_s0 + $0x7c] ss:$12 sps:$4 sm:$0xff]   ;;  %v956_v39 = vld [vmem:[%s1179_s0 + $0x98] ss:$12 sps:$4 sm:$0xff]   ;;  %v1129_v62 = vld [vmem:[#allocation4] ss:$0 sm:$0xff] }
  0x2a   :  { %802 = vmatpush3.bf16.msra.mxu0 %v916_v7  ;;  %900 = vmatpush3.bf16.msra.mxu1 %v916_v7  ;;  %v957_v40 = vld [vmem:[%s1179_s0 + $0x78] ss:$12 sps:$4 sm:$0xff]   ;;  %v958_v41 = vld [vmem:[%s1179_s0 + $0xb0] ss:$12 sps:$4 sm:$0xff]  }
  0x2b   :  { %803 = vmatprep.subr.bf16.mxu0 %v917_v8  ;;  %893 = vmatprep.subr.bf16.mxu1 %v917_v8 }
  0x2e   :  { %804 = vmatpush3.bf16.msra.mxu0 %v918_v9  ;;  %901 = vmatpush3.bf16.msra.mxu1 %v918_v9 }
  0x2f   :  { %805 = vmatprep.subr.bf16.mxu0 %v919_v10  ;;  %894 = vmatprep.subr.bf16.mxu1 %v919_v10 }
  0x32   :  { %806 = vmatpush3.bf16.msra.mxu0 %v920_v13  ;;  %902 = vmatpush3.bf16.msra.mxu1 %v920_v13 }
  0x33   :  { %807 = vmatprep.subr.bf16.mxu0 %v921_v14  ;;  %895 = vmatprep.subr.bf16.mxu1 %v921_v14 }
  0x36   :  { %808 = vmatpush3.bf16.msra.mxu0 %v922_v15  ;;  %903 = vmatpush3.bf16.msra.mxu1 %v922_v15 }
  0x37   :  { %809 = vmatprep.subr.bf16.mxu0 %v923_v16  ;;  %896 = vmatprep.subr.bf16.mxu1 %v923_v16 }
  0x3a   :  { %810 = vmatpush3.bf16.msra.mxu0 %v924_v17  ;;  %904 = vmatpush3.bf16.msra.mxu1 %v924_v17 }
  0x3b   :  { %869 = vmatprep.subr.bf16.mxu1 %v931_v19 }
  0x3d   :  { %402 = vmatmul.mubr.bf16.vlgmr.msra.gmra.mxu0 %v925_v18  ;;  %450 = vmatmul.mubr.bf16.vlgmr.msra.gmra.mxu1 %v928_v20 }
  0x3e   :  { %870 = vmatpush3.bf16.msra.mxu1 %v931_v19  ;;  %409 = vmatprep.mubr.bf16.mxu0 %v932_v21 }
  0x3f   :  { %457 = vmatprep.mubr.bf16.mxu1 %v934_v22  ;;  %871 = vmatprep.subr.bf16.mxu1 %v938_v23 }
  0x42   :  { %872 = vmatpush3.bf16.msra.mxu1 %v938_v23 }
  0x45   :  { %410 = vmatmul.mubr.bf16.gmra.mxu0 %v936_v24  ;;  %458 = vmatmul.mubr.bf16.gmra.mxu1 %v937_v25 }
  0x46   :  { %417 = vmatprep.mubr.bf16.mxu0 %v939_v26  ;;  %873 = vmatprep.mubr.msk.bf16.mxu1 %vm344_vm0, %v941_v27 }
  0x4d   :  { %418 = vmatmul.mubr.bf16.gmra.mxu0 %v942_v28  ;;  %874 = vmatmul.mubr.msk.bf16.vlgmr.msra.gmra.mxu1 %vm344_vm0, %v943_v29 }
  0x4e   :  { %425 = vmatprep.mubr.bf16.mxu0 %v944_v30  ;;  %877 = vmatprep.mubr.msk.bf16.mxu1 %vm344_vm0, %v946_v31 }
  0x55   :  { %426 = vmatmul.mubr.bf16.gmra.mxu0 %v947_v32  ;;  %878 = vmatmul.mubr.msk.bf16.gmra.mxu1 %vm344_vm0, %v948_v33 }
  0x56   :  { %433 = vmatprep.mubr.bf16.mxu0 %v949_v34  ;;  %881 = vmatprep.mubr.msk.bf16.mxu1 %vm344_vm0, %v951_v35 }
  0x5d   :  { %434 = vmatmul.mubr.bf16.gmra.mxu0 %v952_v36  ;;  %882 = vmatmul.mubr.msk.bf16.gmra.mxu1 %vm344_vm0, %v953_v37 }
  0x5e   :  { %441 = vmatprep.mubr.bf16.mxu0 %v954_v38  ;;  %885 = vmatprep.mubr.msk.bf16.mxu1 %vm344_vm0, %v956_v39 }
  0x65   :  { %442 = vmatmul.mubr.bf16.gmra.mxu0 %v957_v40  ;;  %886 = vmatmul.mubr.msk.bf16.gmra.mxu1 %vm344_vm0, %v958_v41 }
  0xfd   :  { %v811_v42 = vpop.f32.mrf.mxu0  ;;  %v1113_v43 = vpop.f32.mrf.mxu1 }
  0xff   :  { %v812_v44 = vpop.f32.mrf.mxu0  ;;  %v1115_v45 = vpop.f32.mrf.mxu1 }
 0x100   :  { %v813_v59 = vadd.f32 %v812_v44, %v811_v42 }
 0x101   :  { %v814_v46 = vpop.f32.mrf.mxu0  ;;  %v1117_v47 = vpop.f32.mrf.mxu1 }
 0x102   :  { %v404_v5 = vadd.f32 %v813_v59, %v1129_v62 }
 0x103   :  { %v815_v48 = vpop.f32.mrf.mxu0  ;;  %v1119_v49 = vpop.f32.mrf.mxu1 }
 0x104   :  { %v816_v0 = vadd.f32 %v815_v48, %v814_v46 }
 0x105   :  { %v817_v50 = vpop.f32.mrf.mxu0  ;;  %v1121_v51 = vpop.f32.mrf.mxu1 }
 0x106   :  { %v407_v11 = vadd.f32 %v816_v0, %v1129_v62 }
 0x107   :  { %v818_v52 = vpop.f32.mrf.mxu0  ;;  %v1123_v53 = vpop.f32.mrf.mxu1 }
 0x108   :  { %v819_v56 = vadd.f32 %v818_v52, %v817_v50  ;;  %v855_v59 = vadd.f32 %v1123_v53, %v1121_v51 }
 0x109   :  { %v820_v54 = vpop.f32.mrf.mxu0  ;;  %v1125_v55 = vpop.f32.mrf.mxu1 }
 0x10a   :  { %v412_v1 = vadd.f32 %v819_v56, %v1129_v62 }
 0x10b   :  { %v821_v57 = vpop.f32.mrf.mxu0  ;;  %v1127_v58 = vpop.f32.mrf.mxu1 }
 0x10c   :  { %v822_v60 = vadd.f32 %v821_v57, %v820_v54 }
 0x10d   :  { %v823_v61 = vpop.f32.mrf.mxu0  ;;  %v875_v63 = vpop.f32.mrf.mxu1 }
 0x10e   :  { %v509_v4 = vadd.f32 %v875_v63, %v412_v1  ;;  %v415_v6 = vadd.f32 %v822_v60, %v1129_v62 }
 0x10f   :  { %v824_v2 = vpop.f32.mrf.mxu0  ;;  %v500_v3 = vpop.f32.mrf.mxu1 }
 0x110   :  { %v501_v9 = vadd.f32 %v500_v3, %v404_v5  ;;  %v565_v14 = vmax.f32 %v509_v4, 0.0  ;;  %v825_v15 = vadd.f32 %v824_v2, %v823_v61  ;;  %v858_v2 = vadd.f32 %v1127_v58, %v1125_v55 }
 0x111   :  { %v826_v7 = vpop.f32.mrf.mxu0  ;;  %v876_v8 = vpop.f32.mrf.mxu1  ;;  %v849_v5 = vadd.f32 %v1115_v45, %v1113_v43 }
 0x112   :  { %v512_v10 = vadd.f32 %v876_v8, %v415_v6  ;;  %v563_v20 = vmax.f32 %v501_v9, 0.0  ;;  %v420_v28 = vadd.f32 %v825_v15, %v1129_v62  ;;  %v460_v8 = vadd.f32 %v855_v59, %v1129_v62 }
 0x113   :  { %v827_v12 = vpop.f32.mrf.mxu0  ;;  %v503_v13 = vpop.f32.mrf.mxu1  ;;  %v852_v9 = vadd.f32 %v1119_v49, %v1117_v47  ;;  %v463_v43 = vadd.f32 %v858_v2, %v1129_v62  ;;  %v452_v45 = vadd.f32 %v849_v5, %v1129_v62 }
 0x114   :  { %v566_v16 = vmax.f32 %v512_v10, 0.0  ;;  %v504_v17 = vadd.f32 %v503_v13, %v407_v11  ;;  %v828_v22 = vadd.f32 %v827_v12, %v826_v7 }
 0x115   :  { %v829_v18 = vpop.f32.mrf.mxu0  ;;  %v879_v19 = vpop.f32.mrf.mxu1  ;;  %v455_v47 = vadd.f32 %v852_v9, %v1129_v62 }
 0x116   :  { %v756_v21 = vpack.c.bf16 %v566_v16, %v565_v14  ;;  %v564_v23 = vmax.f32 %v504_v17, 0.0  ;;  %v423_v33 = vadd.f32 %v828_v22, %v1129_v62 }
 0x117   :  { %v830_v24 = vpop.f32.mrf.mxu0  ;;  %v516_v25 = vpop.f32.mrf.mxu1 }
 0x118   :  { %788 = vst [vmem:[%s1182_s3 + $0x8] sm:$0xff] %v756_v21   ;;  %v751_v26 = vpack.c.bf16 %v564_v23, %v563_v20  ;;  %v831_v27 = vadd.f32 %v830_v24, %v829_v18  ;;  %v517_v32 = vadd.f32 %v516_v25, %v420_v28 }
 0x119   :  { %v832_v29 = vpop.f32.mrf.mxu0  ;;  %v880_v30 = vpop.f32.mrf.mxu1 }
 0x11a   :  { %752 = vst [vmem:[%s1182_s3] sm:$0xff] %v751_v26   ;;  %v428_v31 = vadd.f32 %v831_v27, %v1129_v62  ;;  %v567_v41 = vmax.f32 %v517_v32, 0.0 }
 0x11b   :  { %v833_v34 = vpop.f32.mrf.mxu0  ;;  %v519_v35 = vpop.f32.mrf.mxu1 }
 0x11c   :  { %v834_v36 = vadd.f32 %v833_v34, %v832_v29  ;;  %v520_v37 = vadd.f32 %v519_v35, %v423_v33  ;;  %v525_v40 = vadd.f32 %v879_v19, %v428_v31 }
 0x11d   :  { %v835_v38 = vpop.f32.mrf.mxu0  ;;  %v883_v39 = vpop.f32.mrf.mxu1 }
 0x11e   :  { %v431_v42 = vadd.f32 %v834_v36, %v1129_v62  ;;  %v568_v44 = vmax.f32 %v520_v37, 0.0  ;;  %v569_v60 = vmax.f32 %v525_v40, 0.0 }
 0x11f   :  { %v836_v46 = vpop.f32.mrf.mxu0  ;;  %v532_v48 = vpop.f32.mrf.mxu1 }
 0x120   :  { %v528_v50 = vadd.f32 %v880_v30, %v431_v42  ;;  %v761_v52 = vpack.c.bf16 %v568_v44, %v567_v41  ;;  %v837_v54 = vadd.f32 %v836_v46, %v835_v38 }
 0x121   :  { %v838_v56 = vpop.f32.mrf.mxu0  ;;  %v884_v57 = vpop.f32.mrf.mxu1 }
 0x122   :  { %v570_v61 = vmax.f32 %v528_v50, 0.0  ;;  %789 = vst [vmem:[%s1182_s3 + $0x10] sm:$0xff] %v761_v52   ;;  %v436_v63 = vadd.f32 %v837_v54, %v1129_v62 }
 0x123   :  { %v839_v0 = vpop.f32.mrf.mxu0  ;;  %v535_v1 = vpop.f32.mrf.mxu1 }
 0x124   :  { %v766_v3 = vpack.c.bf16 %v570_v61, %v569_v60  ;;  %v840_v4 = vadd.f32 %v839_v0, %v838_v56  ;;  %v533_v53 = vadd.f32 %v532_v48, %v436_v63 }
 0x125   :  { %v841_v6 = vpop.f32.mrf.mxu0  ;;  %v887_v51 = vpop.f32.mrf.mxu1 }
 0x126   :  { %790 = vst [vmem:[%s1182_s3 + $0x18] sm:$0xff] %v766_v3   ;;  %v439_v7 = vadd.f32 %v840_v4, %v1129_v62  ;;  %v557_v11 = vadd.f32 %v887_v51, %v460_v8  ;;  %v571_v15 = vmax.f32 %v533_v53, 0.0 }
 0x127   :  { %v842_v55 = vpop.f32.mrf.mxu0  ;;  %v548_v58 = vpop.f32.mrf.mxu1 }
 0x128   :  { %v536_v10 = vadd.f32 %v535_v1, %v439_v7  ;;  %v843_v12 = vadd.f32 %v842_v55, %v841_v6  ;;  %v549_v19 = vadd.f32 %v548_v58, %v452_v45  ;;  %v577_v22 = vmax.f32 %v557_v11, 0.0 }
 0x129   :  { %v844_v13 = vpop.f32.mrf.mxu0  ;;  %v888_v14 = vpop.f32.mrf.mxu1 }
 0x12a   :  { %v572_v16 = vmax.f32 %v536_v10, 0.0  ;;  %v444_v17 = vadd.f32 %v843_v12, %v1129_v62  ;;  %v560_v18 = vadd.f32 %v888_v14, %v463_v43  ;;  %v575_v29 = vmax.f32 %v549_v19, 0.0 }
 0x12b   :  { %v845_v20 = vpop.f32.mrf.mxu0  ;;  %v551_v49 = vpop.f32.mrf.mxu1 }
 0x12c   :  { %v771_v21 = vpack.c.bf16 %v572_v16, %v571_v15  ;;  %v578_v23 = vmax.f32 %v560_v18, 0.0  ;;  %v846_v24 = vadd.f32 %v845_v20, %v844_v13  ;;  %v552_v25 = vadd.f32 %v551_v49, %v455_v47 }
 0x12d   :  { %v541_v26 = vadd.f32 %v883_v39, %v444_v17 }
 0x12e   :  { %791 = vst [vmem:[%s1182_s3 + $0x20] sm:$0xff] %v771_v21   ;;  %v786_v27 = vpack.c.bf16 %v578_v23, %v577_v22  ;;  %v447_v28 = vadd.f32 %v846_v24, %v1129_v62  ;;  %v576_v30 = vmax.f32 %v552_v25, 0.0 }
 0x12f   :  { %v573_v33 = vmax.f32 %v541_v26, 0.0 }
 0x130   :  { %794 = vst [vmem:[%s1182_s3 + $0x38] sm:$0xff] %v786_v27   ;;  %v544_v31 = vadd.f32 %v884_v57, %v447_v28  ;;  %v781_v32 = vpack.c.bf16 %v576_v30, %v575_v29 }
 0x132   :  { %v574_v34 = vmax.f32 %v544_v31, 0.0  ;;  %793 = vst [vmem:[%s1182_s3 + $0x30] sm:$0xff] %v781_v32  }
 0x134   :  { %v776_v35 = vpack.c.bf16 %v574_v34, %v573_v33 }
 0x136   :  { %792 = vst [vmem:[%s1182_s3 + $0x28] sm:$0xff] %v776_v35  }
 0x137   :  { %663 = vsyncpa [#allocation3], 1 }
 0x138   :  { %664 = vsyncpa [#allocation5], 1 }

// kernel: cnn2d_ns_rich_forward.4
= control target key start
LH: loop header
LB: loop body
LE: loop exit
PB: predicated region body
PF: predicated region fallthrough
CT: control target
= control target key end

     0   :  { %8 = vsyncpa [#allocation3], 0  ;;  %s1168_s0 = inlined_call_operand.vmem [shape: bf16[32,864], index: 0, kind: input, shape index: {}]   ;;  %s1169_s1 = inlined_call_operand.hbm [shape: bf16[864,128], index: 1, kind: input, shape index: {}]   ;;  %s1170_s2 = inlined_call_operand.hbm [shape: f32[1,128], index: 2, kind: input, shape index: {}]   ;;  %s1171_s3 = inlined_call_operand.vmem [shape: f32[32,128], index: 3, kind: output, shape index: {}]  }
   0x1   :  { %9 = vsyncpa [#allocation5], 0  ;;  %s1084_s12 = smov [#allocation2]  }
   0x2   :  { %s17_s13 = sshll.u32 %s1084_s12, 4  ;;  %s18_s13 = int_to_ptr.vmem [resolvable:$true] %s17_s13 }
   0x3   :  { %s1048_s14 = scalar_lea.vmem %s18_s13, 6912  ;;  %p1053_p1 = scmp.lt.s32.totalorder %s18_s13, %s18_s13 }
   0x4   :  { %p1049_p0 = scmp.ne.s32.totalorder %s18_s13, %s1048_s14  ;;  %p1054_p2 = scmp.lt.s32.totalorder %s1048_s14, %s1048_s14 }
   0x6   :  { %p1055_p3 = por %p1054_p2, %p1053_p1 }
   0x8   :  { %p1056_p4 = pnand %p1055_p3, %p1049_p0 }
   0xa   :  { %1059 = shalt.err (!%p1056_p4)
}
   0xb   :  { %s1085_s15 = smov 64   ;;  %s1086_s16 = smov 4  }
   0xc   :  { %23 = dma.hbm_to_vmem [thread:$0]  %s1169_s1, 6912, %s18_s13, [#allocation3], %s1085_s15, %s1085_s15, %s1086_s16  }
   0xd   :  { %s1087_s19 = smov [#allocation4]  }
   0xe   :  { %s30_s20 = sshll.u32 %s1087_s19, 4  ;;  %s31_s20 = int_to_ptr.vmem [resolvable:$true] %s30_s20 }
   0xf   :  { %s1068_s21 = scalar_lea.vmem %s31_s20, 16  ;;  %s1072_s22 = scalar_lea.vmem %s31_s20, 32 }
  0x10   :  { %p1069_p5 = scmp.ne.s32.totalorder %s31_s20, %s1068_s21  ;;  %p1073_p6 = scmp.lt.s32.totalorder %s31_s20, %s31_s20 }
  0x11   :  { %p1074_p7 = scmp.lt.s32.totalorder %s1072_s22, %s1068_s21 }
  0x13   :  { %p1075_p8 = por %p1074_p7, %p1073_p6 }
  0x15   :  { %p1076_p9 = pnand %p1075_p8, %p1069_p5 }
  0x17   :  { %1079 = shalt.err (!%p1076_p9)
}
  0x18   :  { %33 = dma.hbm_to_vmem [thread:$0]  %s1170_s2, 16, %s31_s20, [#allocation5]  }
  0x19   :  { %1080 = dma.done.wait [#allocation3], 6912  }
  0x1a   :  { %1081 = vsyncadd [#allocation3], 4294960384 }
  0x1b   :  { %1082 = dma.done.wait [#allocation5], 16  }
  0x1c   :  { %1083 = vsyncadd [#allocation5], 4294967280  ;;  %v966_v0 = vld [vmem:[#allocation2 + $0x78] sm:$0xff]   ;;  %v970_v4 = vld [vmem:[#allocation2 + $0x70] sm:$0xff]   ;;  %vm566_vm0 = vcmask 785408  }
  0x1d   :  { %v967_v1 = vld [vmem:[#allocation2 + $0x38] sm:$0xff]   ;;  %854 = vmatprep.subr.bf16.mxu0 %v966_v0  ;;  %v971_v5 = vld [vmem:[#allocation2 + $0x30] sm:$0xff]   ;;  %v974_v8 = vld [vmem:[#allocation2 + $0x68] sm:$0xff]  }
  0x1e   :  { %v968_v2 = vld [vmem:[#allocation2 + $0xf8] sm:$0xff]   ;;  %855 = vmatpush3.bf16.msra.mxu0 %v967_v1  ;;  %v972_v6 = vld [vmem:[#allocation2 + $0xf0] sm:$0xff]   ;;  %v975_v9 = vld [vmem:[#allocation2 + $0x28] sm:$0xff]  }
  0x1f   :  { %v969_v3 = vld [vmem:[#allocation2 + $0xb8] sm:$0xff]   ;;  %882 = vmatprep.subr.bf16.mxu1 %v968_v2  ;;  %856 = vmatprep.subr.bf16.mxu0 %v970_v4  ;;  %v973_v7 = vld [vmem:[#allocation2 + $0xb0] sm:$0xff]   ;;  %v976_v10 = vld [vmem:[#allocation2 + $0xe8] sm:$0xff]  }
  0x20   :  { %883 = vmatpush3.bf16.msra.mxu1 %v969_v3  ;;  %v977_v11 = vld [vmem:[#allocation2 + $0xa8] sm:$0xff]   ;;  %v978_v12 = vld [vmem:[#allocation2 + $0x60] sm:$0xff]   ;;  %v982_v16 = vld [vmem:[#allocation2 + $0x58] sm:$0xff]  }
  0x21   :  { %884 = vmatprep.subr.bf16.mxu1 %v972_v6  ;;  %v979_v13 = vld [vmem:[#allocation2 + $0x20] sm:$0xff]   ;;  %v983_v17 = vld [vmem:[#allocation2 + $0x18] sm:$0xff]   ;;  %v986_v20 = vld [vmem:[#allocation2 + $0x50] sm:$0xff]  }
  0x22   :  { %857 = vmatpush3.bf16.msra.mxu0 %v971_v5  ;;  %v980_v14 = vld [vmem:[#allocation2 + $0xe0] sm:$0xff]   ;;  %v984_v18 = vld [vmem:[#allocation2 + $0xd8] sm:$0xff]   ;;  %v987_v21 = vld [vmem:[#allocation2 + $0x10] sm:$0xff]  }
  0x23   :  { %858 = vmatprep.subr.bf16.mxu0 %v974_v8  ;;  %v981_v15 = vld [vmem:[#allocation2 + $0xa0] sm:$0xff]   ;;  %v985_v19 = vld [vmem:[#allocation2 + $0x98] sm:$0xff]   ;;  %v988_v22 = vld [vmem:[#allocation2 + $0xd0] sm:$0xff]  }
  0x24   :  { %885 = vmatpush3.bf16.msra.mxu1 %v973_v7  ;;  %v989_v23 = vld [vmem:[#allocation2 + $0x90] sm:$0xff]   ;;  %v990_v24 = vld [vmem:[#allocation2 + $0x48] sm:$0xff]   ;;  %v994_v28 = vld [vmem:[#allocation2 + $0x40] sm:$0xff]  }
  0x25   :  { %886 = vmatprep.subr.bf16.mxu1 %v976_v10  ;;  %v991_v25 = vld [vmem:[#allocation2 + $0x8] sm:$0xff]   ;;  %v995_v29 = vld [vmem:[#allocation2] sm:$0xff]   ;;  %v1001_v34 = vld [vmem:[#allocation2 + $0x178] sm:$0xff]  }
  0x26   :  { %859 = vmatpush3.bf16.msra.mxu0 %v975_v9  ;;  %v992_v26 = vld [vmem:[#allocation2 + $0xc8] sm:$0xff]   ;;  %v996_v30 = vld [vmem:[#allocation2 + $0xc0] sm:$0xff]   ;;  %v1005_v37 = vld [vmem:[#allocation2 + $0x138] sm:$0xff]  }
  0x27   :  { %860 = vmatprep.subr.bf16.mxu0 %v978_v12  ;;  %v993_v27 = vld [vmem:[#allocation2 + $0x88] sm:$0xff]   ;;  %v997_v31 = vld [vmem:[%s1168_s0] ss:$28 sps:$4 sm:$0xff]   ;;  %v1006_v38 = vld [vmem:[#allocation2 + $0x170] sm:$0xff]  }
  0x28   :  { %887 = vmatpush3.bf16.msra.mxu1 %v977_v11  ;;  %v999_v32 = vld [vmem:[%s1168_s0 + $0x4] ss:$28 sps:$4 sm:$0xff]   ;;  %v1004_v36 = vld [vmem:[%s1168_s0 + $0xc] ss:$28 sps:$4 sm:$0xff]   ;;  %v1007_v39 = vld [vmem:[#allocation2 + $0x130] sm:$0xff]  }
  0x29   :  { %888 = vmatprep.subr.bf16.mxu1 %v980_v14  ;;  %v1000_v33 = vld [vmem:[#allocation2 + $0x80] sm:$0xff]   ;;  %605 = vmatprep.mubr.bf16.mxu0 %v999_v32  ;;  %v1008_v40 = vld [vmem:[#allocation2 + $0x168] sm:$0xff]   ;;  %v1015_v46 = vld [vmem:[%s1168_s0 + $0x3c] ss:$28 sps:$4 sm:$0xff]  }
  0x2a   :  { %861 = vmatpush3.bf16.msra.mxu0 %v979_v13  ;;  %v1002_v35 = vld [vmem:[%s1168_s0 + $0x8] ss:$28 sps:$4 sm:$0xff]   ;;  %654 = vmatprep.mubr.bf16.mxu1 %v1004_v36  ;;  %v1013_v47 = vld [vmem:[#allocation2 + $0x158] sm:$0xff]   ;;  %v1022_v52 = vld [vmem:[#allocation2 + $0x150] sm:$0xff]  }
  0x2b   :  { %862 = vmatprep.subr.bf16.mxu0 %v982_v16  ;;  %v1009_v41 = vld [vmem:[#allocation2 + $0x128] sm:$0xff]   ;;  %v1010_v43 = vld [vmem:[#allocation2 + $0x160] sm:$0xff]   ;;  %v1018_v48 = vld [vmem:[%s1168_s0 + $0x38] ss:$28 sps:$4 sm:$0xff]  }
  0x2c   :  { %889 = vmatpush3.bf16.msra.mxu1 %v981_v15  ;;  %v1011_v42 = vld [vmem:[#allocation2 + $0x1a8] sm:$0xff]   ;;  %v1012_v44 = vld [vmem:[#allocation2 + $0x120] sm:$0xff]   ;;  %v1017_v49 = vld [vmem:[#allocation2 + $0x118] sm:$0xff]  }
  0x2d   :  { %890 = vmatprep.subr.bf16.mxu1 %v984_v18  ;;  %v1014_v45 = vld [vmem:[#allocation2 + $0x1a0] sm:$0xff]   ;;  %v1023_v53 = vld [vmem:[#allocation2 + $0x198] sm:$0xff]   ;;  %v1024_v54 = vld [vmem:[#allocation2 + $0x110] sm:$0xff]  }
  0x2e   :  { %863 = vmatpush3.bf16.msra.mxu0 %v983_v17  ;;  %v1019_v50 = vld [vmem:[%s1168_s0 + $0x44] ss:$28 sps:$4 sm:$0xff]   ;;  %v1026_v55 = vld [vmem:[#allocation2 + $0x190] sm:$0xff]   ;;  %v1025_v56 = vld [vmem:[#allocation2 + $0x148] sm:$0xff]  }
  0x2f   :  { %864 = vmatprep.subr.bf16.mxu0 %v986_v20  ;;  %v1021_v51 = vld [vmem:[%s1168_s0 + $0x40] ss:$28 sps:$4 sm:$0xff]   ;;  %v1029_v57 = vld [vmem:[#allocation2 + $0x188] sm:$0xff]   ;;  %v1033_v60 = vld [vmem:[%s1168_s0 + $0x14] ss:$28 sps:$4 sm:$0xff]  }
  0x30   :  { %891 = vmatpush3.bf16.msra.mxu1 %v985_v19  ;;  %v1027_v58 = vld [vmem:[#allocation2 + $0x108] sm:$0xff]   ;;  %v1028_v59 = vld [vmem:[#allocation2 + $0x140] sm:$0xff]   ;;  %v1035_v62 = vld [vmem:[%s1168_s0 + $0x18] ss:$28 sps:$4 sm:$0xff]  }
  0x31   :  { %892 = vmatprep.subr.bf16.mxu1 %v988_v22  ;;  %v1034_v61 = vld [vmem:[#allocation2 + $0x180] sm:$0xff]   ;;  %v1031_v0 = vld [vmem:[%s1168_s0 + $0x10] ss:$28 sps:$4 sm:$0xff]  }
  0x32   :  { %865 = vmatpush3.bf16.msra.mxu0 %v987_v21  ;;  %v1030_v63 = vld [vmem:[#allocation2 + $0x100] sm:$0xff]   ;;  %v1036_v1 = vld [vmem:[%s1168_s0 + $0x50] ss:$28 sps:$4 sm:$0xff]  }
  0x33   :  { %866 = vmatprep.subr.bf16.mxu0 %v990_v24  ;;  %v1037_v2 = vld [vmem:[%s1168_s0 + $0x4c] ss:$28 sps:$4 sm:$0xff]   ;;  %v783_v19 = vld [vmem:[#allocation4] ss:$0 sm:$0xff] }
  0x34   :  { %893 = vmatpush3.bf16.msra.mxu1 %v989_v23  ;;  %v1039_v3 = vld [vmem:[%s1168_s0 + $0x48] ss:$28 sps:$4 sm:$0xff]  }
  0x35   :  { %894 = vmatprep.subr.bf16.mxu1 %v992_v26 }
  0x36   :  { %867 = vmatpush3.bf16.msra.mxu0 %v991_v25 }
  0x37   :  { %868 = vmatprep.subr.bf16.mxu0 %v994_v28 }
  0x38   :  { %895 = vmatpush3.bf16.msra.mxu1 %v993_v27 }
  0x39   :  { %896 = vmatprep.subr.bf16.mxu1 %v996_v30 }
  0x3a   :  { %869 = vmatpush3.bf16.msra.mxu0 %v995_v29 }
  0x3b   :  { %910 = vmatprep.subr.bf16.mxu0 %v1001_v34 }
  0x3c   :  { %897 = vmatpush3.bf16.msra.mxu1 %v1000_v33 }
  0x3d   :  { %606 = vmatmul.mubr.bf16.vlgmr.msra.gmra.mxu0 %v997_v31  ;;  %946 = vmatprep.subr.bf16.mxu1 %v1011_v42 }
  0x3e   :  { %911 = vmatpush3.bf16.msra.mxu0 %v1005_v37  ;;  %613 = vmatprep.mubr.bf16.mxu0 %v1015_v46 }
  0x3f   :  { %655 = vmatmul.mubr.bf16.vlgmr.msra.gmra.mxu1 %v1002_v35  ;;  %912 = vmatprep.subr.bf16.mxu0 %v1006_v38 }
  0x40   :  { %947 = vmatpush3.bf16.msra.mxu1 %v1011_v42  ;;  %662 = vmatprep.mubr.bf16.mxu1 %v1019_v50 }
  0x41   :  { %948 = vmatprep.subr.bf16.mxu1 %v1014_v45 }
  0x42   :  { %913 = vmatpush3.bf16.msra.mxu0 %v1007_v39 }
  0x43   :  { %914 = vmatprep.subr.bf16.mxu0 %v1008_v40 }
  0x44   :  { %949 = vmatpush3.bf16.msra.mxu1 %v1014_v45 }
  0x45   :  { %614 = vmatmul.mubr.bf16.gmra.mxu0 %v1018_v48  ;;  %950 = vmatprep.subr.bf16.mxu1 %v1023_v53 }
  0x46   :  { %915 = vmatpush3.bf16.msra.mxu0 %v1009_v41  ;;  %703 = vmatprep.mubr.bf16.mxu0 %v1033_v60 }
  0x47   :  { %916 = vmatprep.subr.bf16.mxu0 %v1010_v43  ;;  %663 = vmatmul.mubr.bf16.gmra.mxu1 %v1021_v51 }
  0x48   :  { %951 = vmatpush3.bf16.msra.mxu1 %v1023_v53  ;;  %958 = vmatprep.mubr.msk.bf16.mxu1 %vm566_vm0, %v1035_v62 }
  0x49   :  { %952 = vmatprep.subr.bf16.mxu1 %v1026_v55 }
  0x4a   :  { %917 = vmatpush3.bf16.msra.mxu0 %v1012_v44 }
  0x4b   :  { %918 = vmatprep.subr.bf16.mxu0 %v1013_v47 }
  0x4c   :  { %953 = vmatpush3.bf16.msra.mxu1 %v1026_v55 }
  0x4d   :  { %954 = vmatprep.subr.bf16.mxu1 %v1029_v57 }
  0x4e   :  { %919 = vmatpush3.bf16.msra.mxu0 %v1017_v49 }
  0x4f   :  { %920 = vmatprep.subr.bf16.mxu0 %v1022_v52 }
  0x50   :  { %955 = vmatpush3.bf16.msra.mxu1 %v1029_v57 }
  0x51   :  { %956 = vmatprep.subr.bf16.mxu1 %v1034_v61 }
  0x52   :  { %921 = vmatpush3.bf16.msra.mxu0 %v1024_v54 }
  0x53   :  { %922 = vmatprep.subr.bf16.mxu0 %v1025_v56 }
  0x54   :  { %957 = vmatpush3.bf16.msra.mxu1 %v1034_v61 }
  0x56   :  { %923 = vmatpush3.bf16.msra.mxu0 %v1027_v58 }
  0x57   :  { %924 = vmatprep.subr.bf16.mxu0 %v1028_v59  ;;  %959 = vmatmul.mubr.msk.bf16.vlgmr.msra.gmra.mxu1 %vm566_vm0, %v1036_v1 }
  0x5a   :  { %925 = vmatpush3.bf16.msra.mxu0 %v1030_v63 }
  0x5d   :  { %704 = vmatmul.mubr.bf16.vlgmr.msra.gmra.mxu0 %v1031_v0 }
  0x5e   :  { %711 = vmatprep.mubr.bf16.mxu0 %v1037_v2 }
  0x65   :  { %712 = vmatmul.mubr.bf16.gmra.mxu0 %v1039_v3 }
  0xfd   :  { %v870_v4 = vpop.f32.mrf.mxu0 }
  0xff   :  { %v898_v5 = vpop.f32.mrf.mxu1  ;;  %v871_v6 = vpop.f32.mrf.mxu0 }
 0x100   :  { %v872_v18 = vadd.f32 %v871_v6, %v870_v4 }
 0x101   :  { %v899_v7 = vpop.f32.mrf.mxu1  ;;  %v873_v8 = vpop.f32.mrf.mxu0 }
 0x102   :  { %v608_v22 = vadd.f32 %v872_v18, %v783_v19  ;;  %v900_v23 = vadd.f32 %v899_v7, %v898_v5 }
 0x103   :  { %v901_v9 = vpop.f32.mrf.mxu1  ;;  %v874_v10 = vpop.f32.mrf.mxu0 }
 0x104   :  { %v875_v24 = vadd.f32 %v874_v10, %v873_v8  ;;  %v657_v30 = vadd.f32 %v900_v23, %v608_v22 }
 0x105   :  { %v902_v11 = vpop.f32.mrf.mxu1  ;;  %v876_v12 = vpop.f32.mrf.mxu0 }
 0x106   :  { %v611_v31 = vadd.f32 %v875_v24, %v783_v19  ;;  %v903_v32 = vadd.f32 %v902_v11, %v901_v9 }
 0x107   :  { %v904_v13 = vpop.f32.mrf.mxu1  ;;  %v877_v14 = vpop.f32.mrf.mxu0 }
 0x108   :  { %v878_v27 = vadd.f32 %v877_v14, %v876_v12  ;;  %v660_v40 = vadd.f32 %v903_v32, %v611_v31 }
 0x109   :  { %v905_v15 = vpop.f32.mrf.mxu1  ;;  %v879_v16 = vpop.f32.mrf.mxu0 }
 0x10a   :  { %v616_v37 = vadd.f32 %v878_v27, %v783_v19  ;;  %v906_v38 = vadd.f32 %v905_v15, %v904_v13 }
 0x10b   :  { %v907_v17 = vpop.f32.mrf.mxu1  ;;  %v880_v20 = vpop.f32.mrf.mxu0 }
 0x10c   :  { %v881_v41 = vadd.f32 %v880_v20, %v879_v16  ;;  %v665_v48 = vadd.f32 %v906_v38, %v616_v37 }
 0x10d   :  { %v908_v21 = vpop.f32.mrf.mxu1 }
 0x10e   :  { %v619_v50 = vadd.f32 %v881_v41, %v783_v19  ;;  %v909_v51 = vadd.f32 %v908_v21, %v907_v17 }
 0x110   :  { %v668_v58 = vadd.f32 %v909_v51, %v619_v50 }
 0x117   :  { %v960_v26 = vpop.f32.mrf.mxu1 }
 0x119   :  { %v754_v29 = vpop.f32.mrf.mxu1 }
 0x11b   :  { %v961_v35 = vpop.f32.mrf.mxu1 }
 0x11d   :  { %v926_v25 = vpop.f32.mrf.mxu0  ;;  %v757_v45 = vpop.f32.mrf.mxu1 }
 0x11f   :  { %v927_v28 = vpop.f32.mrf.mxu0 }
 0x120   :  { %v928_v33 = vadd.f32 %v927_v28, %v926_v25 }
 0x121   :  { %v929_v34 = vpop.f32.mrf.mxu0 }
 0x122   :  { %v706_v36 = vadd.f32 %v928_v33, %v657_v30 }
 0x123   :  { %v930_v39 = vpop.f32.mrf.mxu0 }
 0x124   :  { %v931_v42 = vadd.f32 %v930_v39, %v929_v34  ;;  %v755_v43 = vadd.f32 %v754_v29, %v706_v36 }
 0x125   :  { %v932_v44 = vpop.f32.mrf.mxu0 }
 0x126   :  { %v769_v46 = vmax.f32 %v755_v43, 0.0  ;;  %v709_v47 = vadd.f32 %v931_v42, %v660_v40 }
 0x127   :  { %v933_v49 = vpop.f32.mrf.mxu0 }
 0x128   :  { %773 = vst [vmem:[%s1171_s3] sm:$0xff] %v769_v46  ;;  %v934_v52 = vadd.f32 %v933_v49, %v932_v44  ;;  %v758_v53 = vadd.f32 %v757_v45, %v709_v47 }
 0x129   :  { %v935_v54 = vpop.f32.mrf.mxu0 }
 0x12a   :  { %v714_v55 = vadd.f32 %v934_v52, %v665_v48  ;;  %v770_v56 = vmax.f32 %v758_v53, 0.0 }
 0x12b   :  { %v936_v57 = vpop.f32.mrf.mxu0 }
 0x12c   :  { %v763_v59 = vadd.f32 %v960_v26, %v714_v55  ;;  %774 = vst [vmem:[%s1171_s3 + $0x8] sm:$0xff] %v770_v56  ;;  %v937_v60 = vadd.f32 %v936_v57, %v935_v54 }
 0x12e   :  { %v771_v61 = vmax.f32 %v763_v59, 0.0  ;;  %v717_v62 = vadd.f32 %v937_v60, %v668_v58 }
 0x130   :  { %775 = vst [vmem:[%s1171_s3 + $0x10] sm:$0xff] %v771_v61  ;;  %v766_v63 = vadd.f32 %v961_v35, %v717_v62 }
 0x132   :  { %v772_v0 = vmax.f32 %v766_v63, 0.0 }
 0x134   :  { %776 = vst [vmem:[%s1171_s3 + $0x18] sm:$0xff] %v772_v0 }
 0x135   :  { %781 = vsyncpa [#allocation3], 1 }
 0x136   :  { %782 = vsyncpa [#allocation5], 1 }

// kernel: cnn2d_ns_rich_forward.5
= control target key start
LH: loop header
LB: loop body
LE: loop exit
PB: predicated region body
PF: predicated region fallthrough
CT: control target
= control target key end

     0   :  { %s23914_s0 = inlined_call_operand.vmem [shape: f32[2,16,128], index: 0, kind: input, shape index: {}]   ;;  %s23915_s1 = inlined_call_operand.vmem [shape: bf16[784,16], index: 1, kind: input, shape index: {}]   ;;  %s23916_s2 = inlined_call_operand.hbm [shape: bf16[4,12544,128], index: 2, kind: input, shape index: {}]   ;;  %s23917_s3 = inlined_call_operand.hbm [shape: f32[4,2,128], index: 3, kind: input, shape index: {}]   ;;  %s23918_s4 = inlined_call_operand.hbm [shape: f32[4,16,128], index: 4, kind: input, shape index: {}]   ;;  %s23919_s5 = inlined_call_operand.hbm [shape: f32[4,16,128], index: 5, kind: input, shape index: {}]   ;;  %s23920_s6 = inlined_call_operand.vmem [shape: f32[2,16,128], index: 6, kind: output, shape index: {}]  }
   0x1   :  { %23925 = sst [smem:[#allocation19_spill]] %s23916_s2 }
   0x2   :  { %23926 = sst [smem:[#allocation20_spill]] %s23917_s3 }
   0x3   :  { %11 = vsyncpa [#allocation5], 0 }
   0x4   :  { %13 = vsyncpa [#allocation5 + $0x1], 0 }
   0x5   :  { %14 = vsyncpa [#allocation7], 0 }
   0x6   :  { %16 = vsyncpa [#allocation7 + $0x1], 0 }
   0x7   :  { %17 = vsyncpa [#allocation10], 0 }
   0x8   :  { %19 = vsyncpa [#allocation10 + $0x1], 0  ;;  %s20940_s21 = smov 0   ;;  %s20942_s22 = smov 0  }
   0x9   :  { %s20944_s23 = smov 0   ;;  %s20946_s24 = smov 0  }
   0xa   :  { %s20948_s25 = smov 0   ;;  %s20950_s26 = smov 0  }
   0xb   :  { %s20952_s27 = smov 0   ;;  %s20954_s28 = smov 0  }
   0xc LB: > { %23927 = sst [smem:[#allocation14_spill]] %s20873_s23  ;;  %s23921_s29 = sadd.s32 4294967295, %s20893_s28   ;;  %s20893_s28 = sphi %s20954_s28, %s25_s28   ;;  %s20889_s27 = sphi %s20952_s27, %s23942_s27   ;;  %s20885_s26 = sphi %s20950_s26, %s23946_s26   ;;  %s20881_s25 = sphi %s20948_s25, %s23940_s25   ;;  %s20877_s24 = sphi %s20946_s24, %s23945_s24   ;;  %s20873_s23 = sphi %s20944_s23, %s23939_s23   ;;  %s20869_s22 = sphi %s20942_s22, %s23944_s22   ;;  %s20865_s21 = sphi %s20940_s21, %s23943_s21  }
   0xd   : > { %23928 = sst [smem:[#allocation15_spill]] %s20889_s27  ;;  %s34_s30 = sadd.s32 1, %s20885_s26 }
   0xe   : > { %p35_p0 = scmp.ge.s32.totalorder %s34_s30, 4  ;;  %s37_s7 = sadd.s32 1, %s20889_s27 }
   0xf   : > { %s91_s8 = sadd.s32 1, %s20873_s23  ;;  %p98_p1 = scmp.ne.s32.totalorder %s20873_s23, %s20869_s22 }
  0x10   : > { %s23948_s30 = smov (%p35_p0, %s34_s30), 0  ;;  %s23950_s7 = smov (!%p35_p0, %s37_s7), %s20889_s27 }
  0x11   : > { %23929 = sst [smem:[#allocation16_spill]] %s23948_s30  ;;  %s88_s9 = ssub.s32 %s20885_s26, %s23948_s30 }
  0x12   : > { %p99_p2 = scmp.eq.s32.totalorder %s20893_s28, 0  ;;  %p39_p3 = scmp.ge.s32.totalorder %s23950_s7, 2 }
  0x13   : > { %p89_p4 = scmp.eq.s32.totalorder %s88_s9, 0  ;;  %p104_p6 = scmp.ne.s32.totalorder %s20869_s22, %s20865_s21 }
  0x14   : > { %p100_p5 = por %p99_p2, %p98_p1  ;;  %s23952_s7 = smov (%p39_p3, %s23950_s7), 0 }
  0x15   : > { %23930 = sst [smem:[#allocation17_spill]] %s23952_s7  ;;  %p105_p7 = scmp.eq.s32.totalorder %s23921_s29, 0 }
  0x16   : > { %s20994_s10 = scalar_select %p89_p4, %s20873_s23, %s91_s8  }
  0x17   : > { %p19652_p8 = scmp.lt.s32.totalorder %s20893_s28, 8  ;;  %s21000_s11 = sand.u32 1, %s20873_s23  }
  0x18   : > { %23931 = sst [smem:[#allocation18_spill]] %s20994_s10  ;;  %p21002_p9 = por %p105_p7, %p104_p6 }
  0x19   : > { %s264_s13 = sand.u32 1, %s20893_s28   ;;  %p21007_p10 = pnand %p19652_p8, %p100_p5 }
  0x1a   : > { %s14252_s15 = sshll.u32 %s21000_s11, 1  ;;  %s14253_s16 = sshll.u32 %s20885_s26, 5 }
  0x1b   : > { %s23934_s3 = sld [smem:[#allocation20_spill]]  ;;  %s268_s20 = scalar_lea.vmem [#allocation6], %s14252_s15 }
  0x1c   : > { %s275_s21 = sshll.u32 %s268_s20, 4  ;;  %p14260_p11 = scmp.ge.s32.totalorder %s20893_s28, 1  ;;  %s276_s21 = int_to_ptr.vmem [resolvable:$true] %s275_s21 }
  0x1d   : > { %s21017_s8 = scalar_lea.sflag [#allocation7], %s264_s13  ;;  %p20709_p12 = pneg %p21007_p10 }
  0x1e   : > { %s20720_s9 = scalar_lea.vmem %s276_s21, 32  ;;  %s20895_s29 = smov [#allocation6]  }
  0x1f   : > { %p20721_p13 = scmp.ne.s32.totalorder %s276_s21, %s20720_s9  ;;  %s20725_s7 = sshll.u32 %s20895_s29, 4  ;;  %s20726_s7 = int_to_ptr.vmem [resolvable:$false] %s20725_s7 }
  0x20   : > { %s20727_s30 = scalar_lea.vmem %s20726_s7, 64  ;;  %p20728_p2 = scmp.lt.s32.totalorder %s276_s21, %s20726_s7 }
  0x21   : > { %s273_s19 = scalar_lea.hbm %s23934_s3, %s14253_s16  ;;  %p20723_p0 = pnand %p20721_p13, %p20709_p12 }
  0x22   : > { %p20729_p3 = scmp.lt.s32.totalorder %s20727_s30, %s20720_s9 }
  0x23   : > { %p20724_p1 = pneg %p20723_p0 }
  0x24   : > { %p20730_p4 = por %p20729_p3, %p20728_p2 }
  0x26   : > { %p20731_p5 = pnand %p20730_p4, %p20724_p1 }
  0x28   : > { %20734 = shalt.err (!%p20731_p5)
}
  0x29   : > { %19645 = dma.hbm_to_vmem [thread:$0]  (!%p21007_p10), %s273_s19, 32, %s276_s21, %s21017_s8  }
  0x2a   : > { %p322_p6 = scmp.lt.s32.totalorder %s20893_s28, 9  ;;  %s19622_s30 = smul.u32 6272, %s21000_s11 }
  0x2b   : > { %s19623_s7 = smul.u32 100352, %s20885_s26  ;;  %s23936_s2 = sld [smem:[#allocation19_spill]] }
  0x2c   : > { %p21030_p7 = pnand %p14260_p11, %p322_p6  ;;  %s247_s17 = scalar_lea.vmem [#allocation4], %s19622_s30 }
  0x2d   : > { %s254_s18 = sshll.u32 %s247_s17, 4  ;;  %s14254_s20 = sshll.u32 %s21000_s11, 4  ;;  %s255_s18 = int_to_ptr.vmem [resolvable:$true] %s254_s18 }
  0x2e   : > { %s244_s9 = scalar_lea.sflag [#allocation5], %s21000_s11  ;;  %s20748_s3 = scalar_lea.vmem %s255_s18, 100352 }
  0x2f   : > { %p20749_p8 = scmp.ne.s32.totalorder %s255_s18, %s20748_s3  ;;  %s20896_s19 = smov [#allocation4]  }
  0x30   : > { %s20753_s21 = sshll.u32 %s20896_s19, 4  ;;  %s20754_s21 = int_to_ptr.vmem [resolvable:$false] %s20753_s21 }
  0x31   : > { %s253_s16 = scalar_lea.hbm %s23936_s2, %s19623_s7  ;;  %p20751_p13 = pnand %p20749_p8, %p20709_p12 }
  0x32   : > { %s20755_s27 = scalar_lea.vmem %s20754_s21, 200704  ;;  %p20756_p0 = scmp.lt.s32.totalorder %s255_s18, %s20754_s21 }
  0x33   : > { %p20752_p11 = pneg %p20751_p13  ;;  %p20757_p1 = scmp.lt.s32.totalorder %s20755_s27, %s20748_s3 }
  0x35   : > { %p20758_p2 = por %p20757_p1, %p20756_p0 }
  0x37   : > { %p20759_p3 = pnand %p20758_p2, %p20752_p11 }
  0x39   : > { %20762 = shalt.err (!%p20759_p3)
}
  0x3a   : > { %s20897_s30 = smov 64   ;;  %s20898_s7 = smov 4  }
  0x3b   : > { %19642 = dma.hbm_to_vmem [thread:$0]  (!%p21007_p10), %s253_s16, 100352, %s255_s18, %s244_s9, %s20897_s30, %s20897_s30, %s20898_s7  }
  0x3c   : > { %s15498_s13 = sshll.u32 %s20885_s26, 8  ;;  %s286_s2 = scalar_lea.vmem [#allocation8], %s14254_s20 }
  0x3d   : > { %s292_s19 = scalar_lea.hbm %s23918_s4, %s15498_s13  ;;  %s293_s21 = sshll.u32 %s286_s2, 4  ;;  %s294_s21 = int_to_ptr.vmem [resolvable:$true] %s293_s21 }
  0x3e   : > { %s20776_s3 = scalar_lea.vmem %s294_s21, 256  ;;  %s20899_s27 = smov [#allocation8]  }
  0x3f   : > { %p20777_p4 = scmp.ne.s32.totalorder %s294_s21, %s20776_s3  ;;  %s20781_s10 = sshll.u32 %s20899_s27, 4  ;;  %s20782_s10 = int_to_ptr.vmem [resolvable:$false] %s20781_s10 }
  0x40   : > { %s20783_s23 = scalar_lea.vmem %s20782_s10, 512  ;;  %p20784_p8 = scmp.lt.s32.totalorder %s294_s21, %s20782_s10 }
  0x41   : > { %p20779_p5 = pnand %p20777_p4, %p20709_p12  ;;  %p20785_p13 = scmp.lt.s32.totalorder %s20783_s23, %s20776_s3 }
  0x43   : > { %p20780_p6 = pneg %p20779_p5  ;;  %p20786_p11 = por %p20785_p13, %p20784_p8 }
  0x45   : > { %p20787_p0 = pnand %p20786_p11, %p20780_p6 }
  0x47   : > { %20790 = shalt.err (!%p20787_p0)
}
  0x48   : > { %s20900_s16 = smov 128   ;;  %s20901_s2 = smov 8  }
  0x49   : > { %19648 = dma.hbm_to_vmem [thread:$0]  (!%p21007_p10), %s292_s19, 256, %s294_s21, %s21017_s8, %s20900_s16, %s20900_s16, %s20901_s2  }
  0x4a   : > { %s313_s30 = scalar_lea.hbm %s23919_s5, %s15498_s13  ;;  %s307_s7 = scalar_lea.vmem [#allocation9], %s14254_s20 }
  0x4b   : > { %s314_s10 = sshll.u32 %s307_s7, 4  ;;  %s304_s23 = scalar_lea.sflag [#allocation10], %s21000_s11  ;;  %s315_s10 = int_to_ptr.vmem [resolvable:$true] %s314_s10 }
  0x4c   : > { %s20804_s15 = scalar_lea.vmem %s315_s10, 256  ;;  %s20902_s17 = smov [#allocation9]  }
  0x4d   : > { %p20805_p1 = scmp.ne.s32.totalorder %s315_s10, %s20804_s15  ;;  %s20809_s3 = sshll.u32 %s20902_s17, 4  ;;  %s20810_s3 = int_to_ptr.vmem [resolvable:$false] %s20809_s3 }
  0x4e   : > { %s20811_s27 = scalar_lea.vmem %s20810_s3, 512  ;;  %p20812_p4 = scmp.lt.s32.totalorder %s315_s10, %s20810_s3 }
  0x4f   : > { %p20807_p2 = pnand %p20805_p1, %p20709_p12  ;;  %p20813_p5 = scmp.lt.s32.totalorder %s20811_s27, %s20804_s15 }
  0x51   : > { %p20808_p3 = pneg %p20807_p2  ;;  %p20814_p6 = por %p20813_p5, %p20812_p4 }
  0x53   : > { %p20815_p8 = pnand %p20814_p6, %p20808_p3 }
  0x55   : > { %20818 = shalt.err (!%p20815_p8)
}
  0x56   : > { %19651 = dma.hbm_to_vmem [thread:$0]  (!%p21007_p10), %s313_s30, 256, %s315_s10, %s304_s23, %s20900_s16, %s20900_s16, %s20901_s2  }
  0x57   : > { %326 = sbr.rel (%p21030_p7) target bundleno = 3314 (0xcf2), region = 44  ;;  %s328_s11 = sand.u32 (!%p21030_p7), 1, %s20869_s22  }
  0x58   : > { %s19624_s8 = smul.u32 (!%p21030_p7), 6272, %s328_s11  ;;  %s329_s20 = scalar_lea.sflag (!%p21030_p7), [#allocation5], %s328_s11 }
  0x5a   : > { %s21072_s13 = scalar_lea.vmem (!%p21030_p7), [#allocation4], %s19624_s8 }
  0x5c   : > { %20852 = dma.done.wait (%p21002_p9), %s329_s20, 100352  }
  0x5d   : > { %20854 = vsyncadd (%p21002_p9), %s329_s20, 4294866944  ;;  %s23937_s19 = sadd.s32 4294967295, %s20893_s28   ;;  %s14261_s21 = sshll.u32 %s328_s11, 1 }
  0x5e   : > { %s337_s14 = sand.u32 1, %s23937_s19   ;;  %s21080_s29 = scalar_lea.vmem [#allocation6], %s14261_s21 }
  0x5f   : > { %s338_s16 = scalar_lea.sflag [#allocation7], %s337_s14 }
  0x60   : > { %20856 = dma.done.wait (%p21002_p9), %s338_s16, 288  }
  0x61   : > { %20858 = vsyncadd (%p21002_p9), %s338_s16, 4294967008  ;;  %s14262_s2 = sshll.u32 %s328_s11, 4  ;;  %s356_s9 = scalar_lea.sflag [#allocation10], %s328_s11 }
  0x62   : > { %s21086_s18 = scalar_lea.vmem [#allocation8], %s14262_s2  ;;  %s21088_s30 = scalar_lea.vmem [#allocation9], %s14262_s2 }
  0x63   : > { %20860 = dma.done.wait (%p21002_p9), %s356_s9, 256  }
  0x64   : > { %20862 = vsyncadd (%p21002_p9), %s356_s9, 4294967040  ;;  %p408_p10 = scmp.lt.s32.totalorder %s20881_s25, 1  ;;  %p14268_p12 = scmp.ne.s32.totalorder %s20877_s24, 0 }
  0x66   : > { %s23954_s25 = smov (!%p408_p10, %s20881_s25), 1  ;;  %422 = sbr.rel (%p14268_p12) target bundleno = 109 (0x6d), region = 64 }
  0x67   : > { %s15500_s7 = sshll.u32 %s23954_s25, 4 }
  0x68   : > { %s412_s15 = scalar_lea.vmem %s23914_s0, %s15500_s7  ;;  %s21102_s27 = scalar_lea.vmem %s23920_s6, %s15500_s7 }
  0x6b   : > { %v423_v0 = vld [vmem:[%s412_s15] sm:$0xff]  ;;  %v424_v1 = vld [vmem:[%s412_s15 + $0x8] sm:$0xff] }
  0x6c   : > { %425 = vst [vmem:[#allocation2] sm:$0xff] %v423_v0  ;;  %426 = vst [vmem:[#allocation2 + $0x8] sm:$0xff] %v424_v1 }
  0x6d PF: > { %v20903_v4 = vmov 0.0   ;;  %vm20904_vm0 = vmmov 0   ;;  %v19723_v6 = vld [vmem:[%s23915_s1] sm:$0xff]   ;;  %vm773_vm1 = vcmask 130048   ;;  %v19724_v7 = vld [vmem:[%s23915_s1 + $0x8] sm:$0xff]   ;;  %v19725_v8 = vld [vmem:[%s23915_s1 + $0x10] sm:$0xff]  }
  0x6e   : > { %17266 = vmatprep.subr.bf16.mxu0 %v20903_v4  ;;  %17268 = vmatprep.mubr.msk.bf16.mxu0 %vm20904_vm0, %v20903_v4  ;;  %v19726_v9 = vld [vmem:[%s23915_s1 + $0x18] sm:$0xff]   ;;  %v19727_v10 = vld [vmem:[%s23915_s1 + $0x20] sm:$0xff]   ;;  %v19728_v11 = vld [vmem:[%s23915_s1 + $0x28] sm:$0xff]  }
  0x6f   : > { %17464 = vmatprep.subr.bf16.mxu1 %v20903_v4  ;;  %17480 = vmatprep.mubr.msk.bf16.mxu1 %vm20904_vm0, %v20903_v4  ;;  %v19729_v12 = vld [vmem:[%s23915_s1 + $0x30] sm:$0xff]   ;;  %v19730_v13 = vld [vmem:[%s23915_s1 + $0x38] sm:$0xff]   ;;  %v19749_v16 = vld [vmem:[%s21072_s13 + $0x70] sm:$0xff]  }
  0x70   : > { %v19748_v14 = vld [vmem:[%s21072_s13 + $0x78] sm:$0xff]   ;;  %v19731_v17 = vld [vmem:[%s23915_s1 + $0x40] sm:$0xff]   ;;  %v19732_v19 = vld [vmem:[%s23915_s1 + $0x48] sm:$0xff]  }
  0x71   : > { %v19747_v15 = vld [vmem:[%s21072_s13 + $0x338] sm:$0xff]   ;;  %17465 = vmatpush3.bf16.msra.mxu1 %v19748_v14  ;;  %v19751_v18 = vld [vmem:[%s21072_s13 + $0x68] sm:$0xff]   ;;  %v19752_v20 = vld [vmem:[%s21072_s13 + $0x60] sm:$0xff]  }
  0x72   : > { %17466 = vmatprep.subr.bf16.mxu1 %v20903_v4  ;;  %v19754_v21 = vld [vmem:[%s21072_s13 + $0x58] sm:$0xff]   ;;  %v19755_v23 = vld [vmem:[%s21072_s13 + $0x50] sm:$0xff]   ;;  %v19757_v24 = vld [vmem:[%s21072_s13 + $0x48] sm:$0xff]  }
  0x73   : > { %v427_v2 = vld [vmem:[#allocation2] sm:$0xff]  ;;  %v428_v3 = vld [vmem:[#allocation2 + $0x8] sm:$0xff]  ;;  %v19733_v22 = vld [vmem:[%s23915_s1 + $0x50] sm:$0xff]  }
  0x74   : > { %v527_v5 = vpack.c.bf16 %v428_v3, %v427_v2  ;;  %v19758_v25 = vld [vmem:[%s21072_s13 + $0x40] sm:$0xff]   ;;  %v19735_v27 = vld [vmem:[%s23915_s1 + $0x60] sm:$0xff]   ;;  %v19736_v28 = vld [vmem:[%s23915_s1 + $0x68] sm:$0xff]  }
  0x75   : > { %17467 = vmatpush3.bf16.msra.mxu1 %v19749_v16  ;;  %v19734_v26 = vld [vmem:[%s23915_s1 + $0x58] sm:$0xff]   ;;  %v19768_v29 = vld [vmem:[%s21072_s13 + $0x330] sm:$0xff]   ;;  %v19737_v30 = vld [vmem:[%s23915_s1 + $0x70] sm:$0xff]  }
  0x76   : > { %17267 = vmatpush3.bf16.msra.mxu0 %v527_v5  ;;  %17468 = vmatprep.subr.bf16.mxu1 %v20903_v4  ;;  %v19738_v31 = vld [vmem:[%s23915_s1 + $0x78] sm:$0xff]   ;;  %v19739_v32 = vld [vmem:[%s23915_s1 + $0x80] sm:$0xff]   ;;  %v19740_v33 = vld [vmem:[%s23915_s1 + $0x88] sm:$0xff]  }
  0x77   : > { %17704 = vmatprep.subr.bf16.mxu0 %v20903_v4  ;;  %v19741_v34 = vld [vmem:[%s23915_s1 + $0x90] sm:$0xff]   ;;  %v19742_v35 = vld [vmem:[%s23915_s1 + $0x98] sm:$0xff]   ;;  %v19789_v36 = vld [vmem:[%s21072_s13 + $0x328] sm:$0xff]  }
  0x78   : > { %v19743_v37 = vld [vmem:[%s23915_s1 + $0xa0] sm:$0xff]   ;;  %v19744_v38 = vld [vmem:[%s23915_s1 + $0xa8] sm:$0xff]   ;;  %v19745_v39 = vld [vmem:[%s23915_s1 + $0xb0] sm:$0xff]  }
  0x79   : > { %17269 = vmatmul.mubr.msk.bf16.vlgmr.msra.gmra.mxu0 %vm773_vm1, %v19723_v6  ;;  %17469 = vmatpush3.bf16.msra.mxu1 %v19751_v18  ;;  %v19746_v40 = vld [vmem:[%s23915_s1 + $0xb8] sm:$0xff]   ;;  %v19750_v41 = vld [vmem:[%s23915_s1 + $0xc0] sm:$0xff]   ;;  %v19753_v44 = vld [vmem:[%s23915_s1 + $0xc8] sm:$0xff]  }
  0x7a   : > { %17272 = vmatprep.mubr.msk.bf16.mxu0 %vm20904_vm0, %v20903_v4  ;;  %17705 = vmatpush3.bf16.msra.mxu0 %v19747_v15  ;;  %v19809_v49 = vld [vmem:[%s21072_s13 + $0x320] sm:$0xff]   ;;  %v19756_v51 = vld [vmem:[%s23915_s1 + $0xd0] sm:$0xff]   ;;  %v19762_v63 = vld [vmem:[%s21072_s13 + $0x30] sm:$0xff]  }
  0x7b   : > { %17706 = vmatprep.subr.bf16.mxu0 %v20903_v4  ;;  %17470 = vmatprep.subr.bf16.mxu1 %v20903_v4  ;;  %v19759_v56 = vld [vmem:[%s23915_s1 + $0xd8] sm:$0xff]   ;;  %v19761_v59 = vld [vmem:[%s21072_s13 + $0x38] sm:$0xff]   ;;  %v19763_v1 = vld [vmem:[%s23915_s1 + $0xe0] sm:$0xff]  }
  0x7c   : > { %v19764_v5 = vld [vmem:[%s21072_s13 + $0x28] sm:$0xff]   ;;  %v19769_v16 = vld [vmem:[%s21072_s13 + $0x10] sm:$0xff]   ;;  %v19770_v18 = vld [vmem:[%s23915_s1 + $0xf0] sm:$0xff]  }
  0x7d   : > { %17471 = vmatpush3.bf16.msra.mxu1 %v19752_v20 }
  0x7e   : > { %17472 = vmatprep.subr.bf16.mxu1 %v20903_v4  ;;  %17707 = vmatpush3.bf16.msra.mxu0 %v19768_v29  ;;  %v19775_v29 = vld [vmem:[%s21072_s13 + $0xb8] sm:$0xff]  }
  0x7f   : > { %17708 = vmatprep.subr.bf16.mxu0 %v20903_v4 }
  0x81   : > { %17273 = vmatmul.mubr.msk.bf16.gmra.mxu0 %vm773_vm1, %v19724_v7  ;;  %17473 = vmatpush3.bf16.msra.mxu1 %v19754_v21  ;;  %v19771_v21 = vld [vmem:[%s21072_s13 + $0x8] sm:$0xff]  }
  0x82   : > { %17276 = vmatprep.mubr.msk.bf16.mxu0 %vm20904_vm0, %v20903_v4  ;;  %17474 = vmatprep.subr.bf16.mxu1 %v20903_v4 }
  0x83   : > { %17709 = vmatpush3.bf16.msra.mxu0 %v19789_v36  ;;  %v19777_v36 = vld [vmem:[%s23915_s1 + $0x100] sm:$0xff]  }
  0x84   : > { %17710 = vmatprep.subr.bf16.mxu0 %v20903_v4 }
  0x85   : > { %17475 = vmatpush3.bf16.msra.mxu1 %v19755_v23 }
  0x86   : > { %17476 = vmatprep.subr.bf16.mxu1 %v20903_v4 }
  0x87   : > { %17711 = vmatpush3.bf16.msra.mxu0 %v19809_v49  ;;  %v19781_v49 = vld [vmem:[%s21072_s13 + $0x98] sm:$0xff]  }
  0x88   : > { %17712 = vmatprep.subr.bf16.mxu0 %v20903_v4 }
  0x89   : > { %17277 = vmatmul.mubr.msk.bf16.gmra.mxu0 %vm773_vm1, %v19725_v8  ;;  %17477 = vmatpush3.bf16.msra.mxu1 %v19757_v24  ;;  %v19765_v8 = vld [vmem:[%s21072_s13 + $0x20] sm:$0xff]  }
  0x8a   : > { %17280 = vmatprep.mubr.msk.bf16.mxu0 %vm20904_vm0, %v20903_v4  ;;  %17478 = vmatprep.subr.bf16.mxu1 %v20903_v4  ;;  %v19772_v24 = vld [vmem:[%s21072_s13] sm:$0xff]  }
  0x8d   : > { %17479 = vmatpush3.bf16.msra.mxu1 %v19758_v25 }
  0x8e   : > { %17484 = vmatprep.subr.bf16.mxu1 %v20903_v4 }
  0x91   : > { %17281 = vmatmul.mubr.msk.bf16.gmra.mxu0 %vm773_vm1, %v19726_v9 }
  0x92   : > { %17284 = vmatprep.mubr.msk.bf16.mxu0 %vm20904_vm0, %v20903_v4 }
  0x99   : > { %17285 = vmatmul.mubr.msk.bf16.gmra.mxu0 %vm773_vm1, %v19727_v10  ;;  %v19766_v10 = vld [vmem:[%s23915_s1 + $0xe8] sm:$0xff]  }
  0x9a   : > { %17288 = vmatprep.mubr.msk.bf16.mxu0 %vm20904_vm0, %v20903_v4 }
  0xa1   : > { %17289 = vmatmul.mubr.msk.bf16.gmra.mxu0 %vm773_vm1, %v19728_v11 }
  0xa2   : > { %17292 = vmatprep.mubr.msk.bf16.mxu0 %vm20904_vm0, %v20903_v4 }
  0xa9   : > { %17293 = vmatmul.mubr.msk.bf16.gmra.mxu0 %vm773_vm1, %v19729_v12 }
  0xaa   : > { %17296 = vmatprep.mubr.msk.bf16.mxu0 %vm20904_vm0, %v20903_v4 }
  0xb1   : > { %17297 = vmatmul.mubr.msk.bf16.gmra.mxu0 %vm773_vm1, %v19730_v13  ;;  %v19767_v13 = vld [vmem:[%s21072_s13 + $0x18] sm:$0xff]  }
  0xb2   : > { %17300 = vmatprep.mubr.msk.bf16.mxu0 %vm20904_vm0, %v20903_v4 }
  0xb9   : > { %17301 = vmatmul.mubr.msk.bf16.gmra.mxu0 %vm773_vm1, %v19731_v17 }
  0xba   : > { %17304 = vmatprep.mubr.msk.bf16.mxu0 %vm20904_vm0, %v20903_v4 }
  0xc1   : > { %17305 = vmatmul.mubr.msk.bf16.gmra.mxu0 %vm773_vm1, %v19732_v19 }
  0xc2   : > { %17308 = vmatprep.mubr.msk.bf16.mxu0 %vm20904_vm0, %v20903_v4 }
  0xc9   : > { %17309 = vmatmul.mubr.msk.bf16.gmra.mxu0 %vm773_vm1, %v19733_v22 }
  0xca   : > { %17312 = vmatprep.mubr.msk.bf16.mxu0 %vm20904_vm0, %v20903_v4 }
  0xd1   : > { %17313 = vmatmul.mubr.msk.bf16.gmra.mxu0 %vm773_vm1, %v19734_v26  ;;  %v19773_v26 = vld [vmem:[%s23915_s1 + $0xf8] sm:$0xff]  }
  0xd2   : > { %17316 = vmatprep.mubr.msk.bf16.mxu0 %vm20904_vm0, %v20903_v4 }
  0xd9   : > { %17317 = vmatmul.mubr.msk.bf16.gmra.mxu0 %vm773_vm1, %v19735_v27 }
  0xda   : > { %17320 = vmatprep.mubr.msk.bf16.mxu0 %vm20904_vm0, %v20903_v4 }
  0xe1   : > { %17321 = vmatmul.mubr.msk.bf16.gmra.mxu0 %vm773_vm1, %v19736_v28 }
  0xe2   : > { %17324 = vmatprep.mubr.msk.bf16.mxu0 %vm20904_vm0, %v20903_v4 }
  0xe9   : > { %17325 = vmatmul.mubr.msk.bf16.gmra.mxu0 %vm773_vm1, %v19737_v30 }
  0xea   : > { %17328 = vmatprep.mubr.msk.bf16.mxu0 %vm20904_vm0, %v20903_v4 }
  0xf1   : > { %17329 = vmatmul.mubr.msk.bf16.gmra.mxu0 %vm773_vm1, %v19738_v31 }
  0xf2   : > { %17332 = vmatprep.mubr.msk.bf16.mxu0 %vm20904_vm0, %v20903_v4 }
  0xf9   : > { %17333 = vmatmul.mubr.msk.bf16.gmra.mxu0 %vm773_vm1, %v19739_v32 }
  0xfa   : > { %17336 = vmatprep.mubr.msk.bf16.mxu0 %vm20904_vm0, %v20903_v4 }
 0x101   : > { %17337 = vmatmul.mubr.msk.bf16.gmra.mxu0 %vm773_vm1, %v19740_v33  ;;  %v19776_v33 = vld [vmem:[%s21072_s13 + $0xb0] sm:$0xff]  }
 0x102   : > { %17340 = vmatprep.mubr.msk.bf16.mxu0 %vm20904_vm0, %v20903_v4 }
 0x109   : > { %17341 = vmatmul.mubr.msk.bf16.gmra.mxu0 %vm773_vm1, %v19741_v34  ;;  %v19829_v34 = vld [vmem:[%s21072_s13 + $0x318] sm:$0xff]  }
 0x10a   : > { %17344 = vmatprep.mubr.msk.bf16.mxu0 %vm20904_vm0, %v20903_v4  ;;  %17713 = vmatpush3.bf16.msra.mxu0 %v19829_v34  ;;  %v19800_v34 = vld [vmem:[%s23915_s1 + $0x138] sm:$0xff]  }
 0x10b   : > { %17714 = vmatprep.subr.bf16.mxu0 %v20903_v4 }
 0x111   : > { %17345 = vmatmul.mubr.msk.bf16.gmra.mxu0 %vm773_vm1, %v19742_v35 }
 0x112   : > { %17348 = vmatprep.mubr.msk.bf16.mxu0 %vm20904_vm0, %v20903_v4 }
 0x119   : > { %17349 = vmatmul.mubr.msk.bf16.gmra.mxu0 %vm773_vm1, %v19743_v37 }
 0x11a   : > { %17352 = vmatprep.mubr.msk.bf16.mxu0 %vm20904_vm0, %v20903_v4 }
 0x121   : > { %17353 = vmatmul.mubr.msk.bf16.gmra.mxu0 %vm773_vm1, %v19744_v38  ;;  %v19831_v38 = vld [vmem:[%s21072_s13 + $0x310] sm:$0xff]  }
 0x122   : > { %17356 = vmatprep.mubr.msk.bf16.mxu0 %vm20904_vm0, %v20903_v4  ;;  %17715 = vmatpush3.bf16.msra.mxu0 %v19831_v38 }
 0x123   : > { %17716 = vmatprep.subr.bf16.mxu0 %v20903_v4 }
 0x129   : > { %17357 = vmatmul.mubr.msk.bf16.gmra.mxu0 %vm773_vm1, %v19745_v39 }
 0x12a   : > { %17360 = vmatprep.mubr.msk.bf16.mxu0 %vm20904_vm0, %v20903_v4 }
 0x131   : > { %17361 = vmatmul.mubr.msk.bf16.gmra.mxu0 %vm773_vm1, %v19746_v40  ;;  %v19778_v40 = vld [vmem:[%s21072_s13 + $0xa8] sm:$0xff]  }
 0x132   : > { %17364 = vmatprep.mubr.msk.bf16.mxu0 %vm20904_vm0, %v20903_v4 }
 0x139   : > { %v955_v42 = vpop.f32.mrf.mxu0  ;;  %17365 = vmatmul.mubr.msk.bf16.gmra.mxu0 %vm773_vm1, %v19750_v41 }
 0x13a   : > { %17368 = vmatprep.mubr.msk.bf16.mxu0 %vm20904_vm0, %v20903_v4 }
 0x13b   : > { %v17270_v43 = vpop.f32.mrf.mxu0 }
 0x13c   : > { %v19779_v43 = vld [vmem:[%s21072_s13 + $0xa0] sm:$0xff]  }
 0x13d   : > { %v958_v45 = vpop.f32.mrf.mxu0 }
 0x13e   : > { %v15701_v46 = vpack.c.bf16 %v958_v45, %v955_v42 }
 0x13f   : > { %v17271_v47 = vpop.f32.mrf.mxu0 }
 0x140   : > { %15702 = vst [vmem:[#allocation3] sm:$0xff] %v15701_v46   ;;  %v19780_v46 = vld [vmem:[%s23915_s1 + $0x108] sm:$0xff]  }
 0x141   : > { %v963_v48 = vpop.f32.mrf.mxu0  ;;  %17369 = vmatmul.mubr.msk.bf16.gmra.mxu0 %vm773_vm1, %v19753_v44  ;;  %v19834_v44 = vld [vmem:[%s21072_s13 + $0x308] sm:$0xff]  }
 0x142   : > { %17372 = vmatprep.mubr.msk.bf16.mxu0 %vm20904_vm0, %v20903_v4  ;;  %17717 = vmatpush3.bf16.msra.mxu0 %v19834_v44 }
 0x143   : > { %v17274_v50 = vpop.f32.mrf.mxu0  ;;  %17718 = vmatprep.subr.bf16.mxu0 %v20903_v4 }
 0x145   : > { %v966_v52 = vpop.f32.mrf.mxu0 }
 0x146   : > { %v15706_v53 = vpack.c.bf16 %v966_v52, %v963_v48  ;;  %v19836_v48 = vld [vmem:[%s21072_s13 + $0x300] sm:$0xff]  }
 0x147   : > { %v17275_v54 = vpop.f32.mrf.mxu0  ;;  %v19774_v31 = vld [vmem:[#allocation3] sm:$0xff]   ;;  %17719 = vmatpush3.bf16.msra.mxu0 %v19836_v48  ;;  %v19806_v48 = vld [vmem:[%s21072_s13 + $0x120] sm:$0xff]  }
 0x148   : > { %16188 = vst [vmem:[#allocation3 + $0x8] sm:$0xff] %v15706_v53   ;;  %v19782_v53 = vld [vmem:[%s21072_s13 + $0x90] sm:$0xff]   ;;  %17744 = vmatprep.subr.bf16.mxu0 %v20903_v4 }
 0x149   : > { %17373 = vmatmul.mubr.msk.bf16.gmra.mxu0 %vm773_vm1, %v19756_v51  ;;  %v971_v55 = vpop.f32.mrf.mxu0 }
 0x14a   : > { %17376 = vmatprep.mubr.msk.bf16.mxu0 %vm20904_vm0, %v20903_v4 }
 0x14b   : > { %v17278_v57 = vpop.f32.mrf.mxu0 }
 0x14c   : > { %v19784_v57 = vld [vmem:[%s21072_s13 + $0x88] sm:$0xff]  }
 0x14d   : > { %v974_v58 = vpop.f32.mrf.mxu0 }
 0x14e   : > { %v15711_v60 = vpack.c.bf16 %v974_v58, %v971_v55  ;;  %v19783_v55 = vld [vmem:[%s23915_s1 + $0x110] sm:$0xff]  }
 0x14f   : > { %v19760_v61 = vld [vmem:[#allocation3 + $0x8] sm:$0xff]   ;;  %v17279_v62 = vpop.f32.mrf.mxu0 }
 0x150   : > { %16189 = vst [vmem:[#allocation3 + $0x10] sm:$0xff] %v15711_v60   ;;  %17481 = vmatmul.mubr.bf16.vlgmr.msra.gmra.mxu1 %v19760_v61  ;;  %v19785_v61 = vld [vmem:[%s21072_s13 + $0x80] sm:$0xff]  }
 0x151   : > { %17377 = vmatmul.mubr.msk.bf16.gmra.mxu0 %vm773_vm1, %v19759_v56  ;;  %v979_v0 = vpop.f32.mrf.mxu0  ;;  %17485 = vmatpush3.bf16.msra.mxu1 %v19761_v59 }
 0x152   : > { %17380 = vmatprep.mubr.msk.bf16.mxu0 %vm20904_vm0, %v20903_v4  ;;  %17486 = vmatprep.subr.bf16.mxu1 %v20903_v4 }
 0x153   : > { %v17282_v2 = vpop.f32.mrf.mxu0  ;;  %17500 = vmatprep.mubr.msk.bf16.mxu1 %vm20904_vm0, %v20903_v4 }
 0x155   : > { %v982_v3 = vpop.f32.mrf.mxu0  ;;  %17487 = vmatpush3.bf16.msra.mxu1 %v19762_v63 }
 0x156   : > { %v15716_v6 = vpack.c.bf16 %v982_v3, %v979_v0  ;;  %17488 = vmatprep.subr.bf16.mxu1 %v20903_v4  ;;  %v19786_v0 = vld [vmem:[%s23915_s1 + $0x118] sm:$0xff]  }
 0x157   : > { %v17283_v7 = vpop.f32.mrf.mxu0  ;;  %v19787_v2 = vld [vmem:[#allocation3 + $0x10] sm:$0xff]  }
 0x158   : > { %16190 = vst [vmem:[#allocation3 + $0x18] sm:$0xff] %v15716_v6   ;;  %v19790_v7 = vld [vmem:[%s21072_s13 + $0xf0] sm:$0xff]  }
 0x159   : > { %17381 = vmatmul.mubr.msk.bf16.gmra.mxu0 %vm773_vm1, %v19763_v1  ;;  %v987_v9 = vpop.f32.mrf.mxu0  ;;  %17489 = vmatpush3.bf16.msra.mxu1 %v19764_v5  ;;  %v19788_v1 = vld [vmem:[%s21072_s13 + $0xf8] sm:$0xff]  }
 0x15a   : > { %17384 = vmatprep.mubr.msk.bf16.mxu0 %vm20904_vm0, %v20903_v4  ;;  %17490 = vmatprep.subr.bf16.mxu1 %v20903_v4 }
 0x15b   : > { %v17286_v11 = vpop.f32.mrf.mxu0 }
 0x15c   : > { %v19792_v11 = vld [vmem:[%s21072_s13 + $0xe8] sm:$0xff]  }
 0x15d   : > { %v990_v12 = vpop.f32.mrf.mxu0  ;;  %17491 = vmatpush3.bf16.msra.mxu1 %v19765_v8 }
 0x15e   : > { %v15721_v14 = vpack.c.bf16 %v990_v12, %v987_v9  ;;  %17492 = vmatprep.subr.bf16.mxu1 %v20903_v4  ;;  %v19791_v9 = vld [vmem:[%s23915_s1 + $0x120] sm:$0xff]  }
 0x15f   : > { %v17287_v15 = vpop.f32.mrf.mxu0 }
 0x160   : > { %16191 = vst [vmem:[#allocation3 + $0x20] sm:$0xff] %v15721_v14   ;;  %v19793_v15 = vld [vmem:[%s21072_s13 + $0xe0] sm:$0xff]  }
 0x161   : > { %17385 = vmatmul.mubr.msk.bf16.gmra.mxu0 %vm773_vm1, %v19766_v10  ;;  %v995_v17 = vpop.f32.mrf.mxu0  ;;  %17493 = vmatpush3.bf16.msra.mxu1 %v19767_v13 }
 0x162   : > { %17388 = vmatprep.mubr.msk.bf16.mxu0 %vm20904_vm0, %v20903_v4  ;;  %17494 = vmatprep.subr.bf16.mxu1 %v20903_v4 }
 0x163   : > { %v17290_v19 = vpop.f32.mrf.mxu0 }
 0x164   : > { %v19795_v19 = vld [vmem:[%s21072_s13 + $0xd8] sm:$0xff]  }
 0x165   : > { %v998_v20 = vpop.f32.mrf.mxu0  ;;  %17495 = vmatpush3.bf16.msra.mxu1 %v19769_v16 }
 0x166   : > { %v15726_v22 = vpack.c.bf16 %v998_v20, %v995_v17  ;;  %17496 = vmatprep.subr.bf16.mxu1 %v20903_v4  ;;  %v19794_v17 = vld [vmem:[%s23915_s1 + $0x128] sm:$0xff]  }
 0x167   : > { %v17291_v23 = vpop.f32.mrf.mxu0 }
 0x168   : > { %16192 = vst [vmem:[#allocation3 + $0x28] sm:$0xff] %v15726_v22   ;;  %v19796_v23 = vld [vmem:[%s21072_s13 + $0xd0] sm:$0xff]  }
 0x169   : > { %17389 = vmatmul.mubr.msk.bf16.gmra.mxu0 %vm773_vm1, %v19770_v18  ;;  %v1003_v25 = vpop.f32.mrf.mxu0  ;;  %17497 = vmatpush3.bf16.msra.mxu1 %v19771_v21 }
 0x16a   : > { %17392 = vmatprep.mubr.msk.bf16.mxu0 %vm20904_vm0, %v20903_v4  ;;  %17498 = vmatprep.subr.bf16.mxu1 %v20903_v4 }
 0x16b   : > { %v17294_v27 = vpop.f32.mrf.mxu0 }
 0x16c   : > { %v19798_v27 = vld [vmem:[%s21072_s13 + $0xc8] sm:$0xff]  }
 0x16d   : > { %v1006_v28 = vpop.f32.mrf.mxu0  ;;  %17499 = vmatpush3.bf16.msra.mxu1 %v19772_v24 }
 0x16e   : > { %v15731_v30 = vpack.c.bf16 %v1006_v28, %v1003_v25  ;;  %17504 = vmatprep.subr.bf16.mxu1 %v20903_v4  ;;  %v19797_v25 = vld [vmem:[%s23915_s1 + $0x130] sm:$0xff]  }
 0x16f   : > { %v17295_v32 = vpop.f32.mrf.mxu0 }
 0x170   : > { %16193 = vst [vmem:[#allocation3 + $0x30] sm:$0xff] %v15731_v30   ;;  %17501 = vmatmul.mubr.bf16.vlgmr.msra.gmra.mxu1 %v19774_v31  ;;  %v19799_v31 = vld [vmem:[%s21072_s13 + $0xc0] sm:$0xff]  }
 0x171   : > { %17393 = vmatmul.mubr.msk.bf16.gmra.mxu0 %vm773_vm1, %v19773_v26  ;;  %v1011_v35 = vpop.f32.mrf.mxu0  ;;  %17505 = vmatpush3.bf16.msra.mxu1 %v19775_v29 }
 0x172   : > { %17396 = vmatprep.mubr.msk.bf16.mxu0 %vm20904_vm0, %v20903_v4  ;;  %17506 = vmatprep.subr.bf16.mxu1 %v20903_v4 }
 0x173   : > { %v17298_v37 = vpop.f32.mrf.mxu0  ;;  %17520 = vmatprep.mubr.msk.bf16.mxu1 %vm20904_vm0, %v20903_v4 }
 0x175   : > { %v1014_v39 = vpop.f32.mrf.mxu0  ;;  %17507 = vmatpush3.bf16.msra.mxu1 %v19776_v33 }
 0x176   : > { %v15736_v41 = vpack.c.bf16 %v1014_v39, %v1011_v35  ;;  %17508 = vmatprep.subr.bf16.mxu1 %v20903_v4  ;;  %v19802_v35 = vld [vmem:[%s21072_s13 + $0x138] sm:$0xff]  }
 0x177   : > { %v17299_v42 = vpop.f32.mrf.mxu0 }
 0x178   : > { %16194 = vst [vmem:[#allocation3 + $0x38] sm:$0xff] %v15736_v41  }
 0x179   : > { %17397 = vmatmul.mubr.msk.bf16.gmra.mxu0 %vm773_vm1, %v19777_v36  ;;  %v1019_v45 = vpop.f32.mrf.mxu0  ;;  %17509 = vmatpush3.bf16.msra.mxu1 %v19778_v40  ;;  %v19801_v36 = vld [vmem:[#allocation3 + $0x18] sm:$0xff]  }
 0x17a   : > { %17400 = vmatprep.mubr.msk.bf16.mxu0 %vm20904_vm0, %v20903_v4  ;;  %17510 = vmatprep.subr.bf16.mxu1 %v20903_v4  ;;  %v19803_v40 = vld [vmem:[%s21072_s13 + $0x130] sm:$0xff]  }
 0x17b   : > { %v17302_v47 = vpop.f32.mrf.mxu0 }
 0x17d   : > { %v1022_v50 = vpop.f32.mrf.mxu0  ;;  %17511 = vmatpush3.bf16.msra.mxu1 %v19779_v43  ;;  %v19804_v43 = vld [vmem:[%s23915_s1 + $0x140] sm:$0xff]  }
 0x17e   : > { %v15741_v51 = vpack.c.bf16 %v1022_v50, %v1019_v45  ;;  %17512 = vmatprep.subr.bf16.mxu1 %v20903_v4  ;;  %v19805_v45 = vld [vmem:[%s21072_s13 + $0x128] sm:$0xff]  }
 0x17f   : > { %v17303_v52 = vpop.f32.mrf.mxu0 }
 0x180   : > { %16195 = vst [vmem:[#allocation3 + $0x40] sm:$0xff] %v15741_v51   ;;  %v19807_v51 = vld [vmem:[%s23915_s1 + $0x148] sm:$0xff]  }
 0x181   : > { %17401 = vmatmul.mubr.msk.bf16.gmra.mxu0 %vm773_vm1, %v19780_v46  ;;  %v1027_v54 = vpop.f32.mrf.mxu0  ;;  %17513 = vmatpush3.bf16.msra.mxu1 %v19781_v49 }
 0x182   : > { %17404 = vmatprep.mubr.msk.bf16.mxu0 %vm20904_vm0, %v20903_v4  ;;  %17514 = vmatprep.subr.bf16.mxu1 %v20903_v4 }
 0x183   : > { %v17306_v56 = vpop.f32.mrf.mxu0 }
 0x184   : > { %v19810_v56 = vld [vmem:[%s21072_s13 + $0x110] sm:$0xff]  }
 0x185   : > { %v1030_v58 = vpop.f32.mrf.mxu0  ;;  %17515 = vmatpush3.bf16.msra.mxu1 %v19782_v53  ;;  %v19808_v53 = vld [vmem:[%s21072_s13 + $0x118] sm:$0xff]  }
 0x186   : > { %v15746_v59 = vpack.c.bf16 %v1030_v58, %v1027_v54  ;;  %17516 = vmatprep.subr.bf16.mxu1 %v20903_v4 }
 0x187   : > { %v17307_v60 = vpop.f32.mrf.mxu0 }
 0x188   : > { %16196 = vst [vmem:[#allocation3 + $0x48] sm:$0xff] %v15746_v59   ;;  %v19811_v59 = vld [vmem:[%s23915_s1 + $0x150] sm:$0xff]  }
 0x189   : > { %17405 = vmatmul.mubr.msk.bf16.gmra.mxu0 %vm773_vm1, %v19783_v55  ;;  %v1035_v62 = vpop.f32.mrf.mxu0  ;;  %17517 = vmatpush3.bf16.msra.mxu1 %v19784_v57 }
 0x18a   : > { %17408 = vmatprep.mubr.msk.bf16.mxu0 %vm20904_vm0, %v20903_v4  ;;  %17518 = vmatprep.subr.bf16.mxu1 %v20903_v4 }
 0x18b   : > { %v17310_v63 = vpop.f32.mrf.mxu0 }
 0x18d   : > { %v1038_v3 = vpop.f32.mrf.mxu0  ;;  %17519 = vmatpush3.bf16.msra.mxu1 %v19785_v61  ;;  %v19812_v61 = vld [vmem:[%s21072_s13 + $0x108] sm:$0xff]  }
 0x18e   : > { %v15751_v5 = vpack.c.bf16 %v1038_v3, %v1035_v62  ;;  %17524 = vmatprep.subr.bf16.mxu1 %v20903_v4 }
 0x18f   : > { %v17311_v6 = vpop.f32.mrf.mxu0 }
 0x190   : > { %16197 = vst [vmem:[#allocation3 + $0x50] sm:$0xff] %v15751_v5   ;;  %17521 = vmatmul.mubr.bf16.vlgmr.msra.gmra.mxu1 %v19787_v2  ;;  %v19814_v2 = vld [vmem:[%s23915_s1 + $0x158] sm:$0xff]   ;;  %v19816_v5 = vld [vmem:[%s21072_s13 + $0x178] sm:$0xff]  }
 0x191   : > { %17409 = vmatmul.mubr.msk.bf16.gmra.mxu0 %vm773_vm1, %v19786_v0  ;;  %v1043_v8 = vpop.f32.mrf.mxu0  ;;  %17525 = vmatpush3.bf16.msra.mxu1 %v19788_v1  ;;  %v19813_v0 = vld [vmem:[%s21072_s13 + $0x100] sm:$0xff]  }
 0x192   : > { %17412 = vmatprep.mubr.msk.bf16.mxu0 %vm20904_vm0, %v20903_v4  ;;  %17526 = vmatprep.subr.bf16.mxu1 %v20903_v4 }
 0x193   : > { %v17314_v10 = vpop.f32.mrf.mxu0  ;;  %17540 = vmatprep.mubr.msk.bf16.mxu1 %vm20904_vm0, %v20903_v4 }
 0x194   : > { %v19817_v10 = vld [vmem:[%s21072_s13 + $0x170] sm:$0xff]  }
 0x195   : > { %v1046_v12 = vpop.f32.mrf.mxu0  ;;  %17527 = vmatpush3.bf16.msra.mxu1 %v19790_v7  ;;  %v19815_v7 = vld [vmem:[#allocation3 + $0x20] sm:$0xff]  }
 0x196   : > { %v15756_v13 = vpack.c.bf16 %v1046_v12, %v1043_v8  ;;  %17528 = vmatprep.subr.bf16.mxu1 %v20903_v4 }
 0x197   : > { %v17315_v14 = vpop.f32.mrf.mxu0 }
 0x198   : > { %16198 = vst [vmem:[#allocation3 + $0x58] sm:$0xff] %v15756_v13   ;;  %v19818_v13 = vld [vmem:[%s23915_s1 + $0x160] sm:$0xff]  }
 0x199   : > { %17413 = vmatmul.mubr.msk.bf16.gmra.mxu0 %vm773_vm1, %v19791_v9  ;;  %v1051_v16 = vpop.f32.mrf.mxu0  ;;  %17529 = vmatpush3.bf16.msra.mxu1 %v19792_v11  ;;  %v19819_v14 = vld [vmem:[%s21072_s13 + $0x168] sm:$0xff]  }
 0x19a   : > { %17416 = vmatprep.mubr.msk.bf16.mxu0 %vm20904_vm0, %v20903_v4  ;;  %17530 = vmatprep.subr.bf16.mxu1 %v20903_v4 }
 0x19b   : > { %v17318_v18 = vpop.f32.mrf.mxu0 }
 0x19c   : > { %v19820_v18 = vld [vmem:[%s21072_s13 + $0x160] sm:$0xff]  }
 0x19d   : > { %v1054_v20 = vpop.f32.mrf.mxu0  ;;  %17531 = vmatpush3.bf16.msra.mxu1 %v19793_v15 }
 0x19e   : > { %v15761_v21 = vpack.c.bf16 %v1054_v20, %v1051_v16  ;;  %17532 = vmatprep.subr.bf16.mxu1 %v20903_v4 }
 0x19f   : > { %v17319_v22 = vpop.f32.mrf.mxu0 }
 0x1a0   : > { %16199 = vst [vmem:[#allocation3 + $0x60] sm:$0xff] %v15761_v21   ;;  %v19821_v21 = vld [vmem:[%s23915_s1 + $0x168] sm:$0xff]  }
 0x1a1   : > { %17417 = vmatmul.mubr.msk.bf16.gmra.mxu0 %vm773_vm1, %v19794_v17  ;;  %v1059_v24 = vpop.f32.mrf.mxu0  ;;  %17533 = vmatpush3.bf16.msra.mxu1 %v19795_v19 }
 0x1a2   : > { %17420 = vmatprep.mubr.msk.bf16.mxu0 %vm20904_vm0, %v20903_v4  ;;  %17534 = vmatprep.subr.bf16.mxu1 %v20903_v4 }
 0x1a3   : > { %v17322_v26 = vpop.f32.mrf.mxu0 }
 0x1a4   : > { %v19823_v26 = vld [vmem:[%s21072_s13 + $0x150] sm:$0xff]  }
 0x1a5   : > { %v1062_v28 = vpop.f32.mrf.mxu0  ;;  %17535 = vmatpush3.bf16.msra.mxu1 %v19796_v23  ;;  %v19822_v23 = vld [vmem:[%s21072_s13 + $0x158] sm:$0xff]  }
 0x1a6   : > { %v15766_v29 = vpack.c.bf16 %v1062_v28, %v1059_v24  ;;  %17536 = vmatprep.subr.bf16.mxu1 %v20903_v4  ;;  %v19824_v28 = vld [vmem:[%s23915_s1 + $0x170] sm:$0xff]  }
 0x1a7   : > { %v17323_v30 = vpop.f32.mrf.mxu0 }
 0x1a8   : > { %16200 = vst [vmem:[#allocation3 + $0x68] sm:$0xff] %v15766_v29   ;;  %v19825_v30 = vld [vmem:[%s21072_s13 + $0x148] sm:$0xff]  }
 0x1a9   : > { %17421 = vmatmul.mubr.msk.bf16.gmra.mxu0 %vm773_vm1, %v19797_v25  ;;  %v1067_v32 = vpop.f32.mrf.mxu0  ;;  %17537 = vmatpush3.bf16.msra.mxu1 %v19798_v27 }
 0x1aa   : > { %17424 = vmatprep.mubr.msk.bf16.mxu0 %vm20904_vm0, %v20903_v4  ;;  %17538 = vmatprep.subr.bf16.mxu1 %v20903_v4 }
 0x1ab   : > { %v17326_v33 = vpop.f32.mrf.mxu0 }
 0x1ad   : > { %v1070_v37 = vpop.f32.mrf.mxu0  ;;  %17539 = vmatpush3.bf16.msra.mxu1 %v19799_v31 }
 0x1ae   : > { %v15771_v38 = vpack.c.bf16 %v1070_v37, %v1067_v32  ;;  %17544 = vmatprep.subr.bf16.mxu1 %v20903_v4  ;;  %v19827_v37 = vld [vmem:[%s23915_s1 + $0x178] sm:$0xff]  }
 0x1af   : > { %v17327_v39 = vpop.f32.mrf.mxu0 }
 0x1b0   : > { %16201 = vst [vmem:[#allocation3 + $0x70] sm:$0xff] %v15771_v38   ;;  %17541 = vmatmul.mubr.bf16.vlgmr.msra.gmra.mxu1 %v19801_v36  ;;  %v19828_v38 = vld [vmem:[#allocation3 + $0x28] sm:$0xff]  }
 0x1b1   : > { %17425 = vmatmul.mubr.msk.bf16.gmra.mxu0 %vm773_vm1, %v19800_v34  ;;  %v1075_v41 = vpop.f32.mrf.mxu0  ;;  %17545 = vmatpush3.bf16.msra.mxu1 %v19802_v35  ;;  %v19826_v34 = vld [vmem:[%s21072_s13 + $0x140] sm:$0xff]  }
 0x1b2   : > { %17428 = vmatprep.mubr.msk.bf16.mxu0 %vm20904_vm0, %v20903_v4  ;;  %17546 = vmatprep.subr.bf16.mxu1 %v20903_v4 }
 0x1b3   : > { %v17330_v42 = vpop.f32.mrf.mxu0  ;;  %17560 = vmatprep.mubr.msk.bf16.mxu1 %vm20904_vm0, %v20903_v4 }
 0x1b5   : > { %v1078_v44 = vpop.f32.mrf.mxu0  ;;  %17547 = vmatpush3.bf16.msra.mxu1 %v19803_v40  ;;  %v19830_v40 = vld [vmem:[%s21072_s13 + $0x1b8] sm:$0xff]  }
 0x1b6   : > { %v15776_v46 = vpack.c.bf16 %v1078_v44, %v1075_v41  ;;  %17548 = vmatprep.subr.bf16.mxu1 %v20903_v4 }
 0x1b7   : > { %v17331_v47 = vpop.f32.mrf.mxu0 }
 0x1b8   : > { %16202 = vst [vmem:[#allocation3 + $0x78] sm:$0xff] %v15776_v46   ;;  %v19833_v46 = vld [vmem:[%s23915_s1 + $0x180] sm:$0xff]  }
 0x1b9   : > { %17429 = vmatmul.mubr.msk.bf16.gmra.mxu0 %vm773_vm1, %v19804_v43  ;;  %v1083_v49 = vpop.f32.mrf.mxu0  ;;  %17549 = vmatpush3.bf16.msra.mxu1 %v19805_v45  ;;  %v19832_v43 = vld [vmem:[%s21072_s13 + $0x1b0] sm:$0xff]   ;;  %v19835_v47 = vld [vmem:[%s21072_s13 + $0x1a8] sm:$0xff]  }
 0x1ba   : > { %17432 = vmatprep.mubr.msk.bf16.mxu0 %vm20904_vm0, %v20903_v4  ;;  %17550 = vmatprep.subr.bf16.mxu1 %v20903_v4 }
 0x1bb   : > { %v17334_v50 = vpop.f32.mrf.mxu0 }
 0x1bd   : > { %v1086_v52 = vpop.f32.mrf.mxu0  ;;  %17551 = vmatpush3.bf16.msra.mxu1 %v19806_v48 }
 0x1be   : > { %v15781_v54 = vpack.c.bf16 %v1086_v52, %v1083_v49  ;;  %17552 = vmatprep.subr.bf16.mxu1 %v20903_v4 }
 0x1bf   : > { %v17335_v55 = vpop.f32.mrf.mxu0 }
 0x1c0   : > { %16203 = vst [vmem:[#allocation3 + $0x80] sm:$0xff] %v15781_v54   ;;  %v19838_v54 = vld [vmem:[#allocation3 + $0x60] sm:$0xff]  }
 0x1c1   : > { %17433 = vmatmul.mubr.msk.bf16.gmra.mxu0 %vm773_vm1, %v19807_v51  ;;  %v1091_v57 = vpop.f32.mrf.mxu0  ;;  %17553 = vmatpush3.bf16.msra.mxu1 %v19808_v53  ;;  %v19837_v51 = vld [vmem:[%s21072_s13 + $0x1a0] sm:$0xff]   ;;  %v19839_v55 = vld [vmem:[%s21072_s13 + $0x3b8] sm:$0xff]  }
 0x1c2   : > { %17436 = vmatprep.mubr.msk.bf16.mxu0 %vm20904_vm0, %v20903_v4  ;;  %17554 = vmatprep.subr.bf16.mxu1 %v20903_v4 }
 0x1c3   : > { %v17338_v58 = vpop.f32.mrf.mxu0 }
 0x1c5   : > { %v1094_v60 = vpop.f32.mrf.mxu0  ;;  %17555 = vmatpush3.bf16.msra.mxu1 %v19810_v56 }
 0x1c6   : > { %v15786_v62 = vpack.c.bf16 %v1094_v60, %v1091_v57  ;;  %17556 = vmatprep.subr.bf16.mxu1 %v20903_v4  ;;  %v19840_v57 = vld [vmem:[%s21072_s13 + $0x198] sm:$0xff]   ;;  %v19841_v60 = vld [vmem:[%s21072_s13 + $0x3b0] sm:$0xff]  }
 0x1c7   : > { %v17339_v63 = vpop.f32.mrf.mxu0 }
 0x1c8   : > { %16204 = vst [vmem:[#allocation3 + $0x88] sm:$0xff] %v15786_v62  }
 0x1c9   : > { %17437 = vmatmul.mubr.msk.bf16.gmra.mxu0 %vm773_vm1, %v19811_v59  ;;  %v1099_v1 = vpop.f32.mrf.mxu0  ;;  %17557 = vmatpush3.bf16.msra.mxu1 %v19812_v61  ;;  %v19842_v61 = vld [vmem:[%s21072_s13 + $0x190] sm:$0xff]  }
 0x1ca   : > { %17440 = vmatprep.mubr.msk.bf16.mxu0 %vm20904_vm0, %v20903_v4  ;;  %17558 = vmatprep.subr.bf16.mxu1 %v20903_v4 }
 0x1cb   : > { %v17342_v3 = vpop.f32.mrf.mxu0 }
 0x1cd   : > { %v1102_v6 = vpop.f32.mrf.mxu0  ;;  %17559 = vmatpush3.bf16.msra.mxu1 %v19813_v0  ;;  %v19843_v0 = vld [vmem:[%s21072_s13 + $0x3a8] sm:$0xff]  }
 0x1ce   : > { %v15791_v8 = vpack.c.bf16 %v1102_v6, %v1099_v1  ;;  %17564 = vmatprep.subr.bf16.mxu1 %v20903_v4  ;;  %v19844_v1 = vld [vmem:[%s21072_s13 + $0x188] sm:$0xff]   ;;  %v19845_v6 = vld [vmem:[%s21072_s13 + $0x3a0] sm:$0xff]  }
 0x1cf   : > { %v17343_v9 = vpop.f32.mrf.mxu0 }
 0x1d0   : > { %16205 = vst [vmem:[#allocation3 + $0x90] sm:$0xff] %v15791_v8   ;;  %17561 = vmatmul.mubr.bf16.vlgmr.msra.gmra.mxu1 %v19815_v7  ;;  %v19846_v7 = vld [vmem:[%s21072_s13 + $0x180] sm:$0xff]  }
 0x1d1   : > { %17441 = vmatmul.mubr.msk.bf16.gmra.mxu0 %vm773_vm1, %v19814_v2  ;;  %v1107_v11 = vpop.f32.mrf.mxu0  ;;  %17565 = vmatpush3.bf16.msra.mxu1 %v19816_v5 }
 0x1d2   : > { %17444 = vmatprep.mubr.msk.bf16.mxu0 %vm20904_vm0, %v20903_v4  ;;  %17566 = vmatprep.subr.bf16.mxu1 %v20903_v4 }
 0x1d3   : > { %v17346_v12 = vpop.f32.mrf.mxu0  ;;  %17580 = vmatprep.mubr.msk.bf16.mxu1 %vm20904_vm0, %v20903_v4 }
 0x1d5   : > { %v1110_v15 = vpop.f32.mrf.mxu0  ;;  %17567 = vmatpush3.bf16.msra.mxu1 %v19817_v10  ;;  %v19848_v10 = vld [vmem:[%s21072_s13 + $0x398] sm:$0xff]  }
 0x1d6   : > { %v15796_v16 = vpack.c.bf16 %v1110_v15, %v1107_v11  ;;  %17568 = vmatprep.subr.bf16.mxu1 %v20903_v4  ;;  %v19847_v11 = vld [vmem:[#allocation3 + $0x30] sm:$0xff]  }
 0x1d7   : > { %v17347_v17 = vpop.f32.mrf.mxu0 }
 0x1d8   : > { %16206 = vst [vmem:[#allocation3 + $0x98] sm:$0xff] %v15796_v16   ;;  %v19850_v16 = vld [vmem:[%s21072_s13 + $0x390] sm:$0xff]  }
 0x1d9   : > { %17445 = vmatmul.mubr.msk.bf16.gmra.mxu0 %vm773_vm1, %v19818_v13  ;;  %v1115_v19 = vpop.f32.mrf.mxu0  ;;  %17569 = vmatpush3.bf16.msra.mxu1 %v19819_v14  ;;  %v19849_v13 = vld [vmem:[%s21072_s13 + $0x1f8] sm:$0xff]   ;;  %v19851_v17 = vld [vmem:[%s21072_s13 + $0x1f0] sm:$0xff]  }
 0x1da   : > { %17448 = vmatprep.mubr.msk.bf16.mxu0 %vm20904_vm0, %v20903_v4  ;;  %17570 = vmatprep.subr.bf16.mxu1 %v20903_v4 }
 0x1db   : > { %v17350_v20 = vpop.f32.mrf.mxu0 }
 0x1dd   : > { %v1118_v22 = vpop.f32.mrf.mxu0  ;;  %17571 = vmatpush3.bf16.msra.mxu1 %v19820_v18 }
 0x1de   : > { %v15801_v24 = vpack.c.bf16 %v1118_v22, %v1115_v19  ;;  %17572 = vmatprep.subr.bf16.mxu1 %v20903_v4  ;;  %v19852_v22 = vld [vmem:[%s21072_s13 + $0x388] sm:$0xff]  }
 0x1df   : > { %v17351_v25 = vpop.f32.mrf.mxu0 }
 0x1e0   : > { %16207 = vst [vmem:[#allocation3 + $0xa0] sm:$0xff] %v15801_v24  }
 0x1e1   : > { %17449 = vmatmul.mubr.msk.bf16.gmra.mxu0 %vm773_vm1, %v19821_v21  ;;  %v1123_v27 = vpop.f32.mrf.mxu0  ;;  %17573 = vmatpush3.bf16.msra.mxu1 %v19822_v23  ;;  %v19853_v23 = vld [vmem:[%s21072_s13 + $0x1e8] sm:$0xff]  }
 0x1e2   : > { %17452 = vmatprep.mubr.msk.bf16.mxu0 %vm20904_vm0, %v20903_v4  ;;  %17574 = vmatprep.subr.bf16.mxu1 %v20903_v4 }
 0x1e3   : > { %v17354_v29 = vpop.f32.mrf.mxu0 }
 0x1e4   : > { %v19854_v29 = vld [vmem:[%s21072_s13 + $0x380] sm:$0xff]  }
 0x1e5   : > { %v1126_v31 = vpop.f32.mrf.mxu0  ;;  %17575 = vmatpush3.bf16.msra.mxu1 %v19823_v26 }
 0x1e6   : > { %v15806_v32 = vpack.c.bf16 %v1126_v31, %v1123_v27  ;;  %17576 = vmatprep.subr.bf16.mxu1 %v20903_v4 }
 0x1e7   : > { %v17355_v33 = vpop.f32.mrf.mxu0 }
 0x1e8   : > { %16208 = vst [vmem:[#allocation3 + $0xa8] sm:$0xff] %v15806_v32   ;;  %v19856_v33 = vld [vmem:[#allocation3 + $0x70] sm:$0xff]  }
 0x1e9   : > { %17453 = vmatmul.mubr.msk.bf16.gmra.mxu0 %vm773_vm1, %v19824_v28  ;;  %v1131_v35 = vpop.f32.mrf.mxu0  ;;  %17577 = vmatpush3.bf16.msra.mxu1 %v19825_v30  ;;  %v19855_v30 = vld [vmem:[%s21072_s13 + $0x1e0] sm:$0xff]  }
 0x1ea   : > { %17456 = vmatprep.mubr.msk.bf16.mxu0 %vm20904_vm0, %v20903_v4  ;;  %17578 = vmatprep.subr.bf16.mxu1 %v20903_v4 }
 0x1eb   : > { %v17358_v36 = vpop.f32.mrf.mxu0 }
 0x1ec   : > { %v19858_v36 = vld [vmem:[%s21072_s13 + $0x1d8] sm:$0xff]  }
 0x1ed   : > { %v1134_v39 = vpop.f32.mrf.mxu0  ;;  %17579 = vmatpush3.bf16.msra.mxu1 %v19826_v34  ;;  %v19857_v34 = vld [vmem:[%s21072_s13 + $0x438] sm:$0xff]  }
 0x1ee   : > { %v15811_v41 = vpack.c.bf16 %v1134_v39, %v1131_v35  ;;  %17584 = vmatprep.subr.bf16.mxu1 %v20903_v4  ;;  %v19859_v39 = vld [vmem:[%s21072_s13 + $0x430] sm:$0xff]  }
 0x1ef   : > { %v17359_v42 = vpop.f32.mrf.mxu0 }
 0x1f0   : > { %16209 = vst [vmem:[#allocation3 + $0xb0] sm:$0xff] %v15811_v41   ;;  %17581 = vmatmul.mubr.bf16.vlgmr.msra.gmra.mxu1 %v19828_v38 }
 0x1f1   : > { %17457 = vmatmul.mubr.msk.bf16.gmra.mxu0 %vm773_vm1, %v19827_v37  ;;  %v1139_v44 = vpop.f32.mrf.mxu0  ;;  %17585 = vmatpush3.bf16.msra.mxu1 %v19830_v40  ;;  %v19860_v40 = vld [vmem:[%s21072_s13 + $0x1d0] sm:$0xff]  }
 0x1f2   : > { %17460 = vmatprep.mubr.msk.bf16.mxu0 %vm20904_vm0, %v20903_v4  ;;  %17586 = vmatprep.subr.bf16.mxu1 %v20903_v4 }
 0x1f3   : > { %17600 = vmatprep.mubr.msk.bf16.mxu1 %vm20904_vm0, %v20903_v4  ;;  %v17362_v45 = vpop.f32.mrf.mxu0 }
 0x1f5   : > { %v1142_v48 = vpop.f32.mrf.mxu0  ;;  %17587 = vmatpush3.bf16.msra.mxu1 %v19832_v43  ;;  %v19861_v43 = vld [vmem:[%s21072_s13 + $0x428] sm:$0xff]  }
 0x1f6   : > { %v15816_v49 = vpack.c.bf16 %v1142_v48, %v1139_v44  ;;  %17588 = vmatprep.subr.bf16.mxu1 %v20903_v4  ;;  %v19862_v44 = vld [vmem:[%s21072_s13 + $0x1c8] sm:$0xff]   ;;  %v19863_v48 = vld [vmem:[%s21072_s13 + $0x420] sm:$0xff]  }
 0x1f7   : > { %v17363_v50 = vpop.f32.mrf.mxu0 }
 0x1f8   : > { %16210 = vst [vmem:[#allocation3 + $0xb8] sm:$0xff] %v15816_v49   ;;  %v19864_v49 = vld [vmem:[%s21072_s13 + $0x1c0] sm:$0xff]  }
 0x1f9   : > { %17461 = vmatmul.mubr.msk.bf16.gmra.mxu0 %vm773_vm1, %v19833_v46  ;;  %v1147_v52 = vpop.f32.mrf.mxu0  ;;  %17589 = vmatpush3.bf16.msra.mxu1 %v19835_v47 }
 0x1fa   : > { %17720 = vmatprep.mubr.msk.bf16.mxu0 %vm20904_vm0, %v20903_v4  ;;  %17590 = vmatprep.subr.bf16.mxu1 %v20903_v4 }
 0x1fb   : > { %v17366_v53 = vpop.f32.mrf.mxu0 }
 0x1fc   : > { %v19865_v53 = vld [vmem:[#allocation3 + $0x38] sm:$0xff]  }
 0x1fd   : > { %v1150_v56 = vpop.f32.mrf.mxu0  ;;  %17591 = vmatpush3.bf16.msra.mxu1 %v19837_v51 }
 0x1fe   : > { %v15821_v58 = vpack.c.bf16 %v1150_v56, %v1147_v52  ;;  %17592 = vmatprep.subr.bf16.mxu1 %v20903_v4  ;;  %v19866_v52 = vld [vmem:[%s21072_s13 + $0x418] sm:$0xff]  }
 0x1ff   : > { %v17367_v59 = vpop.f32.mrf.mxu0 }
 0x200   : > { %16211 = vst [vmem:[#allocation3 + $0xc0] sm:$0xff] %v15821_v58   ;;  %v19868_v58 = vld [vmem:[%s21072_s13 + $0x410] sm:$0xff]  }
 0x201   : > { %17721 = vmatmul.mubr.bf16.vlgmr.msra.gmra.mxu0 %v19838_v54  ;;  %v1155_v62 = vpop.f32.mrf.mxu0  ;;  %17593 = vmatpush3.bf16.msra.mxu1 %v19840_v57  ;;  %v19869_v59 = vld [vmem:[%s21072_s13 + $0x230] sm:$0xff]  }
 0x202   : > { %17745 = vmatpush3.bf16.msra.mxu0 %v19839_v55  ;;  %17594 = vmatprep.subr.bf16.mxu1 %v20903_v4  ;;  %v19867_v55 = vld [vmem:[%s21072_s13 + $0x238] sm:$0xff]  }
 0x203   : > { %17746 = vmatprep.subr.bf16.mxu0 %v20903_v4  ;;  %v17370_v63 = vpop.f32.mrf.mxu0  ;;  %17760 = vmatprep.mubr.msk.bf16.mxu0 %vm20904_vm0, %v20903_v4 }
 0x205   : > { %v1158_v2 = vpop.f32.mrf.mxu0  ;;  %17595 = vmatpush3.bf16.msra.mxu1 %v19842_v61 }
 0x206   : > { %17747 = vmatpush3.bf16.msra.mxu0 %v19841_v60  ;;  %v15826_v3 = vpack.c.bf16 %v1158_v2, %v1155_v62  ;;  %17596 = vmatprep.subr.bf16.mxu1 %v20903_v4 }
 0x207   : > { %17748 = vmatprep.subr.bf16.mxu0 %v20903_v4  ;;  %v17371_v5 = vpop.f32.mrf.mxu0 }
 0x208   : > { %16212 = vst [vmem:[#allocation3 + $0xc8] sm:$0xff] %v15826_v3  }
 0x209   : > { %v1163_v8 = vpop.f32.mrf.mxu0  ;;  %17597 = vmatpush3.bf16.msra.mxu1 %v19844_v1  ;;  %v19870_v1 = vld [vmem:[%s21072_s13 + $0x408] sm:$0xff]  }
 0x20a   : > { %17749 = vmatpush3.bf16.msra.mxu0 %v19843_v0  ;;  %17598 = vmatprep.subr.bf16.mxu1 %v20903_v4 }
 0x20b   : > { %17750 = vmatprep.subr.bf16.mxu0 %v20903_v4  ;;  %v17374_v9 = vpop.f32.mrf.mxu0 }
 0x20d   : > { %v1166_v12 = vpop.f32.mrf.mxu0  ;;  %17599 = vmatpush3.bf16.msra.mxu1 %v19846_v7 }
 0x20e   : > { %17751 = vmatpush3.bf16.msra.mxu0 %v19845_v6  ;;  %v15831_v14 = vpack.c.bf16 %v1166_v12, %v1163_v8  ;;  %17604 = vmatprep.subr.bf16.mxu1 %v20903_v4  ;;  %v19871_v6 = vld [vmem:[%s21072_s13 + $0x228] sm:$0xff]  }
 0x20f   : > { %17752 = vmatprep.subr.bf16.mxu0 %v20903_v4  ;;  %v17375_v15 = vpop.f32.mrf.mxu0 }
 0x210   : > { %16213 = vst [vmem:[#allocation3 + $0xd0] sm:$0xff] %v15831_v14   ;;  %17601 = vmatmul.mubr.bf16.vlgmr.msra.gmra.mxu1 %v19847_v11  ;;  %v21560_v18 = vpop.f32.mrf.mxu1  ;;  %v19873_v11 = vld [vmem:[%s21072_s13 + $0x220] sm:$0xff]   ;;  %v19874_v14 = vld [vmem:[#allocation3 + $0x80] sm:$0xff]  }
 0x211   : > { %v1171_v19 = vpop.f32.mrf.mxu0  ;;  %17605 = vmatpush3.bf16.msra.mxu1 %v19849_v13  ;;  %17620 = vmatprep.mubr.msk.bf16.mxu1 %vm20904_vm0, %v20903_v4  ;;  %v19875_v15 = vld [vmem:[%s21072_s13 + $0x4b8] sm:$0xff]  }
 0x212   : > { %17753 = vmatpush3.bf16.msra.mxu0 %v19848_v10  ;;  %v17482_v20 = vpop.f32.mrf.mxu1  ;;  %17606 = vmatprep.subr.bf16.mxu1 %v20903_v4  ;;  %v19872_v10 = vld [vmem:[%s21072_s13 + $0x400] sm:$0xff]  }
 0x213   : > { %17754 = vmatprep.subr.bf16.mxu0 %v20903_v4  ;;  %v17378_v21 = vpop.f32.mrf.mxu0  ;;  %v19877_v20 = vld [vmem:[%s21072_s13 + $0x4b0] sm:$0xff]  }
 0x214   : > { %v21568_v24 = vpop.f32.mrf.mxu1  ;;  %v19878_v21 = vld [vmem:[%s21072_s13 + $0x210] sm:$0xff]  }
 0x215   : > { %v1174_v25 = vpop.f32.mrf.mxu0  ;;  %17607 = vmatpush3.bf16.msra.mxu1 %v19851_v17  ;;  %v19876_v17 = vld [vmem:[%s21072_s13 + $0x218] sm:$0xff]  }
 0x216   : > { %17755 = vmatpush3.bf16.msra.mxu0 %v19850_v16  ;;  %v15836_v26 = vpack.c.bf16 %v1174_v25, %v1171_v19  ;;  %v17483_v27 = vpop.f32.mrf.mxu1  ;;  %17608 = vmatprep.subr.bf16.mxu1 %v20903_v4 }
 0x217   : > { %17756 = vmatprep.subr.bf16.mxu0 %v20903_v4  ;;  %v17379_v28 = vpop.f32.mrf.mxu0 }
 0x218   : > { %16214 = vst [vmem:[#allocation3 + $0xd8] sm:$0xff] %v15836_v26   ;;  %v19880_v26 = vld [vmem:[%s21072_s13 + $0x208] sm:$0xff]  }
 0x219   : > { %v1179_v31 = vpop.f32.mrf.mxu0  ;;  %17609 = vmatpush3.bf16.msra.mxu1 %v19853_v23 }
 0x21a   : > { %17757 = vmatpush3.bf16.msra.mxu0 %v19852_v22  ;;  %17610 = vmatprep.subr.bf16.mxu1 %v20903_v4 }
 0x21b   : > { %17758 = vmatprep.subr.bf16.mxu0 %v20903_v4  ;;  %v17382_v32 = vpop.f32.mrf.mxu0 }
 0x21d   : > { %v1182_v35 = vpop.f32.mrf.mxu0  ;;  %17611 = vmatpush3.bf16.msra.mxu1 %v19855_v30  ;;  %v19882_v30 = vld [vmem:[%s21072_s13 + $0x200] sm:$0xff]  }
 0x21e   : > { %17759 = vmatpush3.bf16.msra.mxu0 %v19854_v29  ;;  %v15841_v37 = vpack.c.bf16 %v1182_v35, %v1179_v31  ;;  %17612 = vmatprep.subr.bf16.mxu1 %v20903_v4  ;;  %v19881_v29 = vld [vmem:[%s21072_s13 + $0x4a0] sm:$0xff]  }
 0x21f   : > { %17784 = vmatprep.subr.bf16.mxu0 %v20903_v4  ;;  %v17383_v38 = vpop.f32.mrf.mxu0 }
 0x220   : > { %16215 = vst [vmem:[#allocation3 + $0xe0] sm:$0xff] %v15841_v37  }
 0x221   : > { %17761 = vmatmul.mubr.bf16.vlgmr.msra.gmra.mxu0 %v19856_v33  ;;  %v1187_v41 = vpop.f32.mrf.mxu0  ;;  %17613 = vmatpush3.bf16.msra.mxu1 %v19858_v36  ;;  %v19884_v33 = vld [vmem:[%s21072_s13 + $0x498] sm:$0xff]  }
 0x222   : > { %17785 = vmatpush3.bf16.msra.mxu0 %v19857_v34  ;;  %17614 = vmatprep.subr.bf16.mxu1 %v20903_v4  ;;  %v19883_v34 = vld [vmem:[#allocation3 + $0x40] sm:$0xff]  }
 0x223   : > { %17786 = vmatprep.subr.bf16.mxu0 %v20903_v4  ;;  %v17386_v42 = vpop.f32.mrf.mxu0  ;;  %17800 = vmatprep.mubr.msk.bf16.mxu0 %vm20904_vm0, %v20903_v4  ;;  %v19885_v36 = vld [vmem:[%s21072_s13 + $0x278] sm:$0xff]  }
 0x225   : > { %v1190_v45 = vpop.f32.mrf.mxu0  ;;  %17615 = vmatpush3.bf16.msra.mxu1 %v19860_v40  ;;  %v19887_v40 = vld [vmem:[%s21072_s13 + $0x270] sm:$0xff]  }
 0x226   : > { %17787 = vmatpush3.bf16.msra.mxu0 %v19859_v39  ;;  %v15846_v46 = vpack.c.bf16 %v1190_v45, %v1187_v41  ;;  %17616 = vmatprep.subr.bf16.mxu1 %v20903_v4  ;;  %v19886_v39 = vld [vmem:[%s21072_s13 + $0x490] sm:$0xff]  }
 0x227   : > { %17788 = vmatprep.subr.bf16.mxu0 %v20903_v4  ;;  %v17387_v47 = vpop.f32.mrf.mxu0 }
 0x228   : > { %16216 = vst [vmem:[#allocation3 + $0xe8] sm:$0xff] %v15846_v46   ;;  %v19888_v46 = vld [vmem:[%s21072_s13 + $0x488] sm:$0xff]  }
 0x229   : > { %v1195_v50 = vpop.f32.mrf.mxu0  ;;  %17617 = vmatpush3.bf16.msra.mxu1 %v19862_v44 }
 0x22a   : > { %17789 = vmatpush3.bf16.msra.mxu0 %v19861_v43  ;;  %17618 = vmatprep.subr.bf16.mxu1 %v20903_v4 }
 0x22b   : > { %17790 = vmatprep.subr.bf16.mxu0 %v20903_v4  ;;  %v17390_v51 = vpop.f32.mrf.mxu0 }
 0x22d   : > { %v1198_v54 = vpop.f32.mrf.mxu0  ;;  %17619 = vmatpush3.bf16.msra.mxu1 %v19864_v49 }
 0x22e   : > { %17791 = vmatpush3.bf16.msra.mxu0 %v19863_v48  ;;  %v15851_v56 = vpack.c.bf16 %v1198_v54, %v1195_v50  ;;  %17624 = vmatprep.subr.bf16.mxu1 %v20903_v4  ;;  %v19889_v50 = vld [vmem:[%s21072_s13 + $0x268] sm:$0xff]   ;;  %v19890_v54 = vld [vmem:[%s21072_s13 + $0x480] sm:$0xff]  }
 0x22f   : > { %17792 = vmatprep.subr.bf16.mxu0 %v20903_v4  ;;  %v17391_v57 = vpop.f32.mrf.mxu0 }
 0x230   : > { %16217 = vst [vmem:[#allocation3 + $0xf0] sm:$0xff] %v15851_v56   ;;  %v2055_v60 = vpop.f32.mrf.mxu1  ;;  %17621 = vmatmul.mubr.bf16.vlgmr.msra.gmra.mxu1 %v19865_v53  ;;  %v19892_v57 = vld [vmem:[#allocation3 + $0x90] sm:$0xff]  }
 0x231   : > { %v1203_v61 = vpop.f32.mrf.mxu0  ;;  %v21601_v62 = vadd.f32 %v2055_v60, %v21560_v18  ;;  %17625 = vmatpush3.bf16.msra.mxu1 %v19867_v55  ;;  %17640 = vmatprep.mubr.msk.bf16.mxu1 %vm20904_vm0, %v20903_v4  ;;  %v19891_v55 = vld [vmem:[%s21072_s13 + $0x260] sm:$0xff]  }
 0x232   : > { %17793 = vmatpush3.bf16.msra.mxu0 %v19866_v52  ;;  %v17502_v63 = vpop.f32.mrf.mxu1  ;;  %17626 = vmatprep.subr.bf16.mxu1 %v20903_v4 }
 0x233   : > { %17794 = vmatprep.subr.bf16.mxu0 %v20903_v4  ;;  %v17394_v0 = vpop.f32.mrf.mxu0 }
 0x234   : > { %v2058_v2 = vpop.f32.mrf.mxu1  ;;  %v19895_v0 = vld [vmem:[%s21072_s13 + $0x530] sm:$0xff]  }
 0x235   : > { %v1206_v3 = vpop.f32.mrf.mxu0  ;;  %v21609_v5 = vadd.f32 %v2058_v2, %v21568_v24  ;;  %17627 = vmatpush3.bf16.msra.mxu1 %v19869_v59  ;;  %v19879_v24 = vld [vmem:[%s21072_s13 + $0x4a8] sm:$0xff]   ;;  %v19893_v59 = vld [vmem:[%s21072_s13 + $0x538] sm:$0xff]  }
 0x236   : > { %17795 = vmatpush3.bf16.msra.mxu0 %v19868_v58  ;;  %v15856_v7 = vpack.c.bf16 %v1206_v3, %v1203_v61  ;;  %v17503_v8 = vpop.f32.mrf.mxu1  ;;  %17628 = vmatprep.subr.bf16.mxu1 %v20903_v4  ;;  %v19894_v61 = vld [vmem:[%s21072_s13 + $0x258] sm:$0xff]  }
 0x237   : > { %17796 = vmatprep.subr.bf16.mxu0 %v20903_v4  ;;  %v17395_v9 = vpop.f32.mrf.mxu0 }
 0x238   : > { %16218 = vst [vmem:[#allocation3 + $0xf8] sm:$0xff] %v15856_v7   ;;  %v19898_v7 = vld [vmem:[%s21072_s13 + $0x248] sm:$0xff]  }
 0x239   : > { %v1211_v12 = vpop.f32.mrf.mxu0  ;;  %17629 = vmatpush3.bf16.msra.mxu1 %v19871_v6 }
 0x23a   : > { %17797 = vmatpush3.bf16.msra.mxu0 %v19870_v1  ;;  %17630 = vmatprep.subr.bf16.mxu1 %v20903_v4  ;;  %v19896_v1 = vld [vmem:[%s21072_s13 + $0x250] sm:$0xff]  }
 0x23b   : > { %17798 = vmatprep.subr.bf16.mxu0 %v20903_v4  ;;  %v17398_v13 = vpop.f32.mrf.mxu0 }
 0x23d   : > { %v1214_v16 = vpop.f32.mrf.mxu0  ;;  %17631 = vmatpush3.bf16.msra.mxu1 %v19873_v11  ;;  %v19900_v11 = vld [vmem:[%s21072_s13 + $0x240] sm:$0xff]  }
 0x23e   : > { %17799 = vmatpush3.bf16.msra.mxu0 %v19872_v10  ;;  %v15861_v18 = vpack.c.bf16 %v1214_v16, %v1211_v12  ;;  %17632 = vmatprep.subr.bf16.mxu1 %v20903_v4  ;;  %v19899_v10 = vld [vmem:[%s21072_s13 + $0x520] sm:$0xff]  }
 0x23f   : > { %17824 = vmatprep.subr.bf16.mxu0 %v20903_v4  ;;  %v17399_v19 = vpop.f32.mrf.mxu0 }
 0x240   : > { %16219 = vst [vmem:[#allocation3 + $0x100] sm:$0xff] %v15861_v18  }
 0x241   : > { %17801 = vmatmul.mubr.bf16.vlgmr.msra.gmra.mxu0 %v19874_v14  ;;  %v1219_v22 = vpop.f32.mrf.mxu0  ;;  %17633 = vmatpush3.bf16.msra.mxu1 %v19876_v17  ;;  %v19902_v14 = vld [vmem:[%s21072_s13 + $0x518] sm:$0xff]  }
 0x242   : > { %17825 = vmatpush3.bf16.msra.mxu0 %v19875_v15  ;;  %17634 = vmatprep.subr.bf16.mxu1 %v20903_v4  ;;  %v19901_v15 = vld [vmem:[#allocation3 + $0x48] sm:$0xff]   ;;  %v19903_v17 = vld [vmem:[%s21072_s13 + $0x2b8] sm:$0xff]  }
 0x243   : > { %17826 = vmatprep.subr.bf16.mxu0 %v20903_v4  ;;  %v17402_v23 = vpop.f32.mrf.mxu0  ;;  %17840 = vmatprep.mubr.msk.bf16.mxu0 %vm20904_vm0, %v20903_v4 }
 0x245   : > { %v1222_v25 = vpop.f32.mrf.mxu0  ;;  %17635 = vmatpush3.bf16.msra.mxu1 %v19878_v21  ;;  %v19905_v21 = vld [vmem:[%s21072_s13 + $0x2b0] sm:$0xff]  }
 0x246   : > { %17827 = vmatpush3.bf16.msra.mxu0 %v19877_v20  ;;  %v15866_v27 = vpack.c.bf16 %v1222_v25, %v1219_v22  ;;  %17636 = vmatprep.subr.bf16.mxu1 %v20903_v4  ;;  %v19904_v20 = vld [vmem:[%s21072_s13 + $0x510] sm:$0xff]  }
 0x247   : > { %17828 = vmatprep.subr.bf16.mxu0 %v20903_v4  ;;  %v17403_v28 = vpop.f32.mrf.mxu0 }
 0x248   : > { %16220 = vst [vmem:[#allocation3 + $0x108] sm:$0xff] %v15866_v27   ;;  %v19906_v27 = vld [vmem:[%s21072_s13 + $0x508] sm:$0xff]  }
 0x249   : > { %v1227_v31 = vpop.f32.mrf.mxu0  ;;  %17637 = vmatpush3.bf16.msra.mxu1 %v19880_v26 }
 0x24a   : > { %17829 = vmatpush3.bf16.msra.mxu0 %v19879_v24  ;;  %17638 = vmatprep.subr.bf16.mxu1 %v20903_v4 }
 0x24b   : > { %17830 = vmatprep.subr.bf16.mxu0 %v20903_v4  ;;  %v17406_v32 = vpop.f32.mrf.mxu0 }
 0x24d   : > { %v1230_v35 = vpop.f32.mrf.mxu0  ;;  %17639 = vmatpush3.bf16.msra.mxu1 %v19882_v30 }
 0x24e   : > { %17831 = vmatpush3.bf16.msra.mxu0 %v19881_v29  ;;  %v15871_v37 = vpack.c.bf16 %v1230_v35, %v1227_v31  ;;  %17644 = vmatprep.subr.bf16.mxu1 %v20903_v4  ;;  %v19907_v31 = vld [vmem:[%s21072_s13 + $0x2a8] sm:$0xff]   ;;  %v19908_v35 = vld [vmem:[%s21072_s13 + $0x500] sm:$0xff]  }
 0x24f   : > { %17832 = vmatprep.subr.bf16.mxu0 %v20903_v4  ;;  %v17407_v38 = vpop.f32.mrf.mxu0 }
 0x250   : > { %16221 = vst [vmem:[#allocation3 + $0x110] sm:$0xff] %v15871_v37   ;;  %v2168_v41 = vpop.f32.mrf.mxu1  ;;  %17641 = vmatmul.mubr.bf16.vlgmr.msra.gmra.mxu1 %v19883_v34  ;;  %v19910_v38 = vld [vmem:[#allocation3 + $0xa0] sm:$0xff]  }
 0x251   : > { %v1235_v42 = vpop.f32.mrf.mxu0  ;;  %v21643_v43 = vadd.f32 %v2168_v41, %v21601_v62  ;;  %17645 = vmatpush3.bf16.msra.mxu1 %v19885_v36  ;;  %17660 = vmatprep.mubr.msk.bf16.mxu1 %vm20904_vm0, %v20903_v4  ;;  %v19909_v36 = vld [vmem:[%s21072_s13 + $0x2a0] sm:$0xff]  }
 0x252   : > { %17833 = vmatpush3.bf16.msra.mxu0 %v19884_v33  ;;  %v17522_v44 = vpop.f32.mrf.mxu1  ;;  %17646 = vmatprep.subr.bf16.mxu1 %v20903_v4 }
 0x253   : > { %17834 = vmatprep.subr.bf16.mxu0 %v20903_v4  ;;  %v17410_v45 = vpop.f32.mrf.mxu0 }
 0x254   : > { %v2171_v47 = vpop.f32.mrf.mxu1  ;;  %v19913_v45 = vld [vmem:[%s21072_s13 + $0x5b0] sm:$0xff]  }
 0x255   : > { %v1238_v48 = vpop.f32.mrf.mxu0  ;;  %v21651_v49 = vadd.f32 %v2171_v47, %v21609_v5  ;;  %17647 = vmatpush3.bf16.msra.mxu1 %v19887_v40  ;;  %v19897_v5 = vld [vmem:[%s21072_s13 + $0x528] sm:$0xff]   ;;  %v19911_v40 = vld [vmem:[%s21072_s13 + $0x5b8] sm:$0xff]  }
 0x256   : > { %17835 = vmatpush3.bf16.msra.mxu0 %v19886_v39  ;;  %v15876_v51 = vpack.c.bf16 %v1238_v48, %v1235_v42  ;;  %v17523_v52 = vpop.f32.mrf.mxu1  ;;  %17648 = vmatprep.subr.bf16.mxu1 %v20903_v4  ;;  %v19912_v42 = vld [vmem:[%s21072_s13 + $0x298] sm:$0xff]  }
 0x257   : > { %17836 = vmatprep.subr.bf16.mxu0 %v20903_v4  ;;  %v17411_v53 = vpop.f32.mrf.mxu0 }
 0x258   : > { %16222 = vst [vmem:[#allocation3 + $0x118] sm:$0xff] %v15876_v51   ;;  %v19916_v51 = vld [vmem:[%s21072_s13 + $0x288] sm:$0xff]  }
 0x259   : > { %v1243_v56 = vpop.f32.mrf.mxu0  ;;  %17649 = vmatpush3.bf16.msra.mxu1 %v19889_v50 }
 0x25a   : > { %17837 = vmatpush3.bf16.msra.mxu0 %v19888_v46  ;;  %17650 = vmatprep.subr.bf16.mxu1 %v20903_v4  ;;  %v19914_v46 = vld [vmem:[%s21072_s13 + $0x290] sm:$0xff]  }
 0x25b   : > { %17838 = vmatprep.subr.bf16.mxu0 %v20903_v4  ;;  %v17414_v58 = vpop.f32.mrf.mxu0 }
 0x25c   : > { %v19920_v58 = vld [vmem:[%s21072_s13 + $0x598] sm:$0xff]  }
 0x25d   : > { %v1246_v60 = vpop.f32.mrf.mxu0  ;;  %17651 = vmatpush3.bf16.msra.mxu1 %v19891_v55  ;;  %v19918_v55 = vld [vmem:[%s21072_s13 + $0x280] sm:$0xff]  }
 0x25e   : > { %17839 = vmatpush3.bf16.msra.mxu0 %v19890_v54  ;;  %v15881_v62 = vpack.c.bf16 %v1246_v60, %v1243_v56  ;;  %17652 = vmatprep.subr.bf16.mxu1 %v20903_v4  ;;  %v19917_v54 = vld [vmem:[%s21072_s13 + $0x5a0] sm:$0xff]  }
 0x25f   : > { %17864 = vmatprep.subr.bf16.mxu0 %v20903_v4  ;;  %v17415_v63 = vpop.f32.mrf.mxu0 }
 0x260   : > { %16223 = vst [vmem:[#allocation3 + $0x120] sm:$0xff] %v15881_v62  }
 0x261   : > { %17841 = vmatmul.mubr.bf16.vlgmr.msra.gmra.mxu0 %v19892_v57  ;;  %v1251_v2 = vpop.f32.mrf.mxu0  ;;  %17653 = vmatpush3.bf16.msra.mxu1 %v19894_v61  ;;  %v19921_v61 = vld [vmem:[%s21072_s13 + $0x2f8] sm:$0xff]  }
 0x262   : > { %17865 = vmatpush3.bf16.msra.mxu0 %v19893_v59  ;;  %17654 = vmatprep.subr.bf16.mxu1 %v20903_v4  ;;  %v19919_v59 = vld [vmem:[#allocation3 + $0x50] sm:$0xff]  }
 0x263   : > { %17866 = vmatprep.subr.bf16.mxu0 %v20903_v4  ;;  %v17418_v3 = vpop.f32.mrf.mxu0  ;;  %17880 = vmatprep.mubr.msk.bf16.mxu0 %vm20904_vm0, %v20903_v4 }
 0x265   : > { %v1254_v6 = vpop.f32.mrf.mxu0  ;;  %17655 = vmatpush3.bf16.msra.mxu1 %v19896_v1  ;;  %v19923_v1 = vld [vmem:[%s21072_s13 + $0x2f0] sm:$0xff]  }
 0x266   : > { %17867 = vmatpush3.bf16.msra.mxu0 %v19895_v0  ;;  %v15886_v8 = vpack.c.bf16 %v1254_v6, %v1251_v2  ;;  %17656 = vmatprep.subr.bf16.mxu1 %v20903_v4  ;;  %v19922_v0 = vld [vmem:[%s21072_s13 + $0x590] sm:$0xff]  }
 0x267   : > { %17868 = vmatprep.subr.bf16.mxu0 %v20903_v4  ;;  %v17419_v9 = vpop.f32.mrf.mxu0 }
 0x268   : > { %16224 = vst [vmem:[#allocation3 + $0x128] sm:$0xff] %v15886_v8   ;;  %v19924_v8 = vld [vmem:[%s21072_s13 + $0x588] sm:$0xff]  }
 0x269   : > { %v1259_v12 = vpop.f32.mrf.mxu0  ;;  %17657 = vmatpush3.bf16.msra.mxu1 %v19898_v7 }
 0x26a   : > { %17869 = vmatpush3.bf16.msra.mxu0 %v19897_v5  ;;  %17658 = vmatprep.subr.bf16.mxu1 %v20903_v4 }
 0x26b   : > { %17870 = vmatprep.subr.bf16.mxu0 %v20903_v4  ;;  %v17422_v13 = vpop.f32.mrf.mxu0 }
 0x26d   : > { %v1262_v16 = vpop.f32.mrf.mxu0  ;;  %17659 = vmatpush3.bf16.msra.mxu1 %v19900_v11 }
 0x26e   : > { %17871 = vmatpush3.bf16.msra.mxu0 %v19899_v10  ;;  %v15891_v18 = vpack.c.bf16 %v1262_v16, %v1259_v12  ;;  %17664 = vmatprep.subr.bf16.mxu1 %v20903_v4  ;;  %v19925_v12 = vld [vmem:[%s21072_s13 + $0x2e8] sm:$0xff]   ;;  %v19926_v16 = vld [vmem:[%s21072_s13 + $0x580] sm:$0xff]  }
 0x26f   : > { %17872 = vmatprep.subr.bf16.mxu0 %v20903_v4  ;;  %v17423_v19 = vpop.f32.mrf.mxu0 }
 0x270   : > { %16225 = vst [vmem:[#allocation3 + $0x130] sm:$0xff] %v15891_v18   ;;  %v2283_v22 = vpop.f32.mrf.mxu1  ;;  %17661 = vmatmul.mubr.bf16.vlgmr.msra.gmra.mxu1 %v19901_v15  ;;  %v19928_v19 = vld [vmem:[#allocation3 + $0xb0] sm:$0xff]  }
 0x271   : > { %v1267_v23 = vpop.f32.mrf.mxu0  ;;  %v21685_v24 = vadd.f32 %v2283_v22, %v21643_v43  ;;  %17665 = vmatpush3.bf16.msra.mxu1 %v19903_v17  ;;  %17680 = vmatprep.mubr.msk.bf16.mxu1 %vm20904_vm0, %v20903_v4  ;;  %v19927_v17 = vld [vmem:[%s21072_s13 + $0x2e0] sm:$0xff]  }
 0x272   : > { %17873 = vmatpush3.bf16.msra.mxu0 %v19902_v14  ;;  %v17542_v25 = vpop.f32.mrf.mxu1  ;;  %17666 = vmatprep.subr.bf16.mxu1 %v20903_v4 }
 0x273   : > { %17874 = vmatprep.subr.bf16.mxu0 %v20903_v4  ;;  %v17426_v26 = vpop.f32.mrf.mxu0 }
 0x274   : > { %v2286_v28 = vpop.f32.mrf.mxu1  ;;  %v19931_v26 = vld [vmem:[%s21072_s13 + $0x630] sm:$0xff]  }
 0x275   : > { %v1270_v29 = vpop.f32.mrf.mxu0  ;;  %v21693_v30 = vadd.f32 %v2286_v28, %v21651_v49  ;;  %17667 = vmatpush3.bf16.msra.mxu1 %v19905_v21  ;;  %v19915_v49 = vld [vmem:[%s21072_s13 + $0x5a8] sm:$0xff]   ;;  %v19929_v21 = vld [vmem:[%s21072_s13 + $0x638] sm:$0xff]  }
 0x276   : > { %17875 = vmatpush3.bf16.msra.mxu0 %v19904_v20  ;;  %v15896_v32 = vpack.c.bf16 %v1270_v29, %v1267_v23  ;;  %v17543_v33 = vpop.f32.mrf.mxu1  ;;  %17668 = vmatprep.subr.bf16.mxu1 %v20903_v4  ;;  %v19930_v23 = vld [vmem:[%s21072_s13 + $0x2d8] sm:$0xff]  }
 0x277   : > { %17876 = vmatprep.subr.bf16.mxu0 %v20903_v4  ;;  %v17427_v34 = vpop.f32.mrf.mxu0 }
 0x278   : > { %16226 = vst [vmem:[#allocation3 + $0x138] sm:$0xff] %v15896_v32   ;;  %v19934_v32 = vld [vmem:[%s21072_s13 + $0x2c8] sm:$0xff]  }
 0x279   : > { %v1275_v37 = vpop.f32.mrf.mxu0  ;;  %17669 = vmatpush3.bf16.msra.mxu1 %v19907_v31 }
 0x27a   : > { %17877 = vmatpush3.bf16.msra.mxu0 %v19906_v27  ;;  %17670 = vmatprep.subr.bf16.mxu1 %v20903_v4  ;;  %v19932_v27 = vld [vmem:[%s21072_s13 + $0x2d0] sm:$0xff]  }
 0x27b   : > { %17878 = vmatprep.subr.bf16.mxu0 %v20903_v4  ;;  %v17430_v39 = vpop.f32.mrf.mxu0 }
 0x27c   : > { %v19938_v39 = vld [vmem:[%s21072_s13 + $0x618] sm:$0xff]  }
 0x27d   : > { %v1278_v41 = vpop.f32.mrf.mxu0  ;;  %17671 = vmatpush3.bf16.msra.mxu1 %v19909_v36  ;;  %v19936_v36 = vld [vmem:[%s21072_s13 + $0x2c0] sm:$0xff]  }
 0x27e   : > { %17879 = vmatpush3.bf16.msra.mxu0 %v19908_v35  ;;  %v15901_v43 = vpack.c.bf16 %v1278_v41, %v1275_v37  ;;  %17672 = vmatprep.subr.bf16.mxu1 %v20903_v4  ;;  %v19935_v35 = vld [vmem:[%s21072_s13 + $0x620] sm:$0xff]  }
 0x27f   : > { %17904 = vmatprep.subr.bf16.mxu0 %v20903_v4  ;;  %v17431_v44 = vpop.f32.mrf.mxu0 }
 0x280   : > { %16227 = vst [vmem:[#allocation3 + $0x140] sm:$0xff] %v15901_v43  }
 0x281   : > { %17881 = vmatmul.mubr.bf16.vlgmr.msra.gmra.mxu0 %v19910_v38  ;;  %v1283_v47 = vpop.f32.mrf.mxu0  ;;  %17673 = vmatpush3.bf16.msra.mxu1 %v19912_v42  ;;  %v19939_v42 = vld [vmem:[%s21072_s13 + $0x378] sm:$0xff]  }
 0x282   : > { %17905 = vmatpush3.bf16.msra.mxu0 %v19911_v40  ;;  %17674 = vmatprep.subr.bf16.mxu1 %v20903_v4  ;;  %v19937_v40 = vld [vmem:[#allocation3 + $0x58] sm:$0xff]  }
 0x283   : > { %17906 = vmatprep.subr.bf16.mxu0 %v20903_v4  ;;  %v17434_v48 = vpop.f32.mrf.mxu0  ;;  %17920 = vmatprep.mubr.msk.bf16.mxu0 %vm20904_vm0, %v20903_v4 }
 0x285   : > { %v1286_v50 = vpop.f32.mrf.mxu0  ;;  %17675 = vmatpush3.bf16.msra.mxu1 %v19914_v46  ;;  %v19941_v46 = vld [vmem:[%s21072_s13 + $0x370] sm:$0xff]  }
 0x286   : > { %17907 = vmatpush3.bf16.msra.mxu0 %v19913_v45  ;;  %v15906_v52 = vpack.c.bf16 %v1286_v50, %v1283_v47  ;;  %17676 = vmatprep.subr.bf16.mxu1 %v20903_v4  ;;  %v19940_v45 = vld [vmem:[%s21072_s13 + $0x610] sm:$0xff]  }
 0x287   : > { %17908 = vmatprep.subr.bf16.mxu0 %v20903_v4  ;;  %v17435_v53 = vpop.f32.mrf.mxu0 }
 0x288   : > { %16228 = vst [vmem:[#allocation3 + $0x148] sm:$0xff] %v15906_v52   ;;  %v19942_v52 = vld [vmem:[%s21072_s13 + $0x608] sm:$0xff]  }
 0x289   : > { %v1291_v56 = vpop.f32.mrf.mxu0  ;;  %17677 = vmatpush3.bf16.msra.mxu1 %v19916_v51 }
 0x28a   : > { %17909 = vmatpush3.bf16.msra.mxu0 %v19915_v49  ;;  %17678 = vmatprep.subr.bf16.mxu1 %v20903_v4 }
 0x28b   : > { %17910 = vmatprep.subr.bf16.mxu0 %v20903_v4  ;;  %v17438_v57 = vpop.f32.mrf.mxu0 }
 0x28d   : > { %v1294_v60 = vpop.f32.mrf.mxu0  ;;  %17679 = vmatpush3.bf16.msra.mxu1 %v19918_v55 }
 0x28e   : > { %17911 = vmatpush3.bf16.msra.mxu0 %v19917_v54  ;;  %v15911_v62 = vpack.c.bf16 %v1294_v60, %v1291_v56  ;;  %17684 = vmatprep.subr.bf16.mxu1 %v20903_v4  ;;  %v19943_v56 = vld [vmem:[%s21072_s13 + $0x368] sm:$0xff]   ;;  %v19944_v60 = vld [vmem:[%s21072_s13 + $0x600] sm:$0xff]  }
 0x28f   : > { %17912 = vmatprep.subr.bf16.mxu0 %v20903_v4  ;;  %v17439_v63 = vpop.f32.mrf.mxu0 }
 0x290   : > { %16229 = vst [vmem:[#allocation3 + $0x150] sm:$0xff] %v15911_v62   ;;  %v2398_v2 = vpop.f32.mrf.mxu1  ;;  %17681 = vmatmul.mubr.bf16.vlgmr.msra.gmra.mxu1 %v19919_v59 }
 0x291   : > { %v1299_v3 = vpop.f32.mrf.mxu0  ;;  %v21727_v5 = vadd.f32 %v2398_v2, %v21685_v24  ;;  %17685 = vmatpush3.bf16.msra.mxu1 %v19921_v61  ;;  %17700 = vmatprep.mubr.msk.bf16.mxu1 %vm20904_vm0, %v20903_v4  ;;  %v19945_v61 = vld [vmem:[%s21072_s13 + $0x360] sm:$0xff]  }
 0x292   : > { %17913 = vmatpush3.bf16.msra.mxu0 %v19920_v58  ;;  %v17562_v6 = vpop.f32.mrf.mxu1  ;;  %17686 = vmatprep.subr.bf16.mxu1 %v20903_v4 }
 0x293   : > { %17914 = vmatprep.subr.bf16.mxu0 %v20903_v4  ;;  %v17442_v7 = vpop.f32.mrf.mxu0 }
 0x294   : > { %v2401_v9 = vpop.f32.mrf.mxu1  ;;  %v19949_v7 = vld [vmem:[%s21072_s13 + $0x6b0] sm:$0xff]  }
 0x295   : > { %v1302_v10 = vpop.f32.mrf.mxu0  ;;  %v21735_v11 = vadd.f32 %v2401_v9, %v21693_v30  ;;  %17687 = vmatpush3.bf16.msra.mxu1 %v19923_v1  ;;  %v19933_v30 = vld [vmem:[%s21072_s13 + $0x628] sm:$0xff]   ;;  %v19946_v1 = vld [vmem:[#allocation3 + $0xc0] sm:$0xff]  }
 0x296   : > { %17915 = vmatpush3.bf16.msra.mxu0 %v19922_v0  ;;  %v15916_v13 = vpack.c.bf16 %v1302_v10, %v1299_v3  ;;  %v17563_v14 = vpop.f32.mrf.mxu1  ;;  %17688 = vmatprep.subr.bf16.mxu1 %v20903_v4  ;;  %v19947_v0 = vld [vmem:[%s21072_s13 + $0x6b8] sm:$0xff]  }
 0x297   : > { %17916 = vmatprep.subr.bf16.mxu0 %v20903_v4  ;;  %v17443_v15 = vpop.f32.mrf.mxu0  ;;  %v19948_v3 = vld [vmem:[%s21072_s13 + $0x358] sm:$0xff]  }
 0x298   : > { %16230 = vst [vmem:[#allocation3 + $0x158] sm:$0xff] %v15916_v13   ;;  %v19952_v13 = vld [vmem:[%s21072_s13 + $0x348] sm:$0xff]   ;;  %v19953_v15 = vld [vmem:[%s21072_s13 + $0x6a0] sm:$0xff]  }
 0x299   : > { %v1307_v18 = vpop.f32.mrf.mxu0  ;;  %17689 = vmatpush3.bf16.msra.mxu1 %v19925_v12 }
 0x29a   : > { %17917 = vmatpush3.bf16.msra.mxu0 %v19924_v8  ;;  %17690 = vmatprep.subr.bf16.mxu1 %v20903_v4  ;;  %v19950_v8 = vld [vmem:[%s21072_s13 + $0x350] sm:$0xff]  }
 0x29b   : > { %17918 = vmatprep.subr.bf16.mxu0 %v20903_v4  ;;  %v17446_v20 = vpop.f32.mrf.mxu0 }
 0x29c   : > { %v19958_v20 = vld [vmem:[%s21072_s13 + $0x690] sm:$0xff]  }
 0x29d   : > { %v1310_v22 = vpop.f32.mrf.mxu0  ;;  %17691 = vmatpush3.bf16.msra.mxu1 %v19927_v17  ;;  %v19956_v17 = vld [vmem:[%s21072_s13 + $0x698] sm:$0xff]  }
 0x29e   : > { %17919 = vmatpush3.bf16.msra.mxu0 %v19926_v16  ;;  %v15921_v24 = vpack.c.bf16 %v1310_v22, %v1307_v18  ;;  %17692 = vmatprep.subr.bf16.mxu1 %v20903_v4  ;;  %v19954_v16 = vld [vmem:[%s21072_s13 + $0x340] sm:$0xff]  }
 0x29f   : > { %17944 = vmatprep.subr.bf16.mxu0 %v20903_v4  ;;  %v17447_v25 = vpop.f32.mrf.mxu0  ;;  %v19955_v18 = vld [vmem:[#allocation3 + $0x68] sm:$0xff]  }
 0x2a0   : > { %16231 = vst [vmem:[#allocation3 + $0x160] sm:$0xff] %v15921_v24   ;;  %v19960_v25 = vld [vmem:[%s21072_s13 + $0x688] sm:$0xff]  }
 0x2a1   : > { %17921 = vmatmul.mubr.bf16.vlgmr.msra.gmra.mxu0 %v19928_v19  ;;  %v1315_v28 = vpop.f32.mrf.mxu0  ;;  %17693 = vmatpush3.bf16.msra.mxu1 %v19930_v23  ;;  %v19957_v19 = vld [vmem:[%s21072_s13 + $0x3f8] sm:$0xff]  }
 0x2a2   : > { %17945 = vmatpush3.bf16.msra.mxu0 %v19929_v21  ;;  %17694 = vmatprep.subr.bf16.mxu1 %v20903_v4  ;;  %v19959_v21 = vld [vmem:[%s21072_s13 + $0x3f0] sm:$0xff]  }
 0x2a3   : > { %17946 = vmatprep.subr.bf16.mxu0 %v20903_v4  ;;  %v17450_v29 = vpop.f32.mrf.mxu0  ;;  %17960 = vmatprep.mubr.msk.bf16.mxu0 %vm20904_vm0, %v20903_v4 }
 0x2a5   : > { %v1318_v31 = vpop.f32.mrf.mxu0  ;;  %17695 = vmatpush3.bf16.msra.mxu1 %v19932_v27 }
 0x2a6   : > { %17947 = vmatpush3.bf16.msra.mxu0 %v19931_v26  ;;  %v15926_v33 = vpack.c.bf16 %v1318_v31, %v1315_v28  ;;  %17696 = vmatprep.subr.bf16.mxu1 %v20903_v4  ;;  %v19961_v28 = vld [vmem:[%s21072_s13 + $0x3e8] sm:$0xff]   ;;  %v19963_v31 = vld [vmem:[%s21072_s13 + $0x3e0] sm:$0xff]  }
 0x2a7   : > { %17948 = vmatprep.subr.bf16.mxu0 %v20903_v4  ;;  %v17451_v34 = vpop.f32.mrf.mxu0 }
 0x2a8   : > { %16232 = vst [vmem:[#allocation3 + $0x168] sm:$0xff] %v15926_v33   ;;  %v19964_v33 = vld [vmem:[#allocation3 + $0xd0] sm:$0xff]   ;;  %v19966_v34 = vld [vmem:[%s21072_s13 + $0x3d8] sm:$0xff]  }
 0x2a9   : > { %v1323_v37 = vpop.f32.mrf.mxu0  ;;  %17697 = vmatpush3.bf16.msra.mxu1 %v19934_v32  ;;  %v19965_v32 = vld [vmem:[%s21072_s13 + $0x738] sm:$0xff]  }
 0x2aa   : > { %17949 = vmatpush3.bf16.msra.mxu0 %v19933_v30  ;;  %17698 = vmatprep.subr.bf16.mxu1 %v20903_v4  ;;  %v19962_v30 = vld [vmem:[%s21072_s13 + $0x680] sm:$0xff]  }
 0x2ab   : > { %17950 = vmatprep.subr.bf16.mxu0 %v20903_v4  ;;  %v17454_v38 = vpop.f32.mrf.mxu0 }
 0x2ad   : > { %v1326_v41 = vpop.f32.mrf.mxu0  ;;  %17699 = vmatpush3.bf16.msra.mxu1 %v19936_v36  ;;  %v19968_v36 = vld [vmem:[%s21072_s13 + $0x3d0] sm:$0xff]  }
 0x2ae   : > { %17951 = vmatpush3.bf16.msra.mxu0 %v19935_v35  ;;  %v15931_v43 = vpack.c.bf16 %v1326_v41, %v1323_v37  ;;  %17724 = vmatprep.subr.bf16.mxu1 %v20903_v4  ;;  %v19967_v35 = vld [vmem:[%s21072_s13 + $0x730] sm:$0xff]   ;;  %v19970_v41 = vld [vmem:[%s21072_s13 + $0x3c8] sm:$0xff]  }
 0x2af   : > { %17952 = vmatprep.subr.bf16.mxu0 %v20903_v4  ;;  %v17455_v44 = vpop.f32.mrf.mxu0 }
 0x2b0   : > { %16233 = vst [vmem:[#allocation3 + $0x170] sm:$0xff] %v15931_v43   ;;  %v2513_v47 = vpop.f32.mrf.mxu1  ;;  %17701 = vmatmul.mubr.bf16.vlgmr.msra.gmra.mxu1 %v19937_v40  ;;  %v19971_v43 = vld [vmem:[%s21072_s13 + $0x720] sm:$0xff]  }
 0x2b1   : > { %v1331_v48 = vpop.f32.mrf.mxu0  ;;  %v21769_v49 = vadd.f32 %v2513_v47, %v21727_v5  ;;  %17725 = vmatpush3.bf16.msra.mxu1 %v19939_v42  ;;  %17740 = vmatprep.mubr.msk.bf16.mxu1 %vm20904_vm0, %v20903_v4  ;;  %v19972_v44 = vld [vmem:[%s21072_s13 + $0x3c0] sm:$0xff]   ;;  %v19975_v47 = vld [vmem:[%s21072_s13 + $0x478] sm:$0xff]  }
 0x2b2   : > { %17953 = vmatpush3.bf16.msra.mxu0 %v19938_v39  ;;  %v17582_v50 = vpop.f32.mrf.mxu1  ;;  %17726 = vmatprep.subr.bf16.mxu1 %v20903_v4  ;;  %v19969_v39 = vld [vmem:[%s21072_s13 + $0x728] sm:$0xff]  }
 0x2b3   : > { %17954 = vmatprep.subr.bf16.mxu0 %v20903_v4  ;;  %v17458_v51 = vpop.f32.mrf.mxu0 }
 0x2b4   : > { %v2516_v53 = vpop.f32.mrf.mxu1 }
 0x2b5   : > { %v1334_v54 = vpop.f32.mrf.mxu0  ;;  %v21777_v55 = vadd.f32 %v2516_v53, %v21735_v11  ;;  %17727 = vmatpush3.bf16.msra.mxu1 %v19941_v46  ;;  %v19951_v11 = vld [vmem:[%s21072_s13 + $0x6a8] sm:$0xff]   ;;  %v19973_v46 = vld [vmem:[#allocation3 + $0x78] sm:$0xff]  }
 0x2b6   : > { %17955 = vmatpush3.bf16.msra.mxu0 %v19940_v45  ;;  %v15936_v57 = vpack.c.bf16 %v1334_v54, %v1331_v48  ;;  %v17583_v58 = vpop.f32.mrf.mxu1  ;;  %17728 = vmatprep.subr.bf16.mxu1 %v20903_v4  ;;  %v19974_v45 = vld [vmem:[%s21072_s13 + $0x718] sm:$0xff]   ;;  %v19976_v48 = vld [vmem:[%s21072_s13 + $0x710] sm:$0xff]   ;;  %v19978_v53 = vld [vmem:[%s21072_s13 + $0x708] sm:$0xff]  }
 0x2b7   : > { %17956 = vmatprep.subr.bf16.mxu0 %v20903_v4  ;;  %v17459_v59 = vpop.f32.mrf.mxu0  ;;  %v19980_v58 = vld [vmem:[%s21072_s13 + $0x700] sm:$0xff]  }
 0x2b8   : > { %16234 = vst [vmem:[#allocation3 + $0x178] sm:$0xff] %v15936_v57   ;;  %v19981_v59 = vld [vmem:[%s21072_s13 + $0x460] sm:$0xff]  }
 0x2b9   : > { %v1339_v62 = vpop.f32.mrf.mxu0  ;;  %17729 = vmatpush3.bf16.msra.mxu1 %v19943_v56  ;;  %v19979_v56 = vld [vmem:[%s21072_s13 + $0x468] sm:$0xff]  }
 0x2ba   : > { %17957 = vmatpush3.bf16.msra.mxu0 %v19942_v52  ;;  %17730 = vmatprep.subr.bf16.mxu1 %v20903_v4 }
 0x2bb   : > { %17958 = vmatprep.subr.bf16.mxu0 %v20903_v4  ;;  %v17462_v63 = vpop.f32.mrf.mxu0 }
 0x2bc   : > { %v19985_v63 = vld [vmem:[%s21072_s13 + $0x7b0] sm:$0xff]  }
 0x2bd   : > { %v1342_v2 = vpop.f32.mrf.mxu0  ;;  %17731 = vmatpush3.bf16.msra.mxu1 %v19945_v61  ;;  %v19984_v61 = vld [vmem:[%s21072_s13 + $0x458] sm:$0xff]  }
 0x2be   : > { %17959 = vmatpush3.bf16.msra.mxu0 %v19944_v60  ;;  %v15941_v5 = vpack.c.bf16 %v1342_v2, %v1339_v62  ;;  %17732 = vmatprep.subr.bf16.mxu1 %v20903_v4  ;;  %v19983_v60 = vld [vmem:[%s21072_s13 + $0x7b8] sm:$0xff]  }
 0x2bf   : > { %17984 = vmatprep.subr.bf16.mxu0 %v20903_v4  ;;  %v17463_v6 = vpop.f32.mrf.mxu0  ;;  %v19982_v62 = vld [vmem:[#allocation3 + $0xe0] sm:$0xff]  }
 0x2c0   : > { %16235 = vst [vmem:[#allocation3 + $0x180] sm:$0xff] %v15941_v5   ;;  %v19988_v5 = vld [vmem:[%s21072_s13 + $0x448] sm:$0xff]  }
 0x2c1   : > { %17961 = vmatmul.mubr.bf16.vlgmr.msra.gmra.mxu0 %v19946_v1  ;;  %v21792_v9 = vpop.f32.mrf.mxu0  ;;  %17733 = vmatpush3.bf16.msra.mxu1 %v19948_v3  ;;  %v19987_v3 = vld [vmem:[%s21072_s13 + $0x7a8] sm:$0xff]  }
 0x2c2   : > { %17985 = vmatpush3.bf16.msra.mxu0 %v19947_v0  ;;  %17734 = vmatprep.subr.bf16.mxu1 %v20903_v4  ;;  %v19986_v0 = vld [vmem:[%s21072_s13 + $0x450] sm:$0xff]  }
 0x2c3   : > { %17986 = vmatprep.subr.bf16.mxu0 %v20903_v4  ;;  %v17722_v10 = vpop.f32.mrf.mxu0  ;;  %18000 = vmatprep.mubr.msk.bf16.mxu0 %vm20904_vm0, %v20903_v4 }
 0x2c4   : > { %v19990_v10 = vld [vmem:[%s21072_s13 + $0x440] sm:$0xff]  }
 0x2c5   : > { %v21799_v12 = vpop.f32.mrf.mxu0  ;;  %17735 = vmatpush3.bf16.msra.mxu1 %v19950_v8  ;;  %v19989_v8 = vld [vmem:[%s21072_s13 + $0x7a0] sm:$0xff]  }
 0x2c6   : > { %17987 = vmatpush3.bf16.msra.mxu0 %v19949_v7  ;;  %17736 = vmatprep.subr.bf16.mxu1 %v20903_v4 }
 0x2c7   : > { %17988 = vmatprep.subr.bf16.mxu0 %v20903_v4  ;;  %v17723_v14 = vpop.f32.mrf.mxu0 }
 0x2c8   : > { %v19991_v14 = vld [vmem:[#allocation3 + $0x88] sm:$0xff]  }
 0x2c9   : > { %17737 = vmatpush3.bf16.msra.mxu1 %v19952_v13  ;;  %v19993_v13 = vld [vmem:[%s21072_s13 + $0x4f8] sm:$0xff]  }
 0x2ca   : > { %17989 = vmatpush3.bf16.msra.mxu0 %v19951_v11  ;;  %17738 = vmatprep.subr.bf16.mxu1 %v20903_v4  ;;  %v19992_v11 = vld [vmem:[%s21072_s13 + $0x798] sm:$0xff]  }
 0x2cb   : > { %17990 = vmatprep.subr.bf16.mxu0 %v20903_v4 }
 0x2cd   : > { %17739 = vmatpush3.bf16.msra.mxu1 %v19954_v16  ;;  %v19995_v16 = vld [vmem:[%s21072_s13 + $0x4f0] sm:$0xff]  }
 0x2ce   : > { %17991 = vmatpush3.bf16.msra.mxu0 %v19953_v15  ;;  %17764 = vmatprep.subr.bf16.mxu1 %v20903_v4  ;;  %v19994_v15 = vld [vmem:[%s21072_s13 + $0x790] sm:$0xff]  }
 0x2cf   : > { %17992 = vmatprep.subr.bf16.mxu0 %v20903_v4 }
 0x2d0   : > { %v2628_v22 = vpop.f32.mrf.mxu1  ;;  %17741 = vmatmul.mubr.bf16.vlgmr.msra.gmra.mxu1 %v19955_v18 }
 0x2d1   : > { %v21815_v23 = vadd.f32 %v2628_v22, %v21769_v49  ;;  %17765 = vmatpush3.bf16.msra.mxu1 %v19957_v19  ;;  %17780 = vmatprep.mubr.msk.bf16.mxu1 %vm20904_vm0, %v20903_v4  ;;  %v19977_v49 = vld [vmem:[%s21072_s13 + $0x470] sm:$0xff]  }
 0x2d2   : > { %17993 = vmatpush3.bf16.msra.mxu0 %v19956_v17  ;;  %v17602_v24 = vpop.f32.mrf.mxu1  ;;  %17766 = vmatprep.subr.bf16.mxu1 %v20903_v4 }
 0x2d3   : > { %17994 = vmatprep.subr.bf16.mxu0 %v20903_v4 }
 0x2d4   : > { %v2631_v26 = vpop.f32.mrf.mxu1 }
 0x2d5   : > { %v21823_v27 = vadd.f32 %v2631_v26, %v21777_v55  ;;  %17767 = vmatpush3.bf16.msra.mxu1 %v19959_v21  ;;  %v19997_v21 = vld [vmem:[%s21072_s13 + $0x4e8] sm:$0xff]   ;;  %v19999_v26 = vld [vmem:[%s21072_s13 + $0x4e0] sm:$0xff]  }
 0x2d6   : > { %17995 = vmatpush3.bf16.msra.mxu0 %v19958_v20  ;;  %v17603_v29 = vpop.f32.mrf.mxu1  ;;  %17768 = vmatprep.subr.bf16.mxu1 %v20903_v4  ;;  %v19996_v20 = vld [vmem:[%s21072_s13 + $0x788] sm:$0xff]  }
 0x2d7   : > { %17996 = vmatprep.subr.bf16.mxu0 %v20903_v4  ;;  %v20000_v29 = vld [vmem:[#allocation3 + $0xf0] sm:$0xff]  }
 0x2d9   : > { %17769 = vmatpush3.bf16.msra.mxu1 %v19961_v28  ;;  %v20002_v28 = vld [vmem:[%s21072_s13 + $0x4d8] sm:$0xff]  }
 0x2da   : > { %17997 = vmatpush3.bf16.msra.mxu0 %v19960_v25  ;;  %17770 = vmatprep.subr.bf16.mxu1 %v20903_v4  ;;  %v19998_v25 = vld [vmem:[%s21072_s13 + $0x780] sm:$0xff]  }
 0x2db   : > { %17998 = vmatprep.subr.bf16.mxu0 %v20903_v4 }
 0x2dd   : > { %17771 = vmatpush3.bf16.msra.mxu1 %v19963_v31  ;;  %v20004_v31 = vld [vmem:[%s21072_s13 + $0x4d0] sm:$0xff]  }
 0x2de   : > { %17999 = vmatpush3.bf16.msra.mxu0 %v19962_v30  ;;  %17772 = vmatprep.subr.bf16.mxu1 %v20903_v4  ;;  %v20003_v30 = vld [vmem:[%s21072_s13 + $0x830] sm:$0xff]  }
 0x2df   : > { %18024 = vmatprep.subr.bf16.mxu0 %v20903_v4 }
 0x2e1   : > { %18001 = vmatmul.mubr.bf16.vlgmr.msra.gmra.mxu0 %v19964_v33  ;;  %v21838_v37 = vpop.f32.mrf.mxu0  ;;  %17773 = vmatpush3.bf16.msra.mxu1 %v19966_v34  ;;  %v20005_v34 = vld [vmem:[%s21072_s13 + $0x828] sm:$0xff]  }
 0x2e2   : > { %18025 = vmatpush3.bf16.msra.mxu0 %v19965_v32  ;;  %17774 = vmatprep.subr.bf16.mxu1 %v20903_v4 }
 0x2e3   : > { %18026 = vmatprep.subr.bf16.mxu0 %v20903_v4  ;;  %v17762_v38 = vpop.f32.mrf.mxu0  ;;  %18040 = vmatprep.mubr.msk.bf16.mxu0 %vm20904_vm0, %v20903_v4 }
 0x2e5   : > { %v21845_v40 = vpop.f32.mrf.mxu0  ;;  %17775 = vmatpush3.bf16.msra.mxu1 %v19968_v36 }
 0x2e6   : > { %18027 = vmatpush3.bf16.msra.mxu0 %v19967_v35  ;;  %17776 = vmatprep.subr.bf16.mxu1 %v20903_v4  ;;  %v20006_v35 = vld [vmem:[%s21072_s13 + $0x4c8] sm:$0xff]  }
 0x2e7   : > { %18028 = vmatprep.subr.bf16.mxu0 %v20903_v4  ;;  %v17763_v42 = vpop.f32.mrf.mxu0 }
 0x2e8   : > { %v20010_v42 = vld [vmem:[%s21072_s13 + $0x818] sm:$0xff]  }
 0x2e9   : > { %17777 = vmatpush3.bf16.msra.mxu1 %v19970_v41  ;;  %v20008_v41 = vld [vmem:[%s21072_s13 + $0x4c0] sm:$0xff]  }
 0x2ea   : > { %18029 = vmatpush3.bf16.msra.mxu0 %v19969_v39  ;;  %17778 = vmatprep.subr.bf16.mxu1 %v20903_v4  ;;  %v20007_v39 = vld [vmem:[%s21072_s13 + $0x820] sm:$0xff]  }
 0x2eb   : > { %18030 = vmatprep.subr.bf16.mxu0 %v20903_v4 }
 0x2ed   : > { %17779 = vmatpush3.bf16.msra.mxu1 %v19972_v44  ;;  %v20009_v44 = vld [vmem:[#allocation3 + $0x98] sm:$0xff]  }
 0x2ee   : > { %18031 = vmatpush3.bf16.msra.mxu0 %v19971_v43  ;;  %17804 = vmatprep.subr.bf16.mxu1 %v20903_v4  ;;  %v20011_v43 = vld [vmem:[%s21072_s13 + $0x578] sm:$0xff]  }
 0x2ef   : > { %18032 = vmatprep.subr.bf16.mxu0 %v20903_v4 }
 0x2f0   : > { %v2743_v50 = vpop.f32.mrf.mxu1  ;;  %17781 = vmatmul.mubr.bf16.vlgmr.msra.gmra.mxu1 %v19973_v46  ;;  %v20013_v46 = vld [vmem:[%s21072_s13 + $0x570] sm:$0xff]  }
 0x2f1   : > { %v21861_v51 = vadd.f32 %v2743_v50, %v21815_v23  ;;  %17805 = vmatpush3.bf16.msra.mxu1 %v19975_v47  ;;  %17820 = vmatprep.mubr.msk.bf16.mxu1 %vm20904_vm0, %v20903_v4  ;;  %v20014_v50 = vld [vmem:[%s21072_s13 + $0x808] sm:$0xff]  }
 0x2f2   : > { %18033 = vmatpush3.bf16.msra.mxu0 %v19974_v45  ;;  %v17622_v52 = vpop.f32.mrf.mxu1  ;;  %17806 = vmatprep.subr.bf16.mxu1 %v20903_v4  ;;  %v20012_v45 = vld [vmem:[%s21072_s13 + $0x810] sm:$0xff]  }
 0x2f3   : > { %18034 = vmatprep.subr.bf16.mxu0 %v20903_v4 }
 0x2f4   : > { %v2746_v54 = vpop.f32.mrf.mxu1 }
 0x2f5   : > { %v21869_v55 = vadd.f32 %v2746_v54, %v21823_v27  ;;  %17807 = vmatpush3.bf16.msra.mxu1 %v19977_v49  ;;  %v20001_v27 = vld [vmem:[%s21072_s13 + $0x838] sm:$0xff]  }
 0x2f6   : > { %18035 = vmatpush3.bf16.msra.mxu0 %v19976_v48  ;;  %v17623_v57 = vpop.f32.mrf.mxu1  ;;  %17808 = vmatprep.subr.bf16.mxu1 %v20903_v4 }
 0x2f7   : > { %18036 = vmatprep.subr.bf16.mxu0 %v20903_v4  ;;  %v20019_v57 = vld [vmem:[%s21072_s13 + $0x8b8] sm:$0xff]  }
 0x2f9   : > { %17809 = vmatpush3.bf16.msra.mxu1 %v19979_v56  ;;  %v20017_v56 = vld [vmem:[%s21072_s13 + $0x560] sm:$0xff]  }
 0x2fa   : > { %18037 = vmatpush3.bf16.msra.mxu0 %v19978_v53  ;;  %17810 = vmatprep.subr.bf16.mxu1 %v20903_v4 }
 0x2fb   : > { %18038 = vmatprep.subr.bf16.mxu0 %v20903_v4 }
 0x2fd   : > { %17811 = vmatpush3.bf16.msra.mxu1 %v19981_v59  ;;  %v20018_v59 = vld [vmem:[#allocation3 + $0x100] sm:$0xff]  }
 0x2fe   : > { %18039 = vmatpush3.bf16.msra.mxu0 %v19980_v58  ;;  %17812 = vmatprep.subr.bf16.mxu1 %v20903_v4  ;;  %v20020_v58 = vld [vmem:[%s21072_s13 + $0x558] sm:$0xff]  }
 0x2ff   : > { %18064 = vmatprep.subr.bf16.mxu0 %v20903_v4 }
 0x301   : > { %18041 = vmatmul.mubr.bf16.vlgmr.msra.gmra.mxu0 %v19982_v62  ;;  %v21884_v1 = vpop.f32.mrf.mxu0  ;;  %17813 = vmatpush3.bf16.msra.mxu1 %v19984_v61  ;;  %v20021_v61 = vld [vmem:[%s21072_s13 + $0x8b0] sm:$0xff]  }
 0x302   : > { %18065 = vmatpush3.bf16.msra.mxu0 %v19983_v60  ;;  %17814 = vmatprep.subr.bf16.mxu1 %v20903_v4  ;;  %v20022_v62 = vld [vmem:[%s21072_s13 + $0x550] sm:$0xff]  }
 0x303   : > { %18066 = vmatprep.subr.bf16.mxu0 %v20903_v4  ;;  %v17802_v2 = vpop.f32.mrf.mxu0  ;;  %18080 = vmatprep.mubr.msk.bf16.mxu0 %vm20904_vm0, %v20903_v4 }
 0x304   : > { %v20023_v2 = vld [vmem:[%s21072_s13 + $0x8a8] sm:$0xff]  }
 0x305   : > { %v21892_v6 = vpop.f32.mrf.mxu0  ;;  %17815 = vmatpush3.bf16.msra.mxu1 %v19986_v0 }
 0x306   : > { %18067 = vmatpush3.bf16.msra.mxu0 %v19985_v63  ;;  %17816 = vmatprep.subr.bf16.mxu1 %v20903_v4 }
 0x307   : > { %18068 = vmatprep.subr.bf16.mxu0 %v20903_v4  ;;  %v17803_v7 = vpop.f32.mrf.mxu0 }
 0x308   : > { %v20025_v7 = vld [vmem:[%s21072_s13 + $0x8a0] sm:$0xff]  }
 0x309   : > { %17817 = vmatpush3.bf16.msra.mxu1 %v19988_v5 }
 0x30a   : > { %18069 = vmatpush3.bf16.msra.mxu0 %v19987_v3  ;;  %17818 = vmatprep.subr.bf16.mxu1 %v20903_v4  ;;  %v20024_v3 = vld [vmem:[%s21072_s13 + $0x548] sm:$0xff]  }
 0x30b   : > { %18070 = vmatprep.subr.bf16.mxu0 %v20903_v4 }
 0x30d   : > { %17819 = vmatpush3.bf16.msra.mxu1 %v19990_v10  ;;  %v20028_v10 = vld [vmem:[%s21072_s13 + $0x898] sm:$0xff]  }
 0x30e   : > { %18071 = vmatpush3.bf16.msra.mxu0 %v19989_v8  ;;  %17844 = vmatprep.subr.bf16.mxu1 %v20903_v4  ;;  %v20026_v8 = vld [vmem:[%s21072_s13 + $0x540] sm:$0xff]  }
 0x30f   : > { %18072 = vmatprep.subr.bf16.mxu0 %v20903_v4 }
 0x310   : > { %v2858_v17 = vpop.f32.mrf.mxu1  ;;  %17821 = vmatmul.mubr.bf16.vlgmr.msra.gmra.mxu1 %v19991_v14 }
 0x311   : > { %v21907_v18 = vadd.f32 %v2858_v17, %v21861_v51  ;;  %17845 = vmatpush3.bf16.msra.mxu1 %v19993_v13  ;;  %17860 = vmatprep.mubr.msk.bf16.mxu1 %vm20904_vm0, %v20903_v4  ;;  %v20015_v51 = vld [vmem:[%s21072_s13 + $0x568] sm:$0xff]   ;;  %v20027_v13 = vld [vmem:[#allocation3 + $0xa8] sm:$0xff]   ;;  %v20031_v17 = vld [vmem:[%s21072_s13 + $0x5f0] sm:$0xff]  }
 0x312   : > { %18073 = vmatpush3.bf16.msra.mxu0 %v19992_v11  ;;  %v17642_v19 = vpop.f32.mrf.mxu1  ;;  %17846 = vmatprep.subr.bf16.mxu1 %v20903_v4  ;;  %v20029_v11 = vld [vmem:[%s21072_s13 + $0x5f8] sm:$0xff]  }
 0x313   : > { %18074 = vmatprep.subr.bf16.mxu0 %v20903_v4 }
 0x314   : > { %v2861_v22 = vpop.f32.mrf.mxu1 }
 0x315   : > { %v21916_v23 = vadd.f32 %v2861_v22, %v21869_v55  ;;  %17847 = vmatpush3.bf16.msra.mxu1 %v19995_v16  ;;  %v20016_v55 = vld [vmem:[%s21072_s13 + $0x800] sm:$0xff]   ;;  %v20030_v16 = vld [vmem:[%s21072_s13 + $0x890] sm:$0xff]   ;;  %v20033_v22 = vld [vmem:[%s21072_s13 + $0x5e8] sm:$0xff]  }
 0x316   : > { %18075 = vmatpush3.bf16.msra.mxu0 %v19994_v15  ;;  %v17643_v24 = vpop.f32.mrf.mxu1  ;;  %17848 = vmatprep.subr.bf16.mxu1 %v20903_v4 }
 0x317   : > { %18076 = vmatprep.subr.bf16.mxu0 %v20903_v4  ;;  %v20034_v24 = vld [vmem:[%s21072_s13 + $0x880] sm:$0xff]  }
 0x319   : > { %17849 = vmatpush3.bf16.msra.mxu1 %v19997_v21  ;;  %v20032_v21 = vld [vmem:[%s21072_s13 + $0x888] sm:$0xff]  }
 0x31a   : > { %18077 = vmatpush3.bf16.msra.mxu0 %v19996_v20  ;;  %17850 = vmatprep.subr.bf16.mxu1 %v20903_v4 }
 0x31b   : > { %18078 = vmatprep.subr.bf16.mxu0 %v20903_v4 }
 0x31d   : > { %17851 = vmatpush3.bf16.msra.mxu1 %v19999_v26  ;;  %v20037_v26 = vld [vmem:[%s21072_s13 + $0x938] sm:$0xff]  }
 0x31e   : > { %18079 = vmatpush3.bf16.msra.mxu0 %v19998_v25  ;;  %17852 = vmatprep.subr.bf16.mxu1 %v20903_v4  ;;  %v20035_v25 = vld [vmem:[%s21072_s13 + $0x5e0] sm:$0xff]  }
 0x31f   : > { %18104 = vmatprep.subr.bf16.mxu0 %v20903_v4 }
 0x321   : > { %18081 = vmatmul.mubr.bf16.vlgmr.msra.gmra.mxu0 %v20000_v29  ;;  %v21930_v32 = vpop.f32.mrf.mxu0  ;;  %17853 = vmatpush3.bf16.msra.mxu1 %v20002_v28  ;;  %v20036_v28 = vld [vmem:[#allocation3 + $0x110] sm:$0xff]  }
 0x322   : > { %18105 = vmatpush3.bf16.msra.mxu0 %v20001_v27  ;;  %17854 = vmatprep.subr.bf16.mxu1 %v20903_v4  ;;  %v20038_v27 = vld [vmem:[%s21072_s13 + $0x5d8] sm:$0xff]  }
 0x323   : > { %18106 = vmatprep.subr.bf16.mxu0 %v20903_v4  ;;  %v17842_v33 = vpop.f32.mrf.mxu0  ;;  %18120 = vmatprep.mubr.msk.bf16.mxu0 %vm20904_vm0, %v20903_v4 }
 0x325   : > { %v21938_v36 = vpop.f32.mrf.mxu0  ;;  %17855 = vmatpush3.bf16.msra.mxu1 %v20004_v31  ;;  %v20040_v31 = vld [vmem:[%s21072_s13 + $0x5d0] sm:$0xff]  }
 0x326   : > { %18107 = vmatpush3.bf16.msra.mxu0 %v20003_v30  ;;  %17856 = vmatprep.subr.bf16.mxu1 %v20903_v4  ;;  %v20039_v30 = vld [vmem:[%s21072_s13 + $0x930] sm:$0xff]  }
 0x327   : > { %18108 = vmatprep.subr.bf16.mxu0 %v20903_v4  ;;  %v17843_v38 = vpop.f32.mrf.mxu0 }
 0x328   : > { %v20042_v38 = vld [vmem:[%s21072_s13 + $0x5c8] sm:$0xff]  }
 0x329   : > { %17857 = vmatpush3.bf16.msra.mxu1 %v20006_v35  ;;  %v20041_v35 = vld [vmem:[%s21072_s13 + $0x928] sm:$0xff]  }
 0x32a   : > { %18109 = vmatpush3.bf16.msra.mxu0 %v20005_v34  ;;  %17858 = vmatprep.subr.bf16.mxu1 %v20903_v4 }
 0x32b   : > { %18110 = vmatprep.subr.bf16.mxu0 %v20903_v4 }
 0x32d   : > { %17859 = vmatpush3.bf16.msra.mxu1 %v20008_v41  ;;  %v20043_v41 = vld [vmem:[%s21072_s13 + $0x920] sm:$0xff]  }
 0x32e   : > { %18111 = vmatpush3.bf16.msra.mxu0 %v20007_v39  ;;  %17884 = vmatprep.subr.bf16.mxu1 %v20903_v4 }
 0x32f   : > { %18112 = vmatprep.subr.bf16.mxu0 %v20903_v4 }
 0x330   : > { %v2973_v47 = vpop.f32.mrf.mxu1  ;;  %17861 = vmatmul.mubr.bf16.vlgmr.msra.gmra.mxu1 %v20009_v44  ;;  %v20047_v44 = vld [vmem:[%s21072_s13 + $0x678] sm:$0xff]  }
 0x331   : > { %v2980_v48 = vadd.f32 %v2973_v47, %v21907_v18  ;;  %17885 = vmatpush3.bf16.msra.mxu1 %v20011_v43  ;;  %17900 = vmatprep.mubr.msk.bf16.mxu1 %vm20904_vm0, %v20903_v4  ;;  %v20046_v43 = vld [vmem:[%s21072_s13 + $0x918] sm:$0xff]  }
 0x332   : > { %18113 = vmatpush3.bf16.msra.mxu0 %v20010_v42  ;;  %v17662_v49 = vpop.f32.mrf.mxu1  ;;  %17886 = vmatprep.subr.bf16.mxu1 %v20903_v4  ;;  %v20044_v42 = vld [vmem:[%s21072_s13 + $0x5c0] sm:$0xff]  }
 0x333   : > { %18114 = vmatprep.subr.bf16.mxu0 %v20903_v4  ;;  %v20049_v49 = vld [vmem:[%s21072_s13 + $0x670] sm:$0xff]  }
 0x334   : > { %v2976_v52 = vpop.f32.mrf.mxu1 }
 0x335   : > { %v2981_v53 = vadd.f32 %v2976_v52, %v21916_v23  ;;  %17887 = vmatpush3.bf16.msra.mxu1 %v20013_v46 }
 0x336   : > { %18115 = vmatpush3.bf16.msra.mxu0 %v20012_v45  ;;  %v17663_v54 = vpop.f32.mrf.mxu1  ;;  %17888 = vmatprep.subr.bf16.mxu1 %v20903_v4  ;;  %v20045_v45 = vld [vmem:[#allocation3 + $0xb8] sm:$0xff]  }
 0x337   : > { %18116 = vmatprep.subr.bf16.mxu0 %v20903_v4  ;;  %v20051_v54 = vld [vmem:[%s21072_s13 + $0x668] sm:$0xff]  }
 0x339   : > { %17889 = vmatpush3.bf16.msra.mxu1 %v20015_v51 }
 0x33a   : > { %18117 = vmatpush3.bf16.msra.mxu0 %v20014_v50  ;;  %17890 = vmatprep.subr.bf16.mxu1 %v20903_v4 }
 0x33b   : > { %18118 = vmatprep.subr.bf16.mxu0 %v20903_v4 }
 0x33d   : > { %17891 = vmatpush3.bf16.msra.mxu1 %v20017_v56  ;;  %v20052_v56 = vld [vmem:[%s21072_s13 + $0x900] sm:$0xff]  }
 0x33e   : > { %18119 = vmatpush3.bf16.msra.mxu0 %v20016_v55  ;;  %17892 = vmatprep.subr.bf16.mxu1 %v20903_v4 }
 0x33f   : > { %18144 = vmatprep.subr.bf16.mxu0 %v20903_v4 }
 0x341   : > { %18121 = vmatmul.mubr.bf16.vlgmr.msra.gmra.mxu0 %v20018_v59  ;;  %v21970_v60 = vpop.f32.mrf.mxu0  ;;  %17893 = vmatpush3.bf16.msra.mxu1 %v20020_v58  ;;  %v20055_v58 = vld [vmem:[%s21072_s13 + $0x9b8] sm:$0xff]  }
 0x342   : > { %18145 = vmatpush3.bf16.msra.mxu0 %v20019_v57  ;;  %17894 = vmatprep.subr.bf16.mxu1 %v20903_v4  ;;  %v20053_v57 = vld [vmem:[%s21072_s13 + $0x660] sm:$0xff]   ;;  %v20056_v59 = vld [vmem:[%s21072_s13 + $0x658] sm:$0xff]  }
 0x343   : > { %18146 = vmatprep.subr.bf16.mxu0 %v20903_v4  ;;  %v17882_v63 = vpop.f32.mrf.mxu0  ;;  %18160 = vmatprep.mubr.msk.bf16.mxu0 %vm20904_vm0, %v20903_v4 }
 0x344   : > { %v20057_v63 = vld [vmem:[%s21072_s13 + $0x9b0] sm:$0xff]  }
 0x345   : > { %v21978_v0 = vpop.f32.mrf.mxu0  ;;  %17895 = vmatpush3.bf16.msra.mxu1 %v20022_v62 }
 0x346   : > { %18147 = vmatpush3.bf16.msra.mxu0 %v20021_v61  ;;  %17896 = vmatprep.subr.bf16.mxu1 %v20903_v4  ;;  %v20054_v61 = vld [vmem:[#allocation3 + $0x120] sm:$0xff]  }
 0x347   : > { %18148 = vmatprep.subr.bf16.mxu0 %v20903_v4  ;;  %v17883_v5 = vpop.f32.mrf.mxu0 }
 0x349   : > { %17897 = vmatpush3.bf16.msra.mxu1 %v20024_v3 }
 0x34a   : > { %18149 = vmatpush3.bf16.msra.mxu0 %v20023_v2  ;;  %17898 = vmatprep.subr.bf16.mxu1 %v20903_v4  ;;  %v20058_v2 = vld [vmem:[%s21072_s13 + $0x650] sm:$0xff]  }
 0x34b   : > { %18150 = vmatprep.subr.bf16.mxu0 %v20903_v4 }
 0x34d   : > { %17899 = vmatpush3.bf16.msra.mxu1 %v20026_v8  ;;  %v20060_v8 = vld [vmem:[%s21072_s13 + $0x648] sm:$0xff]  }
 0x34e   : > { %18151 = vmatpush3.bf16.msra.mxu0 %v20025_v7  ;;  %17924 = vmatprep.subr.bf16.mxu1 %v20903_v4  ;;  %v20059_v7 = vld [vmem:[%s21072_s13 + $0x9a8] sm:$0xff]  }
 0x34f   : > { %18152 = vmatprep.subr.bf16.mxu0 %v20903_v4 }
 0x350   : > { %v3088_v14 = vpop.f32.mrf.mxu1  ;;  %17901 = vmatmul.mubr.bf16.vlgmr.msra.gmra.mxu1 %v20027_v13  ;;  %v20062_v13 = vld [vmem:[%s21072_s13 + $0x640] sm:$0xff]  }
 0x351   : > { %v21992_v15 = vadd.f32 %v3088_v14, %v2980_v48  ;;  %17925 = vmatpush3.bf16.msra.mxu1 %v20029_v11  ;;  %17940 = vmatprep.mubr.msk.bf16.mxu1 %vm20904_vm0, %v20903_v4  ;;  %v20048_v48 = vld [vmem:[%s21072_s13 + $0x910] sm:$0xff]   ;;  %v20061_v11 = vld [vmem:[%s21072_s13 + $0x9a0] sm:$0xff]   ;;  %v20064_v14 = vld [vmem:[%s21072_s13 + $0x998] sm:$0xff]  }
 0x352   : > { %18153 = vmatpush3.bf16.msra.mxu0 %v20028_v10  ;;  %v17682_v18 = vpop.f32.mrf.mxu1  ;;  %17926 = vmatprep.subr.bf16.mxu1 %v20903_v4 }
 0x353   : > { %18154 = vmatprep.subr.bf16.mxu0 %v20903_v4 }
 0x354   : > { %v3091_v19 = vpop.f32.mrf.mxu1 }
 0x355   : > { %v22000_v20 = vadd.f32 %v3091_v19, %v2981_v53  ;;  %17927 = vmatpush3.bf16.msra.mxu1 %v20031_v17  ;;  %v20050_v53 = vld [vmem:[%s21072_s13 + $0x908] sm:$0xff]  }
 0x356   : > { %18155 = vmatpush3.bf16.msra.mxu0 %v20030_v16  ;;  %v17683_v23 = vpop.f32.mrf.mxu1  ;;  %17928 = vmatprep.subr.bf16.mxu1 %v20903_v4  ;;  %v20063_v16 = vld [vmem:[#allocation3 + $0xc8] sm:$0xff]  }
 0x357   : > { %18156 = vmatprep.subr.bf16.mxu0 %v20903_v4 }
 0x359   : > { %17929 = vmatpush3.bf16.msra.mxu1 %v20033_v22 }
 0x35a   : > { %18157 = vmatpush3.bf16.msra.mxu0 %v20032_v21  ;;  %17930 = vmatprep.subr.bf16.mxu1 %v20903_v4  ;;  %v20067_v21 = vld [vmem:[%s21072_s13 + $0x6f0] sm:$0xff]  }
 0x35b   : > { %18158 = vmatprep.subr.bf16.mxu0 %v20903_v4 }
 0x35d   : > { %17931 = vmatpush3.bf16.msra.mxu1 %v20035_v25  ;;  %v20068_v25 = vld [vmem:[%s21072_s13 + $0x988] sm:$0xff]  }
 0x35e   : > { %18159 = vmatpush3.bf16.msra.mxu0 %v20034_v24  ;;  %17932 = vmatprep.subr.bf16.mxu1 %v20903_v4 }
 0x35f   : > { %18184 = vmatprep.subr.bf16.mxu0 %v20903_v4 }
 0x361   : > { %18161 = vmatmul.mubr.bf16.vlgmr.msra.gmra.mxu0 %v20036_v28  ;;  %v22014_v29 = vpop.f32.mrf.mxu0  ;;  %17933 = vmatpush3.bf16.msra.mxu1 %v20038_v27  ;;  %v20071_v28 = vld [vmem:[%s21072_s13 + $0x6e0] sm:$0xff]  }
 0x362   : > { %18185 = vmatpush3.bf16.msra.mxu0 %v20037_v26  ;;  %17934 = vmatprep.subr.bf16.mxu1 %v20903_v4  ;;  %v20069_v26 = vld [vmem:[%s21072_s13 + $0x6e8] sm:$0xff]  }
 0x363   : > { %18186 = vmatprep.subr.bf16.mxu0 %v20903_v4  ;;  %v17922_v33 = vpop.f32.mrf.mxu0  ;;  %18200 = vmatprep.mubr.msk.bf16.mxu0 %vm20904_vm0, %v20903_v4 }
 0x364   : > { %v20072_v33 = vld [vmem:[#allocation3 + $0x130] sm:$0xff]  }
 0x365   : > { %v22022_v34 = vpop.f32.mrf.mxu0  ;;  %17935 = vmatpush3.bf16.msra.mxu1 %v20040_v31  ;;  %v20074_v31 = vld [vmem:[%s21072_s13 + $0x6d8] sm:$0xff]  }
 0x366   : > { %18187 = vmatpush3.bf16.msra.mxu0 %v20039_v30  ;;  %17936 = vmatprep.subr.bf16.mxu1 %v20903_v4  ;;  %v20073_v30 = vld [vmem:[%s21072_s13 + $0xa38] sm:$0xff]  }
 0x367   : > { %18188 = vmatprep.subr.bf16.mxu0 %v20903_v4  ;;  %v17923_v39 = vpop.f32.mrf.mxu0 }
 0x368   : > { %v20076_v39 = vld [vmem:[%s21072_s13 + $0x6d0] sm:$0xff]  }
 0x369   : > { %17937 = vmatpush3.bf16.msra.mxu1 %v20042_v38  ;;  %v20075_v38 = vld [vmem:[%s21072_s13 + $0xa30] sm:$0xff]  }
 0x36a   : > { %18189 = vmatpush3.bf16.msra.mxu0 %v20041_v35  ;;  %17938 = vmatprep.subr.bf16.mxu1 %v20903_v4 }
 0x36b   : > { %18190 = vmatprep.subr.bf16.mxu0 %v20903_v4 }
 0x36d   : > { %17939 = vmatpush3.bf16.msra.mxu1 %v20044_v42 }
 0x36e   : > { %18191 = vmatpush3.bf16.msra.mxu0 %v20043_v41  ;;  %17964 = vmatprep.subr.bf16.mxu1 %v20903_v4 }
 0x36f   : > { %18192 = vmatprep.subr.bf16.mxu0 %v20903_v4 }
 0x370   : > { %v3203_v46 = vpop.f32.mrf.mxu1  ;;  %17941 = vmatmul.mubr.bf16.vlgmr.msra.gmra.mxu1 %v20045_v45 }
 0x371   : > { %v3210_v47 = vadd.f32 %v3203_v46, %v21992_v15  ;;  %17965 = vmatpush3.bf16.msra.mxu1 %v20047_v44  ;;  %17980 = vmatprep.mubr.msk.bf16.mxu1 %vm20904_vm0, %v20903_v4  ;;  %v20065_v15 = vld [vmem:[%s21072_s13 + $0x6f8] sm:$0xff]   ;;  %v20078_v44 = vld [vmem:[%s21072_s13 + $0x6c8] sm:$0xff]   ;;  %v20079_v46 = vld [vmem:[%s21072_s13 + $0xa20] sm:$0xff]  }
 0x372   : > { %18193 = vmatpush3.bf16.msra.mxu0 %v20046_v43  ;;  %v17702_v50 = vpop.f32.mrf.mxu1  ;;  %17966 = vmatprep.subr.bf16.mxu1 %v20903_v4  ;;  %v20077_v43 = vld [vmem:[%s21072_s13 + $0xa28] sm:$0xff]  }
 0x373   : > { %18194 = vmatprep.subr.bf16.mxu0 %v20903_v4  ;;  %v3325_v17 = vadd.f32 %v21792_v9, %v3210_v47  ;;  %v20080_v47 = vld [vmem:[%s21072_s13 + $0x6c0] sm:$0xff]   ;;  %v20081_v50 = vld [vmem:[#allocation3 + $0xd8] sm:$0xff]  }
 0x374   : > { %v3206_v51 = vpop.f32.mrf.mxu1 }
 0x375   : > { %v22044_v52 = vadd.f32 %v3206_v51, %v22000_v20  ;;  %17967 = vmatpush3.bf16.msra.mxu1 %v20049_v49  ;;  %v20066_v20 = vld [vmem:[%s21072_s13 + $0x990] sm:$0xff]   ;;  %v20083_v49 = vld [vmem:[%s21072_s13 + $0x778] sm:$0xff]  }
 0x376   : > { %18195 = vmatpush3.bf16.msra.mxu0 %v20048_v48  ;;  %v17703_v55 = vpop.f32.mrf.mxu1  ;;  %17968 = vmatprep.subr.bf16.mxu1 %v20903_v4  ;;  %v20082_v48 = vld [vmem:[%s21072_s13 + $0xa18] sm:$0xff]  }
 0x377   : > { %18196 = vmatprep.subr.bf16.mxu0 %v20903_v4  ;;  %v3326_v9 = vadd.f32 %v21799_v12, %v22044_v52  ;;  %v20070_v12 = vld [vmem:[%s21072_s13 + $0x980] sm:$0xff]   ;;  %v20085_v55 = vld [vmem:[%s21072_s13 + $0x770] sm:$0xff]  }
 0x379   : > { %17969 = vmatpush3.bf16.msra.mxu1 %v20051_v54  ;;  %v20084_v54 = vld [vmem:[%s21072_s13 + $0xa10] sm:$0xff]  }
 0x37a   : > { %18197 = vmatpush3.bf16.msra.mxu0 %v20050_v53  ;;  %17970 = vmatprep.subr.bf16.mxu1 %v20903_v4 }
 0x37b   : > { %18198 = vmatprep.subr.bf16.mxu0 %v20903_v4 }
 0x37d   : > { %17971 = vmatpush3.bf16.msra.mxu1 %v20053_v57 }
 0x37e   : > { %18199 = vmatpush3.bf16.msra.mxu0 %v20052_v56  ;;  %17972 = vmatprep.subr.bf16.mxu1 %v20903_v4 }
 0x37f   : > { %18224 = vmatprep.subr.bf16.mxu0 %v20903_v4 }
 0x381   : > { %v22058_v62 = vpop.f32.mrf.mxu0  ;;  %18201 = vmatmul.mubr.bf16.vlgmr.msra.gmra.mxu0 %v20054_v61  ;;  %17973 = vmatpush3.bf16.msra.mxu1 %v20056_v59  ;;  %v20086_v59 = vld [vmem:[%s21072_s13 + $0xa08] sm:$0xff]  }
 0x382   : > { %18225 = vmatpush3.bf16.msra.mxu0 %v20055_v58  ;;  %17974 = vmatprep.subr.bf16.mxu1 %v20903_v4  ;;  %v20087_v61 = vld [vmem:[%s21072_s13 + $0x768] sm:$0xff]  }
 0x383   : > { %v17962_v3 = vpop.f32.mrf.mxu0  ;;  %18226 = vmatprep.subr.bf16.mxu0 %v20903_v4  ;;  %18240 = vmatprep.mubr.msk.bf16.mxu0 %vm20904_vm0, %v20903_v4 }
 0x384   : > { %v20091_v3 = vld [vmem:[%s21072_s13 + $0xab8] sm:$0xff]  }
 0x385   : > { %v22066_v5 = vpop.f32.mrf.mxu0  ;;  %17975 = vmatpush3.bf16.msra.mxu1 %v20058_v2  ;;  %v20089_v2 = vld [vmem:[%s21072_s13 + $0x760] sm:$0xff]  }
 0x386   : > { %18227 = vmatpush3.bf16.msra.mxu0 %v20057_v63  ;;  %17976 = vmatprep.subr.bf16.mxu1 %v20903_v4 }
 0x387   : > { %v17963_v10 = vpop.f32.mrf.mxu0  ;;  %18228 = vmatprep.subr.bf16.mxu0 %v20903_v4 }
 0x389   : > { %17977 = vmatpush3.bf16.msra.mxu1 %v20060_v8  ;;  %v20090_v8 = vld [vmem:[#allocation3 + $0x140] sm:$0xff]  }
 0x38a   : > { %18229 = vmatpush3.bf16.msra.mxu0 %v20059_v7  ;;  %17978 = vmatprep.subr.bf16.mxu1 %v20903_v4  ;;  %v20092_v7 = vld [vmem:[%s21072_s13 + $0x758] sm:$0xff]  }
 0x38b   : > { %18230 = vmatprep.subr.bf16.mxu0 %v20903_v4 }
 0x38d   : > { %17979 = vmatpush3.bf16.msra.mxu1 %v20062_v13  ;;  %v20094_v13 = vld [vmem:[%s21072_s13 + $0x750] sm:$0xff]  }
 0x38e   : > { %18231 = vmatpush3.bf16.msra.mxu0 %v20061_v11  ;;  %18004 = vmatprep.subr.bf16.mxu1 %v20903_v4  ;;  %v20093_v11 = vld [vmem:[%s21072_s13 + $0xab0] sm:$0xff]  }
 0x38f   : > { %18232 = vmatprep.subr.bf16.mxu0 %v20903_v4 }
 0x390   : > { %v3433_v18 = vpop.f32.mrf.mxu1  ;;  %17981 = vmatmul.mubr.bf16.vlgmr.msra.gmra.mxu1 %v20063_v16  ;;  %v20095_v16 = vld [vmem:[%s21072_s13 + $0xaa8] sm:$0xff]  }
 0x391   : > { %v22081_v19 = vadd.f32 %v3433_v18, %v3325_v17  ;;  %18005 = vmatpush3.bf16.msra.mxu1 %v20065_v15  ;;  %18020 = vmatprep.mubr.msk.bf16.mxu1 %vm20904_vm0, %v20903_v4  ;;  %v20096_v17 = vld [vmem:[%s21072_s13 + $0x748] sm:$0xff]  }
 0x392   : > { %18233 = vmatpush3.bf16.msra.mxu0 %v20064_v14  ;;  %v17742_v22 = vpop.f32.mrf.mxu1  ;;  %18006 = vmatprep.subr.bf16.mxu1 %v20903_v4 }
 0x393   : > { %18234 = vmatprep.subr.bf16.mxu0 %v20903_v4  ;;  %v3555_v51 = vadd.f32 %v21838_v37, %v22081_v19  ;;  %v20097_v19 = vld [vmem:[%s21072_s13 + $0xaa0] sm:$0xff]   ;;  %v20101_v22 = vld [vmem:[%s21072_s13 + $0x7f8] sm:$0xff]  }
 0x394   : > { %v3436_v23 = vpop.f32.mrf.mxu1 }
 0x395   : > { %v22091_v24 = vadd.f32 %v3436_v23, %v3326_v9  ;;  %18007 = vmatpush3.bf16.msra.mxu1 %v20067_v21  ;;  %v20100_v21 = vld [vmem:[%s21072_s13 + $0xa98] sm:$0xff]   ;;  %v20099_v9 = vld [vmem:[#allocation3 + $0xe8] sm:$0xff]  }
 0x396   : > { %18235 = vmatpush3.bf16.msra.mxu0 %v20066_v20  ;;  %v17743_v27 = vpop.f32.mrf.mxu1  ;;  %18008 = vmatprep.subr.bf16.mxu1 %v20903_v4  ;;  %v20098_v20 = vld [vmem:[%s21072_s13 + $0x740] sm:$0xff]  }
 0x397   : > { %18236 = vmatprep.subr.bf16.mxu0 %v20903_v4  ;;  %v3556_v37 = vadd.f32 %v21845_v40, %v22091_v24  ;;  %v20088_v40 = vld [vmem:[%s21072_s13 + $0xa00] sm:$0xff]   ;;  %v20103_v27 = vld [vmem:[%s21072_s13 + $0x7f0] sm:$0xff]  }
 0x399   : > { %18009 = vmatpush3.bf16.msra.mxu1 %v20069_v26  ;;  %v20102_v26 = vld [vmem:[%s21072_s13 + $0xa90] sm:$0xff]  }
 0x39a   : > { %18237 = vmatpush3.bf16.msra.mxu0 %v20068_v25  ;;  %18010 = vmatprep.subr.bf16.mxu1 %v20903_v4 }
 0x39b   : > { %18238 = vmatprep.subr.bf16.mxu0 %v20903_v4 }
 0x39d   : > { %18011 = vmatpush3.bf16.msra.mxu1 %v20071_v28 }
 0x39e   : > { %18239 = vmatpush3.bf16.msra.mxu0 %v20070_v12  ;;  %18012 = vmatprep.subr.bf16.mxu1 %v20903_v4 }
 0x39f   : > { %18264 = vmatprep.subr.bf16.mxu0 %v20903_v4 }
 0x3a1   : > { %v22105_v35 = vpop.f32.mrf.mxu0  ;;  %18241 = vmatmul.mubr.bf16.vlgmr.msra.gmra.mxu0 %v20072_v33  ;;  %18013 = vmatpush3.bf16.msra.mxu1 %v20074_v31  ;;  %v20104_v31 = vld [vmem:[%s21072_s13 + $0xa88] sm:$0xff]  }
 0x3a2   : > { %18265 = vmatpush3.bf16.msra.mxu0 %v20073_v30  ;;  %18014 = vmatprep.subr.bf16.mxu1 %v20903_v4  ;;  %v20105_v33 = vld [vmem:[%s21072_s13 + $0x7e8] sm:$0xff]  }
 0x3a3   : > { %v18002_v41 = vpop.f32.mrf.mxu0  ;;  %18266 = vmatprep.subr.bf16.mxu0 %v20903_v4  ;;  %18280 = vmatprep.mubr.msk.bf16.mxu0 %vm20904_vm0, %v20903_v4 }
 0x3a4   : > { %v20109_v41 = vld [vmem:[%s21072_s13 + $0xb38] sm:$0xff]  }
 0x3a5   : > { %v22113_v42 = vpop.f32.mrf.mxu0  ;;  %18015 = vmatpush3.bf16.msra.mxu1 %v20076_v39  ;;  %v20107_v39 = vld [vmem:[%s21072_s13 + $0x7e0] sm:$0xff]  }
 0x3a6   : > { %18267 = vmatpush3.bf16.msra.mxu0 %v20075_v38  ;;  %18016 = vmatprep.subr.bf16.mxu1 %v20903_v4 }
 0x3a7   : > { %v18003_v45 = vpop.f32.mrf.mxu0  ;;  %18268 = vmatprep.subr.bf16.mxu0 %v20903_v4 }
 0x3a9   : > { %18017 = vmatpush3.bf16.msra.mxu1 %v20078_v44  ;;  %v20108_v44 = vld [vmem:[#allocation3 + $0x150] sm:$0xff]  }
 0x3aa   : > { %18269 = vmatpush3.bf16.msra.mxu0 %v20077_v43  ;;  %18018 = vmatprep.subr.bf16.mxu1 %v20903_v4  ;;  %v20110_v43 = vld [vmem:[%s21072_s13 + $0x7d8] sm:$0xff]  }
 0x3ab   : > { %18270 = vmatprep.subr.bf16.mxu0 %v20903_v4 }
 0x3ad   : > { %18019 = vmatpush3.bf16.msra.mxu1 %v20080_v47  ;;  %v20112_v47 = vld [vmem:[%s21072_s13 + $0x7d0] sm:$0xff]  }
 0x3ae   : > { %18271 = vmatpush3.bf16.msra.mxu0 %v20079_v46  ;;  %18044 = vmatprep.subr.bf16.mxu1 %v20903_v4  ;;  %v20111_v46 = vld [vmem:[%s21072_s13 + $0xb30] sm:$0xff]  }
 0x3af   : > { %18272 = vmatprep.subr.bf16.mxu0 %v20903_v4 }
 0x3b0   : > { %v3663_v52 = vpop.f32.mrf.mxu1  ;;  %18021 = vmatmul.mubr.bf16.vlgmr.msra.gmra.mxu1 %v20081_v50  ;;  %v20113_v50 = vld [vmem:[%s21072_s13 + $0xb28] sm:$0xff]  }
 0x3b1   : > { %v22129_v53 = vadd.f32 %v3663_v52, %v3555_v51  ;;  %18045 = vmatpush3.bf16.msra.mxu1 %v20083_v49  ;;  %18060 = vmatprep.mubr.msk.bf16.mxu1 %vm20904_vm0, %v20903_v4  ;;  %v20114_v51 = vld [vmem:[%s21072_s13 + $0x7c8] sm:$0xff]  }
 0x3b2   : > { %18273 = vmatpush3.bf16.msra.mxu0 %v20082_v48  ;;  %v17782_v56 = vpop.f32.mrf.mxu1  ;;  %18046 = vmatprep.subr.bf16.mxu1 %v20903_v4 }
 0x3b3   : > { %18274 = vmatprep.subr.bf16.mxu0 %v20903_v4  ;;  %v3785_v23 = vadd.f32 %v21884_v1, %v22129_v53  ;;  %v20115_v53 = vld [vmem:[%s21072_s13 + $0xb20] sm:$0xff]   ;;  %v20119_v56 = vld [vmem:[%s21072_s13 + $0x878] sm:$0xff]  }
 0x3b4   : > { %v3666_v57 = vpop.f32.mrf.mxu1 }
 0x3b5   : > { %v22139_v58 = vadd.f32 %v3666_v57, %v3556_v37  ;;  %18047 = vmatpush3.bf16.msra.mxu1 %v20085_v55  ;;  %v20118_v55 = vld [vmem:[%s21072_s13 + $0xb18] sm:$0xff]   ;;  %v20117_v37 = vld [vmem:[#allocation3 + $0xf8] sm:$0xff]  }
 0x3b6   : > { %18275 = vmatpush3.bf16.msra.mxu0 %v20084_v54  ;;  %v17783_v63 = vpop.f32.mrf.mxu1  ;;  %18048 = vmatprep.subr.bf16.mxu1 %v20903_v4  ;;  %v20116_v54 = vld [vmem:[%s21072_s13 + $0x7c0] sm:$0xff]  }
 0x3b7   : > { %18276 = vmatprep.subr.bf16.mxu0 %v20903_v4  ;;  %v3786_v1 = vadd.f32 %v21892_v6, %v22139_v58  ;;  %v20106_v6 = vld [vmem:[%s21072_s13 + $0xa80] sm:$0xff]   ;;  %v20121_v63 = vld [vmem:[%s21072_s13 + $0x870] sm:$0xff]  }
 0x3b9   : > { %18049 = vmatpush3.bf16.msra.mxu1 %v20087_v61  ;;  %v20120_v61 = vld [vmem:[%s21072_s13 + $0xb10] sm:$0xff]  }
 0x3ba   : > { %18277 = vmatpush3.bf16.msra.mxu0 %v20086_v59  ;;  %18050 = vmatprep.subr.bf16.mxu1 %v20903_v4 }
 0x3bb   : > { %18278 = vmatprep.subr.bf16.mxu0 %v20903_v4 }
 0x3bd   : > { %18051 = vmatpush3.bf16.msra.mxu1 %v20089_v2 }
 0x3be   : > { %18279 = vmatpush3.bf16.msra.mxu0 %v20088_v40  ;;  %18052 = vmatprep.subr.bf16.mxu1 %v20903_v4 }
 0x3bf   : > { %18304 = vmatprep.subr.bf16.mxu0 %v20903_v4 }
 0x3c1   : > { %v22153_v10 = vpop.f32.mrf.mxu0  ;;  %18281 = vmatmul.mubr.bf16.vlgmr.msra.gmra.mxu0 %v20090_v8  ;;  %18053 = vmatpush3.bf16.msra.mxu1 %v20092_v7  ;;  %v20122_v7 = vld [vmem:[%s21072_s13 + $0xb08] sm:$0xff]  }
 0x3c2   : > { %18305 = vmatpush3.bf16.msra.mxu0 %v20091_v3  ;;  %18054 = vmatprep.subr.bf16.mxu1 %v20903_v4  ;;  %v20123_v8 = vld [vmem:[%s21072_s13 + $0x868] sm:$0xff]  }
 0x3c3   : > { %v18042_v14 = vpop.f32.mrf.mxu0  ;;  %18306 = vmatprep.subr.bf16.mxu0 %v20903_v4  ;;  %18320 = vmatprep.mubr.msk.bf16.mxu0 %vm20904_vm0, %v20903_v4 }
 0x3c4   : > { %v20127_v14 = vld [vmem:[%s21072_s13 + $0xbb8] sm:$0xff]  }
 0x3c5   : > { %v22161_v15 = vpop.f32.mrf.mxu0  ;;  %18055 = vmatpush3.bf16.msra.mxu1 %v20094_v13  ;;  %v20125_v13 = vld [vmem:[%s21072_s13 + $0x860] sm:$0xff]  }
 0x3c6   : > { %18307 = vmatpush3.bf16.msra.mxu0 %v20093_v11  ;;  %18056 = vmatprep.subr.bf16.mxu1 %v20903_v4 }
 0x3c7   : > { %v18043_v18 = vpop.f32.mrf.mxu0  ;;  %18308 = vmatprep.subr.bf16.mxu0 %v20903_v4 }
 0x3c9   : > { %18057 = vmatpush3.bf16.msra.mxu1 %v20096_v17  ;;  %v20126_v17 = vld [vmem:[#allocation3 + $0x160] sm:$0xff]  }
 0x3ca   : > { %18309 = vmatpush3.bf16.msra.mxu0 %v20095_v16  ;;  %18058 = vmatprep.subr.bf16.mxu1 %v20903_v4  ;;  %v20128_v16 = vld [vmem:[%s21072_s13 + $0x858] sm:$0xff]  }
 0x3cb   : > { %18310 = vmatprep.subr.bf16.mxu0 %v20903_v4 }
 0x3cd   : > { %18059 = vmatpush3.bf16.msra.mxu1 %v20098_v20  ;;  %v20130_v20 = vld [vmem:[%s21072_s13 + $0x850] sm:$0xff]  }
 0x3ce   : > { %18311 = vmatpush3.bf16.msra.mxu0 %v20097_v19  ;;  %18084 = vmatprep.subr.bf16.mxu1 %v20903_v4  ;;  %v20129_v19 = vld [vmem:[%s21072_s13 + $0xbb0] sm:$0xff]  }
 0x3cf   : > { %18312 = vmatprep.subr.bf16.mxu0 %v20903_v4 }
 0x3d0   : > { %v3893_v24 = vpop.f32.mrf.mxu1  ;;  %18061 = vmatmul.mubr.bf16.vlgmr.msra.gmra.mxu1 %v20099_v9  ;;  %v20131_v9 = vld [vmem:[%s21072_s13 + $0xba8] sm:$0xff]  }
 0x3d1   : > { %v22177_v25 = vadd.f32 %v3893_v24, %v3785_v23  ;;  %18085 = vmatpush3.bf16.msra.mxu1 %v20101_v22  ;;  %18100 = vmatprep.mubr.msk.bf16.mxu1 %vm20904_vm0, %v20903_v4  ;;  %v20132_v23 = vld [vmem:[%s21072_s13 + $0x848] sm:$0xff]  }
 0x3d2   : > { %18313 = vmatpush3.bf16.msra.mxu0 %v20100_v21  ;;  %v17822_v12 = vpop.f32.mrf.mxu1  ;;  %18086 = vmatprep.subr.bf16.mxu1 %v20903_v4 }
 0x3d3   : > { %18314 = vmatprep.subr.bf16.mxu0 %v20903_v4  ;;  %v4015_v57 = vadd.f32 %v21930_v32, %v22177_v25  ;;  %v20133_v25 = vld [vmem:[%s21072_s13 + $0xba0] sm:$0xff]   ;;  %v20137_v12 = vld [vmem:[%s21072_s13 + $0x8f8] sm:$0xff]  }
 0x3d4   : > { %v3896_v28 = vpop.f32.mrf.mxu1 }
 0x3d5   : > { %v22187_v30 = vadd.f32 %v3896_v28, %v3786_v1  ;;  %18087 = vmatpush3.bf16.msra.mxu1 %v20103_v27  ;;  %v20136_v27 = vld [vmem:[%s21072_s13 + $0xb98] sm:$0xff]   ;;  %v20135_v1 = vld [vmem:[#allocation3 + $0x108] sm:$0xff]  }
 0x3d6   : > { %18315 = vmatpush3.bf16.msra.mxu0 %v20102_v26  ;;  %v17823_v38 = vpop.f32.mrf.mxu1  ;;  %18088 = vmatprep.subr.bf16.mxu1 %v20903_v4  ;;  %v20134_v26 = vld [vmem:[%s21072_s13 + $0x840] sm:$0xff]  }
 0x3d7   : > { %18316 = vmatprep.subr.bf16.mxu0 %v20903_v4  ;;  %v4016_v32 = vadd.f32 %v21938_v36, %v22187_v30  ;;  %v20124_v36 = vld [vmem:[%s21072_s13 + $0xb00] sm:$0xff]   ;;  %v20139_v38 = vld [vmem:[%s21072_s13 + $0x8f0] sm:$0xff]  }
 0x3d9   : > { %18089 = vmatpush3.bf16.msra.mxu1 %v20105_v33  ;;  %v20138_v33 = vld [vmem:[%s21072_s13 + $0xb90] sm:$0xff]  }
 0x3da   : > { %18317 = vmatpush3.bf16.msra.mxu0 %v20104_v31  ;;  %18090 = vmatprep.subr.bf16.mxu1 %v20903_v4 }
 0x3db   : > { %18318 = vmatprep.subr.bf16.mxu0 %v20903_v4 }
 0x3dd   : > { %18091 = vmatpush3.bf16.msra.mxu1 %v20107_v39 }
 0x3de   : > { %18319 = vmatpush3.bf16.msra.mxu0 %v20106_v6  ;;  %18092 = vmatprep.subr.bf16.mxu1 %v20903_v4 }
 0x3df   : > { %18344 = vmatprep.subr.bf16.mxu0 %v20903_v4 }
 0x3e1   : > { %v22201_v45 = vpop.f32.mrf.mxu0  ;;  %18321 = vmatmul.mubr.bf16.vlgmr.msra.gmra.mxu0 %v20108_v44  ;;  %18093 = vmatpush3.bf16.msra.mxu1 %v20110_v43  ;;  %v20140_v43 = vld [vmem:[%s21072_s13 + $0xb88] sm:$0xff]  }
 0x3e2   : > { %18345 = vmatpush3.bf16.msra.mxu0 %v20109_v41  ;;  %18094 = vmatprep.subr.bf16.mxu1 %v20903_v4  ;;  %v20141_v44 = vld [vmem:[%s21072_s13 + $0x8e8] sm:$0xff]  }
 0x3e3   : > { %v18082_v48 = vpop.f32.mrf.mxu0  ;;  %18346 = vmatprep.subr.bf16.mxu0 %v20903_v4  ;;  %18360 = vmatprep.mubr.msk.bf16.mxu0 %vm20904_vm0, %v20903_v4 }
 0x3e4   : > { %v20145_v48 = vld [vmem:[%s21072_s13 + $0xc38] sm:$0xff]  }
 0x3e5   : > { %v22209_v49 = vpop.f32.mrf.mxu0  ;;  %18095 = vmatpush3.bf16.msra.mxu1 %v20112_v47  ;;  %v20143_v47 = vld [vmem:[%s21072_s13 + $0x8e0] sm:$0xff]  }
 0x3e6   : > { %18347 = vmatpush3.bf16.msra.mxu0 %v20111_v46  ;;  %18096 = vmatprep.subr.bf16.mxu1 %v20903_v4 }
 0x3e7   : > { %v18083_v52 = vpop.f32.mrf.mxu0  ;;  %18348 = vmatprep.subr.bf16.mxu0 %v20903_v4 }
 0x3e9   : > { %18097 = vmatpush3.bf16.msra.mxu1 %v20114_v51  ;;  %v20144_v51 = vld [vmem:[#allocation3 + $0x170] sm:$0xff]  }
 0x3ea   : > { %18349 = vmatpush3.bf16.msra.mxu0 %v20113_v50  ;;  %18098 = vmatprep.subr.bf16.mxu1 %v20903_v4  ;;  %v20146_v50 = vld [vmem:[%s21072_s13 + $0x8d8] sm:$0xff]  }
 0x3eb   : > { %18350 = vmatprep.subr.bf16.mxu0 %v20903_v4 }
 0x3ed   : > { %18099 = vmatpush3.bf16.msra.mxu1 %v20116_v54  ;;  %v20148_v54 = vld [vmem:[%s21072_s13 + $0x8d0] sm:$0xff]  }
 0x3ee   : > { %18351 = vmatpush3.bf16.msra.mxu0 %v20115_v53  ;;  %18124 = vmatprep.subr.bf16.mxu1 %v20903_v4  ;;  %v20147_v53 = vld [vmem:[%s21072_s13 + $0xc30] sm:$0xff]  }
 0x3ef   : > { %18352 = vmatprep.subr.bf16.mxu0 %v20903_v4 }
 0x3f0   : > { %v4123_v58 = vpop.f32.mrf.mxu1  ;;  %18101 = vmatmul.mubr.bf16.vlgmr.msra.gmra.mxu1 %v20117_v37  ;;  %v20149_v37 = vld [vmem:[%s21072_s13 + $0xc28] sm:$0xff]  }
 0x3f1   : > { %v22225_v59 = vadd.f32 %v4123_v58, %v4015_v57  ;;  %18125 = vmatpush3.bf16.msra.mxu1 %v20119_v56  ;;  %18140 = vmatprep.mubr.msk.bf16.mxu1 %vm20904_vm0, %v20903_v4  ;;  %v20150_v57 = vld [vmem:[%s21072_s13 + $0x8c8] sm:$0xff]  }
 0x3f2   : > { %18353 = vmatpush3.bf16.msra.mxu0 %v20118_v55  ;;  %v17862_v40 = vpop.f32.mrf.mxu1  ;;  %18126 = vmatprep.subr.bf16.mxu1 %v20903_v4 }
 0x3f3   : > { %18354 = vmatprep.subr.bf16.mxu0 %v20903_v4  ;;  %v4245_v28 = vadd.f32 %v21970_v60, %v22225_v59  ;;  %v20151_v59 = vld [vmem:[%s21072_s13 + $0xc20] sm:$0xff]   ;;  %v20155_v40 = vld [vmem:[%s21072_s13 + $0x978] sm:$0xff]  }
 0x3f4   : > { %v4126_v2 = vpop.f32.mrf.mxu1 }
 0x3f5   : > { %v22235_v3 = vadd.f32 %v4126_v2, %v4016_v32  ;;  %18127 = vmatpush3.bf16.msra.mxu1 %v20121_v63  ;;  %v20154_v63 = vld [vmem:[%s21072_s13 + $0xc18] sm:$0xff]   ;;  %v20153_v32 = vld [vmem:[#allocation3 + $0x118] sm:$0xff]  }
 0x3f6   : > { %18355 = vmatpush3.bf16.msra.mxu0 %v20120_v61  ;;  %v17863_v11 = vpop.f32.mrf.mxu1  ;;  %18128 = vmatprep.subr.bf16.mxu1 %v20903_v4  ;;  %v20152_v61 = vld [vmem:[%s21072_s13 + $0x8c0] sm:$0xff]  }
 0x3f7   : > { %18356 = vmatprep.subr.bf16.mxu0 %v20903_v4  ;;  %v4246_v60 = vadd.f32 %v21978_v0, %v22235_v3  ;;  %v20142_v0 = vld [vmem:[%s21072_s13 + $0xb80] sm:$0xff]   ;;  %v20157_v11 = vld [vmem:[%s21072_s13 + $0x970] sm:$0xff]  }
 0x3f9   : > { %18129 = vmatpush3.bf16.msra.mxu1 %v20123_v8  ;;  %v20156_v8 = vld [vmem:[%s21072_s13 + $0xc10] sm:$0xff]  }
 0x3fa   : > { %18357 = vmatpush3.bf16.msra.mxu0 %v20122_v7  ;;  %18130 = vmatprep.subr.bf16.mxu1 %v20903_v4 }
 0x3fb   : > { %18358 = vmatprep.subr.bf16.mxu0 %v20903_v4 }
 0x3fd   : > { %18131 = vmatpush3.bf16.msra.mxu1 %v20125_v13 }
 0x3fe   : > { %18359 = vmatpush3.bf16.msra.mxu0 %v20124_v36  ;;  %18132 = vmatprep.subr.bf16.mxu1 %v20903_v4 }
 0x3ff   : > { %18384 = vmatprep.subr.bf16.mxu0 %v20903_v4 }
 0x401   : > { %v22249_v18 = vpop.f32.mrf.mxu0  ;;  %18361 = vmatmul.mubr.bf16.vlgmr.msra.gmra.mxu0 %v20126_v17  ;;  %18133 = vmatpush3.bf16.msra.mxu1 %v20128_v16  ;;  %v20158_v16 = vld [vmem:[%s21072_s13 + $0xc08] sm:$0xff]  }
 0x402   : > { %18385 = vmatpush3.bf16.msra.mxu0 %v20127_v14  ;;  %18134 = vmatprep.subr.bf16.mxu1 %v20903_v4  ;;  %v20159_v17 = vld [vmem:[%s21072_s13 + $0x968] sm:$0xff]  }
 0x403   : > { %v18122_v21 = vpop.f32.mrf.mxu0  ;;  %18386 = vmatprep.subr.bf16.mxu0 %v20903_v4  ;;  %18400 = vmatprep.mubr.msk.bf16.mxu0 %vm20904_vm0, %v20903_v4 }
 0x404   : > { %v20163_v21 = vld [vmem:[%s21072_s13 + $0x958] sm:$0xff]  }
 0x405   : > { %v22257_v22 = vpop.f32.mrf.mxu0  ;;  %18135 = vmatpush3.bf16.msra.mxu1 %v20130_v20  ;;  %v20160_v20 = vld [vmem:[%s21072_s13 + $0xc00] sm:$0xff]  }
 0x406   : > { %18387 = vmatpush3.bf16.msra.mxu0 %v20129_v19  ;;  %18136 = vmatprep.subr.bf16.mxu1 %v20903_v4 }
 0x407   : > { %v18123_v24 = vpop.f32.mrf.mxu0  ;;  %18388 = vmatprep.subr.bf16.mxu0 %v20903_v4 }
 0x408   : > { %v20164_v24 = vld [vmem:[%s21072_s13 + $0x950] sm:$0xff]  }
 0x409   : > { %18137 = vmatpush3.bf16.msra.mxu1 %v20132_v23 }
 0x40a   : > { %18389 = vmatpush3.bf16.msra.mxu0 %v20131_v9  ;;  %18138 = vmatprep.subr.bf16.mxu1 %v20903_v4  ;;  %v20162_v9 = vld [vmem:[#allocation3 + $0x180] sm:$0xff]  }
 0x40b   : > { %18390 = vmatprep.subr.bf16.mxu0 %v20903_v4 }
 0x40d   : > { %18139 = vmatpush3.bf16.msra.mxu1 %v20134_v26 }
 0x40e   : > { %18391 = vmatpush3.bf16.msra.mxu0 %v20133_v25  ;;  %18164 = vmatprep.subr.bf16.mxu1 %v20903_v4 }
 0x40f   : > { %18392 = vmatprep.subr.bf16.mxu0 %v20903_v4 }
 0x410   : > { %v4353_v30 = vpop.f32.mrf.mxu1  ;;  %18141 = vmatmul.mubr.bf16.vlgmr.msra.gmra.mxu1 %v20135_v1  ;;  %v20166_v1 = vld [vmem:[%s21072_s13 + $0x940] sm:$0xff]  }
 0x411   : > { %v22273_v31 = vadd.f32 %v4353_v30, %v4245_v28  ;;  %18165 = vmatpush3.bf16.msra.mxu1 %v20137_v12  ;;  %18180 = vmatprep.mubr.msk.bf16.mxu1 %vm20904_vm0, %v20903_v4  ;;  %v20168_v28 = vld [vmem:[%s21072_s13 + $0x9f8] sm:$0xff]   ;;  %v20167_v30 = vld [vmem:[#allocation3 + $0x128] sm:$0xff]  }
 0x412   : > { %18393 = vmatpush3.bf16.msra.mxu0 %v20136_v27  ;;  %v17902_v6 = vpop.f32.mrf.mxu1  ;;  %18166 = vmatprep.subr.bf16.mxu1 %v20903_v4  ;;  %v20165_v27 = vld [vmem:[%s21072_s13 + $0x948] sm:$0xff]  }
 0x413   : > { %18394 = vmatprep.subr.bf16.mxu0 %v20903_v4  ;;  %v4475_v2 = vadd.f32 %v22014_v29, %v22273_v31  ;;  %v20169_v6 = vld [vmem:[%s21072_s13 + $0x9f0] sm:$0xff]  }
 0x414   : > { %v4356_v39 = vpop.f32.mrf.mxu1 }
 0x415   : > { %v22283_v41 = vadd.f32 %v4356_v39, %v4246_v60  ;;  %18167 = vmatpush3.bf16.msra.mxu1 %v20139_v38 }
 0x416   : > { %18395 = vmatpush3.bf16.msra.mxu0 %v20138_v33  ;;  %v17903_v46 = vpop.f32.mrf.mxu1  ;;  %18168 = vmatprep.subr.bf16.mxu1 %v20903_v4 }
 0x417   : > { %18396 = vmatprep.subr.bf16.mxu0 %v20903_v4  ;;  %v4476_v13 = vadd.f32 %v22022_v34, %v22283_v41  ;;  %v20161_v34 = vld [vmem:[%s21072_s13 + $0x960] sm:$0xff]  }
 0x418   : > { %v20171_v46 = vld [vmem:[%s21072_s13 + $0x9e0] sm:$0xff]  }
 0x419   : > { %18169 = vmatpush3.bf16.msra.mxu1 %v20141_v44 }
 0x41a   : > { %18397 = vmatpush3.bf16.msra.mxu0 %v20140_v43  ;;  %18170 = vmatprep.subr.bf16.mxu1 %v20903_v4 }
 0x41b   : > { %18398 = vmatprep.subr.bf16.mxu0 %v20903_v4 }
 0x41d   : > { %18171 = vmatpush3.bf16.msra.mxu1 %v20143_v47 }
 0x41e   : > { %18399 = vmatpush3.bf16.msra.mxu0 %v20142_v0  ;;  %18172 = vmatprep.subr.bf16.mxu1 %v20903_v4  ;;  %v20172_v0 = vld [vmem:[%s21072_s13 + $0x9d8] sm:$0xff]  }
 0x41f   : > { %18424 = vmatprep.subr.bf16.mxu0 %v20903_v4 }
 0x421   : > { %v22297_v52 = vpop.f32.mrf.mxu0  ;;  %18401 = vmatmul.mubr.bf16.vlgmr.msra.gmra.mxu0 %v20144_v51  ;;  %18173 = vmatpush3.bf16.msra.mxu1 %v20146_v50  ;;  %v20174_v51 = vld [vmem:[%s21072_s13 + $0x9c8] sm:$0xff]  }
 0x422   : > { %18425 = vmatpush3.bf16.msra.mxu0 %v20145_v48  ;;  %18174 = vmatprep.subr.bf16.mxu1 %v20903_v4 }
 0x423   : > { %v18162_v55 = vpop.f32.mrf.mxu0  ;;  %18426 = vmatprep.subr.bf16.mxu0 %v20903_v4  ;;  %18440 = vmatprep.mubr.msk.bf16.mxu0 %vm20904_vm0, %v20903_v4 }
 0x424   : > { %v20177_v55 = vld [vmem:[%s21072_s13 + $0xa78] sm:$0xff]  }
 0x425   : > { %v22305_v56 = vpop.f32.mrf.mxu0  ;;  %18175 = vmatpush3.bf16.msra.mxu1 %v20148_v54  ;;  %v20175_v54 = vld [vmem:[%s21072_s13 + $0x9c0] sm:$0xff]  }
 0x426   : > { %18427 = vmatpush3.bf16.msra.mxu0 %v20147_v53  ;;  %18176 = vmatprep.subr.bf16.mxu1 %v20903_v4 }
 0x427   : > { %v18163_v58 = vpop.f32.mrf.mxu0  ;;  %18428 = vmatprep.subr.bf16.mxu0 %v20903_v4 }
 0x429   : > { %18177 = vmatpush3.bf16.msra.mxu1 %v20150_v57 }
 0x42a   : > { %18429 = vmatpush3.bf16.msra.mxu0 %v20149_v37  ;;  %18178 = vmatprep.subr.bf16.mxu1 %v20903_v4  ;;  %v20176_v37 = vld [vmem:[#allocation3 + $0x138] sm:$0xff]  }
 0x42b   : > { %18430 = vmatprep.subr.bf16.mxu0 %v20903_v4 }
 0x42d   : > { %18179 = vmatpush3.bf16.msra.mxu1 %v20152_v61  ;;  %v20178_v61 = vld [vmem:[%s21072_s13 + $0xa70] sm:$0xff]  }
 0x42e   : > { %18431 = vmatpush3.bf16.msra.mxu0 %v20151_v59  ;;  %18204 = vmatprep.subr.bf16.mxu1 %v20903_v4 }
 0x42f   : > { %18432 = vmatprep.subr.bf16.mxu0 %v20903_v4 }
 0x430   : > { %v4583_v3 = vpop.f32.mrf.mxu1  ;;  %18181 = vmatmul.mubr.bf16.vlgmr.msra.gmra.mxu1 %v20153_v32 }
 0x431   : > { %v4590_v7 = vadd.f32 %v4583_v3, %v4475_v2  ;;  %18205 = vmatpush3.bf16.msra.mxu1 %v20155_v40  ;;  %18220 = vmatprep.mubr.msk.bf16.mxu1 %vm20904_vm0, %v20903_v4 }
 0x432   : > { %18433 = vmatpush3.bf16.msra.mxu0 %v20154_v63  ;;  %v17942_v36 = vpop.f32.mrf.mxu1  ;;  %18206 = vmatprep.subr.bf16.mxu1 %v20903_v4 }
 0x433   : > { %18434 = vmatprep.subr.bf16.mxu0 %v20903_v4  ;;  %v4705_v31 = vadd.f32 %v22058_v62, %v4590_v7  ;;  %v20170_v62 = vld [vmem:[%s21072_s13 + $0x9e8] sm:$0xff]   ;;  %v20180_v7 = vld [vmem:[%s21072_s13 + $0xa60] sm:$0xff]  }
 0x434   : > { %v4586_v29 = vpop.f32.mrf.mxu1 }
 0x435   : > { %v4591_v14 = vadd.f32 %v4586_v29, %v4476_v13  ;;  %18207 = vmatpush3.bf16.msra.mxu1 %v20157_v11  ;;  %v20183_v29 = vld [vmem:[%s21072_s13 + $0xa48] sm:$0xff]  }
 0x436   : > { %18435 = vmatpush3.bf16.msra.mxu0 %v20156_v8  ;;  %v17943_v19 = vpop.f32.mrf.mxu1  ;;  %18208 = vmatprep.subr.bf16.mxu1 %v20903_v4  ;;  %v20181_v8 = vld [vmem:[%s21072_s13 + $0xa58] sm:$0xff]  }
 0x437   : > { %18436 = vmatprep.subr.bf16.mxu0 %v20903_v4  ;;  %v4706_v39 = vadd.f32 %v22066_v5, %v4591_v14  ;;  %v20173_v5 = vld [vmem:[%s21072_s13 + $0x9d0] sm:$0xff]   ;;  %v20185_v19 = vld [vmem:[#allocation3 + $0x148] sm:$0xff]  }
 0x439   : > { %18209 = vmatpush3.bf16.msra.mxu1 %v20159_v17  ;;  %v20186_v17 = vld [vmem:[%s21072_s13 + $0xaf8] sm:$0xff]  }
 0x43a   : > { %18437 = vmatpush3.bf16.msra.mxu0 %v20158_v16  ;;  %18210 = vmatprep.subr.bf16.mxu1 %v20903_v4  ;;  %v20184_v16 = vld [vmem:[%s21072_s13 + $0xa40] sm:$0xff]  }
 0x43b   : > { %18438 = vmatprep.subr.bf16.mxu0 %v20903_v4 }
 0x43d   : > { %18211 = vmatpush3.bf16.msra.mxu1 %v20161_v34 }
 0x43e   : > { %18439 = vmatpush3.bf16.msra.mxu0 %v20160_v20  ;;  %18212 = vmatprep.subr.bf16.mxu1 %v20903_v4 }
 0x43f   : > { %18642 = vmatprep.subr.bf16.mxu0 %v20903_v4 }
 0x441   : > { %v22340_v23 = vpop.f32.mrf.mxu0  ;;  %18441 = vmatmul.mubr.bf16.vlgmr.msra.gmra.mxu0 %v20162_v9  ;;  %18213 = vmatpush3.bf16.msra.mxu1 %v20163_v21  ;;  %v20187_v9 = vld [vmem:[%s21072_s13 + $0xaf0] sm:$0xff]  }
 0x442   : > { %18658 = vmatprep.mubr.msk.bf16.mxu0 %vm20904_vm0, %v20903_v4  ;;  %18214 = vmatprep.subr.bf16.mxu1 %v20903_v4 }
 0x443   : > { %v18202_v25 = vpop.f32.mrf.mxu0 }
 0x445   : > { %v22346_v26 = vpop.f32.mrf.mxu0  ;;  %18215 = vmatpush3.bf16.msra.mxu1 %v20164_v24 }
 0x446   : > { %18216 = vmatprep.subr.bf16.mxu1 %v20903_v4 }
 0x447   : > { %v18203_v12 = vpop.f32.mrf.mxu0 }
 0x449   : > { %18217 = vmatpush3.bf16.msra.mxu1 %v20165_v27 }
 0x44a   : > { %18218 = vmatprep.subr.bf16.mxu1 %v20903_v4 }
 0x44d   : > { %18219 = vmatpush3.bf16.msra.mxu1 %v20166_v1 }
 0x44e   : > { %18244 = vmatprep.subr.bf16.mxu1 %v20903_v4 }
 0x450   : > { %v4813_v33 = vpop.f32.mrf.mxu1  ;;  %18221 = vmatmul.mubr.bf16.vlgmr.msra.gmra.mxu1 %v20167_v30  ;;  %v20190_v30 = vld [vmem:[%s21072_s13 + $0xad8] sm:$0xff]  }
 0x451   : > { %v4820_v38 = vadd.f32 %v4813_v33, %v4705_v31  ;;  %18245 = vmatpush3.bf16.msra.mxu1 %v20168_v28  ;;  %18260 = vmatprep.mubr.msk.bf16.mxu1 %vm20904_vm0, %v20903_v4  ;;  %v20189_v28 = vld [vmem:[%s21072_s13 + $0xae0] sm:$0xff]  }
 0x452   : > { %v17982_v60 = vpop.f32.mrf.mxu1  ;;  %18246 = vmatprep.subr.bf16.mxu1 %v20903_v4 }
 0x453   : > { %v4935_v57 = vadd.f32 %v22105_v35, %v4820_v38  ;;  %v20179_v35 = vld [vmem:[%s21072_s13 + $0xa68] sm:$0xff]  }
 0x454   : > { %v4816_v41 = vpop.f32.mrf.mxu1 }
 0x455   : > { %v4821_v43 = vadd.f32 %v4816_v41, %v4706_v39  ;;  %18247 = vmatpush3.bf16.msra.mxu1 %v20169_v6  ;;  %v20192_v6 = vld [vmem:[%s21072_s13 + $0xac8] sm:$0xff]   ;;  %v20193_v39 = vld [vmem:[%s21072_s13 + $0xac0] sm:$0xff]   ;;  %v20195_v41 = vld [vmem:[%s21072_s13 + $0xb78] sm:$0xff]  }
 0x456   : > { %v17983_v44 = vpop.f32.mrf.mxu1  ;;  %18248 = vmatprep.subr.bf16.mxu1 %v20903_v4 }
 0x457   : > { %v4936_v40 = vadd.f32 %v22113_v42, %v4821_v43  ;;  %v20182_v42 = vld [vmem:[%s21072_s13 + $0xa50] sm:$0xff]  }
 0x458   : > { %v20194_v43 = vld [vmem:[#allocation3 + $0x158] sm:$0xff]  }
 0x459   : > { %18249 = vmatpush3.bf16.msra.mxu1 %v20170_v62 }
 0x45a   : > { %18250 = vmatprep.subr.bf16.mxu1 %v20903_v4 }
 0x45d   : > { %18251 = vmatpush3.bf16.msra.mxu1 %v20171_v46 }
 0x45e   : > { %18252 = vmatprep.subr.bf16.mxu1 %v20903_v4 }
 0x461   : > { %v22366_v47 = vpop.f32.mrf.mxu0  ;;  %18253 = vmatpush3.bf16.msra.mxu1 %v20172_v0  ;;  %v20196_v0 = vld [vmem:[%s21072_s13 + $0xb70] sm:$0xff]  }
 0x462   : > { %18254 = vmatprep.subr.bf16.mxu1 %v20903_v4 }
 0x463   : > { %v18242_v48 = vpop.f32.mrf.mxu0 }
 0x465   : > { %v22370_v50 = vpop.f32.mrf.mxu0  ;;  %18255 = vmatpush3.bf16.msra.mxu1 %v20173_v5 }
 0x466   : > { %18256 = vmatprep.subr.bf16.mxu1 %v20903_v4 }
 0x467   : > { %v18243_v53 = vpop.f32.mrf.mxu0 }
 0x469   : > { %18257 = vmatpush3.bf16.msra.mxu1 %v20174_v51 }
 0x46a   : > { %18258 = vmatprep.subr.bf16.mxu1 %v20903_v4 }
 0x46d   : > { %18259 = vmatpush3.bf16.msra.mxu1 %v20175_v54 }
 0x46e   : > { %18284 = vmatprep.subr.bf16.mxu1 %v20903_v4 }
 0x470   : > { %v5043_v58 = vpop.f32.mrf.mxu1  ;;  %18261 = vmatmul.mubr.bf16.vlgmr.msra.gmra.mxu1 %v20176_v37  ;;  %v20199_v37 = vld [vmem:[%s21072_s13 + $0xb58] sm:$0xff]  }
 0x471   : > { %v5050_v59 = vadd.f32 %v5043_v58, %v4935_v57  ;;  %18285 = vmatpush3.bf16.msra.mxu1 %v20177_v55  ;;  %18300 = vmatprep.mubr.msk.bf16.mxu1 %vm20904_vm0, %v20903_v4  ;;  %v20198_v55 = vld [vmem:[%s21072_s13 + $0xb60] sm:$0xff]  }
 0x472   : > { %v18022_v63 = vpop.f32.mrf.mxu1  ;;  %18286 = vmatprep.subr.bf16.mxu1 %v20903_v4 }
 0x473   : > { %v5165_v20 = vadd.f32 %v22153_v10, %v5050_v59  ;;  %v20188_v10 = vld [vmem:[%s21072_s13 + $0xae8] sm:$0xff]  }
 0x474   : > { %v5046_v32 = vpop.f32.mrf.mxu1 }
 0x475   : > { %v5051_v2 = vadd.f32 %v5046_v32, %v4936_v40  ;;  %18287 = vmatpush3.bf16.msra.mxu1 %v20178_v61  ;;  %v20201_v61 = vld [vmem:[%s21072_s13 + $0xb48] sm:$0xff]   ;;  %v20202_v40 = vld [vmem:[%s21072_s13 + $0xb40] sm:$0xff]   ;;  %v20204_v32 = vld [vmem:[%s21072_s13 + $0xbf8] sm:$0xff]  }
 0x476   : > { %v18023_v3 = vpop.f32.mrf.mxu1  ;;  %18288 = vmatprep.subr.bf16.mxu1 %v20903_v4 }
 0x477   : > { %v5166_v25 = vadd.f32 %v22161_v15, %v5051_v2  ;;  %v20191_v15 = vld [vmem:[%s21072_s13 + $0xad0] sm:$0xff]   ;;  %v20203_v2 = vld [vmem:[#allocation3 + $0x168] sm:$0xff]  }
 0x479   : > { %18289 = vmatpush3.bf16.msra.mxu1 %v20179_v35 }
 0x47a   : > { %18290 = vmatprep.subr.bf16.mxu1 %v20903_v4 }
 0x47d   : > { %18291 = vmatpush3.bf16.msra.mxu1 %v20180_v7 }
 0x47e   : > { %18292 = vmatprep.subr.bf16.mxu1 %v20903_v4 }
 0x481   : > { %v22390_v11 = vpop.f32.mrf.mxu0  ;;  %18293 = vmatpush3.bf16.msra.mxu1 %v20181_v8  ;;  %v20205_v8 = vld [vmem:[%s21072_s13 + $0xbf0] sm:$0xff]  }
 0x482   : > { %18294 = vmatprep.subr.bf16.mxu1 %v20903_v4 }
 0x483   : > { %v18282_v36 = vpop.f32.mrf.mxu0 }
 0x485   : > { %v22394_v13 = vpop.f32.mrf.mxu0  ;;  %18295 = vmatpush3.bf16.msra.mxu1 %v20182_v42 }
 0x486   : > { %18296 = vmatprep.subr.bf16.mxu1 %v20903_v4 }
 0x487   : > { %v18283_v14 = vpop.f32.mrf.mxu0 }
 0x489   : > { %18297 = vmatpush3.bf16.msra.mxu1 %v20183_v29 }
 0x48a   : > { %18298 = vmatprep.subr.bf16.mxu1 %v20903_v4 }
 0x48d   : > { %18299 = vmatpush3.bf16.msra.mxu1 %v20184_v16 }
 0x48e   : > { %18324 = vmatprep.subr.bf16.mxu1 %v20903_v4 }
 0x490   : > { %v5273_v34 = vpop.f32.mrf.mxu1  ;;  %18301 = vmatmul.mubr.bf16.vlgmr.msra.gmra.mxu1 %v20185_v19  ;;  %v20208_v19 = vld [vmem:[%s21072_s13 + $0xbd8] sm:$0xff]  }
 0x491   : > { %v5280_v21 = vadd.f32 %v5273_v34, %v5165_v20  ;;  %18325 = vmatpush3.bf16.msra.mxu1 %v20186_v17  ;;  %18340 = vmatprep.mubr.msk.bf16.mxu1 %vm20904_vm0, %v20903_v4  ;;  %v20207_v17 = vld [vmem:[%s21072_s13 + $0xbe0] sm:$0xff]  }
 0x492   : > { %v18062_v24 = vpop.f32.mrf.mxu1  ;;  %18326 = vmatprep.subr.bf16.mxu1 %v20903_v4 }
 0x493   : > { %v5395_v62 = vadd.f32 %v22201_v45, %v5280_v21  ;;  %v20197_v45 = vld [vmem:[%s21072_s13 + $0xb68] sm:$0xff]  }
 0x494   : > { %v5276_v27 = vpop.f32.mrf.mxu1 }
 0x495   : > { %v5281_v12 = vadd.f32 %v5276_v27, %v5166_v25  ;;  %18327 = vmatpush3.bf16.msra.mxu1 %v20187_v9  ;;  %v20210_v9 = vld [vmem:[%s21072_s13 + $0xbc8] sm:$0xff]   ;;  %v20211_v25 = vld [vmem:[%s21072_s13 + $0xbc0] sm:$0xff]   ;;  %v20212_v27 = vld [vmem:[#allocation3 + $0x178] sm:$0xff]  }
 0x496   : > { %v18063_v1 = vpop.f32.mrf.mxu1  ;;  %18328 = vmatprep.subr.bf16.mxu1 %v20903_v4 }
 0x497   : > { %v5396_v48 = vadd.f32 %v22209_v49, %v5281_v12  ;;  %v20200_v49 = vld [vmem:[%s21072_s13 + $0xb50] sm:$0xff]  }
 0x499   : > { %18329 = vmatpush3.bf16.msra.mxu1 %v20188_v10 }
 0x49a   : > { %18330 = vmatprep.subr.bf16.mxu1 %v20903_v4 }
 0x49d   : > { %18331 = vmatpush3.bf16.msra.mxu1 %v20189_v28 }
 0x49e   : > { %18332 = vmatprep.subr.bf16.mxu1 %v20903_v4 }
 0x4a1   : > { %v22414_v31 = vpop.f32.mrf.mxu0  ;;  %18333 = vmatpush3.bf16.msra.mxu1 %v20190_v30 }
 0x4a2   : > { %18334 = vmatprep.subr.bf16.mxu1 %v20903_v4 }
 0x4a3   : > { %v18322_v33 = vpop.f32.mrf.mxu0 }
 0x4a5   : > { %v22418_v38 = vpop.f32.mrf.mxu0  ;;  %18335 = vmatpush3.bf16.msra.mxu1 %v20191_v15 }
 0x4a6   : > { %18336 = vmatprep.subr.bf16.mxu1 %v20903_v4 }
 0x4a7   : > { %v18323_v60 = vpop.f32.mrf.mxu0 }
 0x4a9   : > { %18337 = vmatpush3.bf16.msra.mxu1 %v20192_v6 }
 0x4aa   : > { %18338 = vmatprep.subr.bf16.mxu1 %v20903_v4 }
 0x4ad   : > { %18339 = vmatpush3.bf16.msra.mxu1 %v20193_v39 }
 0x4ae   : > { %18364 = vmatprep.subr.bf16.mxu1 %v20903_v4 }
 0x4b0   : > { %v5503_v44 = vpop.f32.mrf.mxu1  ;;  %18341 = vmatmul.mubr.bf16.vlgmr.msra.gmra.mxu1 %v20194_v43 }
 0x4b1   : > { %v5510_v46 = vadd.f32 %v5503_v44, %v5395_v62  ;;  %18365 = vmatpush3.bf16.msra.mxu1 %v20195_v41  ;;  %18380 = vmatprep.mubr.msk.bf16.mxu1 %vm20904_vm0, %v20903_v4 }
 0x4b2   : > { %v18102_v5 = vpop.f32.mrf.mxu1  ;;  %18366 = vmatprep.subr.bf16.mxu1 %v20903_v4 }
 0x4b3   : > { %v5625_v35 = vadd.f32 %v22249_v18, %v5510_v46  ;;  %v20206_v18 = vld [vmem:[%s21072_s13 + $0xbe8] sm:$0xff]  }
 0x4b4   : > { %v5506_v51 = vpop.f32.mrf.mxu1 }
 0x4b5   : > { %v5511_v53 = vadd.f32 %v5506_v51, %v5396_v48  ;;  %18367 = vmatpush3.bf16.msra.mxu1 %v20196_v0 }
 0x4b6   : > { %v18103_v54 = vpop.f32.mrf.mxu1  ;;  %18368 = vmatprep.subr.bf16.mxu1 %v20903_v4 }
 0x4b7   : > { %v5626_v36 = vadd.f32 %v22257_v22, %v5511_v53  ;;  %v20209_v22 = vld [vmem:[%s21072_s13 + $0xbd0] sm:$0xff]  }
 0x4b9   : > { %18369 = vmatpush3.bf16.msra.mxu1 %v20197_v45 }
 0x4ba   : > { %18370 = vmatprep.subr.bf16.mxu1 %v20903_v4 }
 0x4bd   : > { %18371 = vmatpush3.bf16.msra.mxu1 %v20198_v55 }
 0x4be   : > { %18372 = vmatprep.subr.bf16.mxu1 %v20903_v4 }
 0x4c1   : > { %v22438_v57 = vpop.f32.mrf.mxu0  ;;  %18373 = vmatpush3.bf16.msra.mxu1 %v20199_v37 }
 0x4c2   : > { %18374 = vmatprep.subr.bf16.mxu1 %v20903_v4 }
 0x4c3   : > { %v18362_v58 = vpop.f32.mrf.mxu0 }
 0x4c5   : > { %v22442_v59 = vpop.f32.mrf.mxu0  ;;  %18375 = vmatpush3.bf16.msra.mxu1 %v20200_v49 }
 0x4c6   : > { %18376 = vmatprep.subr.bf16.mxu1 %v20903_v4 }
 0x4c7   : > { %v18363_v63 = vpop.f32.mrf.mxu0 }
 0x4c9   : > { %18377 = vmatpush3.bf16.msra.mxu1 %v20201_v61 }
 0x4ca   : > { %18378 = vmatprep.subr.bf16.mxu1 %v20903_v4 }
 0x4cd   : > { %18379 = vmatpush3.bf16.msra.mxu1 %v20202_v40 }
 0x4ce   : > { %18404 = vmatprep.subr.bf16.mxu1 %v20903_v4 }
 0x4d0   : > { %v5733_v3 = vpop.f32.mrf.mxu1  ;;  %18381 = vmatmul.mubr.bf16.vlgmr.msra.gmra.mxu1 %v20203_v2 }
 0x4d1   : > { %v5740_v7 = vadd.f32 %v5733_v3, %v5625_v35  ;;  %18405 = vmatpush3.bf16.msra.mxu1 %v20204_v32  ;;  %18420 = vmatprep.mubr.msk.bf16.mxu1 %vm20904_vm0, %v20903_v4 }
 0x4d2   : > { %v18142_v42 = vpop.f32.mrf.mxu1  ;;  %18406 = vmatprep.subr.bf16.mxu1 %v20903_v4 }
 0x4d3   : > { %v5855_v12 = vadd.f32 %v22297_v52, %v5740_v7 }
 0x4d4   : > { %v5736_v29 = vpop.f32.mrf.mxu1 }
 0x4d5   : > { %v5741_v14 = vadd.f32 %v5736_v29, %v5626_v36  ;;  %18407 = vmatpush3.bf16.msra.mxu1 %v20205_v8 }
 0x4d6   : > { %v18143_v16 = vpop.f32.mrf.mxu1  ;;  %18408 = vmatprep.subr.bf16.mxu1 %v20903_v4 }
 0x4d7   : > { %v5856_v30 = vadd.f32 %v22305_v56, %v5741_v14 }
 0x4d9   : > { %18409 = vmatpush3.bf16.msra.mxu1 %v20206_v18 }
 0x4da   : > { %18410 = vmatprep.subr.bf16.mxu1 %v20903_v4 }
 0x4dd   : > { %18411 = vmatpush3.bf16.msra.mxu1 %v20207_v17 }
 0x4de   : > { %18412 = vmatprep.subr.bf16.mxu1 %v20903_v4 }
 0x4e1   : > { %v22462_v20 = vpop.f32.mrf.mxu0  ;;  %18413 = vmatpush3.bf16.msra.mxu1 %v20208_v19 }
 0x4e2   : > { %18414 = vmatprep.subr.bf16.mxu1 %v20903_v4 }
 0x4e3   : > { %v18402_v34 = vpop.f32.mrf.mxu0 }
 0x4e5   : > { %v22466_v21 = vpop.f32.mrf.mxu0  ;;  %18415 = vmatpush3.bf16.msra.mxu1 %v20209_v22 }
 0x4e6   : > { %18416 = vmatprep.subr.bf16.mxu1 %v20903_v4 }
 0x4e7   : > { %v18403_v24 = vpop.f32.mrf.mxu0 }
 0x4e9   : > { %18417 = vmatpush3.bf16.msra.mxu1 %v20210_v9 }
 0x4ea   : > { %18418 = vmatprep.subr.bf16.mxu1 %v20903_v4 }
 0x4ed   : > { %18419 = vmatpush3.bf16.msra.mxu1 %v20211_v25 }
 0x4ee   : > { %18444 = vmatprep.subr.bf16.mxu1 %v20903_v4 }
 0x4f0   : > { %v5963_v10 = vpop.f32.mrf.mxu1  ;;  %18421 = vmatmul.mubr.bf16.vlgmr.msra.gmra.mxu1 %v20212_v27 }
 0x4f1   : > { %v5970_v1 = vadd.f32 %v5963_v10, %v5855_v12  ;;  %18446 = vmatprep.mubr.msk.bf16.mxu1 %vm20904_vm0, %v20903_v4  ;;  %v14906_v10 = vld [vmem:[%s21080_s29] ss:$0 sm:$0xff] }
 0x4f2   : > { %v18182_v28 = vpop.f32.mrf.mxu1 }
 0x4f3   : > { %v6085_v62 = vadd.f32 %v22340_v23, %v5970_v1 }
 0x4f4   : > { %v5966_v15 = vpop.f32.mrf.mxu1 }
 0x4f5   : > { %v5971_v33 = vadd.f32 %v5966_v15, %v5856_v30 }
 0x4f6   : > { %v18183_v6 = vpop.f32.mrf.mxu1 }
 0x4f7   : > { %v6086_v0 = vadd.f32 %v22346_v26, %v5971_v33 }
 0x501   : > { %v7458_v60 = vpop.f32.mrf.mxu0 }
 0x503   : > { %v18442_v39 = vpop.f32.mrf.mxu0 }
 0x504   : > { %v20660_v39 = vld [vmem:[%s23915_s1 + $0x20] sm:$0xff]  }
 0x505   : > { %v7461_v41 = vpop.f32.mrf.mxu0 }
 0x507   : > { %v18443_v43 = vpop.f32.mrf.mxu0 }
 0x508   : > { %v20662_v43 = vld [vmem:[%s23915_s1 + $0x30] sm:$0xff]  }
 0x510   : > { %v6193_v44 = vpop.f32.mrf.mxu1 }
 0x511   : > { %v6200_v52 = vadd.f32 %v6193_v44, %v6085_v62  ;;  %v20214_v62 = vld [vmem:[%s21072_s13 + $0xcb8] sm:$0xff]   ;;  %v20663_v44 = vld [vmem:[%s23915_s1 + $0x38] sm:$0xff]  }
 0x512   : > { %v18222_v46 = vpop.f32.mrf.mxu1  ;;  %18643 = vmatpush3.bf16.msra.mxu0 %v20214_v62 }
 0x513   : > { %v6315_v53 = vadd.f32 %v22366_v47, %v6200_v52  ;;  %v20213_v52 = vld [vmem:[%s21072_s13 + $0xf78] sm:$0xff]   ;;  %v20215_v46 = vld [vmem:[%s21072_s13 + $0xcb0] sm:$0xff]   ;;  %18644 = vmatprep.subr.bf16.mxu0 %v20903_v4 }
 0x514   : > { %v6196_v5 = vpop.f32.mrf.mxu1 }
 0x515   : > { %v6201_v48 = vadd.f32 %v6196_v5, %v6086_v0  ;;  %v20216_v0 = vld [vmem:[%s21072_s13 + $0xca8] sm:$0xff]  }
 0x516   : > { %v18223_v51 = vpop.f32.mrf.mxu1  ;;  %18645 = vmatpush3.bf16.msra.mxu0 %v20215_v46  ;;  %v20664_v5 = vld [vmem:[%s23915_s1 + $0x40] sm:$0xff]  }
 0x517   : > { %v6316_v55 = vadd.f32 %v22370_v50, %v6201_v48  ;;  %18646 = vmatprep.subr.bf16.mxu0 %v20903_v4  ;;  %v20217_v48 = vld [vmem:[%s21072_s13 + $0xca0] sm:$0xff]   ;;  %v20218_v51 = vld [vmem:[%s21072_s13 + $0xc98] sm:$0xff]  }
 0x51a   : > { %18647 = vmatpush3.bf16.msra.mxu0 %v20216_v0  ;;  %v20229_v0 = vld [vmem:[%s21072_s13 + $0xc50] sm:$0xff]  }
 0x51b   : > { %18648 = vmatprep.subr.bf16.mxu0 %v20903_v4 }
 0x51e   : > { %18649 = vmatpush3.bf16.msra.mxu0 %v20217_v48 }
 0x51f   : > { %18650 = vmatprep.subr.bf16.mxu0 %v20903_v4 }
 0x522   : > { %18651 = vmatpush3.bf16.msra.mxu0 %v20218_v51  ;;  %v20230_v51 = vld [vmem:[%s21072_s13 + $0xc48] sm:$0xff]  }
 0x523   : > { %18652 = vmatprep.subr.bf16.mxu0 %v20903_v4 }
 0x530   : > { %v6423_v56 = vpop.f32.mrf.mxu1 }
 0x531   : > { %v6430_v45 = vadd.f32 %v6423_v56, %v6315_v53  ;;  %v20665_v53 = vld [vmem:[%s23915_s1 + $0x48] sm:$0xff]  }
 0x532   : > { %v18262_v54 = vpop.f32.mrf.mxu1  ;;  %v20219_v56 = vld [vmem:[%s21072_s13 + $0xc90] sm:$0xff]  }
 0x533   : > { %v6545_v23 = vadd.f32 %v22390_v11, %v6430_v45  ;;  %18653 = vmatpush3.bf16.msra.mxu0 %v20219_v56  ;;  %v20220_v45 = vld [vmem:[%s21072_s13 + $0xc88] sm:$0xff]   ;;  %v20666_v54 = vld [vmem:[%s23915_s1 + $0x50] sm:$0xff]  }
 0x534   : > { %v6426_v37 = vpop.f32.mrf.mxu1  ;;  %18654 = vmatprep.subr.bf16.mxu0 %v20903_v4 }
 0x535   : > { %v6431_v49 = vadd.f32 %v6426_v37, %v6316_v55  ;;  %v20221_v55 = vld [vmem:[%s21072_s13 + $0xc80] sm:$0xff]  }
 0x536   : > { %v18263_v58 = vpop.f32.mrf.mxu1  ;;  %v20667_v37 = vld [vmem:[%s23915_s1 + $0x58] sm:$0xff]  }
 0x537   : > { %v6546_v26 = vadd.f32 %v22394_v13, %v6431_v49  ;;  %18655 = vmatpush3.bf16.msra.mxu0 %v20220_v45  ;;  %v20668_v49 = vld [vmem:[%s23915_s1 + $0x60] sm:$0xff]   ;;  %v20669_v58 = vld [vmem:[%s23915_s1 + $0x68] sm:$0xff]   ;;  %v20686_v45 = vld [vmem:[%s23915_s1 + $0xf0] sm:$0xff]  }
 0x538   : > { %18656 = vmatprep.subr.bf16.mxu0 %v20903_v4 }
 0x53b   : > { %18657 = vmatpush3.bf16.msra.mxu0 %v20221_v55  ;;  %v20231_v55 = vld [vmem:[%s21072_s13 + $0xc40] sm:$0xff]  }
 0x53c   : > { %18662 = vmatprep.subr.bf16.mxu0 %v20903_v4 }
 0x550   : > { %v6653_v61 = vpop.f32.mrf.mxu1 }
 0x551   : > { %v6660_v63 = vadd.f32 %v6653_v61, %v6545_v23  ;;  %v20228_v23 = vld [vmem:[%s21072_s13 + $0xf70] sm:$0xff]   ;;  %v20670_v61 = vld [vmem:[%s23915_s1 + $0x70] sm:$0xff]  }
 0x552   : > { %v18302_v40 = vpop.f32.mrf.mxu1 }
 0x553   : > { %v6775_v14 = vadd.f32 %v22414_v31, %v6660_v63  ;;  %v20671_v63 = vld [vmem:[%s23915_s1 + $0x78] sm:$0xff]   ;;  %v20672_v40 = vld [vmem:[%s23915_s1 + $0x80] sm:$0xff]  }
 0x554   : > { %v6656_v32 = vpop.f32.mrf.mxu1 }
 0x555   : > { %v6661_v2 = vadd.f32 %v6656_v32, %v6546_v26  ;;  %v20673_v26 = vld [vmem:[%s23915_s1 + $0x88] sm:$0xff]   ;;  %v20674_v32 = vld [vmem:[%s23915_s1 + $0x90] sm:$0xff]  }
 0x556   : > { %v18303_v35 = vpop.f32.mrf.mxu1 }
 0x557   : > { %v6776_v18 = vadd.f32 %v22418_v38, %v6661_v2  ;;  %v20675_v2 = vld [vmem:[%s23915_s1 + $0x98] sm:$0xff]   ;;  %v20243_v35 = vld [vmem:[%s21072_s13 + $0xf68] sm:$0xff]  }
 0x570   : > { %v6883_v3 = vpop.f32.mrf.mxu1 }
 0x571   : > { %v6890_v11 = vadd.f32 %v6883_v3, %v6775_v14  ;;  %v20676_v3 = vld [vmem:[%s23915_s1 + $0xa0] sm:$0xff]  }
 0x572   : > { %v18342_v47 = vpop.f32.mrf.mxu1 }
 0x573   : > { %v7005_v13 = vadd.f32 %v22438_v57, %v6890_v11  ;;  %v20677_v47 = vld [vmem:[%s23915_s1 + $0xa8] sm:$0xff]  }
 0x574   : > { %v6886_v7 = vpop.f32.mrf.mxu1 }
 0x575   : > { %v6891_v16 = vadd.f32 %v6886_v7, %v6776_v18  ;;  %v20678_v7 = vld [vmem:[%s23915_s1 + $0xb0] sm:$0xff]  }
 0x576   : > { %v18343_v8 = vpop.f32.mrf.mxu1 }
 0x577   : > { %v7006_v19 = vadd.f32 %v22442_v59, %v6891_v16  ;;  %v20656_v59 = vld [vmem:[%s23915_s1] sm:$0xff]   ;;  %v20679_v8 = vld [vmem:[%s23915_s1 + $0xb8] sm:$0xff]   ;;  %v20681_v16 = vld [vmem:[%s23915_s1 + $0xc8] sm:$0xff]  }
 0x590   : > { %v7113_v42 = vpop.f32.mrf.mxu1 }
 0x591   : > { %v7120_v17 = vadd.f32 %v7113_v42, %v7005_v13  ;;  %v20257_v13 = vld [vmem:[%s21072_s13 + $0xf60] sm:$0xff]  }
 0x592   : > { %v18382_v36 = vpop.f32.mrf.mxu1 }
 0x593   : > { %v7235_v34 = vadd.f32 %v22462_v20, %v7120_v17  ;;  %v20657_v20 = vld [vmem:[%s23915_s1 + $0x8] sm:$0xff]   ;;  %v20680_v36 = vld [vmem:[%s23915_s1 + $0xc0] sm:$0xff]  }
 0x594   : > { %v7116_v50 = vpop.f32.mrf.mxu1 }
 0x595   : > { %v7121_v22 = vadd.f32 %v7116_v50, %v7006_v19 }
 0x596   : > { %v18383_v29 = vpop.f32.mrf.mxu1 }
 0x597   : > { %v7236_v12 = vadd.f32 %v22466_v21, %v7121_v22  ;;  %v20658_v21 = vld [vmem:[%s23915_s1 + $0x10] sm:$0xff]  }
 0x5b0   : > { %v7343_v9 = vpop.f32.mrf.mxu1 }
 0x5b1   : > { %v7350_v24 = vadd.f32 %v7343_v9, %v7235_v34  ;;  %v20682_v9 = vld [vmem:[%s23915_s1 + $0xd0] sm:$0xff]  }
 0x5b2   : > { %v18422_v25 = vpop.f32.mrf.mxu1 }
 0x5b3   : > { %v7465_v27 = vadd.f32 %v7458_v60, %v7350_v24  ;;  %v20659_v60 = vld [vmem:[%s23915_s1 + $0x18] sm:$0xff]  }
 0x5b4   : > { %v7346_v31 = vpop.f32.mrf.mxu1 }
 0x5b5   : > { %v7351_v1 = vadd.f32 %v7346_v31, %v7236_v12  ;;  %v7472_v38 = vadd.f32 %v14906_v10, %v7465_v27  ;;  %v20223_v12 = vld [vmem:[%s21072_s13 + $0xc78] sm:$0xff]  }
 0x5b6   : > { %v18423_v28 = vpop.f32.mrf.mxu1 }
 0x5b7   : > { %v7466_v30 = vadd.f32 %v7461_v41, %v7351_v1  ;;  %v7474_v57 = vmax.f32 %v7472_v38, 0.0  ;;  %v20661_v41 = vld [vmem:[%s23915_s1 + $0x28] sm:$0xff]   ;;  %v20683_v28 = vld [vmem:[%s23915_s1 + $0xd8] sm:$0xff]  }
 0x5b9   : > { %v7473_v15 = vadd.f32 %v14906_v10, %v7466_v30  ;;  %v20224_v30 = vld [vmem:[%s21072_s13 + $0xc70] sm:$0xff]  }
 0x5bb   : > { %v7475_v33 = vmax.f32 %v7473_v15, 0.0 }
 0x5bd   : > { %v7476_v6 = vpack.c.bf16 %v7475_v33, %v7474_v57  ;;  %v20225_v33 = vld [vmem:[%s21072_s13 + $0xc68] sm:$0xff]  }
 0x5bf   : > { %18445 = vmatpush3.bf16.msra.mxu1 %v7476_v6 }
 0x5c0   : > { %18882 = vmatprep.subr.bf16.mxu1 %v20903_v4 }
 0x5c2   : > { %18447 = vmatmul.mubr.msk.bf16.vlgmr.msra.gmra.mxu1 %vm773_vm1, %v20656_v59 }
 0x5c3   : > { %18450 = vmatprep.mubr.msk.bf16.mxu1 %vm20904_vm0, %v20903_v4  ;;  %18883 = vmatpush3.bf16.msra.mxu1 %v20213_v52  ;;  %v20685_v52 = vld [vmem:[%s23915_s1 + $0xe8] sm:$0xff]  }
 0x5c4   : > { %18884 = vmatprep.subr.bf16.mxu1 %v20903_v4 }
 0x5c7   : > { %18885 = vmatpush3.bf16.msra.mxu1 %v20228_v23 }
 0x5c8   : > { %18886 = vmatprep.subr.bf16.mxu1 %v20903_v4 }
 0x5ca   : > { %18451 = vmatmul.mubr.msk.bf16.gmra.mxu1 %vm773_vm1, %v20657_v20  ;;  %v20684_v20 = vld [vmem:[%s23915_s1 + $0xe0] sm:$0xff]  }
 0x5cb   : > { %18454 = vmatprep.mubr.msk.bf16.mxu1 %vm20904_vm0, %v20903_v4  ;;  %18887 = vmatpush3.bf16.msra.mxu1 %v20243_v35 }
 0x5cc   : > { %18888 = vmatprep.subr.bf16.mxu1 %v20903_v4 }
 0x5cf   : > { %18889 = vmatpush3.bf16.msra.mxu1 %v20257_v13  ;;  %v20237_v13 = vld [vmem:[%s21072_s13 + $0xcd8] sm:$0xff]  }
 0x5d0   : > { %18890 = vmatprep.subr.bf16.mxu1 %v20903_v4 }
 0x5d2   : > { %18455 = vmatmul.mubr.msk.bf16.gmra.mxu1 %vm773_vm1, %v20658_v21 }
 0x5d3   : > { %18458 = vmatprep.mubr.msk.bf16.mxu1 %vm20904_vm0, %v20903_v4 }
 0x5da   : > { %18459 = vmatmul.mubr.msk.bf16.gmra.mxu1 %vm773_vm1, %v20659_v60  ;;  %v20226_v60 = vld [vmem:[%s21072_s13 + $0xc60] sm:$0xff]  }
 0x5db   : > { %18462 = vmatprep.mubr.msk.bf16.mxu1 %vm20904_vm0, %v20903_v4 }
 0x5e2   : > { %18463 = vmatmul.mubr.msk.bf16.gmra.mxu1 %vm773_vm1, %v20660_v39 }
 0x5e3   : > { %18466 = vmatprep.mubr.msk.bf16.mxu1 %vm20904_vm0, %v20903_v4 }
 0x5ea   : > { %18467 = vmatmul.mubr.msk.bf16.gmra.mxu1 %vm773_vm1, %v20661_v41 }
 0x5eb   : > { %18470 = vmatprep.mubr.msk.bf16.mxu1 %vm20904_vm0, %v20903_v4 }
 0x5f2   : > { %18471 = vmatmul.mubr.msk.bf16.gmra.mxu1 %vm773_vm1, %v20662_v43  ;;  %v20227_v43 = vld [vmem:[%s21072_s13 + $0xc58] sm:$0xff]  }
 0x5f3   : > { %18474 = vmatprep.mubr.msk.bf16.mxu1 %vm20904_vm0, %v20903_v4 }
 0x5fa   : > { %18475 = vmatmul.mubr.msk.bf16.gmra.mxu1 %vm773_vm1, %v20663_v44 }
 0x5fb   : > { %18478 = vmatprep.mubr.msk.bf16.mxu1 %vm20904_vm0, %v20903_v4 }
 0x602   : > { %18479 = vmatmul.mubr.msk.bf16.gmra.mxu1 %vm773_vm1, %v20664_v5 }
 0x603   : > { %18482 = vmatprep.mubr.msk.bf16.mxu1 %vm20904_vm0, %v20903_v4 }
 0x60a   : > { %18483 = vmatmul.mubr.msk.bf16.gmra.mxu1 %vm773_vm1, %v20665_v53 }
 0x60b   : > { %18486 = vmatprep.mubr.msk.bf16.mxu1 %vm20904_vm0, %v20903_v4 }
 0x612   : > { %18487 = vmatmul.mubr.msk.bf16.gmra.mxu1 %vm773_vm1, %v20666_v54 }
 0x613   : > { %18490 = vmatprep.mubr.msk.bf16.mxu1 %vm20904_vm0, %v20903_v4 }
 0x61a   : > { %18491 = vmatmul.mubr.msk.bf16.gmra.mxu1 %vm773_vm1, %v20667_v37 }
 0x61b   : > { %18494 = vmatprep.mubr.msk.bf16.mxu1 %vm20904_vm0, %v20903_v4 }
 0x622   : > { %18495 = vmatmul.mubr.msk.bf16.gmra.mxu1 %vm773_vm1, %v20668_v49 }
 0x623   : > { %18498 = vmatprep.mubr.msk.bf16.mxu1 %vm20904_vm0, %v20903_v4 }
 0x62a   : > { %18499 = vmatmul.mubr.msk.bf16.gmra.mxu1 %vm773_vm1, %v20669_v58  ;;  %v20233_v58 = vld [vmem:[%s21072_s13 + $0xcf8] sm:$0xff]  }
 0x62b   : > { %18502 = vmatprep.mubr.msk.bf16.mxu1 %vm20904_vm0, %v20903_v4 }
 0x632   : > { %18503 = vmatmul.mubr.msk.bf16.gmra.mxu1 %vm773_vm1, %v20670_v61 }
 0x633   : > { %18506 = vmatprep.mubr.msk.bf16.mxu1 %vm20904_vm0, %v20903_v4 }
 0x63a   : > { %18507 = vmatmul.mubr.msk.bf16.gmra.mxu1 %vm773_vm1, %v20671_v63 }
 0x63b   : > { %18510 = vmatprep.mubr.msk.bf16.mxu1 %vm20904_vm0, %v20903_v4 }
 0x642   : > { %18511 = vmatmul.mubr.msk.bf16.gmra.mxu1 %vm773_vm1, %v20672_v40  ;;  %v20271_v40 = vld [vmem:[%s21072_s13 + $0xf58] sm:$0xff]  }
 0x643   : > { %18514 = vmatprep.mubr.msk.bf16.mxu1 %vm20904_vm0, %v20903_v4  ;;  %18891 = vmatpush3.bf16.msra.mxu1 %v20271_v40  ;;  %v20250_v40 = vld [vmem:[%s21072_s13 + $0xd00] sm:$0xff]  }
 0x644   : > { %18892 = vmatprep.subr.bf16.mxu1 %v20903_v4 }
 0x64a   : > { %18515 = vmatmul.mubr.msk.bf16.gmra.mxu1 %vm773_vm1, %v20673_v26  ;;  %v20687_v26 = vld [vmem:[%s23915_s1 + $0xf8] sm:$0xff]  }
 0x64b   : > { %18518 = vmatprep.mubr.msk.bf16.mxu1 %vm20904_vm0, %v20903_v4 }
 0x652   : > { %18519 = vmatmul.mubr.msk.bf16.gmra.mxu1 %vm773_vm1, %v20674_v32 }
 0x653   : > { %18522 = vmatprep.mubr.msk.bf16.mxu1 %vm20904_vm0, %v20903_v4 }
 0x65a   : > { %18523 = vmatmul.mubr.msk.bf16.gmra.mxu1 %vm773_vm1, %v20675_v2  ;;  %v20234_v2 = vld [vmem:[%s21072_s13 + $0xcf0] sm:$0xff]  }
 0x65b   : > { %18526 = vmatprep.mubr.msk.bf16.mxu1 %vm20904_vm0, %v20903_v4 }
 0x662   : > { %18527 = vmatmul.mubr.msk.bf16.gmra.mxu1 %vm773_vm1, %v20676_v3  ;;  %v20273_v3 = vld [vmem:[%s21072_s13 + $0xf50] sm:$0xff]  }
 0x663   : > { %18530 = vmatprep.mubr.msk.bf16.mxu1 %vm20904_vm0, %v20903_v4  ;;  %18893 = vmatpush3.bf16.msra.mxu1 %v20273_v3 }
 0x664   : > { %18894 = vmatprep.subr.bf16.mxu1 %v20903_v4 }
 0x66a   : > { %18531 = vmatmul.mubr.msk.bf16.gmra.mxu1 %vm773_vm1, %v20677_v47 }
 0x66b   : > { %18534 = vmatprep.mubr.msk.bf16.mxu1 %vm20904_vm0, %v20903_v4 }
 0x672   : > { %18535 = vmatmul.mubr.msk.bf16.gmra.mxu1 %vm773_vm1, %v20678_v7  ;;  %v20235_v7 = vld [vmem:[%s21072_s13 + $0xce8] sm:$0xff]  }
 0x673   : > { %18538 = vmatprep.mubr.msk.bf16.mxu1 %vm20904_vm0, %v20903_v4 }
 0x67a   : > { %18539 = vmatmul.mubr.msk.bf16.gmra.mxu1 %vm773_vm1, %v20679_v8 }
 0x67b   : > { %18542 = vmatprep.mubr.msk.bf16.mxu1 %vm20904_vm0, %v20903_v4 }
 0x682   : > { %v7511_v42 = vpop.f32.mrf.mxu1  ;;  %18543 = vmatmul.mubr.msk.bf16.gmra.mxu1 %vm773_vm1, %v20680_v36  ;;  %v20275_v36 = vld [vmem:[%s21072_s13 + $0xf48] sm:$0xff]  }
 0x683   : > { %18546 = vmatprep.mubr.msk.bf16.mxu1 %vm20904_vm0, %v20903_v4  ;;  %18895 = vmatpush3.bf16.msra.mxu1 %v20275_v36 }
 0x684   : > { %v18448_v50 = vpop.f32.mrf.mxu1  ;;  %18896 = vmatprep.subr.bf16.mxu1 %v20903_v4 }
 0x685   : > { %v20688_v50 = vld [vmem:[%s23915_s1 + $0x100] sm:$0xff]  }
 0x686   : > { %v7514_v29 = vpop.f32.mrf.mxu1 }
 0x687   : > { %v15946_v14 = vpack.c.bf16 %v7514_v29, %v7511_v42 }
 0x688   : > { %v18449_v11 = vpop.f32.mrf.mxu1 }
 0x689   : > { %15947 = vst [vmem:[#allocation3] sm:$0xff] %v15946_v14   ;;  %v20236_v14 = vld [vmem:[%s21072_s13 + $0xce0] sm:$0xff]  }
 0x68a   : > { %v7519_v18 = vpop.f32.mrf.mxu1  ;;  %18547 = vmatmul.mubr.msk.bf16.gmra.mxu1 %vm773_vm1, %v20681_v16 }
 0x68b   : > { %18550 = vmatprep.mubr.msk.bf16.mxu1 %vm20904_vm0, %v20903_v4 }
 0x68c   : > { %v18452_v17 = vpop.f32.mrf.mxu1 }
 0x68e   : > { %v7522_v19 = vpop.f32.mrf.mxu1 }
 0x68f   : > { %v15951_v22 = vpack.c.bf16 %v7522_v19, %v7519_v18  ;;  %v20277_v18 = vld [vmem:[%s21072_s13 + $0xf40] sm:$0xff]  }
 0x690   : > { %v18453_v34 = vpop.f32.mrf.mxu1  ;;  %v20232_v61 = vld [vmem:[#allocation3] sm:$0xff]   ;;  %18897 = vmatpush3.bf16.msra.mxu1 %v20277_v18  ;;  %v20696_v18 = vld [vmem:[%s23915_s1 + $0x140] sm:$0xff]  }
 0x691   : > { %16236 = vst [vmem:[#allocation3 + $0x8] sm:$0xff] %v15951_v22   ;;  %v20689_v22 = vld [vmem:[%s23915_s1 + $0x108] sm:$0xff]   ;;  %18922 = vmatprep.subr.bf16.mxu1 %v20903_v4 }
 0x692   : > { %18551 = vmatmul.mubr.msk.bf16.gmra.mxu1 %vm773_vm1, %v20682_v9  ;;  %v7527_v24 = vpop.f32.mrf.mxu1  ;;  %v20238_v9 = vld [vmem:[%s21072_s13 + $0xcd0] sm:$0xff]  }
 0x693   : > { %18554 = vmatprep.mubr.msk.bf16.mxu1 %vm20904_vm0, %v20903_v4 }
 0x694   : > { %v18456_v25 = vpop.f32.mrf.mxu1 }
 0x696   : > { %v7530_v27 = vpop.f32.mrf.mxu1 }
 0x697   : > { %v15956_v10 = vpack.c.bf16 %v7530_v27, %v7527_v24  ;;  %v20239_v27 = vld [vmem:[%s21072_s13 + $0xcc8] sm:$0xff]  }
 0x698   : > { %v20222_v31 = vld [vmem:[#allocation3 + $0x8] sm:$0xff]   ;;  %v18457_v1 = vpop.f32.mrf.mxu1 }
 0x699   : > { %16237 = vst [vmem:[#allocation3 + $0x10] sm:$0xff] %v15956_v10   ;;  %18659 = vmatmul.mubr.bf16.vlgmr.msra.gmra.mxu0 %v20222_v31  ;;  %v20690_v31 = vld [vmem:[%s23915_s1 + $0x110] sm:$0xff]  }
 0x69a   : > { %18555 = vmatmul.mubr.msk.bf16.gmra.mxu1 %vm773_vm1, %v20683_v28  ;;  %v7535_v38 = vpop.f32.mrf.mxu1  ;;  %18663 = vmatpush3.bf16.msra.mxu0 %v20223_v12  ;;  %v20240_v28 = vld [vmem:[%s21072_s13 + $0xcc0] sm:$0xff]  }
 0x69b   : > { %18558 = vmatprep.mubr.msk.bf16.mxu1 %vm20904_vm0, %v20903_v4  ;;  %18664 = vmatprep.subr.bf16.mxu0 %v20903_v4 }
 0x69c   : > { %v18460_v15 = vpop.f32.mrf.mxu1  ;;  %18678 = vmatprep.mubr.msk.bf16.mxu0 %vm20904_vm0, %v20903_v4 }
 0x69d   : > { %v20242_v15 = vld [vmem:[%s21072_s13 + $0xd38] sm:$0xff]  }
 0x69e   : > { %v7538_v57 = vpop.f32.mrf.mxu1  ;;  %18665 = vmatpush3.bf16.msra.mxu0 %v20224_v30 }
 0x69f   : > { %v15961_v6 = vpack.c.bf16 %v7538_v57, %v7535_v38  ;;  %18666 = vmatprep.subr.bf16.mxu0 %v20903_v4 }
 0x6a0   : > { %v18461_v59 = vpop.f32.mrf.mxu1 }
 0x6a1   : > { %16238 = vst [vmem:[#allocation3 + $0x18] sm:$0xff] %v15961_v6   ;;  %v20691_v59 = vld [vmem:[%s23915_s1 + $0x118] sm:$0xff]  }
 0x6a2   : > { %18559 = vmatmul.mubr.msk.bf16.gmra.mxu1 %vm773_vm1, %v20684_v20  ;;  %v7543_v21 = vpop.f32.mrf.mxu1  ;;  %18667 = vmatpush3.bf16.msra.mxu0 %v20225_v33  ;;  %v20241_v33 = vld [vmem:[#allocation3 + $0x10] sm:$0xff]  }
 0x6a3   : > { %18562 = vmatprep.mubr.msk.bf16.mxu1 %vm20904_vm0, %v20903_v4  ;;  %18668 = vmatprep.subr.bf16.mxu0 %v20903_v4 }
 0x6a4   : > { %v18464_v39 = vpop.f32.mrf.mxu1 }
 0x6a6   : > { %v7546_v41 = vpop.f32.mrf.mxu1  ;;  %18669 = vmatpush3.bf16.msra.mxu0 %v20226_v60 }
 0x6a7   : > { %v15966_v62 = vpack.c.bf16 %v7546_v41, %v7543_v21  ;;  %18670 = vmatprep.subr.bf16.mxu0 %v20903_v4  ;;  %v20244_v21 = vld [vmem:[%s21072_s13 + $0xd30] sm:$0xff]   ;;  %v20245_v41 = vld [vmem:[%s21072_s13 + $0xd28] sm:$0xff]  }
 0x6a8   : > { %v18465_v44 = vpop.f32.mrf.mxu1  ;;  %v20251_v3 = vld [vmem:[#allocation3 + $0x18] sm:$0xff]  }
 0x6a9   : > { %16239 = vst [vmem:[#allocation3 + $0x20] sm:$0xff] %v15966_v62   ;;  %v20692_v44 = vld [vmem:[%s23915_s1 + $0x120] sm:$0xff]  }
 0x6aa   : > { %18563 = vmatmul.mubr.msk.bf16.gmra.mxu1 %vm773_vm1, %v20685_v52  ;;  %v7551_v46 = vpop.f32.mrf.mxu1  ;;  %18671 = vmatpush3.bf16.msra.mxu0 %v20227_v43 }
 0x6ab   : > { %18566 = vmatprep.mubr.msk.bf16.mxu1 %vm20904_vm0, %v20903_v4  ;;  %18672 = vmatprep.subr.bf16.mxu0 %v20903_v4 }
 0x6ac   : > { %v18468_v5 = vpop.f32.mrf.mxu1 }
 0x6ae   : > { %v7554_v48 = vpop.f32.mrf.mxu1  ;;  %18673 = vmatpush3.bf16.msra.mxu0 %v20229_v0 }
 0x6af   : > { %v15971_v53 = vpack.c.bf16 %v7554_v48, %v7551_v46  ;;  %18674 = vmatprep.subr.bf16.mxu0 %v20903_v4  ;;  %v20246_v46 = vld [vmem:[%s21072_s13 + $0xd20] sm:$0xff]   ;;  %v20247_v48 = vld [vmem:[%s21072_s13 + $0xd18] sm:$0xff]  }
 0x6b0   : > { %v18469_v56 = vpop.f32.mrf.mxu1 }
 0x6b1   : > { %16240 = vst [vmem:[#allocation3 + $0x28] sm:$0xff] %v15971_v53   ;;  %v20693_v56 = vld [vmem:[%s23915_s1 + $0x128] sm:$0xff]  }
 0x6b2   : > { %18567 = vmatmul.mubr.msk.bf16.gmra.mxu1 %vm773_vm1, %v20686_v45  ;;  %v7559_v54 = vpop.f32.mrf.mxu1  ;;  %18675 = vmatpush3.bf16.msra.mxu0 %v20230_v51 }
 0x6b3   : > { %18570 = vmatprep.mubr.msk.bf16.mxu1 %vm20904_vm0, %v20903_v4  ;;  %18676 = vmatprep.subr.bf16.mxu0 %v20903_v4 }
 0x6b4   : > { %v18472_v37 = vpop.f32.mrf.mxu1 }
 0x6b6   : > { %v7562_v49 = vpop.f32.mrf.mxu1  ;;  %18677 = vmatpush3.bf16.msra.mxu0 %v20231_v55 }
 0x6b7   : > { %v15976_v23 = vpack.c.bf16 %v7562_v49, %v7559_v54  ;;  %18682 = vmatprep.subr.bf16.mxu0 %v20903_v4  ;;  %v20248_v54 = vld [vmem:[%s21072_s13 + $0xd10] sm:$0xff]   ;;  %v20249_v49 = vld [vmem:[%s21072_s13 + $0xd08] sm:$0xff]  }
 0x6b8   : > { %v18473_v63 = vpop.f32.mrf.mxu1 }
 0x6b9   : > { %16241 = vst [vmem:[#allocation3 + $0x30] sm:$0xff] %v15976_v23   ;;  %18679 = vmatmul.mubr.bf16.vlgmr.msra.gmra.mxu0 %v20232_v61  ;;  %v20694_v61 = vld [vmem:[%s23915_s1 + $0x130] sm:$0xff]  }
 0x6ba   : > { %18571 = vmatmul.mubr.msk.bf16.gmra.mxu1 %vm773_vm1, %v20687_v26  ;;  %v7567_v32 = vpop.f32.mrf.mxu1  ;;  %18683 = vmatpush3.bf16.msra.mxu0 %v20233_v58 }
 0x6bb   : > { %18574 = vmatprep.mubr.msk.bf16.mxu1 %vm20904_vm0, %v20903_v4  ;;  %18684 = vmatprep.subr.bf16.mxu0 %v20903_v4 }
 0x6bc   : > { %v18476_v35 = vpop.f32.mrf.mxu1  ;;  %18698 = vmatprep.mubr.msk.bf16.mxu0 %vm20904_vm0, %v20903_v4 }
 0x6be   : > { %v7570_v47 = vpop.f32.mrf.mxu1  ;;  %18685 = vmatpush3.bf16.msra.mxu0 %v20234_v2  ;;  %v20252_v2 = vld [vmem:[%s21072_s13 + $0xd78] sm:$0xff]  }
 0x6bf   : > { %v15981_v8 = vpack.c.bf16 %v7570_v47, %v7567_v32  ;;  %18686 = vmatprep.subr.bf16.mxu0 %v20903_v4 }
 0x6c0   : > { %v18477_v42 = vpop.f32.mrf.mxu1 }
 0x6c1   : > { %16242 = vst [vmem:[#allocation3 + $0x38] sm:$0xff] %v15981_v8   ;;  %v20253_v42 = vld [vmem:[%s21072_s13 + $0xd70] sm:$0xff]  }
 0x6c2   : > { %18575 = vmatmul.mubr.msk.bf16.gmra.mxu1 %vm773_vm1, %v20688_v50  ;;  %v7575_v29 = vpop.f32.mrf.mxu1  ;;  %18687 = vmatpush3.bf16.msra.mxu0 %v20235_v7  ;;  %v20695_v7 = vld [vmem:[%s23915_s1 + $0x138] sm:$0xff]  }
 0x6c3   : > { %18578 = vmatprep.mubr.msk.bf16.mxu1 %vm20904_vm0, %v20903_v4  ;;  %18688 = vmatprep.subr.bf16.mxu0 %v20903_v4 }
 0x6c4   : > { %v18480_v11 = vpop.f32.mrf.mxu1 }
 0x6c6   : > { %v7578_v16 = vpop.f32.mrf.mxu1  ;;  %18689 = vmatpush3.bf16.msra.mxu0 %v20236_v14 }
 0x6c7   : > { %v15986_v17 = vpack.c.bf16 %v7578_v16, %v7575_v29  ;;  %18690 = vmatprep.subr.bf16.mxu0 %v20903_v4  ;;  %v20254_v29 = vld [vmem:[%s21072_s13 + $0xd68] sm:$0xff]  }
 0x6c8   : > { %v18481_v19 = vpop.f32.mrf.mxu1 }
 0x6c9   : > { %16243 = vst [vmem:[#allocation3 + $0x40] sm:$0xff] %v15986_v17  }
 0x6ca   : > { %18579 = vmatmul.mubr.msk.bf16.gmra.mxu1 %vm773_vm1, %v20689_v22  ;;  %v7583_v34 = vpop.f32.mrf.mxu1  ;;  %18691 = vmatpush3.bf16.msra.mxu0 %v20237_v13  ;;  %v20255_v13 = vld [vmem:[%s21072_s13 + $0xd60] sm:$0xff]   ;;  %v20256_v22 = vld [vmem:[%s21072_s13 + $0xd58] sm:$0xff]  }
 0x6cb   : > { %18582 = vmatprep.mubr.msk.bf16.mxu1 %vm20904_vm0, %v20903_v4  ;;  %18692 = vmatprep.subr.bf16.mxu0 %v20903_v4 }
 0x6cc   : > { %v18484_v24 = vpop.f32.mrf.mxu1 }
 0x6cd   : > { %v20697_v24 = vld [vmem:[%s23915_s1 + $0x148] sm:$0xff]  }
 0x6ce   : > { %v7586_v25 = vpop.f32.mrf.mxu1  ;;  %18693 = vmatpush3.bf16.msra.mxu0 %v20238_v9 }
 0x6cf   : > { %v15991_v12 = vpack.c.bf16 %v7586_v25, %v7583_v34  ;;  %18694 = vmatprep.subr.bf16.mxu0 %v20903_v4 }
 0x6d0   : > { %v18485_v10 = vpop.f32.mrf.mxu1 }
 0x6d1   : > { %16244 = vst [vmem:[#allocation3 + $0x48] sm:$0xff] %v15991_v12  }
 0x6d2   : > { %18583 = vmatmul.mubr.msk.bf16.gmra.mxu1 %vm773_vm1, %v20690_v31  ;;  %v7591_v1 = vpop.f32.mrf.mxu1  ;;  %18695 = vmatpush3.bf16.msra.mxu0 %v20239_v27  ;;  %v20258_v27 = vld [vmem:[%s21072_s13 + $0xd50] sm:$0xff]   ;;  %v20259_v31 = vld [vmem:[%s21072_s13 + $0xd48] sm:$0xff]  }
 0x6d3   : > { %18586 = vmatprep.mubr.msk.bf16.mxu1 %vm20904_vm0, %v20903_v4  ;;  %18696 = vmatprep.subr.bf16.mxu0 %v20903_v4 }
 0x6d4   : > { %v18488_v38 = vpop.f32.mrf.mxu1 }
 0x6d5   : > { %v20698_v38 = vld [vmem:[%s23915_s1 + $0x150] sm:$0xff]  }
 0x6d6   : > { %v7594_v30 = vpop.f32.mrf.mxu1  ;;  %18697 = vmatpush3.bf16.msra.mxu0 %v20240_v28 }
 0x6d7   : > { %v15996_v57 = vpack.c.bf16 %v7594_v30, %v7591_v1  ;;  %18702 = vmatprep.subr.bf16.mxu0 %v20903_v4 }
 0x6d8   : > { %v18489_v6 = vpop.f32.mrf.mxu1 }
 0x6d9   : > { %16245 = vst [vmem:[#allocation3 + $0x50] sm:$0xff] %v15996_v57   ;;  %18699 = vmatmul.mubr.bf16.vlgmr.msra.gmra.mxu0 %v20241_v33  ;;  %v20262_v6 = vld [vmem:[%s21072_s13 + $0xdb8] sm:$0xff]  }
 0x6da   : > { %18587 = vmatmul.mubr.msk.bf16.gmra.mxu1 %vm773_vm1, %v20691_v59  ;;  %v7599_v20 = vpop.f32.mrf.mxu1  ;;  %18703 = vmatpush3.bf16.msra.mxu0 %v20242_v15  ;;  %v20260_v15 = vld [vmem:[%s21072_s13 + $0xd40] sm:$0xff]  }
 0x6db   : > { %18590 = vmatprep.mubr.msk.bf16.mxu1 %vm20904_vm0, %v20903_v4  ;;  %18704 = vmatprep.subr.bf16.mxu0 %v20903_v4 }
 0x6dc   : > { %v18492_v60 = vpop.f32.mrf.mxu1  ;;  %18718 = vmatprep.mubr.msk.bf16.mxu0 %vm20904_vm0, %v20903_v4 }
 0x6dd   : > { %v20699_v60 = vld [vmem:[%s23915_s1 + $0x158] sm:$0xff]  }
 0x6de   : > { %v7602_v39 = vpop.f32.mrf.mxu1  ;;  %18705 = vmatpush3.bf16.msra.mxu0 %v20244_v21 }
 0x6df   : > { %v16001_v43 = vpack.c.bf16 %v7602_v39, %v7599_v20  ;;  %18706 = vmatprep.subr.bf16.mxu0 %v20903_v4  ;;  %v20261_v20 = vld [vmem:[#allocation3 + $0x20] sm:$0xff]  }
 0x6e0   : > { %v18493_v62 = vpop.f32.mrf.mxu1 }
 0x6e1   : > { %16246 = vst [vmem:[#allocation3 + $0x58] sm:$0xff] %v16001_v43  }
 0x6e2   : > { %18591 = vmatmul.mubr.msk.bf16.gmra.mxu1 %vm773_vm1, %v20692_v44  ;;  %v7607_v52 = vpop.f32.mrf.mxu1  ;;  %18707 = vmatpush3.bf16.msra.mxu0 %v20245_v41  ;;  %v20263_v41 = vld [vmem:[%s21072_s13 + $0xdb0] sm:$0xff]   ;;  %v20264_v44 = vld [vmem:[%s21072_s13 + $0xda8] sm:$0xff]  }
 0x6e3   : > { %18594 = vmatprep.mubr.msk.bf16.mxu1 %vm20904_vm0, %v20903_v4  ;;  %18708 = vmatprep.subr.bf16.mxu0 %v20903_v4 }
 0x6e4   : > { %v18496_v0 = vpop.f32.mrf.mxu1 }
 0x6e5   : > { %v20700_v0 = vld [vmem:[%s23915_s1 + $0x160] sm:$0xff]  }
 0x6e6   : > { %v7610_v5 = vpop.f32.mrf.mxu1  ;;  %18709 = vmatpush3.bf16.msra.mxu0 %v20246_v46 }
 0x6e7   : > { %v16006_v51 = vpack.c.bf16 %v7610_v5, %v7607_v52  ;;  %18710 = vmatprep.subr.bf16.mxu0 %v20903_v4 }
 0x6e8   : > { %v18497_v53 = vpop.f32.mrf.mxu1 }
 0x6e9   : > { %16247 = vst [vmem:[#allocation3 + $0x60] sm:$0xff] %v16006_v51  }
 0x6ea   : > { %18595 = vmatmul.mubr.msk.bf16.gmra.mxu1 %vm773_vm1, %v20693_v56  ;;  %v7615_v45 = vpop.f32.mrf.mxu1  ;;  %18711 = vmatpush3.bf16.msra.mxu0 %v20247_v48  ;;  %v20265_v48 = vld [vmem:[%s21072_s13 + $0xda0] sm:$0xff]   ;;  %v20266_v56 = vld [vmem:[%s21072_s13 + $0xd98] sm:$0xff]  }
 0x6eb   : > { %18598 = vmatprep.mubr.msk.bf16.mxu1 %vm20904_vm0, %v20903_v4  ;;  %18712 = vmatprep.subr.bf16.mxu0 %v20903_v4 }
 0x6ec   : > { %v18500_v55 = vpop.f32.mrf.mxu1 }
 0x6ed   : > { %v20701_v55 = vld [vmem:[%s23915_s1 + $0x168] sm:$0xff]  }
 0x6ee   : > { %v7618_v37 = vpop.f32.mrf.mxu1  ;;  %18713 = vmatpush3.bf16.msra.mxu0 %v20248_v54 }
 0x6ef   : > { %v16011_v58 = vpack.c.bf16 %v7618_v37, %v7615_v45  ;;  %18714 = vmatprep.subr.bf16.mxu0 %v20903_v4 }
 0x6f0   : > { %v18501_v23 = vpop.f32.mrf.mxu1 }
 0x6f1   : > { %16248 = vst [vmem:[#allocation3 + $0x68] sm:$0xff] %v16011_v58  }
 0x6f2   : > { %18599 = vmatmul.mubr.msk.bf16.gmra.mxu1 %vm773_vm1, %v20694_v61  ;;  %v7623_v63 = vpop.f32.mrf.mxu1  ;;  %18715 = vmatpush3.bf16.msra.mxu0 %v20249_v49  ;;  %v20267_v49 = vld [vmem:[%s21072_s13 + $0xd90] sm:$0xff]   ;;  %v20268_v61 = vld [vmem:[%s21072_s13 + $0xd88] sm:$0xff]  }
 0x6f3   : > { %18602 = vmatprep.mubr.msk.bf16.mxu1 %vm20904_vm0, %v20903_v4  ;;  %18716 = vmatprep.subr.bf16.mxu0 %v20903_v4 }
 0x6f4   : > { %v18504_v26 = vpop.f32.mrf.mxu1 }
 0x6f5   : > { %v20702_v26 = vld [vmem:[%s23915_s1 + $0x170] sm:$0xff]  }
 0x6f6   : > { %v7626_v32 = vpop.f32.mrf.mxu1  ;;  %18717 = vmatpush3.bf16.msra.mxu0 %v20250_v40 }
 0x6f7   : > { %v16016_v35 = vpack.c.bf16 %v7626_v32, %v7623_v63  ;;  %18722 = vmatprep.subr.bf16.mxu0 %v20903_v4 }
 0x6f8   : > { %v18505_v47 = vpop.f32.mrf.mxu1 }
 0x6f9   : > { %16249 = vst [vmem:[#allocation3 + $0x70] sm:$0xff] %v16016_v35   ;;  %18719 = vmatmul.mubr.bf16.vlgmr.msra.gmra.mxu0 %v20251_v3  ;;  %v20272_v47 = vld [vmem:[%s21072_s13 + $0xdf8] sm:$0xff]  }
 0x6fa   : > { %18603 = vmatmul.mubr.msk.bf16.gmra.mxu1 %vm773_vm1, %v20695_v7  ;;  %v7631_v8 = vpop.f32.mrf.mxu1  ;;  %18723 = vmatpush3.bf16.msra.mxu0 %v20252_v2  ;;  %v20269_v2 = vld [vmem:[%s21072_s13 + $0xd80] sm:$0xff]  }
 0x6fb   : > { %18606 = vmatprep.mubr.msk.bf16.mxu1 %vm20904_vm0, %v20903_v4  ;;  %18724 = vmatprep.subr.bf16.mxu0 %v20903_v4 }
 0x6fc   : > { %v18508_v36 = vpop.f32.mrf.mxu1  ;;  %18738 = vmatprep.mubr.msk.bf16.mxu0 %vm20904_vm0, %v20903_v4 }
 0x6fd   : > { %v20703_v36 = vld [vmem:[%s23915_s1 + $0x178] sm:$0xff]  }
 0x6fe   : > { %v7634_v50 = vpop.f32.mrf.mxu1  ;;  %18725 = vmatpush3.bf16.msra.mxu0 %v20253_v42 }
 0x6ff   : > { %v16021_v14 = vpack.c.bf16 %v7634_v50, %v7631_v8  ;;  %18726 = vmatprep.subr.bf16.mxu0 %v20903_v4  ;;  %v20270_v8 = vld [vmem:[#allocation3 + $0x28] sm:$0xff]  }
 0x700   : > { %v18509_v11 = vpop.f32.mrf.mxu1 }
 0x701   : > { %16250 = vst [vmem:[#allocation3 + $0x78] sm:$0xff] %v16021_v14  }
 0x702   : > { %18607 = vmatmul.mubr.msk.bf16.gmra.mxu1 %vm773_vm1, %v20696_v18  ;;  %v7639_v16 = vpop.f32.mrf.mxu1  ;;  %18727 = vmatpush3.bf16.msra.mxu0 %v20254_v29  ;;  %v20274_v29 = vld [vmem:[%s21072_s13 + $0xdf0] sm:$0xff]   ;;  %v20276_v18 = vld [vmem:[%s21072_s13 + $0xde8] sm:$0xff]  }
 0x703   : > { %18610 = vmatprep.mubr.msk.bf16.mxu1 %vm20904_vm0, %v20903_v4  ;;  %18728 = vmatprep.subr.bf16.mxu0 %v20903_v4 }
 0x704   : > { %v18512_v17 = vpop.f32.mrf.mxu1 }
 0x705   : > { %v20704_v17 = vld [vmem:[%s23915_s1 + $0x180] sm:$0xff]  }
 0x706   : > { %v7642_v19 = vpop.f32.mrf.mxu1  ;;  %18729 = vmatpush3.bf16.msra.mxu0 %v20255_v13 }
 0x707   : > { %v16026_v34 = vpack.c.bf16 %v7642_v19, %v7639_v16  ;;  %18730 = vmatprep.subr.bf16.mxu0 %v20903_v4 }
 0x708   : > { %v18513_v9 = vpop.f32.mrf.mxu1 }
 0x709   : > { %16251 = vst [vmem:[#allocation3 + $0x80] sm:$0xff] %v16026_v34   ;;  %v20279_v9 = vld [vmem:[#allocation3 + $0x60] sm:$0xff]  }
 0x70a   : > { %18611 = vmatmul.mubr.msk.bf16.gmra.mxu1 %vm773_vm1, %v20697_v24  ;;  %v7647_v25 = vpop.f32.mrf.mxu1  ;;  %18731 = vmatpush3.bf16.msra.mxu0 %v20256_v22  ;;  %v20278_v22 = vld [vmem:[%s21072_s13 + $0xde0] sm:$0xff]  }
 0x70b   : > { %18614 = vmatprep.mubr.msk.bf16.mxu1 %vm20904_vm0, %v20903_v4  ;;  %18732 = vmatprep.subr.bf16.mxu0 %v20903_v4 }
 0x70c   : > { %v18516_v12 = vpop.f32.mrf.mxu1 }
 0x70e   : > { %v7650_v10 = vpop.f32.mrf.mxu1  ;;  %18733 = vmatpush3.bf16.msra.mxu0 %v20258_v27  ;;  %v20281_v27 = vld [vmem:[%s21072_s13 + $0xdd8] sm:$0xff]  }
 0x70f   : > { %v16031_v1 = vpack.c.bf16 %v7650_v10, %v7647_v25  ;;  %18734 = vmatprep.subr.bf16.mxu0 %v20903_v4  ;;  %v20280_v25 = vld [vmem:[%s21072_s13 + $0xff8] sm:$0xff]  }
 0x710   : > { %v18517_v28 = vpop.f32.mrf.mxu1 }
 0x711   : > { %16252 = vst [vmem:[#allocation3 + $0x88] sm:$0xff] %v16031_v1   ;;  %v20282_v1 = vld [vmem:[%s21072_s13 + $0xff0] sm:$0xff]  }
 0x712   : > { %18615 = vmatmul.mubr.msk.bf16.gmra.mxu1 %vm773_vm1, %v20698_v38  ;;  %v7655_v30 = vpop.f32.mrf.mxu1  ;;  %18735 = vmatpush3.bf16.msra.mxu0 %v20259_v31  ;;  %v20283_v28 = vld [vmem:[%s21072_s13 + $0xdd0] sm:$0xff]  }
 0x713   : > { %18618 = vmatprep.mubr.msk.bf16.mxu1 %vm20904_vm0, %v20903_v4  ;;  %18736 = vmatprep.subr.bf16.mxu0 %v20903_v4 }
 0x714   : > { %v18520_v57 = vpop.f32.mrf.mxu1 }
 0x715   : > { %v20285_v57 = vld [vmem:[%s21072_s13 + $0xdc8] sm:$0xff]  }
 0x716   : > { %v7658_v33 = vpop.f32.mrf.mxu1  ;;  %18737 = vmatpush3.bf16.msra.mxu0 %v20260_v15  ;;  %v20284_v15 = vld [vmem:[%s21072_s13 + $0xfe8] sm:$0xff]  }
 0x717   : > { %v16036_v59 = vpack.c.bf16 %v7658_v33, %v7655_v30  ;;  %18742 = vmatprep.subr.bf16.mxu0 %v20903_v4 }
 0x718   : > { %v18521_v21 = vpop.f32.mrf.mxu1 }
 0x719   : > { %16253 = vst [vmem:[#allocation3 + $0x90] sm:$0xff] %v16036_v59   ;;  %18739 = vmatmul.mubr.bf16.vlgmr.msra.gmra.mxu0 %v20261_v20  ;;  %v20286_v20 = vld [vmem:[%s21072_s13 + $0xfe0] sm:$0xff]  }
 0x71a   : > { %18619 = vmatmul.mubr.msk.bf16.gmra.mxu1 %vm773_vm1, %v20699_v60  ;;  %v7663_v39 = vpop.f32.mrf.mxu1  ;;  %18743 = vmatpush3.bf16.msra.mxu0 %v20262_v6  ;;  %v20287_v21 = vld [vmem:[%s21072_s13 + $0xdc0] sm:$0xff]  }
 0x71b   : > { %18622 = vmatprep.mubr.msk.bf16.mxu1 %vm20904_vm0, %v20903_v4  ;;  %18744 = vmatprep.subr.bf16.mxu0 %v20903_v4 }
 0x71c   : > { %v18524_v43 = vpop.f32.mrf.mxu1  ;;  %18758 = vmatprep.mubr.msk.bf16.mxu0 %vm20904_vm0, %v20903_v4 }
 0x71d   : > { %v20290_v43 = vld [vmem:[%s21072_s13 + $0xe38] sm:$0xff]  }
 0x71e   : > { %v7666_v62 = vpop.f32.mrf.mxu1  ;;  %18745 = vmatpush3.bf16.msra.mxu0 %v20263_v41  ;;  %v20289_v41 = vld [vmem:[%s21072_s13 + $0xfd8] sm:$0xff]  }
 0x71f   : > { %v16041_v52 = vpack.c.bf16 %v7666_v62, %v7663_v39  ;;  %18746 = vmatprep.subr.bf16.mxu0 %v20903_v4 }
 0x720   : > { %v18525_v46 = vpop.f32.mrf.mxu1 }
 0x721   : > { %16254 = vst [vmem:[#allocation3 + $0x98] sm:$0xff] %v16041_v52  }
 0x722   : > { %18623 = vmatmul.mubr.msk.bf16.gmra.mxu1 %vm773_vm1, %v20700_v0  ;;  %v7671_v5 = vpop.f32.mrf.mxu1  ;;  %18747 = vmatpush3.bf16.msra.mxu0 %v20264_v44  ;;  %v20288_v44 = vld [vmem:[#allocation3 + $0x30] sm:$0xff]  }
 0x723   : > { %18626 = vmatprep.mubr.msk.bf16.mxu1 %vm20904_vm0, %v20903_v4  ;;  %18748 = vmatprep.subr.bf16.mxu0 %v20903_v4 }
 0x724   : > { %v18528_v51 = vpop.f32.mrf.mxu1 }
 0x726   : > { %v7674_v53 = vpop.f32.mrf.mxu1  ;;  %18749 = vmatpush3.bf16.msra.mxu0 %v20265_v48  ;;  %v20292_v48 = vld [vmem:[%s21072_s13 + $0xe30] sm:$0xff]  }
 0x727   : > { %v16046_v45 = vpack.c.bf16 %v7674_v53, %v7671_v5  ;;  %18750 = vmatprep.subr.bf16.mxu0 %v20903_v4  ;;  %v20291_v5 = vld [vmem:[%s21072_s13 + $0xfd0] sm:$0xff]  }
 0x728   : > { %v18529_v54 = vpop.f32.mrf.mxu1 }
 0x729   : > { %16255 = vst [vmem:[#allocation3 + $0xa0] sm:$0xff] %v16046_v45   ;;  %v20293_v54 = vld [vmem:[%s21072_s13 + $0xfc8] sm:$0xff]  }
 0x72a   : > { %18627 = vmatmul.mubr.msk.bf16.gmra.mxu1 %vm773_vm1, %v20701_v55  ;;  %v7679_v37 = vpop.f32.mrf.mxu1  ;;  %18751 = vmatpush3.bf16.msra.mxu0 %v20266_v56  ;;  %v20294_v55 = vld [vmem:[%s21072_s13 + $0xe28] sm:$0xff]  }
 0x72b   : > { %18630 = vmatprep.mubr.msk.bf16.mxu1 %vm20904_vm0, %v20903_v4  ;;  %18752 = vmatprep.subr.bf16.mxu0 %v20903_v4 }
 0x72c   : > { %v18532_v58 = vpop.f32.mrf.mxu1 }
 0x72e   : > { %v7682_v23 = vpop.f32.mrf.mxu1  ;;  %18753 = vmatpush3.bf16.msra.mxu0 %v20267_v49 }
 0x72f   : > { %v16051_v63 = vpack.c.bf16 %v7682_v23, %v7679_v37  ;;  %18754 = vmatprep.subr.bf16.mxu0 %v20903_v4 }
 0x730   : > { %v18533_v40 = vpop.f32.mrf.mxu1 }
 0x731   : > { %16256 = vst [vmem:[#allocation3 + $0xa8] sm:$0xff] %v16051_v63   ;;  %v20296_v63 = vld [vmem:[%s21072_s13 + $0xe20] sm:$0xff]  }
 0x732   : > { %18631 = vmatmul.mubr.msk.bf16.gmra.mxu1 %vm773_vm1, %v20702_v26  ;;  %v7687_v32 = vpop.f32.mrf.mxu1  ;;  %18755 = vmatpush3.bf16.msra.mxu0 %v20268_v61  ;;  %v20295_v61 = vld [vmem:[%s21072_s13 + $0xfc0] sm:$0xff]   ;;  %v20297_v26 = vld [vmem:[#allocation3 + $0x70] sm:$0xff]  }
 0x733   : > { %18634 = vmatprep.mubr.msk.bf16.mxu1 %vm20904_vm0, %v20903_v4  ;;  %18756 = vmatprep.subr.bf16.mxu0 %v20903_v4 }
 0x734   : > { %v18536_v35 = vpop.f32.mrf.mxu1 }
 0x735   : > { %v20299_v35 = vld [vmem:[%s21072_s13 + $0xe18] sm:$0xff]  }
 0x736   : > { %v7690_v3 = vpop.f32.mrf.mxu1  ;;  %18757 = vmatpush3.bf16.msra.mxu0 %v20269_v2  ;;  %v20298_v2 = vld [vmem:[%s21072_s13 + $0x1078] sm:$0xff]  }
 0x737   : > { %v16056_v7 = vpack.c.bf16 %v7690_v3, %v7687_v32  ;;  %18762 = vmatprep.subr.bf16.mxu0 %v20903_v4 }
 0x738   : > { %v18537_v42 = vpop.f32.mrf.mxu1 }
 0x739   : > { %16257 = vst [vmem:[#allocation3 + $0xb0] sm:$0xff] %v16056_v7   ;;  %18759 = vmatmul.mubr.bf16.vlgmr.msra.gmra.mxu0 %v20270_v8  ;;  %v20300_v8 = vld [vmem:[%s21072_s13 + $0x1070] sm:$0xff]  }
 0x73a   : > { %18635 = vmatmul.mubr.msk.bf16.gmra.mxu1 %vm773_vm1, %v20703_v36  ;;  %v7695_v50 = vpop.f32.mrf.mxu1  ;;  %18763 = vmatpush3.bf16.msra.mxu0 %v20272_v47  ;;  %v20301_v42 = vld [vmem:[%s21072_s13 + $0xe10] sm:$0xff]  }
 0x73b   : > { %18638 = vmatprep.mubr.msk.bf16.mxu1 %vm20904_vm0, %v20903_v4  ;;  %18764 = vmatprep.subr.bf16.mxu0 %v20903_v4 }
 0x73c   : > { %18778 = vmatprep.mubr.msk.bf16.mxu0 %vm20904_vm0, %v20903_v4  ;;  %v18540_v14 = vpop.f32.mrf.mxu1 }
 0x73d   : > { %v20303_v14 = vld [vmem:[%s21072_s13 + $0xe08] sm:$0xff]  }
 0x73e   : > { %v7698_v11 = vpop.f32.mrf.mxu1  ;;  %18765 = vmatpush3.bf16.msra.mxu0 %v20274_v29  ;;  %v20302_v29 = vld [vmem:[%s21072_s13 + $0x1068] sm:$0xff]  }
 0x73f   : > { %v16061_v16 = vpack.c.bf16 %v7698_v11, %v7695_v50  ;;  %18766 = vmatprep.subr.bf16.mxu0 %v20903_v4 }
 0x740   : > { %v18541_v13 = vpop.f32.mrf.mxu1 }
 0x741   : > { %16258 = vst [vmem:[#allocation3 + $0xb8] sm:$0xff] %v16061_v16   ;;  %v20304_v13 = vld [vmem:[%s21072_s13 + $0x1060] sm:$0xff]  }
 0x742   : > { %18639 = vmatmul.mubr.msk.bf16.gmra.mxu1 %vm773_vm1, %v20704_v17  ;;  %v7703_v19 = vpop.f32.mrf.mxu1  ;;  %18767 = vmatpush3.bf16.msra.mxu0 %v20276_v18  ;;  %v20305_v17 = vld [vmem:[%s21072_s13 + $0xe00] sm:$0xff]  }
 0x743   : > { %18898 = vmatprep.mubr.msk.bf16.mxu1 %vm20904_vm0, %v20903_v4  ;;  %18768 = vmatprep.subr.bf16.mxu0 %v20903_v4 }
 0x744   : > { %v18544_v34 = vpop.f32.mrf.mxu1 }
 0x745   : > { %v20307_v34 = vld [vmem:[%s21072_s13 + $0x1058] sm:$0xff]  }
 0x746   : > { %v7706_v24 = vpop.f32.mrf.mxu1  ;;  %18769 = vmatpush3.bf16.msra.mxu0 %v20278_v22 }
 0x747   : > { %v16066_v12 = vpack.c.bf16 %v7706_v24, %v7703_v19  ;;  %18770 = vmatprep.subr.bf16.mxu0 %v20903_v4 }
 0x748   : > { %v18545_v10 = vpop.f32.mrf.mxu1 }
 0x749   : > { %16259 = vst [vmem:[#allocation3 + $0xc0] sm:$0xff] %v16066_v12  }
 0x74a   : > { %18899 = vmatmul.mubr.bf16.vlgmr.msra.gmra.mxu1 %v20279_v9  ;;  %v7711_v31 = vpop.f32.mrf.mxu1  ;;  %18771 = vmatpush3.bf16.msra.mxu0 %v20281_v27  ;;  %v20308_v9 = vld [vmem:[%s21072_s13 + $0xe78] sm:$0xff]  }
 0x74b   : > { %18923 = vmatpush3.bf16.msra.mxu1 %v20280_v25  ;;  %18772 = vmatprep.subr.bf16.mxu0 %v20903_v4  ;;  %v20306_v25 = vld [vmem:[#allocation3 + $0x38] sm:$0xff]  }
 0x74c   : > { %18924 = vmatprep.subr.bf16.mxu1 %v20903_v4  ;;  %v18548_v38 = vpop.f32.mrf.mxu1  ;;  %18938 = vmatprep.mubr.msk.bf16.mxu1 %vm20904_vm0, %v20903_v4 }
 0x74e   : > { %v7714_v30 = vpop.f32.mrf.mxu1  ;;  %18773 = vmatpush3.bf16.msra.mxu0 %v20283_v28  ;;  %v20310_v28 = vld [vmem:[%s21072_s13 + $0xe70] sm:$0xff]  }
 0x74f   : > { %18925 = vmatpush3.bf16.msra.mxu1 %v20282_v1  ;;  %v16071_v33 = vpack.c.bf16 %v7714_v30, %v7711_v31  ;;  %18774 = vmatprep.subr.bf16.mxu0 %v20903_v4  ;;  %v20309_v1 = vld [vmem:[%s21072_s13 + $0x1050] sm:$0xff]  }
 0x750   : > { %18926 = vmatprep.subr.bf16.mxu1 %v20903_v4  ;;  %v18549_v6 = vpop.f32.mrf.mxu1 }
 0x751   : > { %16260 = vst [vmem:[#allocation3 + $0xc8] sm:$0xff] %v16071_v33   ;;  %v20311_v6 = vld [vmem:[%s21072_s13 + $0x1048] sm:$0xff]  }
 0x752   : > { %v7719_v59 = vpop.f32.mrf.mxu1  ;;  %18775 = vmatpush3.bf16.msra.mxu0 %v20285_v57 }
 0x753   : > { %18927 = vmatpush3.bf16.msra.mxu1 %v20284_v15  ;;  %18776 = vmatprep.subr.bf16.mxu0 %v20903_v4 }
 0x754   : > { %18928 = vmatprep.subr.bf16.mxu1 %v20903_v4  ;;  %v18552_v60 = vpop.f32.mrf.mxu1 }
 0x756   : > { %v7722_v39 = vpop.f32.mrf.mxu1  ;;  %18777 = vmatpush3.bf16.msra.mxu0 %v20287_v21 }
 0x757   : > { %18929 = vmatpush3.bf16.msra.mxu1 %v20286_v20  ;;  %v16076_v62 = vpack.c.bf16 %v7722_v39, %v7719_v59  ;;  %18782 = vmatprep.subr.bf16.mxu0 %v20903_v4  ;;  %v20312_v59 = vld [vmem:[%s21072_s13 + $0xe68] sm:$0xff]  }
 0x758   : > { %18930 = vmatprep.subr.bf16.mxu1 %v20903_v4  ;;  %v18553_v52 = vpop.f32.mrf.mxu1 }
 0x759   : > { %16261 = vst [vmem:[#allocation3 + $0xd0] sm:$0xff] %v16076_v62   ;;  %18779 = vmatmul.mubr.bf16.vlgmr.msra.gmra.mxu0 %v20288_v44  ;;  %v22937_v46 = vpop.f32.mrf.mxu0  ;;  %v20315_v44 = vld [vmem:[#allocation3 + $0x80] sm:$0xff]  }
 0x75a   : > { %v7727_v0 = vpop.f32.mrf.mxu1  ;;  %18783 = vmatpush3.bf16.msra.mxu0 %v20290_v43  ;;  %18798 = vmatprep.mubr.msk.bf16.mxu0 %vm20904_vm0, %v20903_v4  ;;  %v20314_v43 = vld [vmem:[%s21072_s13 + $0xe60] sm:$0xff]  }
 0x75b   : > { %18931 = vmatpush3.bf16.msra.mxu1 %v20289_v41  ;;  %v18660_v51 = vpop.f32.mrf.mxu0  ;;  %18784 = vmatprep.subr.bf16.mxu0 %v20903_v4  ;;  %v20313_v41 = vld [vmem:[%s21072_s13 + $0x1040] sm:$0xff]  }
 0x75c   : > { %18932 = vmatprep.subr.bf16.mxu1 %v20903_v4  ;;  %v18556_v53 = vpop.f32.mrf.mxu1 }
 0x75d   : > { %v22945_v56 = vpop.f32.mrf.mxu0  ;;  %v20318_v53 = vld [vmem:[%s21072_s13 + $0x10f0] sm:$0xff]  }
 0x75e   : > { %v7730_v45 = vpop.f32.mrf.mxu1  ;;  %18785 = vmatpush3.bf16.msra.mxu0 %v20292_v48 }
 0x75f   : > { %18933 = vmatpush3.bf16.msra.mxu1 %v20291_v5  ;;  %v16081_v37 = vpack.c.bf16 %v7730_v45, %v7727_v0  ;;  %v18661_v49 = vpop.f32.mrf.mxu0  ;;  %18786 = vmatprep.subr.bf16.mxu0 %v20903_v4  ;;  %v20317_v0 = vld [vmem:[%s21072_s13 + $0xe58] sm:$0xff]  }
 0x760   : > { %18934 = vmatprep.subr.bf16.mxu1 %v20903_v4  ;;  %v18557_v58 = vpop.f32.mrf.mxu1 }
 0x761   : > { %16262 = vst [vmem:[#allocation3 + $0xd8] sm:$0xff] %v16081_v37   ;;  %v20321_v37 = vld [vmem:[%s21072_s13 + $0xe48] sm:$0xff]  }
 0x762   : > { %v7735_v23 = vpop.f32.mrf.mxu1  ;;  %18787 = vmatpush3.bf16.msra.mxu0 %v20294_v55  ;;  %v20320_v55 = vld [vmem:[%s21072_s13 + $0x10e8] sm:$0xff]  }
 0x763   : > { %18935 = vmatpush3.bf16.msra.mxu1 %v20293_v54  ;;  %18788 = vmatprep.subr.bf16.mxu0 %v20903_v4 }
 0x764   : > { %18936 = vmatprep.subr.bf16.mxu1 %v20903_v4  ;;  %v18560_v40 = vpop.f32.mrf.mxu1 }
 0x766   : > { %v7738_v32 = vpop.f32.mrf.mxu1  ;;  %18789 = vmatpush3.bf16.msra.mxu0 %v20296_v63  ;;  %v20323_v63 = vld [vmem:[%s21072_s13 + $0xe40] sm:$0xff]  }
 0x767   : > { %18937 = vmatpush3.bf16.msra.mxu1 %v20295_v61  ;;  %v16086_v3 = vpack.c.bf16 %v7738_v32, %v7735_v23  ;;  %18790 = vmatprep.subr.bf16.mxu0 %v20903_v4  ;;  %v20322_v61 = vld [vmem:[%s21072_s13 + $0x10e0] sm:$0xff]   ;;  %v20325_v32 = vld [vmem:[%s21072_s13 + $0x10d8] sm:$0xff]  }
 0x768   : > { %18962 = vmatprep.subr.bf16.mxu1 %v20903_v4  ;;  %v18561_v47 = vpop.f32.mrf.mxu1 }
 0x769   : > { %16263 = vst [vmem:[#allocation3 + $0xe0] sm:$0xff] %v16086_v3   ;;  %v20324_v3 = vld [vmem:[#allocation3 + $0x40] sm:$0xff]  }
 0x76a   : > { %18939 = vmatmul.mubr.bf16.vlgmr.msra.gmra.mxu1 %v20297_v26  ;;  %v7743_v7 = vpop.f32.mrf.mxu1  ;;  %18791 = vmatpush3.bf16.msra.mxu0 %v20299_v35 }
 0x76b   : > { %18963 = vmatpush3.bf16.msra.mxu1 %v20298_v2  ;;  %18792 = vmatprep.subr.bf16.mxu0 %v20903_v4  ;;  %v20326_v2 = vld [vmem:[%s21072_s13 + $0xeb8] sm:$0xff]  }
 0x76c   : > { %18964 = vmatprep.subr.bf16.mxu1 %v20903_v4  ;;  %v18564_v36 = vpop.f32.mrf.mxu1  ;;  %18978 = vmatprep.mubr.msk.bf16.mxu1 %vm20904_vm0, %v20903_v4 }
 0x76d   : > { %v20327_v36 = vld [vmem:[%s21072_s13 + $0x10d0] sm:$0xff]  }
 0x76e   : > { %v7746_v50 = vpop.f32.mrf.mxu1  ;;  %18793 = vmatpush3.bf16.msra.mxu0 %v20301_v42 }
 0x76f   : > { %18965 = vmatpush3.bf16.msra.mxu1 %v20300_v8  ;;  %v16091_v11 = vpack.c.bf16 %v7746_v50, %v7743_v7  ;;  %18794 = vmatprep.subr.bf16.mxu0 %v20903_v4  ;;  %v20328_v50 = vld [vmem:[%s21072_s13 + $0xeb0] sm:$0xff]  }
 0x770   : > { %18966 = vmatprep.subr.bf16.mxu1 %v20903_v4  ;;  %v18565_v18 = vpop.f32.mrf.mxu1 }
 0x771   : > { %16264 = vst [vmem:[#allocation3 + $0xe8] sm:$0xff] %v16091_v11  }
 0x772   : > { %v7751_v16 = vpop.f32.mrf.mxu1  ;;  %18795 = vmatpush3.bf16.msra.mxu0 %v20303_v14 }
 0x773   : > { %18967 = vmatpush3.bf16.msra.mxu1 %v20302_v29  ;;  %18796 = vmatprep.subr.bf16.mxu0 %v20903_v4 }
 0x774   : > { %18968 = vmatprep.subr.bf16.mxu1 %v20903_v4  ;;  %v18568_v19 = vpop.f32.mrf.mxu1 }
 0x776   : > { %v7754_v22 = vpop.f32.mrf.mxu1  ;;  %18797 = vmatpush3.bf16.msra.mxu0 %v20305_v17  ;;  %v20330_v17 = vld [vmem:[%s21072_s13 + $0xea8] sm:$0xff]  }
 0x777   : > { %18969 = vmatpush3.bf16.msra.mxu1 %v20304_v13  ;;  %v16096_v24 = vpack.c.bf16 %v7754_v22, %v7751_v16  ;;  %18802 = vmatprep.subr.bf16.mxu0 %v20903_v4  ;;  %v20329_v13 = vld [vmem:[%s21072_s13 + $0x10c8] sm:$0xff]  }
 0x778   : > { %18970 = vmatprep.subr.bf16.mxu1 %v20903_v4  ;;  %v18569_v27 = vpop.f32.mrf.mxu1 }
 0x779   : > { %16265 = vst [vmem:[#allocation3 + $0xf0] sm:$0xff] %v16096_v24   ;;  %v8611_v12 = vpop.f32.mrf.mxu0  ;;  %18799 = vmatmul.mubr.bf16.vlgmr.msra.gmra.mxu0 %v20306_v25  ;;  %v20331_v24 = vld [vmem:[%s21072_s13 + $0x10c0] sm:$0xff]  }
 0x77a   : > { %v7759_v10 = vpop.f32.mrf.mxu1  ;;  %v22978_v31 = vadd.f32 %v8611_v12, %v22937_v46  ;;  %18803 = vmatpush3.bf16.msra.mxu0 %v20308_v9  ;;  %18818 = vmatprep.mubr.msk.bf16.mxu0 %vm20904_vm0, %v20903_v4  ;;  %v20316_v46 = vld [vmem:[%s21072_s13 + $0x10f8] sm:$0xff]   ;;  %v20332_v25 = vld [vmem:[%s21072_s13 + $0xea0] sm:$0xff]   ;;  %v20333_v12 = vld [vmem:[#allocation3 + $0x90] sm:$0xff]  }
 0x77b   : > { %18971 = vmatpush3.bf16.msra.mxu1 %v20307_v34  ;;  %v18680_v38 = vpop.f32.mrf.mxu0  ;;  %18804 = vmatprep.subr.bf16.mxu0 %v20903_v4 }
 0x77c   : > { %18972 = vmatprep.subr.bf16.mxu1 %v20903_v4  ;;  %v18572_v30 = vpop.f32.mrf.mxu1 }
 0x77d   : > { %v8614_v15 = vpop.f32.mrf.mxu0 }
 0x77e   : > { %v7762_v57 = vpop.f32.mrf.mxu1  ;;  %v22987_v33 = vadd.f32 %v8614_v15, %v22945_v56  ;;  %18805 = vmatpush3.bf16.msra.mxu0 %v20310_v28  ;;  %v20319_v56 = vld [vmem:[%s21072_s13 + $0xe50] sm:$0xff]  }
 0x77f   : > { %18973 = vmatpush3.bf16.msra.mxu1 %v20309_v1  ;;  %v16101_v20 = vpack.c.bf16 %v7762_v57, %v7759_v10  ;;  %v18681_v21 = vpop.f32.mrf.mxu0  ;;  %18806 = vmatprep.subr.bf16.mxu0 %v20903_v4  ;;  %v20335_v1 = vld [vmem:[%s21072_s13 + $0xe98] sm:$0xff]   ;;  %v20336_v15 = vld [vmem:[%s21072_s13 + $0x1170] sm:$0xff]  }
 0x780   : > { %18974 = vmatprep.subr.bf16.mxu1 %v20903_v4  ;;  %v18573_v60 = vpop.f32.mrf.mxu1  ;;  %v20337_v57 = vld [vmem:[%s21072_s13 + $0xe90] sm:$0xff]  }
 0x781   : > { %16266 = vst [vmem:[#allocation3 + $0xf8] sm:$0xff] %v16101_v20   ;;  %v20339_v20 = vld [vmem:[%s21072_s13 + $0xe88] sm:$0xff]  }
 0x782   : > { %v7767_v39 = vpop.f32.mrf.mxu1  ;;  %18807 = vmatpush3.bf16.msra.mxu0 %v20312_v59  ;;  %v20338_v59 = vld [vmem:[%s21072_s13 + $0x1168] sm:$0xff]  }
 0x783   : > { %18975 = vmatpush3.bf16.msra.mxu1 %v20311_v6  ;;  %18808 = vmatprep.subr.bf16.mxu0 %v20903_v4 }
 0x784   : > { %18976 = vmatprep.subr.bf16.mxu1 %v20903_v4  ;;  %v18576_v62 = vpop.f32.mrf.mxu1 }
 0x786   : > { %v7770_v52 = vpop.f32.mrf.mxu1  ;;  %18809 = vmatpush3.bf16.msra.mxu0 %v20314_v43  ;;  %v20341_v43 = vld [vmem:[%s21072_s13 + $0xe80] sm:$0xff]  }
 0x787   : > { %18977 = vmatpush3.bf16.msra.mxu1 %v20313_v41  ;;  %v16106_v5 = vpack.c.bf16 %v7770_v52, %v7767_v39  ;;  %18810 = vmatprep.subr.bf16.mxu0 %v20903_v4  ;;  %v20340_v41 = vld [vmem:[%s21072_s13 + $0x1160] sm:$0xff]   ;;  %v20343_v52 = vld [vmem:[%s21072_s13 + $0x1158] sm:$0xff]  }
 0x788   : > { %19002 = vmatprep.subr.bf16.mxu1 %v20903_v4  ;;  %v18577_v48 = vpop.f32.mrf.mxu1 }
 0x789   : > { %16267 = vst [vmem:[#allocation3 + $0x100] sm:$0xff] %v16106_v5   ;;  %v20342_v5 = vld [vmem:[#allocation3 + $0x48] sm:$0xff]  }
 0x78a   : > { %18979 = vmatmul.mubr.bf16.vlgmr.msra.gmra.mxu1 %v20315_v44  ;;  %v7775_v51 = vpop.f32.mrf.mxu1  ;;  %18811 = vmatpush3.bf16.msra.mxu0 %v20317_v0 }
 0x78b   : > { %19003 = vmatpush3.bf16.msra.mxu1 %v20316_v46  ;;  %18812 = vmatprep.subr.bf16.mxu0 %v20903_v4  ;;  %v20344_v46 = vld [vmem:[%s21072_s13 + $0xef8] sm:$0xff]  }
 0x78c   : > { %19004 = vmatprep.subr.bf16.mxu1 %v20903_v4  ;;  %v18580_v45 = vpop.f32.mrf.mxu1  ;;  %19018 = vmatprep.mubr.msk.bf16.mxu1 %vm20904_vm0, %v20903_v4 }
 0x78d   : > { %v20345_v45 = vld [vmem:[%s21072_s13 + $0x1150] sm:$0xff]  }
 0x78e   : > { %v7778_v54 = vpop.f32.mrf.mxu1  ;;  %18813 = vmatpush3.bf16.msra.mxu0 %v20319_v56 }
 0x78f   : > { %19005 = vmatpush3.bf16.msra.mxu1 %v20318_v53  ;;  %v16111_v49 = vpack.c.bf16 %v7778_v54, %v7775_v51  ;;  %18814 = vmatprep.subr.bf16.mxu0 %v20903_v4  ;;  %v20346_v54 = vld [vmem:[%s21072_s13 + $0xef0] sm:$0xff]  }
 0x790   : > { %19006 = vmatprep.subr.bf16.mxu1 %v20903_v4  ;;  %v18581_v58 = vpop.f32.mrf.mxu1 }
 0x791   : > { %16268 = vst [vmem:[#allocation3 + $0x108] sm:$0xff] %v16111_v49  }
 0x792   : > { %v7783_v23 = vpop.f32.mrf.mxu1  ;;  %18815 = vmatpush3.bf16.msra.mxu0 %v20321_v37 }
 0x793   : > { %19007 = vmatpush3.bf16.msra.mxu1 %v20320_v55  ;;  %18816 = vmatprep.subr.bf16.mxu0 %v20903_v4 }
 0x794   : > { %19008 = vmatprep.subr.bf16.mxu1 %v20903_v4  ;;  %v18584_v40 = vpop.f32.mrf.mxu1 }
 0x796   : > { %v7786_v26 = vpop.f32.mrf.mxu1  ;;  %18817 = vmatpush3.bf16.msra.mxu0 %v20323_v63  ;;  %v20348_v63 = vld [vmem:[%s21072_s13 + $0xee8] sm:$0xff]  }
 0x797   : > { %19009 = vmatpush3.bf16.msra.mxu1 %v20322_v61  ;;  %v16116_v35 = vpack.c.bf16 %v7786_v26, %v7783_v23  ;;  %18822 = vmatprep.subr.bf16.mxu0 %v20903_v4  ;;  %v20347_v61 = vld [vmem:[%s21072_s13 + $0x1148] sm:$0xff]  }
 0x798   : > { %19010 = vmatprep.subr.bf16.mxu1 %v20903_v4  ;;  %v18585_v47 = vpop.f32.mrf.mxu1 }
 0x799   : > { %16269 = vst [vmem:[#allocation3 + $0x110] sm:$0xff] %v16116_v35   ;;  %v8724_v7 = vpop.f32.mrf.mxu0  ;;  %18819 = vmatmul.mubr.bf16.vlgmr.msra.gmra.mxu0 %v20324_v3  ;;  %v20349_v35 = vld [vmem:[%s21072_s13 + $0x1140] sm:$0xff]  }
 0x79a   : > { %v7791_v8 = vpop.f32.mrf.mxu1  ;;  %v23020_v42 = vadd.f32 %v8724_v7, %v22978_v31  ;;  %18823 = vmatpush3.bf16.msra.mxu0 %v20326_v2  ;;  %18838 = vmatprep.mubr.msk.bf16.mxu0 %vm20904_vm0, %v20903_v4  ;;  %v20334_v31 = vld [vmem:[%s21072_s13 + $0x1178] sm:$0xff]   ;;  %v20350_v3 = vld [vmem:[%s21072_s13 + $0xee0] sm:$0xff]  }
 0x79b   : > { %19011 = vmatpush3.bf16.msra.mxu1 %v20325_v32  ;;  %v18700_v29 = vpop.f32.mrf.mxu0  ;;  %18824 = vmatprep.subr.bf16.mxu0 %v20903_v4  ;;  %v20351_v7 = vld [vmem:[#allocation3 + $0xa0] sm:$0xff]  }
 0x79c   : > { %19012 = vmatprep.subr.bf16.mxu1 %v20903_v4  ;;  %v18588_v14 = vpop.f32.mrf.mxu1 }
 0x79d   : > { %v8727_v11 = vpop.f32.mrf.mxu0 }
 0x79e   : > { %v7794_v18 = vpop.f32.mrf.mxu1  ;;  %v23029_v16 = vadd.f32 %v8727_v11, %v22987_v33  ;;  %18825 = vmatpush3.bf16.msra.mxu0 %v20328_v50  ;;  %v20354_v11 = vld [vmem:[%s21072_s13 + $0x11f0] sm:$0xff]  }
 0x79f   : > { %19013 = vmatpush3.bf16.msra.mxu1 %v20327_v36  ;;  %v16121_v19 = vpack.c.bf16 %v7794_v18, %v7791_v8  ;;  %v18701_v22 = vpop.f32.mrf.mxu0  ;;  %18826 = vmatprep.subr.bf16.mxu0 %v20903_v4  ;;  %v20353_v36 = vld [vmem:[%s21072_s13 + $0xed8] sm:$0xff]   ;;  %v20355_v18 = vld [vmem:[%s21072_s13 + $0xed0] sm:$0xff]  }
 0x7a0   : > { %19014 = vmatprep.subr.bf16.mxu1 %v20903_v4  ;;  %v18589_v34 = vpop.f32.mrf.mxu1 }
 0x7a1   : > { %16270 = vst [vmem:[#allocation3 + $0x118] sm:$0xff] %v16121_v19   ;;  %v20357_v19 = vld [vmem:[%s21072_s13 + $0xec8] sm:$0xff]  }
 0x7a2   : > { %v7799_v9 = vpop.f32.mrf.mxu1  ;;  %18827 = vmatpush3.bf16.msra.mxu0 %v20330_v17  ;;  %v20356_v17 = vld [vmem:[%s21072_s13 + $0x11e8] sm:$0xff]  }
 0x7a3   : > { %19015 = vmatpush3.bf16.msra.mxu1 %v20329_v13  ;;  %18828 = vmatprep.subr.bf16.mxu0 %v20903_v4 }
 0x7a4   : > { %19016 = vmatprep.subr.bf16.mxu1 %v20903_v4  ;;  %v18592_v27 = vpop.f32.mrf.mxu1 }
 0x7a6   : > { %v7802_v10 = vpop.f32.mrf.mxu1  ;;  %18829 = vmatpush3.bf16.msra.mxu0 %v20332_v25  ;;  %v20359_v25 = vld [vmem:[%s21072_s13 + $0xec0] sm:$0xff]  }
 0x7a7   : > { %19017 = vmatpush3.bf16.msra.mxu1 %v20331_v24  ;;  %v16126_v28 = vpack.c.bf16 %v7802_v10, %v7799_v9  ;;  %18830 = vmatprep.subr.bf16.mxu0 %v20903_v4  ;;  %v20358_v24 = vld [vmem:[%s21072_s13 + $0x11e0] sm:$0xff]   ;;  %v20361_v10 = vld [vmem:[%s21072_s13 + $0x11d8] sm:$0xff]  }
 0x7a8   : > { %19042 = vmatprep.subr.bf16.mxu1 %v20903_v4  ;;  %v18593_v38 = vpop.f32.mrf.mxu1 }
 0x7a9   : > { %16271 = vst [vmem:[#allocation3 + $0x120] sm:$0xff] %v16126_v28   ;;  %v20360_v28 = vld [vmem:[#allocation3 + $0x50] sm:$0xff]  }
 0x7aa   : > { %19019 = vmatmul.mubr.bf16.vlgmr.msra.gmra.mxu1 %v20333_v12  ;;  %v7807_v30 = vpop.f32.mrf.mxu1  ;;  %18831 = vmatpush3.bf16.msra.mxu0 %v20335_v1 }
 0x7ab   : > { %19043 = vmatpush3.bf16.msra.mxu1 %v20334_v31  ;;  %18832 = vmatprep.subr.bf16.mxu0 %v20903_v4  ;;  %v20362_v31 = vld [vmem:[%s21072_s13 + $0xf38] sm:$0xff]  }
 0x7ac   : > { %19044 = vmatprep.subr.bf16.mxu1 %v20903_v4  ;;  %v18596_v33 = vpop.f32.mrf.mxu1  ;;  %19058 = vmatprep.mubr.msk.bf16.mxu1 %vm20904_vm0, %v20903_v4 }
 0x7ad   : > { %v20363_v33 = vld [vmem:[%s21072_s13 + $0x11d0] sm:$0xff]  }
 0x7ae   : > { %v7810_v6 = vpop.f32.mrf.mxu1  ;;  %18833 = vmatpush3.bf16.msra.mxu0 %v20337_v57 }
 0x7af   : > { %19045 = vmatpush3.bf16.msra.mxu1 %v20336_v15  ;;  %v16131_v21 = vpack.c.bf16 %v7810_v6, %v7807_v30  ;;  %18834 = vmatprep.subr.bf16.mxu0 %v20903_v4  ;;  %v20364_v6 = vld [vmem:[%s21072_s13 + $0xf30] sm:$0xff]  }
 0x7b0   : > { %19046 = vmatprep.subr.bf16.mxu1 %v20903_v4  ;;  %v18597_v60 = vpop.f32.mrf.mxu1 }
 0x7b1   : > { %16272 = vst [vmem:[#allocation3 + $0x128] sm:$0xff] %v16131_v21  }
 0x7b2   : > { %v7815_v39 = vpop.f32.mrf.mxu1  ;;  %18835 = vmatpush3.bf16.msra.mxu0 %v20339_v20 }
 0x7b3   : > { %19047 = vmatpush3.bf16.msra.mxu1 %v20338_v59  ;;  %18836 = vmatprep.subr.bf16.mxu0 %v20903_v4 }
 0x7b4   : > { %19048 = vmatprep.subr.bf16.mxu1 %v20903_v4  ;;  %v18600_v62 = vpop.f32.mrf.mxu1 }
 0x7b6   : > { %v7818_v44 = vpop.f32.mrf.mxu1  ;;  %18837 = vmatpush3.bf16.msra.mxu0 %v20341_v43  ;;  %v20366_v43 = vld [vmem:[%s21072_s13 + $0xf28] sm:$0xff]  }
 0x7b7   : > { %19049 = vmatpush3.bf16.msra.mxu1 %v20340_v41  ;;  %v16136_v0 = vpack.c.bf16 %v7818_v44, %v7815_v39  ;;  %18842 = vmatprep.subr.bf16.mxu0 %v20903_v4  ;;  %v20365_v41 = vld [vmem:[%s21072_s13 + $0x11c8] sm:$0xff]  }
 0x7b8   : > { %19050 = vmatprep.subr.bf16.mxu1 %v20903_v4  ;;  %v18601_v48 = vpop.f32.mrf.mxu1 }
 0x7b9   : > { %16273 = vst [vmem:[#allocation3 + $0x130] sm:$0xff] %v16136_v0   ;;  %v8839_v51 = vpop.f32.mrf.mxu0  ;;  %18839 = vmatmul.mubr.bf16.vlgmr.msra.gmra.mxu0 %v20342_v5  ;;  %v20367_v0 = vld [vmem:[%s21072_s13 + $0x11c0] sm:$0xff]  }
 0x7ba   : > { %v7823_v53 = vpop.f32.mrf.mxu1  ;;  %v23062_v56 = vadd.f32 %v8839_v51, %v23020_v42  ;;  %18843 = vmatpush3.bf16.msra.mxu0 %v20344_v46  ;;  %18858 = vmatprep.mubr.msk.bf16.mxu0 %vm20904_vm0, %v20903_v4  ;;  %v20352_v42 = vld [vmem:[%s21072_s13 + $0x11f8] sm:$0xff]   ;;  %v20368_v5 = vld [vmem:[%s21072_s13 + $0xf20] sm:$0xff]   ;;  %v20369_v51 = vld [vmem:[#allocation3 + $0xb0] sm:$0xff]  }
 0x7bb   : > { %19051 = vmatpush3.bf16.msra.mxu1 %v20343_v52  ;;  %v18720_v55 = vpop.f32.mrf.mxu0  ;;  %18844 = vmatprep.subr.bf16.mxu0 %v20903_v4 }
 0x7bc   : > { %19052 = vmatprep.subr.bf16.mxu1 %v20903_v4  ;;  %v18604_v37 = vpop.f32.mrf.mxu1 }
 0x7bd   : > { %v8842_v49 = vpop.f32.mrf.mxu0 }
 0x7be   : > { %v7826_v58 = vpop.f32.mrf.mxu1  ;;  %v23071_v23 = vadd.f32 %v8842_v49, %v23029_v16  ;;  %18845 = vmatpush3.bf16.msra.mxu0 %v20346_v54  ;;  %v20372_v49 = vld [vmem:[%s21072_s13 + $0x1270] sm:$0xff]  }
 0x7bf   : > { %19053 = vmatpush3.bf16.msra.mxu1 %v20345_v45  ;;  %v16141_v40 = vpack.c.bf16 %v7826_v58, %v7823_v53  ;;  %v18721_v26 = vpop.f32.mrf.mxu0  ;;  %18846 = vmatprep.subr.bf16.mxu0 %v20903_v4  ;;  %v20371_v45 = vld [vmem:[%s21072_s13 + $0xf18] sm:$0xff]   ;;  %v20373_v58 = vld [vmem:[%s21072_s13 + $0xf10] sm:$0xff]  }
 0x7c0   : > { %19054 = vmatprep.subr.bf16.mxu1 %v20903_v4  ;;  %v18605_v32 = vpop.f32.mrf.mxu1 }
 0x7c1   : > { %16274 = vst [vmem:[#allocation3 + $0x138] sm:$0xff] %v16141_v40   ;;  %v20375_v40 = vld [vmem:[%s21072_s13 + $0xf08] sm:$0xff]  }
 0x7c2   : > { %v7831_v2 = vpop.f32.mrf.mxu1  ;;  %18847 = vmatpush3.bf16.msra.mxu0 %v20348_v63  ;;  %v20374_v63 = vld [vmem:[%s21072_s13 + $0x1268] sm:$0xff]  }
 0x7c3   : > { %19055 = vmatpush3.bf16.msra.mxu1 %v20347_v61  ;;  %18848 = vmatprep.subr.bf16.mxu0 %v20903_v4 }
 0x7c4   : > { %19056 = vmatprep.subr.bf16.mxu1 %v20903_v4  ;;  %v18608_v47 = vpop.f32.mrf.mxu1 }
 0x7c6   : > { %v7834_v8 = vpop.f32.mrf.mxu1  ;;  %18849 = vmatpush3.bf16.msra.mxu0 %v20350_v3  ;;  %v20377_v3 = vld [vmem:[%s21072_s13 + $0xf00] sm:$0xff]  }
 0x7c7   : > { %19057 = vmatpush3.bf16.msra.mxu1 %v20349_v35  ;;  %v16146_v50 = vpack.c.bf16 %v7834_v8, %v7831_v2  ;;  %18850 = vmatprep.subr.bf16.mxu0 %v20903_v4  ;;  %v20376_v35 = vld [vmem:[%s21072_s13 + $0x1260] sm:$0xff]   ;;  %v20379_v8 = vld [vmem:[%s21072_s13 + $0x1258] sm:$0xff]  }
 0x7c8   : > { %19082 = vmatprep.subr.bf16.mxu1 %v20903_v4  ;;  %v18609_v29 = vpop.f32.mrf.mxu1 }
 0x7c9   : > { %16275 = vst [vmem:[#allocation3 + $0x140] sm:$0xff] %v16146_v50   ;;  %v20378_v50 = vld [vmem:[#allocation3 + $0x58] sm:$0xff]  }
 0x7ca   : > { %19059 = vmatmul.mubr.bf16.vlgmr.msra.gmra.mxu1 %v20351_v7  ;;  %v7839_v14 = vpop.f32.mrf.mxu1  ;;  %18851 = vmatpush3.bf16.msra.mxu0 %v20353_v36 }
 0x7cb   : > { %19083 = vmatpush3.bf16.msra.mxu1 %v20352_v42  ;;  %18852 = vmatprep.subr.bf16.mxu0 %v20903_v4  ;;  %v20380_v42 = vld [vmem:[%s21072_s13 + $0xfb8] sm:$0xff]  }
 0x7cc   : > { %19084 = vmatprep.subr.bf16.mxu1 %v20903_v4  ;;  %v18612_v16 = vpop.f32.mrf.mxu1  ;;  %19098 = vmatprep.mubr.msk.bf16.mxu1 %vm20904_vm0, %v20903_v4 }
 0x7cd   : > { %v20381_v16 = vld [vmem:[%s21072_s13 + $0x1250] sm:$0xff]  }
 0x7ce   : > { %v7842_v13 = vpop.f32.mrf.mxu1  ;;  %18853 = vmatpush3.bf16.msra.mxu0 %v20355_v18 }
 0x7cf   : > { %19085 = vmatpush3.bf16.msra.mxu1 %v20354_v11  ;;  %v16151_v22 = vpack.c.bf16 %v7842_v13, %v7839_v14  ;;  %18854 = vmatprep.subr.bf16.mxu0 %v20903_v4  ;;  %v20382_v13 = vld [vmem:[%s21072_s13 + $0xfb0] sm:$0xff]  }
 0x7d0   : > { %19086 = vmatprep.subr.bf16.mxu1 %v20903_v4  ;;  %v18613_v34 = vpop.f32.mrf.mxu1 }
 0x7d1   : > { %16276 = vst [vmem:[#allocation3 + $0x148] sm:$0xff] %v16151_v22  }
 0x7d2   : > { %v7847_v9 = vpop.f32.mrf.mxu1  ;;  %18855 = vmatpush3.bf16.msra.mxu0 %v20357_v19 }
 0x7d3   : > { %19087 = vmatpush3.bf16.msra.mxu1 %v20356_v17  ;;  %18856 = vmatprep.subr.bf16.mxu0 %v20903_v4 }
 0x7d4   : > { %19088 = vmatprep.subr.bf16.mxu1 %v20903_v4  ;;  %v18616_v27 = vpop.f32.mrf.mxu1 }
 0x7d6   : > { %v7850_v12 = vpop.f32.mrf.mxu1  ;;  %18857 = vmatpush3.bf16.msra.mxu0 %v20359_v25  ;;  %v20384_v25 = vld [vmem:[%s21072_s13 + $0xfa8] sm:$0xff]  }
 0x7d7   : > { %19089 = vmatpush3.bf16.msra.mxu1 %v20358_v24  ;;  %v16156_v1 = vpack.c.bf16 %v7850_v12, %v7847_v9  ;;  %18862 = vmatprep.subr.bf16.mxu0 %v20903_v4  ;;  %v20383_v24 = vld [vmem:[%s21072_s13 + $0x1248] sm:$0xff]  }
 0x7d8   : > { %19090 = vmatprep.subr.bf16.mxu1 %v20903_v4  ;;  %v18617_v38 = vpop.f32.mrf.mxu1 }
 0x7d9   : > { %16277 = vst [vmem:[#allocation3 + $0x150] sm:$0xff] %v16156_v1   ;;  %v8954_v30 = vpop.f32.mrf.mxu0  ;;  %18859 = vmatmul.mubr.bf16.vlgmr.msra.gmra.mxu0 %v20360_v28  ;;  %v20385_v1 = vld [vmem:[%s21072_s13 + $0x1240] sm:$0xff]  }
 0x7da   : > { %v7855_v15 = vpop.f32.mrf.mxu1  ;;  %v23104_v57 = vadd.f32 %v8954_v30, %v23062_v56  ;;  %18863 = vmatpush3.bf16.msra.mxu0 %v20362_v31  ;;  %18878 = vmatprep.mubr.msk.bf16.mxu0 %vm20904_vm0, %v20903_v4  ;;  %v20370_v56 = vld [vmem:[%s21072_s13 + $0x1278] sm:$0xff]   ;;  %v20386_v28 = vld [vmem:[%s21072_s13 + $0xfa0] sm:$0xff]  }
 0x7db   : > { %19091 = vmatpush3.bf16.msra.mxu1 %v20361_v10  ;;  %v18740_v59 = vpop.f32.mrf.mxu0  ;;  %18864 = vmatprep.subr.bf16.mxu0 %v20903_v4 }
 0x7dc   : > { %19092 = vmatprep.subr.bf16.mxu1 %v20903_v4  ;;  %v18620_v20 = vpop.f32.mrf.mxu1 }
 0x7dd   : > { %v8957_v21 = vpop.f32.mrf.mxu0 }
 0x7de   : > { %v7858_v60 = vpop.f32.mrf.mxu1  ;;  %v23113_v39 = vadd.f32 %v8957_v21, %v23071_v23  ;;  %18865 = vmatpush3.bf16.msra.mxu0 %v20364_v6  ;;  %v20387_v6 = vld [vmem:[#allocation3 + $0xc0] sm:$0xff]   ;;  %v20390_v21 = vld [vmem:[%s21072_s13 + $0x12f0] sm:$0xff]  }
 0x7df   : > { %19093 = vmatpush3.bf16.msra.mxu1 %v20363_v33  ;;  %v16161_v62 = vpack.c.bf16 %v7858_v60, %v7855_v15  ;;  %v18741_v44 = vpop.f32.mrf.mxu0  ;;  %18866 = vmatprep.subr.bf16.mxu0 %v20903_v4  ;;  %v20388_v15 = vld [vmem:[%s21072_s13 + $0x12f8] sm:$0xff]   ;;  %v20391_v60 = vld [vmem:[%s21072_s13 + $0xf90] sm:$0xff]  }
 0x7e0   : > { %19094 = vmatprep.subr.bf16.mxu1 %v20903_v4  ;;  %v18621_v52 = vpop.f32.mrf.mxu1 }
 0x7e1   : > { %16278 = vst [vmem:[#allocation3 + $0x158] sm:$0xff] %v16161_v62   ;;  %v20393_v62 = vld [vmem:[%s21072_s13 + $0xf88] sm:$0xff]   ;;  %v20394_v52 = vld [vmem:[%s21072_s13 + $0x12e0] sm:$0xff]  }
 0x7e2   : > { %v7863_v46 = vpop.f32.mrf.mxu1  ;;  %18867 = vmatpush3.bf16.msra.mxu0 %v20366_v43  ;;  %v20392_v43 = vld [vmem:[%s21072_s13 + $0x12e8] sm:$0xff]  }
 0x7e3   : > { %19095 = vmatpush3.bf16.msra.mxu1 %v20365_v41  ;;  %18868 = vmatprep.subr.bf16.mxu0 %v20903_v4 }
 0x7e4   : > { %19096 = vmatprep.subr.bf16.mxu1 %v20903_v4  ;;  %v18624_v48 = vpop.f32.mrf.mxu1 }
 0x7e5   : > { %v20396_v48 = vld [vmem:[#allocation3 + $0x68] sm:$0xff]  }
 0x7e6   : > { %v7866_v53 = vpop.f32.mrf.mxu1  ;;  %18869 = vmatpush3.bf16.msra.mxu0 %v20368_v5  ;;  %v20398_v5 = vld [vmem:[%s21072_s13 + $0x1038] sm:$0xff]  }
 0x7e7   : > { %19097 = vmatpush3.bf16.msra.mxu1 %v20367_v0  ;;  %v16166_v54 = vpack.c.bf16 %v7866_v53, %v7863_v46  ;;  %18870 = vmatprep.subr.bf16.mxu0 %v20903_v4  ;;  %v20395_v46 = vld [vmem:[%s21072_s13 + $0xf80] sm:$0xff]   ;;  %v20397_v0 = vld [vmem:[%s21072_s13 + $0x12d8] sm:$0xff]  }
 0x7e8   : > { %19122 = vmatprep.subr.bf16.mxu1 %v20903_v4  ;;  %v18625_v55 = vpop.f32.mrf.mxu1 }
 0x7e9   : > { %16279 = vst [vmem:[#allocation3 + $0x160] sm:$0xff] %v16166_v54  }
 0x7ea   : > { %19099 = vmatmul.mubr.bf16.vlgmr.msra.gmra.mxu1 %v20369_v51  ;;  %v7871_v37 = vpop.f32.mrf.mxu1  ;;  %18871 = vmatpush3.bf16.msra.mxu0 %v20371_v45  ;;  %v20400_v45 = vld [vmem:[%s21072_s13 + $0x1030] sm:$0xff]  }
 0x7eb   : > { %19123 = vmatpush3.bf16.msra.mxu1 %v20370_v56  ;;  %18872 = vmatprep.subr.bf16.mxu0 %v20903_v4  ;;  %v20399_v56 = vld [vmem:[%s21072_s13 + $0x12d0] sm:$0xff]  }
 0x7ec   : > { %19124 = vmatprep.subr.bf16.mxu1 %v20903_v4  ;;  %v18628_v23 = vpop.f32.mrf.mxu1  ;;  %19138 = vmatprep.mubr.msk.bf16.mxu1 %vm20904_vm0, %v20903_v4 }
 0x7ee   : > { %v7874_v61 = vpop.f32.mrf.mxu1  ;;  %18873 = vmatpush3.bf16.msra.mxu0 %v20373_v58  ;;  %v20402_v58 = vld [vmem:[%s21072_s13 + $0x1028] sm:$0xff]  }
 0x7ef   : > { %19125 = vmatpush3.bf16.msra.mxu1 %v20372_v49  ;;  %v16171_v26 = vpack.c.bf16 %v7874_v61, %v7871_v37  ;;  %18874 = vmatprep.subr.bf16.mxu0 %v20903_v4  ;;  %v20401_v49 = vld [vmem:[%s21072_s13 + $0x12c8] sm:$0xff]   ;;  %v20403_v61 = vld [vmem:[%s21072_s13 + $0x12c0] sm:$0xff]  }
 0x7f0   : > { %19126 = vmatprep.subr.bf16.mxu1 %v20903_v4  ;;  %v18629_v32 = vpop.f32.mrf.mxu1 }
 0x7f1   : > { %16280 = vst [vmem:[#allocation3 + $0x168] sm:$0xff] %v16171_v26   ;;  %v20407_v26 = vld [vmem:[%s21072_s13 + $0x1018] sm:$0xff]   ;;  %v20405_v32 = vld [vmem:[#allocation3 + $0xd0] sm:$0xff]  }
 0x7f2   : > { %v7879_v2 = vpop.f32.mrf.mxu1  ;;  %18875 = vmatpush3.bf16.msra.mxu0 %v20375_v40  ;;  %v20406_v40 = vld [vmem:[%s21072_s13 + $0x1378] sm:$0xff]  }
 0x7f3   : > { %19127 = vmatpush3.bf16.msra.mxu1 %v20374_v63  ;;  %18876 = vmatprep.subr.bf16.mxu0 %v20903_v4  ;;  %v20404_v63 = vld [vmem:[%s21072_s13 + $0x1020] sm:$0xff]  }
 0x7f4   : > { %19128 = vmatprep.subr.bf16.mxu1 %v20903_v4  ;;  %v18632_v47 = vpop.f32.mrf.mxu1 }
 0x7f6   : > { %v7882_v7 = vpop.f32.mrf.mxu1  ;;  %18877 = vmatpush3.bf16.msra.mxu0 %v20377_v3  ;;  %v20409_v3 = vld [vmem:[%s21072_s13 + $0x1010] sm:$0xff]  }
 0x7f7   : > { %19129 = vmatpush3.bf16.msra.mxu1 %v20376_v35  ;;  %v16176_v36 = vpack.c.bf16 %v7882_v7, %v7879_v2  ;;  %18902 = vmatprep.subr.bf16.mxu0 %v20903_v4  ;;  %v20408_v35 = vld [vmem:[%s21072_s13 + $0x1370] sm:$0xff]  }
 0x7f8   : > { %19130 = vmatprep.subr.bf16.mxu1 %v20903_v4  ;;  %v18633_v29 = vpop.f32.mrf.mxu1 }
 0x7f9   : > { %16281 = vst [vmem:[#allocation3 + $0x170] sm:$0xff] %v16176_v36   ;;  %v9069_v14 = vpop.f32.mrf.mxu0  ;;  %18879 = vmatmul.mubr.bf16.vlgmr.msra.gmra.mxu0 %v20378_v50  ;;  %v20412_v50 = vld [vmem:[%s21072_s13 + $0x1360] sm:$0xff]  }
 0x7fa   : > { %v7887_v11 = vpop.f32.mrf.mxu1  ;;  %v23146_v18 = vadd.f32 %v9069_v14, %v23104_v57  ;;  %18903 = vmatpush3.bf16.msra.mxu0 %v20380_v42  ;;  %18918 = vmatprep.mubr.msk.bf16.mxu0 %vm20904_vm0, %v20903_v4  ;;  %v20389_v57 = vld [vmem:[%s21072_s13 + $0xf98] sm:$0xff]   ;;  %v20411_v42 = vld [vmem:[%s21072_s13 + $0x1008] sm:$0xff]   ;;  %v20413_v29 = vld [vmem:[%s21072_s13 + $0x1000] sm:$0xff]  }
 0x7fb   : > { %19131 = vmatpush3.bf16.msra.mxu1 %v20379_v8  ;;  %v18760_v17 = vpop.f32.mrf.mxu0  ;;  %18904 = vmatprep.subr.bf16.mxu0 %v20903_v4  ;;  %v20410_v8 = vld [vmem:[%s21072_s13 + $0x1368] sm:$0xff]   ;;  %v20415_v14 = vld [vmem:[%s21072_s13 + $0x1358] sm:$0xff]  }
 0x7fc   : > { %19132 = vmatprep.subr.bf16.mxu1 %v20903_v4  ;;  %v18636_v19 = vpop.f32.mrf.mxu1  ;;  %v20417_v17 = vld [vmem:[%s21072_s13 + $0x1350] sm:$0xff]  }
 0x7fd   : > { %v9072_v22 = vpop.f32.mrf.mxu0  ;;  %v20418_v19 = vld [vmem:[%s21072_s13 + $0x10b0] sm:$0xff]  }
 0x7fe   : > { %v7890_v34 = vpop.f32.mrf.mxu1  ;;  %v23155_v9 = vadd.f32 %v9072_v22, %v23113_v39  ;;  %18905 = vmatpush3.bf16.msra.mxu0 %v20382_v13 }
 0x7ff   : > { %19133 = vmatpush3.bf16.msra.mxu1 %v20381_v16  ;;  %v16181_v27 = vpack.c.bf16 %v7890_v34, %v7887_v11  ;;  %v18761_v12 = vpop.f32.mrf.mxu0  ;;  %18906 = vmatprep.subr.bf16.mxu0 %v20903_v4  ;;  %v20416_v11 = vld [vmem:[%s21072_s13 + $0x10b8] sm:$0xff]  }
 0x800   : > { %19134 = vmatprep.subr.bf16.mxu1 %v20903_v4  ;;  %v18637_v10 = vpop.f32.mrf.mxu1  ;;  %v20421_v12 = vld [vmem:[%s21072_s13 + $0x1340] sm:$0xff]  }
 0x801   : > { %16282 = vst [vmem:[#allocation3 + $0x178] sm:$0xff] %v16181_v27   ;;  %v20422_v10 = vld [vmem:[%s21072_s13 + $0x10a0] sm:$0xff]  }
 0x802   : > { %v7895_v31 = vpop.f32.mrf.mxu1  ;;  %18907 = vmatpush3.bf16.msra.mxu0 %v20384_v25  ;;  %v20420_v25 = vld [vmem:[%s21072_s13 + $0x10a8] sm:$0xff]  }
 0x803   : > { %19135 = vmatpush3.bf16.msra.mxu1 %v20383_v24  ;;  %18908 = vmatprep.subr.bf16.mxu0 %v20903_v4  ;;  %v20419_v24 = vld [vmem:[%s21072_s13 + $0x1348] sm:$0xff]  }
 0x804   : > { %19136 = vmatprep.subr.bf16.mxu1 %v20903_v4  ;;  %v18640_v38 = vpop.f32.mrf.mxu1 }
 0x806   : > { %v7898_v30 = vpop.f32.mrf.mxu1  ;;  %18909 = vmatpush3.bf16.msra.mxu0 %v20386_v28  ;;  %v20423_v28 = vld [vmem:[#allocation3 + $0xe0] sm:$0xff]  }
 0x807   : > { %19137 = vmatpush3.bf16.msra.mxu1 %v20385_v1  ;;  %v16186_v33 = vpack.c.bf16 %v7898_v30, %v7895_v31  ;;  %18910 = vmatprep.subr.bf16.mxu0 %v20903_v4  ;;  %v20424_v31 = vld [vmem:[%s21072_s13 + $0x13f8] sm:$0xff]   ;;  %v20426_v30 = vld [vmem:[%s21072_s13 + $0x13f0] sm:$0xff]  }
 0x808   : > { %19162 = vmatprep.subr.bf16.mxu1 %v20903_v4  ;;  %v18641_v59 = vpop.f32.mrf.mxu1  ;;  %v20425_v1 = vld [vmem:[%s21072_s13 + $0x1098] sm:$0xff]  }
 0x809   : > { %16283 = vst [vmem:[#allocation3 + $0x180] sm:$0xff] %v16186_v33   ;;  %v20429_v59 = vld [vmem:[%s21072_s13 + $0x1088] sm:$0xff]  }
 0x80a   : > { %19139 = vmatmul.mubr.bf16.vlgmr.msra.gmra.mxu1 %v20387_v6  ;;  %v23169_v20 = vpop.f32.mrf.mxu1  ;;  %18911 = vmatpush3.bf16.msra.mxu0 %v20389_v57  ;;  %v20428_v6 = vld [vmem:[%s21072_s13 + $0x13e8] sm:$0xff]  }
 0x80b   : > { %19163 = vmatpush3.bf16.msra.mxu1 %v20388_v15  ;;  %18912 = vmatprep.subr.bf16.mxu0 %v20903_v4  ;;  %v20427_v15 = vld [vmem:[%s21072_s13 + $0x1090] sm:$0xff]  }
 0x80c   : > { %19164 = vmatprep.subr.bf16.mxu1 %v20903_v4  ;;  %v18900_v39 = vpop.f32.mrf.mxu1  ;;  %19178 = vmatprep.mubr.msk.bf16.mxu1 %vm20904_vm0, %v20903_v4 }
 0x80d   : > { %v20431_v39 = vld [vmem:[%s21072_s13 + $0x1080] sm:$0xff]  }
 0x80e   : > { %v23177_v41 = vpop.f32.mrf.mxu1  ;;  %18913 = vmatpush3.bf16.msra.mxu0 %v20391_v60  ;;  %v20430_v60 = vld [vmem:[%s21072_s13 + $0x13e0] sm:$0xff]  }
 0x80f   : > { %19165 = vmatpush3.bf16.msra.mxu1 %v20390_v21  ;;  %18914 = vmatprep.subr.bf16.mxu0 %v20903_v4 }
 0x810   : > { %19166 = vmatprep.subr.bf16.mxu1 %v20903_v4  ;;  %v18901_v44 = vpop.f32.mrf.mxu1 }
 0x811   : > { %v20432_v44 = vld [vmem:[#allocation3 + $0x88] sm:$0xff]  }
 0x812   : > { %18915 = vmatpush3.bf16.msra.mxu0 %v20393_v62  ;;  %v20434_v62 = vld [vmem:[%s21072_s13 + $0x1138] sm:$0xff]  }
 0x813   : > { %19167 = vmatpush3.bf16.msra.mxu1 %v20392_v43  ;;  %18916 = vmatprep.subr.bf16.mxu0 %v20903_v4  ;;  %v20433_v43 = vld [vmem:[%s21072_s13 + $0x13d8] sm:$0xff]  }
 0x814   : > { %19168 = vmatprep.subr.bf16.mxu1 %v20903_v4 }
 0x816   : > { %18917 = vmatpush3.bf16.msra.mxu0 %v20395_v46 }
 0x817   : > { %19169 = vmatpush3.bf16.msra.mxu1 %v20394_v52  ;;  %18942 = vmatprep.subr.bf16.mxu0 %v20903_v4 }
 0x818   : > { %19170 = vmatprep.subr.bf16.mxu1 %v20903_v4 }
 0x819   : > { %v9184_v51 = vpop.f32.mrf.mxu0  ;;  %18919 = vmatmul.mubr.bf16.vlgmr.msra.gmra.mxu0 %v20396_v48 }
 0x81a   : > { %v23192_v53 = vadd.f32 %v9184_v51, %v23146_v18  ;;  %18943 = vmatpush3.bf16.msra.mxu0 %v20398_v5  ;;  %18958 = vmatprep.mubr.msk.bf16.mxu0 %vm20904_vm0, %v20903_v4  ;;  %v20414_v18 = vld [vmem:[#allocation3 + $0x78] sm:$0xff]  }
 0x81b   : > { %19171 = vmatpush3.bf16.msra.mxu1 %v20397_v0  ;;  %v18780_v54 = vpop.f32.mrf.mxu0  ;;  %18944 = vmatprep.subr.bf16.mxu0 %v20903_v4  ;;  %v20435_v0 = vld [vmem:[%s21072_s13 + $0x13d0] sm:$0xff]  }
 0x81c   : > { %19172 = vmatprep.subr.bf16.mxu1 %v20903_v4  ;;  %v20436_v5 = vld [vmem:[%s21072_s13 + $0x1130] sm:$0xff]  }
 0x81d   : > { %v9187_v55 = vpop.f32.mrf.mxu0 }
 0x81e   : > { %v23201_v37 = vadd.f32 %v9187_v55, %v23155_v9  ;;  %18945 = vmatpush3.bf16.msra.mxu0 %v20400_v45  ;;  %v20438_v45 = vld [vmem:[%s21072_s13 + $0x1128] sm:$0xff]   ;;  %v20439_v55 = vld [vmem:[%s21072_s13 + $0x13c0] sm:$0xff]  }
 0x81f   : > { %19173 = vmatpush3.bf16.msra.mxu1 %v20399_v56  ;;  %v18781_v23 = vpop.f32.mrf.mxu0  ;;  %18946 = vmatprep.subr.bf16.mxu0 %v20903_v4  ;;  %v20437_v56 = vld [vmem:[%s21072_s13 + $0x13c8] sm:$0xff]  }
 0x820   : > { %19174 = vmatprep.subr.bf16.mxu1 %v20903_v4  ;;  %v20441_v23 = vld [vmem:[#allocation3 + $0xf0] sm:$0xff]  }
 0x822   : > { %18947 = vmatpush3.bf16.msra.mxu0 %v20402_v58  ;;  %v20443_v58 = vld [vmem:[%s21072_s13 + $0x1118] sm:$0xff]  }
 0x823   : > { %19175 = vmatpush3.bf16.msra.mxu1 %v20401_v49  ;;  %18948 = vmatprep.subr.bf16.mxu0 %v20903_v4  ;;  %v20442_v49 = vld [vmem:[%s21072_s13 + $0x1478] sm:$0xff]  }
 0x824   : > { %19176 = vmatprep.subr.bf16.mxu1 %v20903_v4 }
 0x826   : > { %18949 = vmatpush3.bf16.msra.mxu0 %v20404_v63  ;;  %v20444_v63 = vld [vmem:[%s21072_s13 + $0x1470] sm:$0xff]  }
 0x827   : > { %19177 = vmatpush3.bf16.msra.mxu1 %v20403_v61  ;;  %18950 = vmatprep.subr.bf16.mxu0 %v20903_v4 }
 0x828   : > { %19202 = vmatprep.subr.bf16.mxu1 %v20903_v4 }
 0x82a   : > { %19179 = vmatmul.mubr.bf16.vlgmr.msra.gmra.mxu1 %v20405_v32  ;;  %v23215_v2 = vpop.f32.mrf.mxu1  ;;  %18951 = vmatpush3.bf16.msra.mxu0 %v20407_v26 }
 0x82b   : > { %19203 = vmatpush3.bf16.msra.mxu1 %v20406_v40  ;;  %18952 = vmatprep.subr.bf16.mxu0 %v20903_v4  ;;  %v20445_v40 = vld [vmem:[%s21072_s13 + $0x1110] sm:$0xff]  }
 0x82c   : > { %19204 = vmatprep.subr.bf16.mxu1 %v20903_v4  ;;  %v18940_v47 = vpop.f32.mrf.mxu1  ;;  %19218 = vmatprep.mubr.msk.bf16.mxu1 %vm20904_vm0, %v20903_v4 }
 0x82e   : > { %v23223_v7 = vpop.f32.mrf.mxu1  ;;  %18953 = vmatpush3.bf16.msra.mxu0 %v20409_v3  ;;  %v20447_v3 = vld [vmem:[%s21072_s13 + $0x1108] sm:$0xff]  }
 0x82f   : > { %19205 = vmatpush3.bf16.msra.mxu1 %v20408_v35  ;;  %18954 = vmatprep.subr.bf16.mxu0 %v20903_v4  ;;  %v20446_v35 = vld [vmem:[%s21072_s13 + $0x1468] sm:$0xff]  }
 0x830   : > { %19206 = vmatprep.subr.bf16.mxu1 %v20903_v4  ;;  %v18941_v36 = vpop.f32.mrf.mxu1 }
 0x831   : > { %v20451_v36 = vld [vmem:[%s21072_s13 + $0x1458] sm:$0xff]  }
 0x832   : > { %18955 = vmatpush3.bf16.msra.mxu0 %v20411_v42  ;;  %v20449_v42 = vld [vmem:[%s21072_s13 + $0x1100] sm:$0xff]  }
 0x833   : > { %19207 = vmatpush3.bf16.msra.mxu1 %v20410_v8  ;;  %18956 = vmatprep.subr.bf16.mxu0 %v20903_v4  ;;  %v20448_v8 = vld [vmem:[%s21072_s13 + $0x1460] sm:$0xff]  }
 0x834   : > { %19208 = vmatprep.subr.bf16.mxu1 %v20903_v4 }
 0x836   : > { %18957 = vmatpush3.bf16.msra.mxu0 %v20413_v29  ;;  %v20450_v29 = vld [vmem:[#allocation3 + $0x98] sm:$0xff]  }
 0x837   : > { %19209 = vmatpush3.bf16.msra.mxu1 %v20412_v50  ;;  %18982 = vmatprep.subr.bf16.mxu0 %v20903_v4  ;;  %v20452_v50 = vld [vmem:[%s21072_s13 + $0x11b8] sm:$0xff]  }
 0x838   : > { %19210 = vmatprep.subr.bf16.mxu1 %v20903_v4 }
 0x839   : > { %v9299_v16 = vpop.f32.mrf.mxu0  ;;  %18959 = vmatmul.mubr.bf16.vlgmr.msra.gmra.mxu0 %v20414_v18  ;;  %v20453_v18 = vld [vmem:[%s21072_s13 + $0x1450] sm:$0xff]  }
 0x83a   : > { %v23238_v13 = vadd.f32 %v9299_v16, %v23192_v53  ;;  %18983 = vmatpush3.bf16.msra.mxu0 %v20416_v11  ;;  %18998 = vmatprep.mubr.msk.bf16.mxu0 %vm20904_vm0, %v20903_v4  ;;  %v20454_v16 = vld [vmem:[%s21072_s13 + $0x11b0] sm:$0xff]  }
 0x83b   : > { %19211 = vmatpush3.bf16.msra.mxu1 %v20415_v14  ;;  %v18800_v22 = vpop.f32.mrf.mxu0  ;;  %18984 = vmatprep.subr.bf16.mxu0 %v20903_v4 }
 0x83c   : > { %19212 = vmatprep.subr.bf16.mxu1 %v20903_v4  ;;  %v20455_v22 = vld [vmem:[%s21072_s13 + $0x1448] sm:$0xff]  }
 0x83d   : > { %v9302_v34 = vpop.f32.mrf.mxu0 }
 0x83e   : > { %v23247_v9 = vadd.f32 %v9302_v34, %v23201_v37  ;;  %18985 = vmatpush3.bf16.msra.mxu0 %v20418_v19  ;;  %v20440_v37 = vld [vmem:[%s21072_s13 + $0x1120] sm:$0xff]   ;;  %v20456_v34 = vld [vmem:[%s21072_s13 + $0x11a8] sm:$0xff]  }
 0x83f   : > { %19213 = vmatpush3.bf16.msra.mxu1 %v20417_v17  ;;  %v18801_v27 = vpop.f32.mrf.mxu0  ;;  %18986 = vmatprep.subr.bf16.mxu0 %v20903_v4 }
 0x840   : > { %19214 = vmatprep.subr.bf16.mxu1 %v20903_v4  ;;  %v20460_v27 = vld [vmem:[%s21072_s13 + $0x14f8] sm:$0xff]  }
 0x842   : > { %18987 = vmatpush3.bf16.msra.mxu0 %v20420_v25  ;;  %v20458_v25 = vld [vmem:[%s21072_s13 + $0x11a0] sm:$0xff]  }
 0x843   : > { %19215 = vmatpush3.bf16.msra.mxu1 %v20419_v24  ;;  %18988 = vmatprep.subr.bf16.mxu0 %v20903_v4  ;;  %v20457_v24 = vld [vmem:[%s21072_s13 + $0x1440] sm:$0xff]  }
 0x844   : > { %19216 = vmatprep.subr.bf16.mxu1 %v20903_v4 }
 0x846   : > { %18989 = vmatpush3.bf16.msra.mxu0 %v20422_v10  ;;  %v20459_v10 = vld [vmem:[#allocation3 + $0x100] sm:$0xff]  }
 0x847   : > { %19217 = vmatpush3.bf16.msra.mxu1 %v20421_v12  ;;  %18990 = vmatprep.subr.bf16.mxu0 %v20903_v4  ;;  %v20461_v12 = vld [vmem:[%s21072_s13 + $0x1198] sm:$0xff]  }
 0x848   : > { %19242 = vmatprep.subr.bf16.mxu1 %v20903_v4 }
 0x84a   : > { %19219 = vmatmul.mubr.bf16.vlgmr.msra.gmra.mxu1 %v20423_v28  ;;  %v23261_v38 = vpop.f32.mrf.mxu1  ;;  %18991 = vmatpush3.bf16.msra.mxu0 %v20425_v1  ;;  %v20462_v1 = vld [vmem:[%s21072_s13 + $0x14f0] sm:$0xff]  }
 0x84b   : > { %19243 = vmatpush3.bf16.msra.mxu1 %v20424_v31  ;;  %18992 = vmatprep.subr.bf16.mxu0 %v20903_v4  ;;  %v20463_v28 = vld [vmem:[%s21072_s13 + $0x1190] sm:$0xff]  }
 0x84c   : > { %19244 = vmatprep.subr.bf16.mxu1 %v20903_v4  ;;  %v18980_v57 = vpop.f32.mrf.mxu1  ;;  %19258 = vmatprep.mubr.msk.bf16.mxu1 %vm20904_vm0, %v20903_v4 }
 0x84d   : > { %v20464_v57 = vld [vmem:[%s21072_s13 + $0x14e8] sm:$0xff]  }
 0x84e   : > { %v23269_v33 = vpop.f32.mrf.mxu1  ;;  %18993 = vmatpush3.bf16.msra.mxu0 %v20427_v15 }
 0x84f   : > { %19245 = vmatpush3.bf16.msra.mxu1 %v20426_v30  ;;  %18994 = vmatprep.subr.bf16.mxu0 %v20903_v4 }
 0x850   : > { %19246 = vmatprep.subr.bf16.mxu1 %v20903_v4  ;;  %v18981_v21 = vpop.f32.mrf.mxu1 }
 0x851   : > { %v20466_v21 = vld [vmem:[%s21072_s13 + $0x14e0] sm:$0xff]  }
 0x852   : > { %18995 = vmatpush3.bf16.msra.mxu0 %v20429_v59 }
 0x853   : > { %19247 = vmatpush3.bf16.msra.mxu1 %v20428_v6  ;;  %18996 = vmatprep.subr.bf16.mxu0 %v20903_v4  ;;  %v20465_v6 = vld [vmem:[%s21072_s13 + $0x1188] sm:$0xff]  }
 0x854   : > { %19248 = vmatprep.subr.bf16.mxu1 %v20903_v4 }
 0x856   : > { %18997 = vmatpush3.bf16.msra.mxu0 %v20431_v39  ;;  %v20469_v39 = vld [vmem:[%s21072_s13 + $0x14d8] sm:$0xff]  }
 0x857   : > { %19249 = vmatpush3.bf16.msra.mxu1 %v20430_v60  ;;  %19022 = vmatprep.subr.bf16.mxu0 %v20903_v4  ;;  %v20467_v60 = vld [vmem:[%s21072_s13 + $0x1180] sm:$0xff]  }
 0x858   : > { %19250 = vmatprep.subr.bf16.mxu1 %v20903_v4 }
 0x859   : > { %v9414_v52 = vpop.f32.mrf.mxu0  ;;  %18999 = vmatmul.mubr.bf16.vlgmr.msra.gmra.mxu0 %v20432_v44 }
 0x85a   : > { %v23284_v46 = vadd.f32 %v9414_v52, %v23238_v13  ;;  %19023 = vmatpush3.bf16.msra.mxu0 %v20434_v62  ;;  %19038 = vmatprep.mubr.msk.bf16.mxu0 %vm20904_vm0, %v20903_v4  ;;  %v20468_v62 = vld [vmem:[#allocation3 + $0xa8] sm:$0xff]  }
 0x85b   : > { %19251 = vmatpush3.bf16.msra.mxu1 %v20433_v43  ;;  %v18820_v48 = vpop.f32.mrf.mxu0  ;;  %19024 = vmatprep.subr.bf16.mxu0 %v20903_v4  ;;  %v20470_v43 = vld [vmem:[%s21072_s13 + $0x1238] sm:$0xff]  }
 0x85c   : > { %19252 = vmatprep.subr.bf16.mxu1 %v20903_v4 }
 0x85d   : > { %v9417_v51 = vpop.f32.mrf.mxu0 }
 0x85e   : > { %v23293_v53 = vadd.f32 %v9417_v51, %v23247_v9  ;;  %19025 = vmatpush3.bf16.msra.mxu0 %v20436_v5 }
 0x85f   : > { %19253 = vmatpush3.bf16.msra.mxu1 %v20435_v0  ;;  %v18821_v54 = vpop.f32.mrf.mxu0  ;;  %19026 = vmatprep.subr.bf16.mxu0 %v20903_v4  ;;  %v20472_v0 = vld [vmem:[%s21072_s13 + $0x1230] sm:$0xff]  }
 0x860   : > { %19254 = vmatprep.subr.bf16.mxu1 %v20903_v4  ;;  %v20475_v54 = vld [vmem:[%s21072_s13 + $0x14c0] sm:$0xff]  }
 0x862   : > { %19027 = vmatpush3.bf16.msra.mxu0 %v20438_v45 }
 0x863   : > { %19255 = vmatpush3.bf16.msra.mxu1 %v20437_v56  ;;  %19028 = vmatprep.subr.bf16.mxu0 %v20903_v4  ;;  %v20474_v56 = vld [vmem:[%s21072_s13 + $0x1228] sm:$0xff]  }
 0x864   : > { %19256 = vmatprep.subr.bf16.mxu1 %v20903_v4 }
 0x866   : > { %19029 = vmatpush3.bf16.msra.mxu0 %v20440_v37  ;;  %v20478_v37 = vld [vmem:[%s21072_s13 + $0x1578] sm:$0xff]  }
 0x867   : > { %19257 = vmatpush3.bf16.msra.mxu1 %v20439_v55  ;;  %19030 = vmatprep.subr.bf16.mxu0 %v20903_v4  ;;  %v20476_v55 = vld [vmem:[%s21072_s13 + $0x1220] sm:$0xff]  }
 0x868   : > { %19282 = vmatprep.subr.bf16.mxu1 %v20903_v4 }
 0x86a   : > { %19259 = vmatmul.mubr.bf16.vlgmr.msra.gmra.mxu1 %v20441_v23  ;;  %v23307_v61 = vpop.f32.mrf.mxu1  ;;  %19031 = vmatpush3.bf16.msra.mxu0 %v20443_v58  ;;  %v20477_v58 = vld [vmem:[#allocation3 + $0x110] sm:$0xff]  }
 0x86b   : > { %19283 = vmatpush3.bf16.msra.mxu1 %v20442_v49  ;;  %19032 = vmatprep.subr.bf16.mxu0 %v20903_v4  ;;  %v20479_v49 = vld [vmem:[%s21072_s13 + $0x1218] sm:$0xff]  }
 0x86c   : > { %19284 = vmatprep.subr.bf16.mxu1 %v20903_v4  ;;  %v19020_v26 = vpop.f32.mrf.mxu1  ;;  %19298 = vmatprep.mubr.msk.bf16.mxu1 %vm20904_vm0, %v20903_v4 }
 0x86e   : > { %v23315_v32 = vpop.f32.mrf.mxu1  ;;  %19033 = vmatpush3.bf16.msra.mxu0 %v20445_v40  ;;  %v20481_v40 = vld [vmem:[%s21072_s13 + $0x1210] sm:$0xff]  }
 0x86f   : > { %19285 = vmatpush3.bf16.msra.mxu1 %v20444_v63  ;;  %19034 = vmatprep.subr.bf16.mxu0 %v20903_v4  ;;  %v20480_v63 = vld [vmem:[%s21072_s13 + $0x1570] sm:$0xff]  }
 0x870   : > { %19286 = vmatprep.subr.bf16.mxu1 %v20903_v4  ;;  %v19021_v47 = vpop.f32.mrf.mxu1 }
 0x871   : > { %v20483_v47 = vld [vmem:[%s21072_s13 + $0x1208] sm:$0xff]  }
 0x872   : > { %19035 = vmatpush3.bf16.msra.mxu0 %v20447_v3  ;;  %v20482_v3 = vld [vmem:[%s21072_s13 + $0x1568] sm:$0xff]  }
 0x873   : > { %19287 = vmatpush3.bf16.msra.mxu1 %v20446_v35  ;;  %19036 = vmatprep.subr.bf16.mxu0 %v20903_v4 }
 0x874   : > { %19288 = vmatprep.subr.bf16.mxu1 %v20903_v4 }
 0x876   : > { %19037 = vmatpush3.bf16.msra.mxu0 %v20449_v42  ;;  %v20484_v42 = vld [vmem:[%s21072_s13 + $0x1560] sm:$0xff]  }
 0x877   : > { %19289 = vmatpush3.bf16.msra.mxu1 %v20448_v8  ;;  %19062 = vmatprep.subr.bf16.mxu0 %v20903_v4 }
 0x878   : > { %19290 = vmatprep.subr.bf16.mxu1 %v20903_v4 }
 0x879   : > { %v9529_v14 = vpop.f32.mrf.mxu0  ;;  %19039 = vmatmul.mubr.bf16.vlgmr.msra.gmra.mxu0 %v20450_v29  ;;  %v20488_v29 = vld [vmem:[%s21072_s13 + $0x12b8] sm:$0xff]  }
 0x87a   : > { %v23330_v11 = vadd.f32 %v9529_v14, %v23284_v46  ;;  %19063 = vmatpush3.bf16.msra.mxu0 %v20452_v50  ;;  %19078 = vmatprep.mubr.msk.bf16.mxu0 %vm20904_vm0, %v20903_v4  ;;  %v20471_v46 = vld [vmem:[%s21072_s13 + $0x14d0] sm:$0xff]   ;;  %v20487_v50 = vld [vmem:[%s21072_s13 + $0x1558] sm:$0xff]  }
 0x87b   : > { %19291 = vmatpush3.bf16.msra.mxu1 %v20451_v36  ;;  %v18840_v13 = vpop.f32.mrf.mxu0  ;;  %19064 = vmatprep.subr.bf16.mxu0 %v20903_v4  ;;  %v20485_v36 = vld [vmem:[%s21072_s13 + $0x1200] sm:$0xff]   ;;  %v20486_v14 = vld [vmem:[#allocation3 + $0xb8] sm:$0xff]  }
 0x87c   : > { %19292 = vmatprep.subr.bf16.mxu1 %v20903_v4  ;;  %v20490_v13 = vld [vmem:[%s21072_s13 + $0x12b0] sm:$0xff]  }
 0x87d   : > { %v9532_v17 = vpop.f32.mrf.mxu0 }
 0x87e   : > { %v23339_v19 = vadd.f32 %v9532_v17, %v23293_v53  ;;  %19065 = vmatpush3.bf16.msra.mxu0 %v20454_v16  ;;  %v20473_v53 = vld [vmem:[%s21072_s13 + $0x14c8] sm:$0xff]   ;;  %v20489_v16 = vld [vmem:[%s21072_s13 + $0x1550] sm:$0xff]  }
 0x87f   : > { %19293 = vmatpush3.bf16.msra.mxu1 %v20453_v18  ;;  %v18841_v9 = vpop.f32.mrf.mxu0  ;;  %19066 = vmatprep.subr.bf16.mxu0 %v20903_v4 }
 0x880   : > { %19294 = vmatprep.subr.bf16.mxu1 %v20903_v4  ;;  %v20492_v9 = vld [vmem:[%s21072_s13 + $0x12a8] sm:$0xff]  }
 0x882   : > { %19067 = vmatpush3.bf16.msra.mxu0 %v20456_v34  ;;  %v20491_v34 = vld [vmem:[%s21072_s13 + $0x1548] sm:$0xff]  }
 0x883   : > { %19295 = vmatpush3.bf16.msra.mxu1 %v20455_v22  ;;  %19068 = vmatprep.subr.bf16.mxu0 %v20903_v4 }
 0x884   : > { %19296 = vmatprep.subr.bf16.mxu1 %v20903_v4 }
 0x886   : > { %19069 = vmatpush3.bf16.msra.mxu0 %v20458_v25  ;;  %v20493_v25 = vld [vmem:[%s21072_s13 + $0x1540] sm:$0xff]  }
 0x887   : > { %19297 = vmatpush3.bf16.msra.mxu1 %v20457_v24  ;;  %19070 = vmatprep.subr.bf16.mxu0 %v20903_v4 }
 0x888   : > { %19322 = vmatprep.subr.bf16.mxu1 %v20903_v4 }
 0x88a   : > { %19299 = vmatmul.mubr.bf16.vlgmr.msra.gmra.mxu1 %v20459_v10  ;;  %v23353_v31 = vpop.f32.mrf.mxu1  ;;  %19071 = vmatpush3.bf16.msra.mxu0 %v20461_v12  ;;  %v20496_v12 = vld [vmem:[%s21072_s13 + $0x15f8] sm:$0xff]  }
 0x88b   : > { %19323 = vmatpush3.bf16.msra.mxu1 %v20460_v27  ;;  %19072 = vmatprep.subr.bf16.mxu0 %v20903_v4  ;;  %v20494_v27 = vld [vmem:[%s21072_s13 + $0x12a0] sm:$0xff]   ;;  %v20497_v10 = vld [vmem:[%s21072_s13 + $0x1298] sm:$0xff]  }
 0x88c   : > { %19324 = vmatprep.subr.bf16.mxu1 %v20903_v4  ;;  %v19060_v30 = vpop.f32.mrf.mxu1  ;;  %19338 = vmatprep.mubr.msk.bf16.mxu1 %vm20904_vm0, %v20903_v4 }
 0x88d   : > { %v20498_v30 = vld [vmem:[%s21072_s13 + $0x15f0] sm:$0xff]  }
 0x88e   : > { %v23361_v15 = vpop.f32.mrf.mxu1  ;;  %19073 = vmatpush3.bf16.msra.mxu0 %v20463_v28 }
 0x88f   : > { %19325 = vmatpush3.bf16.msra.mxu1 %v20462_v1  ;;  %19074 = vmatprep.subr.bf16.mxu0 %v20903_v4  ;;  %v20495_v1 = vld [vmem:[#allocation3 + $0x120] sm:$0xff]  }
 0x890   : > { %19326 = vmatprep.subr.bf16.mxu1 %v20903_v4  ;;  %v19061_v59 = vpop.f32.mrf.mxu1 }
 0x892   : > { %19075 = vmatpush3.bf16.msra.mxu0 %v20465_v6 }
 0x893   : > { %19327 = vmatpush3.bf16.msra.mxu1 %v20464_v57  ;;  %19076 = vmatprep.subr.bf16.mxu0 %v20903_v4  ;;  %v20499_v57 = vld [vmem:[%s21072_s13 + $0x1290] sm:$0xff]  }
 0x894   : > { %19328 = vmatprep.subr.bf16.mxu1 %v20903_v4 }
 0x896   : > { %19077 = vmatpush3.bf16.msra.mxu0 %v20467_v60  ;;  %v20501_v60 = vld [vmem:[%s21072_s13 + $0x1288] sm:$0xff]  }
 0x897   : > { %19329 = vmatpush3.bf16.msra.mxu1 %v20466_v21  ;;  %19102 = vmatprep.subr.bf16.mxu0 %v20903_v4  ;;  %v20500_v21 = vld [vmem:[%s21072_s13 + $0x15e8] sm:$0xff]  }
 0x898   : > { %19330 = vmatprep.subr.bf16.mxu1 %v20903_v4 }
 0x899   : > { %v9644_v44 = vpop.f32.mrf.mxu0  ;;  %19079 = vmatmul.mubr.bf16.vlgmr.msra.gmra.mxu0 %v20468_v62  ;;  %v20503_v62 = vld [vmem:[%s21072_s13 + $0x1280] sm:$0xff]  }
 0x89a   : > { %v23376_v52 = vadd.f32 %v9644_v44, %v23330_v11  ;;  %19103 = vmatpush3.bf16.msra.mxu0 %v20470_v43  ;;  %19118 = vmatprep.mubr.msk.bf16.mxu0 %vm20904_vm0, %v20903_v4  ;;  %v20502_v43 = vld [vmem:[%s21072_s13 + $0x15e0] sm:$0xff]   ;;  %v20505_v44 = vld [vmem:[%s21072_s13 + $0x15d8] sm:$0xff]  }
 0x89b   : > { %19331 = vmatpush3.bf16.msra.mxu1 %v20469_v39  ;;  %v18860_v5 = vpop.f32.mrf.mxu0  ;;  %19104 = vmatprep.subr.bf16.mxu0 %v20903_v4 }
 0x89c   : > { %19332 = vmatprep.subr.bf16.mxu1 %v20903_v4 }
 0x89d   : > { %v9647_v48 = vpop.f32.mrf.mxu0 }
 0x89e   : > { %v23385_v51 = vadd.f32 %v9647_v48, %v23339_v19  ;;  %19105 = vmatpush3.bf16.msra.mxu0 %v20472_v0 }
 0x89f   : > { %19333 = vmatpush3.bf16.msra.mxu1 %v20471_v46  ;;  %v18861_v45 = vpop.f32.mrf.mxu0  ;;  %19106 = vmatprep.subr.bf16.mxu0 %v20903_v4  ;;  %v20504_v46 = vld [vmem:[#allocation3 + $0xc8] sm:$0xff]  }
 0x8a0   : > { %19334 = vmatprep.subr.bf16.mxu1 %v20903_v4 }
 0x8a2   : > { %19107 = vmatpush3.bf16.msra.mxu0 %v20474_v56 }
 0x8a3   : > { %19335 = vmatpush3.bf16.msra.mxu1 %v20473_v53  ;;  %19108 = vmatprep.subr.bf16.mxu0 %v20903_v4  ;;  %v20508_v53 = vld [vmem:[%s21072_s13 + $0x1330] sm:$0xff]  }
 0x8a4   : > { %19336 = vmatprep.subr.bf16.mxu1 %v20903_v4 }
 0x8a6   : > { %19109 = vmatpush3.bf16.msra.mxu0 %v20476_v55  ;;  %v20509_v55 = vld [vmem:[%s21072_s13 + $0x15c8] sm:$0xff]  }
 0x8a7   : > { %19337 = vmatpush3.bf16.msra.mxu1 %v20475_v54  ;;  %19110 = vmatprep.subr.bf16.mxu0 %v20903_v4 }
 0x8a8   : > { %19362 = vmatprep.subr.bf16.mxu1 %v20903_v4 }
 0x8aa   : > { %19339 = vmatmul.mubr.bf16.vlgmr.msra.gmra.mxu1 %v20477_v58  ;;  %v23399_v23 = vpop.f32.mrf.mxu1  ;;  %19111 = vmatpush3.bf16.msra.mxu0 %v20479_v49  ;;  %v20512_v58 = vld [vmem:[%s21072_s13 + $0x1320] sm:$0xff]  }
 0x8ab   : > { %19363 = vmatpush3.bf16.msra.mxu1 %v20478_v37  ;;  %19112 = vmatprep.subr.bf16.mxu0 %v20903_v4  ;;  %v20510_v37 = vld [vmem:[%s21072_s13 + $0x1328] sm:$0xff]  }
 0x8ac   : > { %19364 = vmatprep.subr.bf16.mxu1 %v20903_v4  ;;  %v19100_v26 = vpop.f32.mrf.mxu1  ;;  %19378 = vmatprep.mubr.msk.bf16.mxu1 %vm20904_vm0, %v20903_v4 }
 0x8ad   : > { %v20513_v26 = vld [vmem:[#allocation3 + $0x130] sm:$0xff]  }
 0x8ae   : > { %v23407_v35 = vpop.f32.mrf.mxu1  ;;  %19113 = vmatpush3.bf16.msra.mxu0 %v20481_v40  ;;  %v20515_v40 = vld [vmem:[%s21072_s13 + $0x1318] sm:$0xff]  }
 0x8af   : > { %19365 = vmatpush3.bf16.msra.mxu1 %v20480_v63  ;;  %19114 = vmatprep.subr.bf16.mxu0 %v20903_v4  ;;  %v20514_v63 = vld [vmem:[%s21072_s13 + $0x1678] sm:$0xff]  }
 0x8b0   : > { %19366 = vmatprep.subr.bf16.mxu1 %v20903_v4  ;;  %v19101_v8 = vpop.f32.mrf.mxu1 }
 0x8b1   : > { %v20517_v8 = vld [vmem:[%s21072_s13 + $0x1310] sm:$0xff]  }
 0x8b2   : > { %19115 = vmatpush3.bf16.msra.mxu0 %v20483_v47  ;;  %v20516_v47 = vld [vmem:[%s21072_s13 + $0x1670] sm:$0xff]  }
 0x8b3   : > { %19367 = vmatpush3.bf16.msra.mxu1 %v20482_v3  ;;  %19116 = vmatprep.subr.bf16.mxu0 %v20903_v4 }
 0x8b4   : > { %19368 = vmatprep.subr.bf16.mxu1 %v20903_v4 }
 0x8b6   : > { %19117 = vmatpush3.bf16.msra.mxu0 %v20485_v36 }
 0x8b7   : > { %19369 = vmatpush3.bf16.msra.mxu1 %v20484_v42  ;;  %19142 = vmatprep.subr.bf16.mxu0 %v20903_v4 }
 0x8b8   : > { %19370 = vmatprep.subr.bf16.mxu1 %v20903_v4 }
 0x8b9   : > { %v9759_v11 = vpop.f32.mrf.mxu0  ;;  %19119 = vmatmul.mubr.bf16.vlgmr.msra.gmra.mxu0 %v20486_v14 }
 0x8ba   : > { %v9766_v18 = vadd.f32 %v9759_v11, %v23376_v52  ;;  %19143 = vmatpush3.bf16.msra.mxu0 %v20488_v29  ;;  %19158 = vmatprep.mubr.msk.bf16.mxu0 %vm20904_vm0, %v20903_v4  ;;  %v20506_v52 = vld [vmem:[%s21072_s13 + $0x1338] sm:$0xff]   ;;  %v20519_v29 = vld [vmem:[%s21072_s13 + $0x1308] sm:$0xff]   ;;  %v20520_v11 = vld [vmem:[%s21072_s13 + $0x1660] sm:$0xff]  }
 0x8bb   : > { %19371 = vmatpush3.bf16.msra.mxu1 %v20487_v50  ;;  %v18880_v17 = vpop.f32.mrf.mxu0  ;;  %19144 = vmatprep.subr.bf16.mxu0 %v20903_v4  ;;  %v20518_v50 = vld [vmem:[%s21072_s13 + $0x1668] sm:$0xff]  }
 0x8bc   : > { %19372 = vmatprep.subr.bf16.mxu1 %v20903_v4  ;;  %v9881_v0 = vadd.f32 %v23169_v20, %v9766_v18  ;;  %v20521_v18 = vld [vmem:[%s21072_s13 + $0x1300] sm:$0xff]   ;;  %v20522_v17 = vld [vmem:[#allocation3 + $0xd8] sm:$0xff]  }
 0x8bd   : > { %v9762_v19 = vpop.f32.mrf.mxu0 }
 0x8be   : > { %v23429_v22 = vadd.f32 %v9762_v19, %v23385_v51  ;;  %19145 = vmatpush3.bf16.msra.mxu0 %v20490_v13  ;;  %v20507_v51 = vld [vmem:[%s21072_s13 + $0x15d0] sm:$0xff]   ;;  %v20524_v13 = vld [vmem:[%s21072_s13 + $0x13b8] sm:$0xff]  }
 0x8bf   : > { %19373 = vmatpush3.bf16.msra.mxu1 %v20489_v16  ;;  %v18881_v24 = vpop.f32.mrf.mxu0  ;;  %19146 = vmatprep.subr.bf16.mxu0 %v20903_v4  ;;  %v20523_v16 = vld [vmem:[%s21072_s13 + $0x1658] sm:$0xff]  }
 0x8c0   : > { %19374 = vmatprep.subr.bf16.mxu1 %v20903_v4  ;;  %v9882_v20 = vadd.f32 %v23177_v41, %v23429_v22  ;;  %v20511_v41 = vld [vmem:[%s21072_s13 + $0x15c0] sm:$0xff]   ;;  %v20526_v24 = vld [vmem:[%s21072_s13 + $0x13b0] sm:$0xff]  }
 0x8c2   : > { %19147 = vmatpush3.bf16.msra.mxu0 %v20492_v9  ;;  %v20525_v9 = vld [vmem:[%s21072_s13 + $0x1650] sm:$0xff]  }
 0x8c3   : > { %19375 = vmatpush3.bf16.msra.mxu1 %v20491_v34  ;;  %19148 = vmatprep.subr.bf16.mxu0 %v20903_v4 }
 0x8c4   : > { %19376 = vmatprep.subr.bf16.mxu1 %v20903_v4 }
 0x8c6   : > { %19149 = vmatpush3.bf16.msra.mxu0 %v20494_v27 }
 0x8c7   : > { %19377 = vmatpush3.bf16.msra.mxu1 %v20493_v25  ;;  %19150 = vmatprep.subr.bf16.mxu0 %v20903_v4 }
 0x8c8   : > { %19402 = vmatprep.subr.bf16.mxu1 %v20903_v4 }
 0x8ca   : > { %v23443_v28 = vpop.f32.mrf.mxu1  ;;  %19379 = vmatmul.mubr.bf16.vlgmr.msra.gmra.mxu1 %v20495_v1  ;;  %19151 = vmatpush3.bf16.msra.mxu0 %v20497_v10  ;;  %v20527_v10 = vld [vmem:[%s21072_s13 + $0x1648] sm:$0xff]  }
 0x8cb   : > { %19403 = vmatpush3.bf16.msra.mxu1 %v20496_v12  ;;  %19152 = vmatprep.subr.bf16.mxu0 %v20903_v4  ;;  %v20528_v1 = vld [vmem:[%s21072_s13 + $0x13a8] sm:$0xff]  }
 0x8cc   : > { %v19140_v6 = vpop.f32.mrf.mxu1  ;;  %19404 = vmatprep.subr.bf16.mxu1 %v20903_v4  ;;  %19418 = vmatprep.mubr.msk.bf16.mxu1 %vm20904_vm0, %v20903_v4 }
 0x8cd   : > { %v20532_v6 = vld [vmem:[%s21072_s13 + $0x16f8] sm:$0xff]  }
 0x8ce   : > { %v23451_v59 = vpop.f32.mrf.mxu1  ;;  %19153 = vmatpush3.bf16.msra.mxu0 %v20499_v57  ;;  %v20530_v57 = vld [vmem:[%s21072_s13 + $0x13a0] sm:$0xff]  }
 0x8cf   : > { %19405 = vmatpush3.bf16.msra.mxu1 %v20498_v30  ;;  %19154 = vmatprep.subr.bf16.mxu0 %v20903_v4 }
 0x8d0   : > { %v19141_v39 = vpop.f32.mrf.mxu1  ;;  %19406 = vmatprep.subr.bf16.mxu1 %v20903_v4 }
 0x8d2   : > { %19155 = vmatpush3.bf16.msra.mxu0 %v20501_v60  ;;  %v20531_v60 = vld [vmem:[#allocation3 + $0x140] sm:$0xff]  }
 0x8d3   : > { %19407 = vmatpush3.bf16.msra.mxu1 %v20500_v21  ;;  %19156 = vmatprep.subr.bf16.mxu0 %v20903_v4  ;;  %v20533_v21 = vld [vmem:[%s21072_s13 + $0x1398] sm:$0xff]  }
 0x8d4   : > { %19408 = vmatprep.subr.bf16.mxu1 %v20903_v4 }
 0x8d6   : > { %19157 = vmatpush3.bf16.msra.mxu0 %v20503_v62  ;;  %v20535_v62 = vld [vmem:[%s21072_s13 + $0x1390] sm:$0xff]  }
 0x8d7   : > { %19409 = vmatpush3.bf16.msra.mxu1 %v20502_v43  ;;  %19182 = vmatprep.subr.bf16.mxu0 %v20903_v4  ;;  %v20534_v43 = vld [vmem:[%s21072_s13 + $0x16f0] sm:$0xff]  }
 0x8d8   : > { %19410 = vmatprep.subr.bf16.mxu1 %v20903_v4 }
 0x8d9   : > { %v9989_v5 = vpop.f32.mrf.mxu0  ;;  %19159 = vmatmul.mubr.bf16.vlgmr.msra.gmra.mxu0 %v20504_v46  ;;  %v20536_v46 = vld [vmem:[%s21072_s13 + $0x16e8] sm:$0xff]  }
 0x8da   : > { %v23466_v48 = vadd.f32 %v9989_v5, %v9881_v0  ;;  %19183 = vmatpush3.bf16.msra.mxu0 %v20506_v52  ;;  %19198 = vmatprep.mubr.msk.bf16.mxu0 %vm20904_vm0, %v20903_v4  ;;  %v20537_v0 = vld [vmem:[%s21072_s13 + $0x1388] sm:$0xff]  }
 0x8db   : > { %19411 = vmatpush3.bf16.msra.mxu1 %v20505_v44  ;;  %v18920_v56 = vpop.f32.mrf.mxu0  ;;  %19184 = vmatprep.subr.bf16.mxu0 %v20903_v4 }
 0x8dc   : > { %19412 = vmatprep.subr.bf16.mxu1 %v20903_v4  ;;  %v10111_v19 = vadd.f32 %v23215_v2, %v23466_v48  ;;  %v20538_v48 = vld [vmem:[%s21072_s13 + $0x16e0] sm:$0xff]   ;;  %v20542_v56 = vld [vmem:[%s21072_s13 + $0x1438] sm:$0xff]  }
 0x8dd   : > { %v9992_v45 = vpop.f32.mrf.mxu0 }
 0x8de   : > { %v23476_v54 = vadd.f32 %v9992_v45, %v9882_v20  ;;  %19185 = vmatpush3.bf16.msra.mxu0 %v20508_v53  ;;  %v20541_v53 = vld [vmem:[%s21072_s13 + $0x16d8] sm:$0xff]   ;;  %v20540_v20 = vld [vmem:[#allocation3 + $0xe8] sm:$0xff]  }
 0x8df   : > { %19413 = vmatpush3.bf16.msra.mxu1 %v20507_v51  ;;  %v18921_v49 = vpop.f32.mrf.mxu0  ;;  %19186 = vmatprep.subr.bf16.mxu0 %v20903_v4  ;;  %v20539_v51 = vld [vmem:[%s21072_s13 + $0x1380] sm:$0xff]  }
 0x8e0   : > { %19414 = vmatprep.subr.bf16.mxu1 %v20903_v4  ;;  %v10112_v2 = vadd.f32 %v23223_v7, %v23476_v54  ;;  %v20529_v7 = vld [vmem:[%s21072_s13 + $0x1640] sm:$0xff]   ;;  %v20544_v49 = vld [vmem:[%s21072_s13 + $0x1430] sm:$0xff]  }
 0x8e2   : > { %19187 = vmatpush3.bf16.msra.mxu0 %v20510_v37  ;;  %v20543_v37 = vld [vmem:[%s21072_s13 + $0x16d0] sm:$0xff]  }
 0x8e3   : > { %19415 = vmatpush3.bf16.msra.mxu1 %v20509_v55  ;;  %19188 = vmatprep.subr.bf16.mxu0 %v20903_v4 }
 0x8e4   : > { %19416 = vmatprep.subr.bf16.mxu1 %v20903_v4 }
 0x8e6   : > { %19189 = vmatpush3.bf16.msra.mxu0 %v20512_v58 }
 0x8e7   : > { %19417 = vmatpush3.bf16.msra.mxu1 %v20511_v41  ;;  %19190 = vmatprep.subr.bf16.mxu0 %v20903_v4 }
 0x8e8   : > { %19442 = vmatprep.subr.bf16.mxu1 %v20903_v4 }
 0x8ea   : > { %v23490_v3 = vpop.f32.mrf.mxu1  ;;  %19419 = vmatmul.mubr.bf16.vlgmr.msra.gmra.mxu1 %v20513_v26  ;;  %19191 = vmatpush3.bf16.msra.mxu0 %v20515_v40  ;;  %v20545_v40 = vld [vmem:[%s21072_s13 + $0x16c8] sm:$0xff]  }
 0x8eb   : > { %19443 = vmatpush3.bf16.msra.mxu1 %v20514_v63  ;;  %19192 = vmatprep.subr.bf16.mxu0 %v20903_v4  ;;  %v20546_v26 = vld [vmem:[%s21072_s13 + $0x1428] sm:$0xff]  }
 0x8ec   : > { %v19180_v42 = vpop.f32.mrf.mxu1  ;;  %19444 = vmatprep.subr.bf16.mxu1 %v20903_v4  ;;  %19458 = vmatprep.mubr.msk.bf16.mxu1 %vm20904_vm0, %v20903_v4 }
 0x8ed   : > { %v20550_v42 = vld [vmem:[%s21072_s13 + $0x1778] sm:$0xff]  }
 0x8ee   : > { %v23498_v36 = vpop.f32.mrf.mxu1  ;;  %19193 = vmatpush3.bf16.msra.mxu0 %v20517_v8  ;;  %v20548_v8 = vld [vmem:[%s21072_s13 + $0x1420] sm:$0xff]  }
 0x8ef   : > { %19445 = vmatpush3.bf16.msra.mxu1 %v20516_v47  ;;  %19194 = vmatprep.subr.bf16.mxu0 %v20903_v4 }
 0x8f0   : > { %v19181_v14 = vpop.f32.mrf.mxu1  ;;  %19446 = vmatprep.subr.bf16.mxu1 %v20903_v4 }
 0x8f2   : > { %19195 = vmatpush3.bf16.msra.mxu0 %v20519_v29  ;;  %v20549_v29 = vld [vmem:[#allocation3 + $0x150] sm:$0xff]  }
 0x8f3   : > { %19447 = vmatpush3.bf16.msra.mxu1 %v20518_v50  ;;  %19196 = vmatprep.subr.bf16.mxu0 %v20903_v4  ;;  %v20551_v50 = vld [vmem:[%s21072_s13 + $0x1418] sm:$0xff]  }
 0x8f4   : > { %19448 = vmatprep.subr.bf16.mxu1 %v20903_v4 }
 0x8f6   : > { %19197 = vmatpush3.bf16.msra.mxu0 %v20521_v18  ;;  %v20553_v18 = vld [vmem:[%s21072_s13 + $0x1410] sm:$0xff]  }
 0x8f7   : > { %19449 = vmatpush3.bf16.msra.mxu1 %v20520_v11  ;;  %19222 = vmatprep.subr.bf16.mxu0 %v20903_v4  ;;  %v20552_v11 = vld [vmem:[%s21072_s13 + $0x1770] sm:$0xff]  }
 0x8f8   : > { %19450 = vmatprep.subr.bf16.mxu1 %v20903_v4 }
 0x8f9   : > { %v10219_v22 = vpop.f32.mrf.mxu0  ;;  %19199 = vmatmul.mubr.bf16.vlgmr.msra.gmra.mxu0 %v20522_v17  ;;  %v20554_v17 = vld [vmem:[%s21072_s13 + $0x1768] sm:$0xff]  }
 0x8fa   : > { %v23514_v34 = vadd.f32 %v10219_v22, %v10111_v19  ;;  %19223 = vmatpush3.bf16.msra.mxu0 %v20524_v13  ;;  %19238 = vmatprep.mubr.msk.bf16.mxu0 %vm20904_vm0, %v20903_v4  ;;  %v20555_v19 = vld [vmem:[%s21072_s13 + $0x1408] sm:$0xff]  }
 0x8fb   : > { %19451 = vmatpush3.bf16.msra.mxu1 %v20523_v16  ;;  %v18960_v25 = vpop.f32.mrf.mxu0  ;;  %19224 = vmatprep.subr.bf16.mxu0 %v20903_v4 }
 0x8fc   : > { %19452 = vmatprep.subr.bf16.mxu1 %v20903_v4  ;;  %v10341_v45 = vadd.f32 %v23261_v38, %v23514_v34  ;;  %v20556_v34 = vld [vmem:[%s21072_s13 + $0x1760] sm:$0xff]   ;;  %v20560_v25 = vld [vmem:[%s21072_s13 + $0x14b8] sm:$0xff]  }
 0x8fd   : > { %v10222_v27 = vpop.f32.mrf.mxu0 }
 0x8fe   : > { %v23524_v12 = vadd.f32 %v10222_v27, %v10112_v2  ;;  %19225 = vmatpush3.bf16.msra.mxu0 %v20526_v24  ;;  %v20559_v24 = vld [vmem:[%s21072_s13 + $0x1758] sm:$0xff]   ;;  %v20558_v2 = vld [vmem:[#allocation3 + $0xf8] sm:$0xff]  }
 0x8ff   : > { %19453 = vmatpush3.bf16.msra.mxu1 %v20525_v9  ;;  %v18961_v30 = vpop.f32.mrf.mxu0  ;;  %19226 = vmatprep.subr.bf16.mxu0 %v20903_v4  ;;  %v20557_v9 = vld [vmem:[%s21072_s13 + $0x1400] sm:$0xff]  }
 0x900   : > { %19454 = vmatprep.subr.bf16.mxu1 %v20903_v4  ;;  %v10342_v38 = vadd.f32 %v23269_v33, %v23524_v12  ;;  %v20547_v33 = vld [vmem:[%s21072_s13 + $0x16c0] sm:$0xff]   ;;  %v20562_v30 = vld [vmem:[%s21072_s13 + $0x14b0] sm:$0xff]  }
 0x902   : > { %19227 = vmatpush3.bf16.msra.mxu0 %v20528_v1  ;;  %v20561_v1 = vld [vmem:[%s21072_s13 + $0x1750] sm:$0xff]  }
 0x903   : > { %19455 = vmatpush3.bf16.msra.mxu1 %v20527_v10  ;;  %19228 = vmatprep.subr.bf16.mxu0 %v20903_v4 }
 0x904   : > { %19456 = vmatprep.subr.bf16.mxu1 %v20903_v4 }
 0x906   : > { %19229 = vmatpush3.bf16.msra.mxu0 %v20530_v57 }
 0x907   : > { %19457 = vmatpush3.bf16.msra.mxu1 %v20529_v7  ;;  %19230 = vmatprep.subr.bf16.mxu0 %v20903_v4 }
 0x908   : > { %19482 = vmatprep.subr.bf16.mxu1 %v20903_v4 }
 0x90a   : > { %v23538_v39 = vpop.f32.mrf.mxu1  ;;  %19459 = vmatmul.mubr.bf16.vlgmr.msra.gmra.mxu1 %v20531_v60  ;;  %19231 = vmatpush3.bf16.msra.mxu0 %v20533_v21  ;;  %v20563_v21 = vld [vmem:[%s21072_s13 + $0x1748] sm:$0xff]  }
 0x90b   : > { %19483 = vmatpush3.bf16.msra.mxu1 %v20532_v6  ;;  %19232 = vmatprep.subr.bf16.mxu0 %v20903_v4  ;;  %v20564_v60 = vld [vmem:[%s21072_s13 + $0x14a8] sm:$0xff]  }
 0x90c   : > { %v19220_v44 = vpop.f32.mrf.mxu1  ;;  %19484 = vmatprep.subr.bf16.mxu1 %v20903_v4  ;;  %19498 = vmatprep.mubr.msk.bf16.mxu1 %vm20904_vm0, %v20903_v4 }
 0x90d   : > { %v20568_v44 = vld [vmem:[%s21072_s13 + $0x17f8] sm:$0xff]  }
 0x90e   : > { %v23546_v52 = vpop.f32.mrf.mxu1  ;;  %19233 = vmatpush3.bf16.msra.mxu0 %v20535_v62  ;;  %v20566_v62 = vld [vmem:[%s21072_s13 + $0x14a0] sm:$0xff]  }
 0x90f   : > { %19485 = vmatpush3.bf16.msra.mxu1 %v20534_v43  ;;  %19234 = vmatprep.subr.bf16.mxu0 %v20903_v4 }
 0x910   : > { %v19221_v5 = vpop.f32.mrf.mxu1  ;;  %19486 = vmatprep.subr.bf16.mxu1 %v20903_v4 }
 0x912   : > { %19235 = vmatpush3.bf16.msra.mxu0 %v20537_v0  ;;  %v20567_v0 = vld [vmem:[#allocation3 + $0x160] sm:$0xff]  }
 0x913   : > { %19487 = vmatpush3.bf16.msra.mxu1 %v20536_v46  ;;  %19236 = vmatprep.subr.bf16.mxu0 %v20903_v4  ;;  %v20569_v46 = vld [vmem:[%s21072_s13 + $0x1498] sm:$0xff]  }
 0x914   : > { %19488 = vmatprep.subr.bf16.mxu1 %v20903_v4 }
 0x916   : > { %19237 = vmatpush3.bf16.msra.mxu0 %v20539_v51  ;;  %v20571_v51 = vld [vmem:[%s21072_s13 + $0x1490] sm:$0xff]  }
 0x917   : > { %19489 = vmatpush3.bf16.msra.mxu1 %v20538_v48  ;;  %19262 = vmatprep.subr.bf16.mxu0 %v20903_v4  ;;  %v20570_v48 = vld [vmem:[%s21072_s13 + $0x17f0] sm:$0xff]  }
 0x918   : > { %19490 = vmatprep.subr.bf16.mxu1 %v20903_v4 }
 0x919   : > { %v10449_v54 = vpop.f32.mrf.mxu0  ;;  %19239 = vmatmul.mubr.bf16.vlgmr.msra.gmra.mxu0 %v20540_v20  ;;  %v20572_v20 = vld [vmem:[%s21072_s13 + $0x17e8] sm:$0xff]  }
 0x91a   : > { %v23562_v55 = vadd.f32 %v10449_v54, %v10341_v45  ;;  %19263 = vmatpush3.bf16.msra.mxu0 %v20542_v56  ;;  %19278 = vmatprep.mubr.msk.bf16.mxu0 %vm20904_vm0, %v20903_v4  ;;  %v20573_v45 = vld [vmem:[%s21072_s13 + $0x1488] sm:$0xff]  }
 0x91b   : > { %19491 = vmatpush3.bf16.msra.mxu1 %v20541_v53  ;;  %v19000_v41 = vpop.f32.mrf.mxu0  ;;  %19264 = vmatprep.subr.bf16.mxu0 %v20903_v4 }
 0x91c   : > { %19492 = vmatprep.subr.bf16.mxu1 %v20903_v4  ;;  %v10571_v27 = vadd.f32 %v23307_v61, %v23562_v55  ;;  %v20574_v55 = vld [vmem:[%s21072_s13 + $0x17e0] sm:$0xff]   ;;  %v20578_v41 = vld [vmem:[%s21072_s13 + $0x1538] sm:$0xff]  }
 0x91d   : > { %v10452_v58 = vpop.f32.mrf.mxu0 }
 0x91e   : > { %v23572_v63 = vadd.f32 %v10452_v58, %v10342_v38  ;;  %19265 = vmatpush3.bf16.msra.mxu0 %v20544_v49  ;;  %v20577_v49 = vld [vmem:[%s21072_s13 + $0x17d8] sm:$0xff]   ;;  %v20576_v38 = vld [vmem:[#allocation3 + $0x108] sm:$0xff]  }
 0x91f   : > { %19493 = vmatpush3.bf16.msra.mxu1 %v20543_v37  ;;  %v19001_v47 = vpop.f32.mrf.mxu0  ;;  %19266 = vmatprep.subr.bf16.mxu0 %v20903_v4  ;;  %v20575_v37 = vld [vmem:[%s21072_s13 + $0x1480] sm:$0xff]  }
 0x920   : > { %19494 = vmatprep.subr.bf16.mxu1 %v20903_v4  ;;  %v10572_v61 = vadd.f32 %v23315_v32, %v23572_v63  ;;  %v20565_v32 = vld [vmem:[%s21072_s13 + $0x1740] sm:$0xff]   ;;  %v20580_v47 = vld [vmem:[%s21072_s13 + $0x1530] sm:$0xff]  }
 0x922   : > { %19267 = vmatpush3.bf16.msra.mxu0 %v20546_v26  ;;  %v20579_v26 = vld [vmem:[%s21072_s13 + $0x17d0] sm:$0xff]  }
 0x923   : > { %19495 = vmatpush3.bf16.msra.mxu1 %v20545_v40  ;;  %19268 = vmatprep.subr.bf16.mxu0 %v20903_v4 }
 0x924   : > { %19496 = vmatprep.subr.bf16.mxu1 %v20903_v4 }
 0x926   : > { %19269 = vmatpush3.bf16.msra.mxu0 %v20548_v8 }
 0x927   : > { %19497 = vmatpush3.bf16.msra.mxu1 %v20547_v33  ;;  %19270 = vmatprep.subr.bf16.mxu0 %v20903_v4 }
 0x928   : > { %19522 = vmatprep.subr.bf16.mxu1 %v20903_v4 }
 0x92a   : > { %v23586_v14 = vpop.f32.mrf.mxu1  ;;  %19499 = vmatmul.mubr.bf16.vlgmr.msra.gmra.mxu1 %v20549_v29  ;;  %19271 = vmatpush3.bf16.msra.mxu0 %v20551_v50  ;;  %v20581_v50 = vld [vmem:[%s21072_s13 + $0x17c8] sm:$0xff]  }
 0x92b   : > { %19523 = vmatpush3.bf16.msra.mxu1 %v20550_v42  ;;  %19272 = vmatprep.subr.bf16.mxu0 %v20903_v4  ;;  %v20582_v29 = vld [vmem:[%s21072_s13 + $0x1528] sm:$0xff]  }
 0x92c   : > { %v19260_v16 = vpop.f32.mrf.mxu1  ;;  %19524 = vmatprep.subr.bf16.mxu1 %v20903_v4  ;;  %19538 = vmatprep.mubr.msk.bf16.mxu1 %vm20904_vm0, %v20903_v4 }
 0x92d   : > { %v20586_v16 = vld [vmem:[%s21072_s13 + $0x1878] sm:$0xff]  }
 0x92e   : > { %v23594_v13 = vpop.f32.mrf.mxu1  ;;  %19273 = vmatpush3.bf16.msra.mxu0 %v20553_v18  ;;  %v20584_v18 = vld [vmem:[%s21072_s13 + $0x1520] sm:$0xff]  }
 0x92f   : > { %19525 = vmatpush3.bf16.msra.mxu1 %v20552_v11  ;;  %19274 = vmatprep.subr.bf16.mxu0 %v20903_v4 }
 0x930   : > { %v19261_v22 = vpop.f32.mrf.mxu1  ;;  %19526 = vmatprep.subr.bf16.mxu1 %v20903_v4 }
 0x932   : > { %19275 = vmatpush3.bf16.msra.mxu0 %v20555_v19  ;;  %v20585_v19 = vld [vmem:[#allocation3 + $0x170] sm:$0xff]  }
 0x933   : > { %19527 = vmatpush3.bf16.msra.mxu1 %v20554_v17  ;;  %19276 = vmatprep.subr.bf16.mxu0 %v20903_v4  ;;  %v20587_v17 = vld [vmem:[%s21072_s13 + $0x1518] sm:$0xff]  }
 0x934   : > { %19528 = vmatprep.subr.bf16.mxu1 %v20903_v4 }
 0x936   : > { %19277 = vmatpush3.bf16.msra.mxu0 %v20557_v9  ;;  %v20589_v9 = vld [vmem:[%s21072_s13 + $0x1510] sm:$0xff]  }
 0x937   : > { %19529 = vmatpush3.bf16.msra.mxu1 %v20556_v34  ;;  %19302 = vmatprep.subr.bf16.mxu0 %v20903_v4  ;;  %v20588_v34 = vld [vmem:[%s21072_s13 + $0x1870] sm:$0xff]  }
 0x938   : > { %19530 = vmatprep.subr.bf16.mxu1 %v20903_v4 }
 0x939   : > { %v10679_v12 = vpop.f32.mrf.mxu0  ;;  %19279 = vmatmul.mubr.bf16.vlgmr.msra.gmra.mxu0 %v20558_v2  ;;  %v20590_v2 = vld [vmem:[%s21072_s13 + $0x1868] sm:$0xff]  }
 0x93a   : > { %v23610_v10 = vadd.f32 %v10679_v12, %v10571_v27  ;;  %19303 = vmatpush3.bf16.msra.mxu0 %v20560_v25  ;;  %19318 = vmatprep.mubr.msk.bf16.mxu0 %vm20904_vm0, %v20903_v4  ;;  %v20591_v27 = vld [vmem:[%s21072_s13 + $0x1508] sm:$0xff]  }
 0x93b   : > { %19531 = vmatpush3.bf16.msra.mxu1 %v20559_v24  ;;  %v19040_v7 = vpop.f32.mrf.mxu0  ;;  %19304 = vmatprep.subr.bf16.mxu0 %v20903_v4 }
 0x93c   : > { %19532 = vmatprep.subr.bf16.mxu1 %v20903_v4  ;;  %v10801_v58 = vadd.f32 %v23353_v31, %v23610_v10  ;;  %v20592_v10 = vld [vmem:[%s21072_s13 + $0x1860] sm:$0xff]   ;;  %v20596_v7 = vld [vmem:[%s21072_s13 + $0x15b8] sm:$0xff]  }
 0x93d   : > { %v10682_v57 = vpop.f32.mrf.mxu0 }
 0x93e   : > { %v23620_v6 = vadd.f32 %v10682_v57, %v10572_v61  ;;  %19305 = vmatpush3.bf16.msra.mxu0 %v20562_v30  ;;  %v20595_v30 = vld [vmem:[%s21072_s13 + $0x1858] sm:$0xff]   ;;  %v20594_v61 = vld [vmem:[#allocation3 + $0x118] sm:$0xff]  }
 0x93f   : > { %19533 = vmatpush3.bf16.msra.mxu1 %v20561_v1  ;;  %v19041_v43 = vpop.f32.mrf.mxu0  ;;  %19306 = vmatprep.subr.bf16.mxu0 %v20903_v4  ;;  %v20593_v1 = vld [vmem:[%s21072_s13 + $0x1500] sm:$0xff]  }
 0x940   : > { %19534 = vmatprep.subr.bf16.mxu1 %v20903_v4  ;;  %v10802_v31 = vadd.f32 %v23361_v15, %v23620_v6  ;;  %v20583_v15 = vld [vmem:[%s21072_s13 + $0x17c0] sm:$0xff]   ;;  %v20598_v43 = vld [vmem:[%s21072_s13 + $0x15b0] sm:$0xff]  }
 0x942   : > { %19307 = vmatpush3.bf16.msra.mxu0 %v20564_v60  ;;  %v20597_v60 = vld [vmem:[%s21072_s13 + $0x1850] sm:$0xff]  }
 0x943   : > { %19535 = vmatpush3.bf16.msra.mxu1 %v20563_v21  ;;  %19308 = vmatprep.subr.bf16.mxu0 %v20903_v4 }
 0x944   : > { %19536 = vmatprep.subr.bf16.mxu1 %v20903_v4 }
 0x946   : > { %19309 = vmatpush3.bf16.msra.mxu0 %v20566_v62 }
 0x947   : > { %19537 = vmatpush3.bf16.msra.mxu1 %v20565_v32  ;;  %19310 = vmatprep.subr.bf16.mxu0 %v20903_v4 }
 0x948   : > { %19562 = vmatprep.subr.bf16.mxu1 %v20903_v4 }
 0x94a   : > { %v23634_v5 = vpop.f32.mrf.mxu1  ;;  %19539 = vmatmul.mubr.bf16.vlgmr.msra.gmra.mxu1 %v20567_v0  ;;  %19311 = vmatpush3.bf16.msra.mxu0 %v20569_v46  ;;  %v20599_v46 = vld [vmem:[%s21072_s13 + $0x1848] sm:$0xff]  }
 0x94b   : > { %19563 = vmatpush3.bf16.msra.mxu1 %v20568_v44  ;;  %19312 = vmatprep.subr.bf16.mxu0 %v20903_v4  ;;  %v20600_v0 = vld [vmem:[%s21072_s13 + $0x15a8] sm:$0xff]  }
 0x94c   : > { %v19300_v53 = vpop.f32.mrf.mxu1  ;;  %19564 = vmatprep.subr.bf16.mxu1 %v20903_v4  ;;  %19578 = vmatprep.mubr.msk.bf16.mxu1 %vm20904_vm0, %v20903_v4 }
 0x94d   : > { %v20604_v53 = vld [vmem:[%s21072_s13 + $0x1598] sm:$0xff]  }
 0x94e   : > { %v23642_v56 = vpop.f32.mrf.mxu1  ;;  %19313 = vmatpush3.bf16.msra.mxu0 %v20571_v51  ;;  %v20601_v51 = vld [vmem:[%s21072_s13 + $0x1840] sm:$0xff]  }
 0x94f   : > { %19565 = vmatpush3.bf16.msra.mxu1 %v20570_v48  ;;  %19314 = vmatprep.subr.bf16.mxu0 %v20903_v4 }
 0x950   : > { %v19301_v54 = vpop.f32.mrf.mxu1  ;;  %19566 = vmatprep.subr.bf16.mxu1 %v20903_v4 }
 0x951   : > { %v20605_v54 = vld [vmem:[%s21072_s13 + $0x1590] sm:$0xff]  }
 0x952   : > { %19315 = vmatpush3.bf16.msra.mxu0 %v20573_v45 }
 0x953   : > { %19567 = vmatpush3.bf16.msra.mxu1 %v20572_v20  ;;  %19316 = vmatprep.subr.bf16.mxu0 %v20903_v4  ;;  %v20603_v20 = vld [vmem:[#allocation3 + $0x180] sm:$0xff]  }
 0x954   : > { %19568 = vmatprep.subr.bf16.mxu1 %v20903_v4 }
 0x956   : > { %19317 = vmatpush3.bf16.msra.mxu0 %v20575_v37 }
 0x957   : > { %19569 = vmatpush3.bf16.msra.mxu1 %v20574_v55  ;;  %19342 = vmatprep.subr.bf16.mxu0 %v20903_v4 }
 0x958   : > { %19570 = vmatprep.subr.bf16.mxu1 %v20903_v4 }
 0x959   : > { %v10909_v63 = vpop.f32.mrf.mxu0  ;;  %19319 = vmatmul.mubr.bf16.vlgmr.msra.gmra.mxu0 %v20576_v38  ;;  %v20607_v38 = vld [vmem:[%s21072_s13 + $0x1580] sm:$0xff]  }
 0x95a   : > { %v23658_v40 = vadd.f32 %v10909_v63, %v10801_v58  ;;  %19343 = vmatpush3.bf16.msra.mxu0 %v20578_v41  ;;  %19358 = vmatprep.mubr.msk.bf16.mxu0 %vm20904_vm0, %v20903_v4  ;;  %v20609_v58 = vld [vmem:[%s21072_s13 + $0x1638] sm:$0xff]   ;;  %v20608_v63 = vld [vmem:[#allocation3 + $0x128] sm:$0xff]  }
 0x95b   : > { %19571 = vmatpush3.bf16.msra.mxu1 %v20577_v49  ;;  %v19080_v33 = vpop.f32.mrf.mxu0  ;;  %19344 = vmatprep.subr.bf16.mxu0 %v20903_v4  ;;  %v20606_v49 = vld [vmem:[%s21072_s13 + $0x1588] sm:$0xff]  }
 0x95c   : > { %19572 = vmatprep.subr.bf16.mxu1 %v20903_v4  ;;  %v11031_v57 = vadd.f32 %v23399_v23, %v23658_v40  ;;  %v20610_v33 = vld [vmem:[%s21072_s13 + $0x1630] sm:$0xff]  }
 0x95d   : > { %v10912_v8 = vpop.f32.mrf.mxu0 }
 0x95e   : > { %v23668_v42 = vadd.f32 %v10912_v8, %v10802_v31  ;;  %19345 = vmatpush3.bf16.msra.mxu0 %v20580_v47 }
 0x95f   : > { %19573 = vmatpush3.bf16.msra.mxu1 %v20579_v26  ;;  %v19081_v11 = vpop.f32.mrf.mxu0  ;;  %19346 = vmatprep.subr.bf16.mxu0 %v20903_v4 }
 0x960   : > { %19574 = vmatprep.subr.bf16.mxu1 %v20903_v4  ;;  %v11032_v62 = vadd.f32 %v23407_v35, %v23668_v42  ;;  %v20602_v35 = vld [vmem:[%s21072_s13 + $0x15a0] sm:$0xff]  }
 0x961   : > { %v20612_v11 = vld [vmem:[%s21072_s13 + $0x1620] sm:$0xff]  }
 0x962   : > { %19347 = vmatpush3.bf16.msra.mxu0 %v20582_v29 }
 0x963   : > { %19575 = vmatpush3.bf16.msra.mxu1 %v20581_v50  ;;  %19348 = vmatprep.subr.bf16.mxu0 %v20903_v4 }
 0x964   : > { %19576 = vmatprep.subr.bf16.mxu1 %v20903_v4 }
 0x966   : > { %19349 = vmatpush3.bf16.msra.mxu0 %v20584_v18 }
 0x967   : > { %19577 = vmatpush3.bf16.msra.mxu1 %v20583_v15  ;;  %19350 = vmatprep.subr.bf16.mxu0 %v20903_v4  ;;  %v20613_v15 = vld [vmem:[%s21072_s13 + $0x1618] sm:$0xff]  }
 0x968   : > { %19602 = vmatprep.subr.bf16.mxu1 %v20903_v4 }
 0x96a   : > { %v23682_v22 = vpop.f32.mrf.mxu1  ;;  %19579 = vmatmul.mubr.bf16.vlgmr.msra.gmra.mxu1 %v20585_v19  ;;  %19351 = vmatpush3.bf16.msra.mxu0 %v20587_v17  ;;  %v20615_v19 = vld [vmem:[%s21072_s13 + $0x1608] sm:$0xff]  }
 0x96b   : > { %19603 = vmatpush3.bf16.msra.mxu1 %v20586_v16  ;;  %19352 = vmatprep.subr.bf16.mxu0 %v20903_v4 }
 0x96c   : > { %v19340_v24 = vpop.f32.mrf.mxu1  ;;  %19604 = vmatprep.subr.bf16.mxu1 %v20903_v4  ;;  %19618 = vmatprep.mubr.msk.bf16.mxu1 %vm20904_vm0, %v20903_v4 }
 0x96d   : > { %v20618_v24 = vld [vmem:[%s21072_s13 + $0x16b8] sm:$0xff]  }
 0x96e   : > { %v23690_v25 = vpop.f32.mrf.mxu1  ;;  %19353 = vmatpush3.bf16.msra.mxu0 %v20589_v9  ;;  %v20616_v9 = vld [vmem:[%s21072_s13 + $0x1600] sm:$0xff]  }
 0x96f   : > { %19605 = vmatpush3.bf16.msra.mxu1 %v20588_v34  ;;  %19354 = vmatprep.subr.bf16.mxu0 %v20903_v4 }
 0x970   : > { %v19341_v12 = vpop.f32.mrf.mxu1  ;;  %19606 = vmatprep.subr.bf16.mxu1 %v20903_v4 }
 0x972   : > { %19355 = vmatpush3.bf16.msra.mxu0 %v20591_v27 }
 0x973   : > { %19607 = vmatpush3.bf16.msra.mxu1 %v20590_v2  ;;  %19356 = vmatprep.subr.bf16.mxu0 %v20903_v4  ;;  %v20617_v2 = vld [vmem:[#allocation3 + $0x138] sm:$0xff]  }
 0x974   : > { %19608 = vmatprep.subr.bf16.mxu1 %v20903_v4 }
 0x976   : > { %19357 = vmatpush3.bf16.msra.mxu0 %v20593_v1  ;;  %v20619_v1 = vld [vmem:[%s21072_s13 + $0x16b0] sm:$0xff]  }
 0x977   : > { %19609 = vmatpush3.bf16.msra.mxu1 %v20592_v10  ;;  %19382 = vmatprep.subr.bf16.mxu0 %v20903_v4 }
 0x978   : > { %19610 = vmatprep.subr.bf16.mxu1 %v20903_v4 }
 0x979   : > { %v11139_v6 = vpop.f32.mrf.mxu0  ;;  %19359 = vmatmul.mubr.bf16.vlgmr.msra.gmra.mxu0 %v20594_v61 }
 0x97a   : > { %v11146_v21 = vadd.f32 %v11139_v6, %v11031_v57  ;;  %19383 = vmatpush3.bf16.msra.mxu0 %v20596_v7  ;;  %19398 = vmatprep.mubr.msk.bf16.mxu0 %vm20904_vm0, %v20903_v4 }
 0x97b   : > { %19611 = vmatpush3.bf16.msra.mxu1 %v20595_v30  ;;  %v19120_v32 = vpop.f32.mrf.mxu0  ;;  %19384 = vmatprep.subr.bf16.mxu0 %v20903_v4 }
 0x97c   : > { %19612 = vmatprep.subr.bf16.mxu1 %v20903_v4  ;;  %v11261_v40 = vadd.f32 %v23443_v28, %v11146_v21  ;;  %v20611_v28 = vld [vmem:[%s21072_s13 + $0x1628] sm:$0xff]   ;;  %v20621_v21 = vld [vmem:[%s21072_s13 + $0x16a0] sm:$0xff]  }
 0x97d   : > { %v11142_v23 = vpop.f32.mrf.mxu0 }
 0x97e   : > { %v11147_v44 = vadd.f32 %v11142_v23, %v11032_v62  ;;  %19385 = vmatpush3.bf16.msra.mxu0 %v20598_v43  ;;  %v20624_v23 = vld [vmem:[%s21072_s13 + $0x1688] sm:$0xff]  }
 0x97f   : > { %19613 = vmatpush3.bf16.msra.mxu1 %v20597_v60  ;;  %v19121_v48 = vpop.f32.mrf.mxu0  ;;  %19386 = vmatprep.subr.bf16.mxu0 %v20903_v4  ;;  %v20622_v60 = vld [vmem:[%s21072_s13 + $0x1698] sm:$0xff]  }
 0x980   : > { %19614 = vmatprep.subr.bf16.mxu1 %v20903_v4  ;;  %v11262_v8 = vadd.f32 %v23451_v59, %v11147_v44  ;;  %v20614_v59 = vld [vmem:[%s21072_s13 + $0x1610] sm:$0xff]   ;;  %v20626_v48 = vld [vmem:[#allocation3 + $0x148] sm:$0xff]  }
 0x982   : > { %19387 = vmatpush3.bf16.msra.mxu0 %v20600_v0  ;;  %v20627_v0 = vld [vmem:[%s21072_s13 + $0x1738] sm:$0xff]  }
 0x983   : > { %19615 = vmatpush3.bf16.msra.mxu1 %v20599_v46  ;;  %19388 = vmatprep.subr.bf16.mxu0 %v20903_v4  ;;  %v20625_v46 = vld [vmem:[%s21072_s13 + $0x1680] sm:$0xff]  }
 0x984   : > { %19616 = vmatprep.subr.bf16.mxu1 %v20903_v4 }
 0x986   : > { %19389 = vmatpush3.bf16.msra.mxu0 %v20602_v35 }
 0x987   : > { %19617 = vmatpush3.bf16.msra.mxu1 %v20601_v51  ;;  %19390 = vmatprep.subr.bf16.mxu0 %v20903_v4 }
 0x98a   : > { %v23724_v45 = vpop.f32.mrf.mxu1  ;;  %19619 = vmatmul.mubr.bf16.vlgmr.msra.gmra.mxu1 %v20603_v20  ;;  %19391 = vmatpush3.bf16.msra.mxu0 %v20604_v53  ;;  %v20628_v20 = vld [vmem:[%s21072_s13 + $0x1730] sm:$0xff]  }
 0x98b   : > { %19392 = vmatprep.subr.bf16.mxu0 %v20903_v4 }
 0x98c   : > { %v19380_v55 = vpop.f32.mrf.mxu1 }
 0x98e   : > { %v23728_v37 = vpop.f32.mrf.mxu1  ;;  %19393 = vmatpush3.bf16.msra.mxu0 %v20605_v54 }
 0x98f   : > { %19394 = vmatprep.subr.bf16.mxu0 %v20903_v4 }
 0x990   : > { %v19381_v41 = vpop.f32.mrf.mxu1 }
 0x992   : > { %19395 = vmatpush3.bf16.msra.mxu0 %v20606_v49 }
 0x993   : > { %19396 = vmatprep.subr.bf16.mxu0 %v20903_v4 }
 0x996   : > { %19397 = vmatpush3.bf16.msra.mxu0 %v20607_v38 }
 0x997   : > { %19422 = vmatprep.subr.bf16.mxu0 %v20903_v4 }
 0x999   : > { %v11369_v26 = vpop.f32.mrf.mxu0  ;;  %19399 = vmatmul.mubr.bf16.vlgmr.msra.gmra.mxu0 %v20608_v63  ;;  %v20631_v63 = vld [vmem:[%s21072_s13 + $0x1718] sm:$0xff]  }
 0x99a   : > { %v11376_v47 = vadd.f32 %v11369_v26, %v11261_v40  ;;  %19423 = vmatpush3.bf16.msra.mxu0 %v20609_v58  ;;  %19438 = vmatprep.mubr.msk.bf16.mxu0 %vm20904_vm0, %v20903_v4  ;;  %v20630_v58 = vld [vmem:[%s21072_s13 + $0x1720] sm:$0xff]  }
 0x99b   : > { %v19160_v31 = vpop.f32.mrf.mxu0  ;;  %19424 = vmatprep.subr.bf16.mxu0 %v20903_v4 }
 0x99c   : > { %v11491_v27 = vadd.f32 %v23490_v3, %v11376_v47  ;;  %v20620_v3 = vld [vmem:[%s21072_s13 + $0x16a8] sm:$0xff]  }
 0x99d   : > { %v11372_v42 = vpop.f32.mrf.mxu0 }
 0x99e   : > { %v11377_v50 = vadd.f32 %v11372_v42, %v11262_v8  ;;  %19425 = vmatpush3.bf16.msra.mxu0 %v20610_v33  ;;  %v20633_v33 = vld [vmem:[%s21072_s13 + $0x1708] sm:$0xff]   ;;  %v20634_v8 = vld [vmem:[%s21072_s13 + $0x1700] sm:$0xff]   ;;  %v20636_v42 = vld [vmem:[%s21072_s13 + $0x17b8] sm:$0xff]  }
 0x99f   : > { %v19161_v29 = vpop.f32.mrf.mxu0  ;;  %19426 = vmatprep.subr.bf16.mxu0 %v20903_v4 }
 0x9a0   : > { %v11492_v7 = vadd.f32 %v23498_v36, %v11377_v50  ;;  %v20623_v36 = vld [vmem:[%s21072_s13 + $0x1690] sm:$0xff]  }
 0x9a1   : > { %v20635_v50 = vld [vmem:[#allocation3 + $0x158] sm:$0xff]  }
 0x9a2   : > { %19427 = vmatpush3.bf16.msra.mxu0 %v20611_v28 }
 0x9a3   : > { %19428 = vmatprep.subr.bf16.mxu0 %v20903_v4 }
 0x9a6   : > { %19429 = vmatpush3.bf16.msra.mxu0 %v20612_v11 }
 0x9a7   : > { %19430 = vmatprep.subr.bf16.mxu0 %v20903_v4 }
 0x9aa   : > { %v23748_v18 = vpop.f32.mrf.mxu1  ;;  %19431 = vmatpush3.bf16.msra.mxu0 %v20613_v15  ;;  %v20637_v15 = vld [vmem:[%s21072_s13 + $0x17b0] sm:$0xff]  }
 0x9ab   : > { %19432 = vmatprep.subr.bf16.mxu0 %v20903_v4 }
 0x9ac   : > { %v19420_v16 = vpop.f32.mrf.mxu1 }
 0x9ae   : > { %v23752_v17 = vpop.f32.mrf.mxu1  ;;  %19433 = vmatpush3.bf16.msra.mxu0 %v20614_v59 }
 0x9af   : > { %19434 = vmatprep.subr.bf16.mxu0 %v20903_v4 }
 0x9b0   : > { %v19421_v34 = vpop.f32.mrf.mxu1 }
 0x9b2   : > { %19435 = vmatpush3.bf16.msra.mxu0 %v20615_v19 }
 0x9b3   : > { %19436 = vmatprep.subr.bf16.mxu0 %v20903_v4 }
 0x9b6   : > { %19437 = vmatpush3.bf16.msra.mxu0 %v20616_v9 }
 0x9b7   : > { %19462 = vmatprep.subr.bf16.mxu0 %v20903_v4 }
 0x9b9   : > { %v11599_v12 = vpop.f32.mrf.mxu0  ;;  %19439 = vmatmul.mubr.bf16.vlgmr.msra.gmra.mxu0 %v20617_v2  ;;  %v20640_v2 = vld [vmem:[%s21072_s13 + $0x1798] sm:$0xff]  }
 0x9ba   : > { %v11606_v10 = vadd.f32 %v11599_v12, %v11491_v27  ;;  %19463 = vmatpush3.bf16.msra.mxu0 %v20618_v24  ;;  %19478 = vmatprep.mubr.msk.bf16.mxu0 %vm20904_vm0, %v20903_v4  ;;  %v20639_v24 = vld [vmem:[%s21072_s13 + $0x17a0] sm:$0xff]  }
 0x9bb   : > { %v19200_v30 = vpop.f32.mrf.mxu0  ;;  %19464 = vmatprep.subr.bf16.mxu0 %v20903_v4 }
 0x9bc   : > { %v11721_v51 = vadd.f32 %v23538_v39, %v11606_v10  ;;  %v20629_v39 = vld [vmem:[%s21072_s13 + $0x1728] sm:$0xff]  }
 0x9bd   : > { %v11602_v61 = vpop.f32.mrf.mxu0 }
 0x9be   : > { %v11607_v57 = vadd.f32 %v11602_v61, %v11492_v7  ;;  %19465 = vmatpush3.bf16.msra.mxu0 %v20619_v1  ;;  %v20642_v1 = vld [vmem:[%s21072_s13 + $0x1788] sm:$0xff]   ;;  %v20643_v7 = vld [vmem:[%s21072_s13 + $0x1780] sm:$0xff]   ;;  %v20645_v61 = vld [vmem:[%s21072_s13 + $0x1838] sm:$0xff]  }
 0x9bf   : > { %v19201_v6 = vpop.f32.mrf.mxu0  ;;  %19466 = vmatprep.subr.bf16.mxu0 %v20903_v4 }
 0x9c0   : > { %v11722_v55 = vadd.f32 %v23546_v52, %v11607_v57  ;;  %v20632_v52 = vld [vmem:[%s21072_s13 + $0x1710] sm:$0xff]   ;;  %v20644_v57 = vld [vmem:[#allocation3 + $0x168] sm:$0xff]  }
 0x9c2   : > { %19467 = vmatpush3.bf16.msra.mxu0 %v20620_v3 }
 0x9c3   : > { %19468 = vmatprep.subr.bf16.mxu0 %v20903_v4 }
 0x9c6   : > { %19469 = vmatpush3.bf16.msra.mxu0 %v20621_v21 }
 0x9c7   : > { %19470 = vmatprep.subr.bf16.mxu0 %v20903_v4 }
 0x9ca   : > { %v23772_v43 = vpop.f32.mrf.mxu1  ;;  %19471 = vmatpush3.bf16.msra.mxu0 %v20622_v60  ;;  %v20646_v60 = vld [vmem:[%s21072_s13 + $0x1830] sm:$0xff]  }
 0x9cb   : > { %19472 = vmatprep.subr.bf16.mxu0 %v20903_v4 }
 0x9cc   : > { %v19460_v32 = vpop.f32.mrf.mxu1 }
 0x9ce   : > { %v23776_v62 = vpop.f32.mrf.mxu1  ;;  %19473 = vmatpush3.bf16.msra.mxu0 %v20623_v36 }
 0x9cf   : > { %19474 = vmatprep.subr.bf16.mxu0 %v20903_v4 }
 0x9d0   : > { %v19461_v44 = vpop.f32.mrf.mxu1 }
 0x9d2   : > { %19475 = vmatpush3.bf16.msra.mxu0 %v20624_v23 }
 0x9d3   : > { %19476 = vmatprep.subr.bf16.mxu0 %v20903_v4 }
 0x9d6   : > { %19477 = vmatpush3.bf16.msra.mxu0 %v20625_v46 }
 0x9d7   : > { %19502 = vmatprep.subr.bf16.mxu0 %v20903_v4 }
 0x9d9   : > { %v11829_v35 = vpop.f32.mrf.mxu0  ;;  %19479 = vmatmul.mubr.bf16.vlgmr.msra.gmra.mxu0 %v20626_v48  ;;  %v20649_v48 = vld [vmem:[%s21072_s13 + $0x1818] sm:$0xff]  }
 0x9da   : > { %v11836_v53 = vadd.f32 %v11829_v35, %v11721_v51  ;;  %19503 = vmatpush3.bf16.msra.mxu0 %v20627_v0  ;;  %19518 = vmatprep.mubr.msk.bf16.mxu0 %vm20904_vm0, %v20903_v4  ;;  %v20648_v0 = vld [vmem:[%s21072_s13 + $0x1820] sm:$0xff]  }
 0x9db   : > { %v19240_v54 = vpop.f32.mrf.mxu0  ;;  %19504 = vmatprep.subr.bf16.mxu0 %v20903_v4 }
 0x9dc   : > { %v11951_v28 = vadd.f32 %v23586_v14, %v11836_v53  ;;  %v20638_v14 = vld [vmem:[%s21072_s13 + $0x17a8] sm:$0xff]  }
 0x9dd   : > { %v11832_v49 = vpop.f32.mrf.mxu0 }
 0x9de   : > { %v11837_v41 = vadd.f32 %v11832_v49, %v11722_v55  ;;  %19505 = vmatpush3.bf16.msra.mxu0 %v20628_v20  ;;  %v20651_v20 = vld [vmem:[%s21072_s13 + $0x1808] sm:$0xff]   ;;  %v20652_v55 = vld [vmem:[%s21072_s13 + $0x1800] sm:$0xff]   ;;  %v20653_v49 = vld [vmem:[#allocation3 + $0x178] sm:$0xff]  }
 0x9df   : > { %v19241_v38 = vpop.f32.mrf.mxu0  ;;  %19506 = vmatprep.subr.bf16.mxu0 %v20903_v4 }
 0x9e0   : > { %v11952_v16 = vadd.f32 %v23594_v13, %v11837_v41  ;;  %v20641_v13 = vld [vmem:[%s21072_s13 + $0x1790] sm:$0xff]  }
 0x9e2   : > { %19507 = vmatpush3.bf16.msra.mxu0 %v20629_v39 }
 0x9e3   : > { %19508 = vmatprep.subr.bf16.mxu0 %v20903_v4 }
 0x9e6   : > { %19509 = vmatpush3.bf16.msra.mxu0 %v20630_v58 }
 0x9e7   : > { %19510 = vmatprep.subr.bf16.mxu0 %v20903_v4 }
 0x9ea   : > { %v23796_v40 = vpop.f32.mrf.mxu1  ;;  %19511 = vmatpush3.bf16.msra.mxu0 %v20631_v63 }
 0x9eb   : > { %19512 = vmatprep.subr.bf16.mxu0 %v20903_v4 }
 0x9ec   : > { %v19500_v26 = vpop.f32.mrf.mxu1 }
 0x9ee   : > { %v23800_v47 = vpop.f32.mrf.mxu1  ;;  %19513 = vmatpush3.bf16.msra.mxu0 %v20632_v52 }
 0x9ef   : > { %19514 = vmatprep.subr.bf16.mxu0 %v20903_v4 }
 0x9f0   : > { %v19501_v31 = vpop.f32.mrf.mxu1 }
 0x9f2   : > { %19515 = vmatpush3.bf16.msra.mxu0 %v20633_v33 }
 0x9f3   : > { %19516 = vmatprep.subr.bf16.mxu0 %v20903_v4 }
 0x9f6   : > { %19517 = vmatpush3.bf16.msra.mxu0 %v20634_v8 }
 0x9f7   : > { %19542 = vmatprep.subr.bf16.mxu0 %v20903_v4 }
 0x9f9   : > { %v12059_v29 = vpop.f32.mrf.mxu0  ;;  %19519 = vmatmul.mubr.bf16.vlgmr.msra.gmra.mxu0 %v20635_v50 }
 0x9fa   : > { %v12066_v11 = vadd.f32 %v12059_v29, %v11951_v28  ;;  %19543 = vmatpush3.bf16.msra.mxu0 %v20636_v42  ;;  %19558 = vmatprep.mubr.msk.bf16.mxu0 %vm20904_vm0, %v20903_v4 }
 0x9fb   : > { %v19280_v59 = vpop.f32.mrf.mxu0  ;;  %19544 = vmatprep.subr.bf16.mxu0 %v20903_v4 }
 0x9fc   : > { %v12181_v3 = vadd.f32 %v23634_v5, %v12066_v11  ;;  %v20647_v5 = vld [vmem:[%s21072_s13 + $0x1828] sm:$0xff]  }
 0x9fd   : > { %v12062_v19 = vpop.f32.mrf.mxu0 }
 0x9fe   : > { %v12067_v34 = vadd.f32 %v12062_v19, %v11952_v16  ;;  %19545 = vmatpush3.bf16.msra.mxu0 %v20637_v15 }
 0x9ff   : > { %v19281_v9 = vpop.f32.mrf.mxu0  ;;  %19546 = vmatprep.subr.bf16.mxu0 %v20903_v4 }
 0xa00   : > { %v12182_v32 = vadd.f32 %v23642_v56, %v12067_v34  ;;  %v20650_v56 = vld [vmem:[%s21072_s13 + $0x1810] sm:$0xff]  }
 0xa02   : > { %19547 = vmatpush3.bf16.msra.mxu0 %v20638_v14 }
 0xa03   : > { %19548 = vmatprep.subr.bf16.mxu0 %v20903_v4 }
 0xa06   : > { %19549 = vmatpush3.bf16.msra.mxu0 %v20639_v24 }
 0xa07   : > { %19550 = vmatprep.subr.bf16.mxu0 %v20903_v4 }
 0xa0a   : > { %v23820_v27 = vpop.f32.mrf.mxu1  ;;  %19551 = vmatpush3.bf16.msra.mxu0 %v20640_v2 }
 0xa0b   : > { %19552 = vmatprep.subr.bf16.mxu0 %v20903_v4 }
 0xa0c   : > { %v19540_v12 = vpop.f32.mrf.mxu1 }
 0xa0e   : > { %v23824_v10 = vpop.f32.mrf.mxu1  ;;  %19553 = vmatpush3.bf16.msra.mxu0 %v20641_v13 }
 0xa0f   : > { %19554 = vmatprep.subr.bf16.mxu0 %v20903_v4 }
 0xa10   : > { %v19541_v30 = vpop.f32.mrf.mxu1 }
 0xa12   : > { %19555 = vmatpush3.bf16.msra.mxu0 %v20642_v1 }
 0xa13   : > { %19556 = vmatprep.subr.bf16.mxu0 %v20903_v4 }
 0xa16   : > { %19557 = vmatpush3.bf16.msra.mxu0 %v20643_v7 }
 0xa17   : > { %19582 = vmatprep.subr.bf16.mxu0 %v20903_v4 }
 0xa19   : > { %v12289_v6 = vpop.f32.mrf.mxu0  ;;  %19559 = vmatmul.mubr.bf16.vlgmr.msra.gmra.mxu0 %v20644_v57 }
 0xa1a   : > { %v12296_v21 = vadd.f32 %v12289_v6, %v12181_v3  ;;  %19583 = vmatpush3.bf16.msra.mxu0 %v20645_v61  ;;  %19598 = vmatprep.mubr.msk.bf16.mxu0 %vm20904_vm0, %v20903_v4 }
 0xa1b   : > { %v19320_v36 = vpop.f32.mrf.mxu0  ;;  %19584 = vmatprep.subr.bf16.mxu0 %v20903_v4 }
 0xa1c   : > { %v12411_v41 = vadd.f32 %v23682_v22, %v12296_v21 }
 0xa1d   : > { %v12292_v23 = vpop.f32.mrf.mxu0 }
 0xa1e   : > { %v12297_v44 = vadd.f32 %v12292_v23, %v12182_v32  ;;  %19585 = vmatpush3.bf16.msra.mxu0 %v20646_v60 }
 0xa1f   : > { %v19321_v46 = vpop.f32.mrf.mxu0  ;;  %19586 = vmatprep.subr.bf16.mxu0 %v20903_v4 }
 0xa20   : > { %v12412_v63 = vadd.f32 %v23690_v25, %v12297_v44 }
 0xa22   : > { %19587 = vmatpush3.bf16.msra.mxu0 %v20647_v5 }
 0xa23   : > { %19588 = vmatprep.subr.bf16.mxu0 %v20903_v4 }
 0xa26   : > { %19589 = vmatpush3.bf16.msra.mxu0 %v20648_v0 }
 0xa27   : > { %19590 = vmatprep.subr.bf16.mxu0 %v20903_v4 }
 0xa2a   : > { %v23844_v51 = vpop.f32.mrf.mxu1  ;;  %19591 = vmatpush3.bf16.msra.mxu0 %v20649_v48 }
 0xa2b   : > { %19592 = vmatprep.subr.bf16.mxu0 %v20903_v4 }
 0xa2c   : > { %v19580_v35 = vpop.f32.mrf.mxu1 }
 0xa2e   : > { %v23848_v53 = vpop.f32.mrf.mxu1  ;;  %19593 = vmatpush3.bf16.msra.mxu0 %v20650_v56 }
 0xa2f   : > { %19594 = vmatprep.subr.bf16.mxu0 %v20903_v4 }
 0xa30   : > { %v19581_v54 = vpop.f32.mrf.mxu1 }
 0xa32   : > { %19595 = vmatpush3.bf16.msra.mxu0 %v20651_v20  ;;  %v14030_v20 = vlaneseq }
 0xa33   : > { %19596 = vmatprep.subr.bf16.mxu0 %v20903_v4 }
 0xa36   : > { %19597 = vmatpush3.bf16.msra.mxu0 %v20652_v55 }
 0xa39   : > { %v12519_v39 = vpop.f32.mrf.mxu0  ;;  %19599 = vmatmul.mubr.bf16.vlgmr.msra.gmra.mxu0 %v20653_v49 }
 0xa3a   : > { %v12526_v38 = vadd.f32 %v12519_v39, %v12411_v41  ;;  %v15495_v39 = vld [vmem:[%s21080_s29 + $0x1] ss:$0 sm:$0xff] }
 0xa3b   : > { %v19360_v58 = vpop.f32.mrf.mxu0 }
 0xa3c   : > { %v12641_v28 = vadd.f32 %v23724_v45, %v12526_v38  ;;  %v23869_v38 = vand.u32 127, %v14030_v20 }
 0xa3d   : > { %v12522_v52 = vpop.f32.mrf.mxu0 }
 0xa3e   : > { %v12527_v26 = vadd.f32 %v12522_v52, %v12412_v63  ;;  %vm14032_vm2 = vcmp.lt.s32.totalorder %v23869_v38, 96 }
 0xa3f   : > { %v19361_v33 = vpop.f32.mrf.mxu0 }
 0xa40   : > { %v12642_v22 = vadd.f32 %v23728_v37, %v12527_v26 }
 0xa4a   : > { %v14014_v31 = vpop.f32.mrf.mxu1 }
 0xa4c   : > { %v19620_v8 = vpop.f32.mrf.mxu1 }
 0xa4e   : > { %v14017_v42 = vpop.f32.mrf.mxu1 }
 0xa50   : > { %v19621_v50 = vpop.f32.mrf.mxu1 }
 0xa59   : > { %v12749_v4 = vpop.f32.mrf.mxu0 }
 0xa5a   : > { %v12756_v29 = vadd.f32 %v12749_v4, %v12641_v28 }
 0xa5b   : > { %v19400_v11 = vpop.f32.mrf.mxu0 }
 0xa5c   : > { %v12871_v19 = vadd.f32 %v23748_v18, %v12756_v29 }
 0xa5d   : > { %v12752_v15 = vpop.f32.mrf.mxu0 }
 0xa5e   : > { %v12757_v59 = vadd.f32 %v12752_v15, %v12642_v22 }
 0xa5f   : > { %v19401_v16 = vpop.f32.mrf.mxu0 }
 0xa60   : > { %v12872_v9 = vadd.f32 %v23752_v17, %v12757_v59 }
 0xa79   : > { %v12979_v25 = vpop.f32.mrf.mxu0 }
 0xa7a   : > { %v12986_v34 = vadd.f32 %v12979_v25, %v12871_v19 }
 0xa7b   : > { %v19440_v14 = vpop.f32.mrf.mxu0 }
 0xa7c   : > { %v13101_v45 = vadd.f32 %v23772_v43, %v12986_v34 }
 0xa7d   : > { %v12982_v24 = vpop.f32.mrf.mxu0 }
 0xa7e   : > { %v12987_v2 = vadd.f32 %v12982_v24, %v12872_v9 }
 0xa7f   : > { %v19441_v13 = vpop.f32.mrf.mxu0 }
 0xa80   : > { %v13102_v37 = vadd.f32 %v23776_v62, %v12987_v2 }
 0xa99   : > { %v13209_v12 = vpop.f32.mrf.mxu0 }
 0xa9a   : > { %v13216_v1 = vadd.f32 %v13209_v12, %v13101_v45 }
 0xa9b   : > { %v19480_v30 = vpop.f32.mrf.mxu0 }
 0xa9c   : > { %v13331_v23 = vadd.f32 %v23796_v40, %v13216_v1  ;;  %v14075_v30 = vld [vmem:[%s21086_s18] sm:$0xff] }
 0xa9d   : > { %v13212_v7 = vpop.f32.mrf.mxu0 }
 0xa9e   : > { %v13217_v61 = vadd.f32 %v13212_v7, %v13102_v37  ;;  %v14076_v37 = vld [vmem:[%s21086_s18 + $0x8] sm:$0xff] }
 0xa9f   : > { %v19481_v57 = vpop.f32.mrf.mxu0 }
 0xaa0   : > { %v13332_v44 = vadd.f32 %v23800_v47, %v13217_v61  ;;  %v14079_v57 = vld [vmem:[%s21088_s30] sm:$0xff] }
 0xab9   : > { %v13439_v3 = vpop.f32.mrf.mxu0 }
 0xaba   : > { %v13446_v43 = vadd.f32 %v13439_v3, %v13331_v23  ;;  %v14080_v3 = vld [vmem:[%s21088_s30 + $0x8] sm:$0xff] }
 0xabb   : > { %v19520_v18 = vpop.f32.mrf.mxu0 }
 0xabc   : > { %v13561_v62 = vadd.f32 %v23820_v27, %v13446_v43 }
 0xabd   : > { %v13442_v6 = vpop.f32.mrf.mxu0 }
 0xabe   : > { %v13447_v5 = vadd.f32 %v13442_v6, %v13332_v44 }
 0xabf   : > { %v19521_v21 = vpop.f32.mrf.mxu0 }
 0xac0   : > { %v13562_v0 = vadd.f32 %v23824_v10, %v13447_v5 }
 0xad9   : > { %v13669_v60 = vpop.f32.mrf.mxu0 }
 0xada   : > { %v13676_v46 = vadd.f32 %v13669_v60, %v13561_v62 }
 0xadb   : > { %v19560_v36 = vpop.f32.mrf.mxu0 }
 0xadc   : > { %v13791_v56 = vadd.f32 %v23844_v51, %v13676_v46  ;;  %v20705_v36 = vld [vmem:[#allocation2] sm:$0xff] }
 0xadd   : > { %v13672_v17 = vpop.f32.mrf.mxu0 }
 0xade   : > { %v13677_v48 = vadd.f32 %v13672_v17, %v13562_v0 }
 0xadf   : > { %v19561_v32 = vpop.f32.mrf.mxu0 }
 0xae0   : > { %v13792_v40 = vadd.f32 %v23848_v53, %v13677_v48  ;;  %v20706_v32 = vld [vmem:[#allocation2 + $0x8] sm:$0xff] }
 0xaf9   : > { %v13899_v35 = vpop.f32.mrf.mxu0 }
 0xafa   : > { %v13906_v54 = vadd.f32 %v13899_v35, %v13791_v56 }
 0xafb   : > { %v19600_v55 = vpop.f32.mrf.mxu0 }
 0xafc   : > { %v14021_v49 = vadd.f32 %v14014_v31, %v13906_v54 }
 0xafd   : > { %v13902_v41 = vpop.f32.mrf.mxu0 }
 0xafe   : > { %v13907_v47 = vadd.f32 %v13902_v41, %v13792_v40  ;;  %v14028_v63 = vadd.f32 %v15495_v39, %v14021_v49 }
 0xaff   : > { %v19601_v58 = vpop.f32.mrf.mxu0 }
 0xb00   : > { %v14022_v27 = vadd.f32 %v14017_v42, %v13907_v47  ;;  %v14033_v51 = vsel %vm14032_vm2, %v14028_v63, 0.0 }
 0xb02   : > { %v14029_v10 = vadd.f32 %v15495_v39, %v14022_v27 }
 0xb04   : > { %v14034_v52 = vsel %vm14032_vm2, %v14029_v10, 0.0 }
 0xb05   : > { %v14035_v26 = vadd.f32 %v14034_v52, %v14033_v51 }
 0xb07   : > { %14036 = vadd.xlane.f32.xlu0 %v14035_v26 }
 0xb90   : > { %v14037_v53 = vpop.xlane.xlu0 %14036 }
 0xb91   : > { %v14038_v33 = vrot.slane %v14037_v53, 4 }
 0xb93   : > { %v14039_v31 = vadd.f32 %v14038_v33, %v14037_v53 }
 0xb95   : > { %v14040_v8 = vrot.slane %v14039_v31, 2 }
 0xb97   : > { %v14041_v50 = vadd.f32 %v14040_v8, %v14039_v31 }
 0xb99   : > { %v14042_v28 = vrot.slane %v14041_v50, 1 }
 0xb9b   : > { %v14043_v4 = vadd.f32 %v14042_v28, %v14041_v50 }
 0xb9d   : > { %19625 = vpush %v14043_v4 }
 0xbce   : > { %s19626_s13 = spop %19625 }
 0xbcf   : > { %s14047_s29 = smul.f32 0.0006510417, %s19626_s13 }
 0xbd1   : > { %v14048_v42 = vstv %s14047_s29 }
 0xbd2   : > { %v14049_v29 = vsub.f32 %v14028_v63, %v14048_v42  ;;  %v14050_v11 = vsub.f32 %v14029_v10, %v14048_v42 }
 0xbd4   : > { %v14051_v22 = vsel %vm14032_vm2, %v14049_v29, 0.0  ;;  %v14052_v15 = vsel %vm14032_vm2, %v14050_v11, 0.0 }
 0xbd5   : > { %v14053_v59 = vmul.f32 %v14051_v22, %v14051_v22  ;;  %v14054_v16 = vmul.f32 %v14052_v15, %v14052_v15 }
 0xbd7   : > { %v14055_v19 = vadd.f32 %v14054_v16, %v14053_v59 }
 0xbd9   : > { %14056 = vadd.xlane.f32.xlu0 %v14055_v19 }
 0xc62   : > { %v14057_v25 = vpop.xlane.xlu0 %14056 }
 0xc63   : > { %v14058_v34 = vrot.slane %v14057_v25, 4 }
 0xc65   : > { %v14059_v14 = vadd.f32 %v14058_v34, %v14057_v25 }
 0xc67   : > { %v14060_v9 = vrot.slane %v14059_v14, 2 }
 0xc69   : > { %v14061_v24 = vadd.f32 %v14060_v9, %v14059_v14 }
 0xc6b   : > { %v14062_v2 = vrot.slane %v14061_v24, 1 }
 0xc6d   : > { %v14063_v13 = vadd.f32 %v14062_v2, %v14061_v24 }
 0xc6f   : > { %19627 = vpush %v14063_v13 }
 0xca0   : > { %s19628_s17 = spop %19627 }
 0xca1   : > { %s14067_s3 = smul.f32 0.0006510417, %s19628_s17 }
 0xca3   : > { %s14068_s25 = sadd.f32 1e-05, %s14067_s3 }
 0xca5   : > { %v14069_v45 = vstv %s14068_s25 }
 0xca6   : > { %20654 = vrsqrt.f32 %v14069_v45 }
 0xcb3   : > { %v20655_v12 = vpop.eup %20654 }
 0xcb4   : > { %19629 = vpush %v20655_v12 }
 0xce5   : > { %s19630_s12 = spop %19629 }
 0xce6   : > { %v14072_v1 = vstv %s19630_s12 }
 0xce7   : > { %v14073_v7 = vmul.f32 %v14072_v1, %v14051_v22  ;;  %v14074_v61 = vmul.f32 %v14072_v1, %v14052_v15 }
 0xce9   : > { %v14077_v18 = vmul.f32 %v14075_v30, %v14073_v7  ;;  %v14078_v6 = vmul.f32 %v14076_v37, %v14074_v61 }
 0xceb   : > { %v14081_v21 = vadd.f32 %v14079_v57, %v14077_v18  ;;  %v14082_v60 = vadd.f32 %v14080_v3, %v14078_v6 }
 0xced   : > { %v14083_v17 = vadd.f32 %v20705_v36, %v14081_v21  ;;  %v14084_v23 = vadd.f32 %v20706_v32, %v14082_v60 }
 0xcef   : > { %v14085_v43 = vsel %vm14032_vm2, %v14083_v17, 0.0  ;;  %v14086_v44 = vsel %vm14032_vm2, %v14084_v23, 0.0 }
 0xcf0   : > { %14087 = vst [vmem:[#allocation2] sm:$0xff] %v14085_v43  ;;  %14088 = vst [vmem:[#allocation2 + $0x8] sm:$0xff] %v14086_v44 }
 0xcf1   : > { %14089 = vst [vmem:[%s21102_s27] sm:$0xff] %v14085_v43  ;;  %14090 = vst [vmem:[%s21102_s27 + $0x8] sm:$0xff] %v14086_v44 }
 0xcf2 PF: > { %s25_s28 = sadd.s32 1, %s20893_s28   ;;  %s23938_s18 = sld [smem:[#allocation14_spill]] }
 0xcf3   : > { %p22_p9 = scmp.ge.s32.totalorder %s25_s28, 10   ;;  %s23939_s23 = sld [smem:[#allocation18_spill]] }
 0xcf4   : > { %s23940_s25 = sld [smem:[#allocation15_spill]]  ;;  %s23943_s21 = smov %s20869_s22 }
 0xcf5   : > { %s23941_s30 = sld [smem:[#allocation16_spill]]  ;;  %s23945_s24 = smov %s20885_s26 }
 0xcf6   : > { %s23942_s27 = sld [smem:[#allocation17_spill]] }
 0xcf7   :  { %24 = sbr.rel (!%p22_p9) target bundleno = 12 (0xc), region = 128 }
 0xcf8   : > { %s23944_s22 = smov %s23938_s18 }
 0xcfb   : > { %s23946_s26 = smov %s23941_s30 }
 0xcfc   :  { %14112 = vsyncpa [#allocation5], 1 }
 0xcfd   :  { %14114 = vsyncpa [#allocation5 + $0x1], 1 }
 0xcfe   :  { %14115 = vsyncpa [#allocation7], 1 }
 0xcff   :  { %14117 = vsyncpa [#allocation7 + $0x1], 1 }
 0xd00   :  { %14118 = vsyncpa [#allocation10], 1 }
 0xd01   :  { %14120 = vsyncpa [#allocation10 + $0x1], 1 }

</bundles_post_ra>
